<compile_context>
chip_gen: v7x
topology: tpu7x:2x2x1
jax: 0.10.0
libtpu: 0.0.40
codegen_flags: <defaults>
</compile_context>

<pallas_src>
import math

import jax
import jax.numpy as jnp
from jax.experimental import pallas as pl
from jax.experimental.pallas import tpu as pltpu

LN_EPS = 1e-5          # nn.LayerNorm default
LEAKY_SLOPE = 0.01     # nn.LeakyReLU default
NUM_HEADS = 4
EMBED = 128
HEAD_DIM = EMBED // NUM_HEADS
BF16 = jnp.bfloat16

# Column offsets inside the packed bf16 weight slabs (all 128-aligned).
W128_COL = dict(att_qkv=0, att_o=384, conv1=512, cat_qkv=1024, cat_o=1408,
                cli_qkv=1536, cli_o=1920, cli5=2048)
W128_WIDTH = 2560
W256_COL = dict(cat4=0, catbr2=256)
W256_WIDTH = 640
W512_COL = dict(conv2=0, cli8=128)
W512_WIDTH = 256
W384_COL = dict(cli10=0, cli11=1536, out=1920)
W384_WIDTH = 2048        # out columns padded to 128


def _round_up(x, m):
    return (x + m - 1) // m * m


def _apply_act(y, act):
    if act == "relu":
        return jnp.maximum(y, 0.0)
    if act == "leaky_relu":
        return jnp.where(y >= 0.0, y, LEAKY_SLOPE * y)
    return y


# ---------------------------------------------------------- small-param pack --

def _vec_layout(out_len):
    """Layout of the single (1, total) f32 vector holding biases + LN params."""
    entries = [
        ("b_cont", 128), ("b_att_qkv", 384), ("b_att_o", 128),
        ("b_conv1", 512), ("b_conv2", 128),
        ("b_cate", 128), ("b_cat_qkv", 384), ("b_cat_o", 128),
        ("b_cat4", 256), ("b_catbr2", 384),
        ("b_clin", 128), ("b_cli_qkv", 384), ("b_cli_o", 128),
        ("b_cli5", 512), ("b_cli8", 128), ("b_cli10", 1536),
        ("b_cli11", 384), ("b_cli13", 384), ("b_out", out_len),
        ("ln_input_g", 128), ("ln_input_b", 128),
        ("ln_next_g", 128), ("ln_next_b", 128),
        ("ln_next2_g", 512), ("ln_next2_b", 512),
        ("ln_cat2_g", 128), ("ln_cat2_b", 128),
        ("ln_catbr_g", 256), ("ln_catbr_b", 256),
        ("ln_cli2_g", 128), ("ln_cli2_b", 128),
        ("ln_cli4_g", 128), ("ln_cli4_b", 128),
        ("ln_cli7_g", 512), ("ln_cli7_b", 512),
        ("ln_cli9_g", 384), ("ln_cli9_b", 384),
    ]
    slots, off = {}, 0
    for name, w in entries:
        slots[name] = (off, w)
        off += _round_up(w, 128)        # keep every offset 128-lane aligned
    return slots, off


def pack_params(p, out_len):
    """One-time host-side packing of all parameters into a few fused arrays."""
    vec_slots, vec_total = _vec_layout(out_len)
    bf = lambda a: a.astype(BF16)

    cont_len = p["contInput"][0].shape[0]
    categ_len = p["categInput"][0].shape[0]
    clin_len = p["cliInput"][0].shape[0]

    # Block-diagonal fused input projection: cols 0:128 cont, 128:256 categ,
    # 256:384 clinical -> one matmul computes all three branch inputs.
    w_in = jnp.zeros((cont_len + categ_len + clin_len, 3 * EMBED), jnp.float32)
    w_in = w_in.at[0:cont_len, 0:EMBED].set(p["contInput"][0])
    w_in = w_in.at[cont_len:cont_len + categ_len, EMBED:2 * EMBED].set(p["categInput"][0])
    w_in = w_in.at[cont_len + categ_len:, 2 * EMBED:3 * EMBED].set(p["cliInput"][0])

    w128 = jnp.concatenate(
        [p["attention"][0], p["attention"][2], p["conv1"][0],
         p["cat_3_self_attention"][0], p["cat_3_self_attention"][2],
         p["cli_3_selfAtt"][0], p["cli_3_selfAtt"][2], p["cli_5_conv1"][0]],
        axis=1)
    w256 = jnp.concatenate([p["cat_4_conv1"][0], p["cat_branch_conv2"][0]], axis=1)
    w512 = jnp.concatenate([p["conv2"][0], p["cli_8_conv2"][0]], axis=1)
    w_out_pad = jnp.pad(p["out"][0], ((0, 0), (0, EMBED - out_len)))
    w384 = jnp.concatenate([p["cli_10_conv3l"][0], p["cli_11_conv3r"][0], w_out_pad],
                           axis=1)
    w1536 = p["cli_13_conv4"][0]

    vec_src = {
        "b_cont": p["contInput"][1], "b_att_qkv": p["attention"][1],
        "b_att_o": p["attention"][3], "b_conv1": p["conv1"][1],
        "b_conv2": p["conv2"][1],
        "b_cate": p["categInput"][1], "b_cat_qkv": p["cat_3_self_attention"][1],
        "b_cat_o": p["cat_3_self_attention"][3], "b_cat4": p["cat_4_conv1"][1],
        "b_catbr2": p["cat_branch_conv2"][1],
        "b_clin": p["cliInput"][1], "b_cli_qkv": p["cli_3_selfAtt"][1],
        "b_cli_o": p["cli_3_selfAtt"][3], "b_cli5": p["cli_5_conv1"][1],
        "b_cli8": p["cli_8_conv2"][1], "b_cli10": p["cli_10_conv3l"][1],
        "b_cli11": p["cli_11_conv3r"][1], "b_cli13": p["cli_13_conv4"][1],
        "b_out": p["out"][1],
        "ln_input_g": p["inputNorm"][0], "ln_input_b": p["inputNorm"][1],
        "ln_next_g": p["nextLayerNorm"][0], "ln_next_b": p["nextLayerNorm"][1],
        "ln_next2_g": p["next2LayerNorm"][0], "ln_next2_b": p["next2LayerNorm"][1],
        "ln_cat2_g": p["cat_2_layerNorm"][0], "ln_cat2_b": p["cat_2_layerNorm"][1],
        "ln_catbr_g": p["cat_branch_layerNorm"][0],
        "ln_catbr_b": p["cat_branch_layerNorm"][1],
        "ln_cli2_g": p["cli_2_layerNorm"][0], "ln_cli2_b": p["cli_2_layerNorm"][1],
        "ln_cli4_g": p["cli_4_layerNorm"][0], "ln_cli4_b": p["cli_4_layerNorm"][1],
        "ln_cli7_g": p["cli_7_layerNorm"][0], "ln_cli7_b": p["cli_7_layerNorm"][1],
        "ln_cli9_g": p["cli_9_layerNorm"][0], "ln_cli9_b": p["cli_9_layerNorm"][1],
    }
    vec = jnp.zeros((1, vec_total), jnp.float32)
    for name, src in vec_src.items():
        off, width = vec_slots[name]
        vec = vec.at[:, off:off + width].set(src.reshape(1, width))

    return {"w_in": bf(w_in), "w128": bf(w128), "w256": bf(w256), "w512": bf(w512),
            "w384": bf(w384), "w1536": bf(w1536), "vec": vec}


# --------------------------------------------------------------- mega kernel --

def make_mufasa_forward(out_len):
    vec_slots, _ = _vec_layout(out_len)

    def kernel(x_ref, vec_ref, w_in_ref, w128_ref, w256_ref, w512_ref,
               w384_hbm, w1536_hbm, out_ref, w384_v, w1536_v, sem):
        # Kick off prefetch of the late-use big weights so their HBM->VMEM DMA
        # overlaps the continuous + categorical branch compute.
        cp384 = pltpu.make_async_copy(w384_hbm, w384_v, sem.at[0])
        cp1536 = pltpu.make_async_copy(w1536_hbm, w1536_v, sem.at[1])
        cp384.start()
        cp1536.start()

        def vec(name):
            off, width = vec_slots[name]
            return vec_ref[:, off:off + width]           # (1, width), broadcasts

        def dot_bf16(x, w):
            return jnp.dot(x.astype(BF16), w, preferred_element_type=jnp.float32)

        def linear(x, w_ref, col, width, bias, act=None):
            y = dot_bf16(x, w_ref[:, col:col + width]) + vec(bias)
            return _apply_act(y, act)

        def layernorm(x, name):
            # var = E[x^2] - E[x]^2 : two independent cross-lane reductions.
            m = jnp.mean(x, axis=-1, keepdims=True)
            m2 = jnp.mean(x * x, axis=-1, keepdims=True)
            inv = jax.lax.rsqrt(m2 - m * m + LN_EPS)
            return (x - m) * inv * vec("ln_" + name + "_g") + vec("ln_" + name + "_b")

        def mha(x, qkv_col, o_col, prefix, act=None):
            qkv = dot_bf16(x, w128_ref[:, qkv_col:qkv_col + 3 * EMBED]) + vec(prefix + "_qkv")
            scale = float(HEAD_DIM) ** -0.5
            y = vec(prefix + "_o")                       # start from output bias
            for h in range(NUM_HEADS):                   # static unroll over heads
                lo = h * HEAD_DIM
                qh = qkv[:, lo:lo + HEAD_DIM].astype(BF16)
                kh = qkv[:, EMBED + lo:EMBED + lo + HEAD_DIM].astype(BF16)
                vh = qkv[:, 2 * EMBED + lo:2 * EMBED + lo + HEAD_DIM].astype(BF16)
                # q @ k^T without an explicit transpose (contract dim 1 of both).
                s = jax.lax.dot_general(qh, kh, (((1,), (1,)), ((), ())),
                                        preferred_element_type=jnp.float32) * scale
                # No max-subtraction: MHA input is LayerNorm'd, logits are O(1).
                p = jnp.exp(s)
                p = p * pl.reciprocal(jnp.sum(p, axis=-1, keepdims=True), approx=True)
                ctx = dot_bf16(p, vh)                    # (N, 32) head context
                # Fold the head straight into the output projection: no 32-lane
                # scratch stores, context stays register-resident.
                y = y + dot_bf16(ctx, w128_ref[lo:lo + HEAD_DIM, o_col:o_col + EMBED])
            return _apply_act(y, act)

        # ---- fused input projections (block-diagonal weight, single matmul) --
        proj = dot_bf16(x_ref[...], w_in_ref[...])        # (N, 384)
        x_cont = proj[:, 0:EMBED] + vec("b_cont")
        x_cate = proj[:, EMBED:2 * EMBED] + vec("b_cate")
        x_clin = proj[:, 2 * EMBED:3 * EMBED] + vec("b_clin")

        # ---- continuous branch (dropouts are identity) -----------------------
        sav0 = x_cont
        h = mha(layernorm(x_cont, "input"), W128_COL["att_qkv"], W128_COL["att_o"],
                "b_att", act="leaky_relu")
        add_out = h + sav0
        h = layernorm(add_out, "next")
        h = linear(h, w128_ref, W128_COL["conv1"], 512, "b_conv1", act="relu")
        h = layernorm(h, "next2")
        h = linear(h, w512_ref, W512_COL["conv2"], EMBED, "b_conv2")
        cont_out = h + add_out                            # (N, 128)

        # ---- categorical branch ----------------------------------------------
        attn = mha(layernorm(x_cate, "cat2"), W128_COL["cat_qkv"], W128_COL["cat_o"],
                   "b_cat")
        xb = jnp.concatenate([attn, x_cate], axis=1)      # (N, 256), lane-aligned
        h = linear(xb, w256_ref, W256_COL["cat4"], 256, "b_cat4", act="relu")
        xbran = layernorm(xb, "catbr")
        ret1 = xbran + h                                  # (N, 256)
        ret2 = linear(xbran, w256_ref, W256_COL["catbr2"], 384, "b_catbr2", act="relu")

        # ---- clinical branch ---------------------------------------------------
        attn = mha(layernorm(x_clin, "cli2"), W128_COL["cli_qkv"], W128_COL["cli_o"],
                   "b_cli")
        h = attn + x_clin
        xbc = layernorm(h, "cli4")
        h = linear(xbc, w128_ref, W128_COL["cli5"], 512, "b_cli5", act="relu")
        h = layernorm(h, "cli7")
        h = linear(h, w512_ref, W512_COL["cli8"], EMBED, "b_cli8")
        x_cli = h + xbc                                   # (N, 128)
        xc = jnp.concatenate([x_cli, ret1], axis=1)       # (N, 384)
        xn = layernorm(xc, "cli9")

        # Late-use weights must have landed by now (prefetched at kernel entry).
        cp384.wait()
        cp1536.wait()

        xdl = linear(xn, w384_v, W384_COL["cli10"], 1536, "b_cli10", act="relu")
        xdr = linear(xn, w384_v, W384_COL["cli11"], 384, "b_cli11")
        h = linear(xdl, w1536_v, 0, 384, "b_cli13")
        # res = h + xc + pad(cont_out,(0,256)) + xdr + ret2, with the pad folded
        # into lanes 0:128 of the xc copy -> a single final projection matmul.
        xc_plus = jnp.concatenate([x_cli + cont_out, ret1], axis=1)
        res = h + xdr + ret2 + xc_plus                    # (N, 384)
        out_ref[...] = (dot_bf16(res, w384_v[:, W384_COL["out"]:W384_COL["out"] + out_len])
                        + vec("b_out"))

    @jax.jit
    def forward(packed, cont_in, cate_in, clin_in):
        n = cont_in.shape[0]
        x_all = jnp.concatenate([cont_in, cate_in, clin_in], axis=1)   # (N, 112)
        vspec = pl.BlockSpec(memory_space=pltpu.MemorySpace.VMEM)
        anyspec = pl.BlockSpec(memory_space=pl.ANY)
        return pl.pallas_call(
            kernel,
            out_shape=jax.ShapeDtypeStruct((n, out_len), jnp.float32),
            in_specs=[vspec, vspec, vspec, vspec, vspec, vspec, anyspec, anyspec],
            out_specs=pl.BlockSpec(memory_space=pltpu.MemorySpace.VMEM),
            scratch_shapes=[
                pltpu.VMEM((384, W384_WIDTH), BF16),      # prefetch dst: conv3l/r + out
                pltpu.VMEM((1536, 384), BF16),            # prefetch dst: conv4
                pltpu.SemaphoreType.DMA((2,)),
            ],
            compiler_params=pltpu.CompilerParams(vmem_limit_bytes=24 * 1024 * 1024),
        )(x_all, packed["vec"], packed["w_in"], packed["w128"], packed["w256"],
          packed["w512"], packed["w384"], packed["w1536"])

    return forward


# ---------------------------------------------------------------- references --

def make_reference(mixed):
    """Pure-JAX reference. mixed=True mirrors the kernel's bf16-operand / f32-acc
    precision policy; mixed=False is the full-f32 PyTorch-spec reference."""
    if mixed:
        def dot(x, w):
            return jnp.dot(x.astype(BF16), w.astype(BF16),
                           preferred_element_type=jnp.float32)
    else:
        def dot(x, w):
            return jnp.dot(x, w, precision=jax.lax.Precision.HIGHEST)

    def linear(x, wb, act=None):
        return _apply_act(dot(x, wb[0]) + wb[1], act)

    def layernorm(x, gb):
        g, b = gb
        m = x.mean(-1, keepdims=True)
        v = ((x - m) ** 2).mean(-1, keepdims=True)
        return (x - m) / jnp.sqrt(v + LN_EPS) * g + b

    def mha(x, p4, act=None):
        wqkv, bqkv, wo, bo = p4
        qkv = dot(x, wqkv) + bqkv
        q, k, v = qkv[:, :EMBED], qkv[:, EMBED:2 * EMBED], qkv[:, 2 * EMBED:]
        outs = []
        for h in range(NUM_HEADS):
            sl = slice(h * HEAD_DIM, (h + 1) * HEAD_DIM)
            s = dot(q[:, sl], k[:, sl].T) / math.sqrt(HEAD_DIM)
            pm = jax.nn.softmax(s, axis=-1)
            outs.append(dot(pm, v[:, sl]))
        ctx = jnp.concatenate(outs, axis=1)
        return _apply_act(dot(ctx, wo) + bo, act)

    def forward(p, cont_in, cate_in, clin_in):
        # continuous branch
        x = linear(cont_in, p["contInput"])
        sav0 = x
        x = mha(layernorm(x, p["inputNorm"]), p["attention"], act="leaky_relu")
        add_out = x + sav0
        x = layernorm(add_out, p["nextLayerNorm"])
        x = linear(x, p["conv1"], act="relu")
        x = layernorm(x, p["next2LayerNorm"])
        x = linear(x, p["conv2"])
        cont_out = x + add_out
        # categorical branch
        xa = linear(cate_in, p["categInput"])
        attn = mha(layernorm(xa, p["cat_2_layerNorm"]), p["cat_3_self_attention"])
        xb = jnp.concatenate([attn, xa], axis=1)
        x = linear(xb, p["cat_4_conv1"], act="relu")
        xbran = layernorm(xb, p["cat_branch_layerNorm"])
        ret1 = xbran + x
        ret2 = linear(xbran, p["cat_branch_conv2"], act="relu")
        # clinical branch
        xa = linear(clin_in, p["cliInput"])
        attn = mha(layernorm(xa, p["cli_2_layerNorm"]), p["cli_3_selfAtt"])
        x = attn + xa
        xbc = layernorm(x, p["cli_4_layerNorm"])
        x = linear(xbc, p["cli_5_conv1"], act="relu")
        x = layernorm(x, p["cli_7_layerNorm"])
        x = linear(x, p["cli_8_conv2"])
        x = x + xbc
        xc = jnp.concatenate([x, ret1], axis=1)
        xn = layernorm(xc, p["cli_9_layerNorm"])
        xdl = linear(xn, p["cli_10_conv3l"], act="relu")
        xdr = linear(xn, p["cli_11_conv3r"])
        x = linear(xdl, p["cli_13_conv4"])
        res = x + xc + jnp.pad(cont_out, ((0, 0), (0, 2 * EMBED))) + xdr + ret2
        return linear(res, p["out"])

    return forward


# ------------------------------------------------------------------- params --

def _init_linear(key, din, dout):
    kw, kb = jax.random.split(key)
    bound = 1.0 / math.sqrt(din)
    w = jax.random.uniform(kw, (din, dout), jnp.float32, -bound, bound)
    b = jax.random.uniform(kb, (1, dout), jnp.float32, -bound, bound)
    return (w, b)


def _init_layernorm(dim):
    return (jnp.ones((1, dim), jnp.float32), jnp.zeros((1, dim), jnp.float32))


def _init_mha(key, embed):
    kq, ko = jax.random.split(key)
    wqkv, bqkv = _init_linear(kq, embed, 3 * embed)   # fused in_proj (E, 3E)
    wo, bo = _init_linear(ko, embed, embed)
    return (wqkv, bqkv, wo, bo)


def init_params(key, cont_len, categ_len, clin_len, out_len):
    keys = jax.random.split(key, 16)
    p = {}
    p["contInput"] = _init_linear(keys[0], cont_len, 128)
    p["inputNorm"] = _init_layernorm(128)
    p["attention"] = _init_mha(keys[1], 128)
    p["nextLayerNorm"] = _init_layernorm(128)
    p["conv1"] = _init_linear(keys[2], 128, 512)
    p["next2LayerNorm"] = _init_layernorm(512)
    p["conv2"] = _init_linear(keys[3], 512, 128)

    p["categInput"] = _init_linear(keys[4], categ_len, 128)
    p["cat_2_layerNorm"] = _init_layernorm(128)
    p["cat_3_self_attention"] = _init_mha(keys[5], 128)
    p["cat_4_conv1"] = _init_linear(keys[6], 256, 256)
    p["cat_branch_layerNorm"] = _init_layernorm(256)
    p["cat_branch_conv2"] = _init_linear(keys[7], 256, 384)

    p["cliInput"] = _init_linear(keys[8], clin_len, 128)
    p["cli_2_layerNorm"] = _init_layernorm(128)
    p["cli_3_selfAtt"] = _init_mha(keys[9], 128)
    p["cli_4_layerNorm"] = _init_layernorm(128)
    p["cli_5_conv1"] = _init_linear(keys[10], 128, 512)
    p["cli_7_layerNorm"] = _init_layernorm(512)
    p["cli_8_conv2"] = _init_linear(keys[11], 512, 128)
    p["cli_9_layerNorm"] = _init_layernorm(384)
    p["cli_10_conv3l"] = _init_linear(keys[12], 384, 1536)
    p["cli_11_conv3r"] = _init_linear(keys[13], 384, 384)
    p["cli_13_conv4"] = _init_linear(keys[14], 1536, 384)
    p["out"] = _init_linear(keys[15], 384, out_len)
    return p


# --------------------------------------------------------------------- main --

if __name__ == "__main__":
    N = 8
    CONT_LEN, CATEG_LEN, CLIN_LEN, OUT_LEN = 32, 16, 64, 16

    key = jax.random.PRNGKey(0)
    kp, k1, k2, k3 = jax.random.split(key, 4)
    params = init_params(kp, CONT_LEN, CATEG_LEN, CLIN_LEN, OUT_LEN)

    cont_in = jax.random.normal(k1, (N, CONT_LEN), jnp.float32)
    cate_in = jax.random.normal(k2, (N, CATEG_LEN), jnp.float32)
    clin_in = jax.random.normal(k3, (N, CLIN_LEN), jnp.float32)

    packed = pack_params(params, OUT_LEN)         # one-time host-side packing
    forward = make_mufasa_forward(OUT_LEN)

    out = jax.block_until_ready(forward(packed, cont_in, cate_in, clin_in))

    # Tight check vs. a reference with the SAME bf16-operand / f32-acc policy,
    # and a loose fidelity check vs. the full-f32 PyTorch-spec reference.
    ref_mixed = make_reference(mixed=True)(params, cont_in, cate_in, clin_in)
    ref_f32 = make_reference(mixed=False)(params, cont_in, cate_in, clin_in)

    assert out.shape == (N, OUT_LEN)
    assert bool(jnp.all(jnp.isfinite(out)))
    assert bool(jnp.allclose(out, ref_mixed, rtol=2e-2, atol=2e-2)), (
        float(jnp.max(jnp.abs(out - ref_mixed))))
    assert bool(jnp.allclose(out, ref_f32, rtol=1e-1, atol=1e-1)), (
        float(jnp.max(jnp.abs(out - ref_f32))))

    print("KERNEL_OK")
</pallas_src>

<mosaic_0001>
module attributes {stable_mosaic.version = 11 : i64} {
  func.func @kernel(%arg0: memref<8x112xf32, #tpu.memory_space<vmem>>, %arg1: memref<1x10880xf32, #tpu.memory_space<vmem>>, %arg2: memref<112x384xbf16, #tpu.memory_space<vmem>>, %arg3: memref<128x2560xbf16, #tpu.memory_space<vmem>>, %arg4: memref<256x640xbf16, #tpu.memory_space<vmem>>, %arg5: memref<512x256xbf16, #tpu.memory_space<vmem>>, %arg6: memref<384x2048xbf16, #tpu.memory_space<any>>, %arg7: memref<1536x384xbf16, #tpu.memory_space<any>>, %arg8: memref<8x16xf32, #tpu.memory_space<vmem>>, %arg9: memref<384x2048xbf16, #tpu.memory_space<vmem>>, %arg10: memref<1536x384xbf16, #tpu.memory_space<vmem>>, %arg11: memref<2x!tpu.dma_semaphore, #tpu.memory_space<semaphore_mem>>) attributes {dimension_semantics = [], scalar_prefetch = 0 : i64, scratch_operands = 3 : i64, tpu.core_type = #tpu.core_type<tc>} {
    %c0_i32 = arith.constant 0 : i32
    %0 = tpu.memref_slice %arg11[%c0_i32] : memref<2x!tpu.dma_semaphore, #tpu.memory_space<semaphore_mem>> -> memref<1x!tpu.dma_semaphore, #tpu.memory_space<semaphore_mem>>
    %1 = tpu.memref_squeeze %0 : memref<1x!tpu.dma_semaphore, #tpu.memory_space<semaphore_mem>> -> memref<!tpu.dma_semaphore, #tpu.memory_space<semaphore_mem>>
    tpu.enqueue_dma source(%arg6 : memref<384x2048xbf16, #tpu.memory_space<any>>) target(%arg9 : memref<384x2048xbf16, #tpu.memory_space<vmem>>) target_semaphore(%1 : memref<!tpu.dma_semaphore, #tpu.memory_space<semaphore_mem>>)
    %c1_i32 = arith.constant 1 : i32
    %2 = tpu.memref_slice %arg11[%c1_i32] : memref<2x!tpu.dma_semaphore, #tpu.memory_space<semaphore_mem>> -> memref<1x!tpu.dma_semaphore, #tpu.memory_space<semaphore_mem>>
    %3 = tpu.memref_squeeze %2 : memref<1x!tpu.dma_semaphore, #tpu.memory_space<semaphore_mem>> -> memref<!tpu.dma_semaphore, #tpu.memory_space<semaphore_mem>>
    tpu.enqueue_dma source(%arg7 : memref<1536x384xbf16, #tpu.memory_space<any>>) target(%arg10 : memref<1536x384xbf16, #tpu.memory_space<vmem>>) target_semaphore(%3 : memref<!tpu.dma_semaphore, #tpu.memory_space<semaphore_mem>>)
    %c0 = arith.constant 0 : index
    %c0_0 = arith.constant 0 : index
    %4 = vector.load %arg0[%c0, %c0_0] : memref<8x112xf32, #tpu.memory_space<vmem>>, vector<8x112xf32>
    %c0_1 = arith.constant 0 : index
    %c0_2 = arith.constant 0 : index
    %5 = vector.load %arg2[%c0_1, %c0_2] : memref<112x384xbf16, #tpu.memory_space<vmem>>, vector<112x384xbf16>
    %6 = arith.truncf %4 : vector<8x112xf32> to vector<8x112xbf16>
    %cst = arith.constant dense<0.000000e+00> : vector<8x384xf32>
    %7 = tpu.matmul %6, %5, %cst {dimension_numbers = #tpu.dot_dimension_numbers<[1], [0], [0], [1], [0, 0, 1, 1], [], []>} : vector<8x112xbf16>, vector<112x384xbf16>, vector<8x384xf32> -> vector<8x384xf32>
    %8 = vector.extract_strided_slice %7 {offsets = [0, 0], sizes = [8, 128], strides = [1, 1]} : vector<8x384xf32> to vector<8x128xf32>
    %c0_3 = arith.constant 0 : index
    %c0_4 = arith.constant 0 : index
    %9 = vector.load %arg1[%c0_3, %c0_4] : memref<1x10880xf32, #tpu.memory_space<vmem>>, vector<1x128xf32>
    %10 = vector.broadcast %9 : vector<1x128xf32> to vector<8x128xf32>
    %11 = arith.addf %8, %10 : vector<8x128xf32>
    %12 = vector.extract_strided_slice %7 {offsets = [0, 128], sizes = [8, 128], strides = [1, 1]} : vector<8x384xf32> to vector<8x128xf32>
    %c0_5 = arith.constant 0 : index
    %c1280 = arith.constant 1280 : index
    %13 = vector.load %arg1[%c0_5, %c1280] : memref<1x10880xf32, #tpu.memory_space<vmem>>, vector<1x128xf32>
    %14 = vector.broadcast %13 : vector<1x128xf32> to vector<8x128xf32>
    %15 = arith.addf %12, %14 : vector<8x128xf32>
    %16 = vector.extract_strided_slice %7 {offsets = [0, 256], sizes = [8, 128], strides = [1, 1]} : vector<8x384xf32> to vector<8x128xf32>
    %c0_6 = arith.constant 0 : index
    %c2560 = arith.constant 2560 : index
    %17 = vector.load %arg1[%c0_6, %c2560] : memref<1x10880xf32, #tpu.memory_space<vmem>>, vector<1x128xf32>
    %18 = vector.broadcast %17 : vector<1x128xf32> to vector<8x128xf32>
    %19 = arith.addf %16, %18 : vector<8x128xf32>
    %cst_7 = arith.constant dense<0.000000e+00> : vector<8xf32>
    %20 = vector.multi_reduction <add>, %11, %cst_7 [1] : vector<8x128xf32> to vector<8xf32>
    %21 = vector.shape_cast %20 : vector<8xf32> to vector<8x1xf32>
    %cst_8 = arith.constant 1.280000e+02 : f32
    %22 = vector.broadcast %cst_8 : f32 to vector<8x1xf32>
    %23 = arith.divf %21, %22 : vector<8x1xf32>
    %24 = arith.mulf %11, %11 : vector<8x128xf32>
    %cst_9 = arith.constant dense<0.000000e+00> : vector<8xf32>
    %25 = vector.multi_reduction <add>, %24, %cst_9 [1] : vector<8x128xf32> to vector<8xf32>
    %26 = vector.shape_cast %25 : vector<8xf32> to vector<8x1xf32>
    %cst_10 = arith.constant 1.280000e+02 : f32
    %27 = vector.broadcast %cst_10 : f32 to vector<8x1xf32>
    %28 = arith.divf %26, %27 : vector<8x1xf32>
    %29 = arith.mulf %23, %23 : vector<8x1xf32>
    %30 = arith.subf %28, %29 : vector<8x1xf32>
    %cst_11 = arith.constant 9.99999974E-6 : f32
    %31 = vector.broadcast %cst_11 : f32 to vector<8x1xf32>
    %32 = arith.addf %30, %31 : vector<8x1xf32>
    %33 = math.rsqrt %32 : vector<8x1xf32>
    %34 = vector.broadcast %23 : vector<8x1xf32> to vector<8x128xf32>
    %35 = arith.subf %11, %34 : vector<8x128xf32>
    %36 = vector.broadcast %33 : vector<8x1xf32> to vector<8x128xf32>
    %37 = arith.mulf %35, %36 : vector<8x128xf32>
    %c0_12 = arith.constant 0 : index
    %c6272 = arith.constant 6272 : index
    %38 = vector.load %arg1[%c0_12, %c6272] : memref<1x10880xf32, #tpu.memory_space<vmem>>, vector<1x128xf32>
    %39 = vector.broadcast %38 : vector<1x128xf32> to vector<8x128xf32>
    %40 = arith.mulf %37, %39 : vector<8x128xf32>
    %c0_13 = arith.constant 0 : index
    %c6400 = arith.constant 6400 : index
    %41 = vector.load %arg1[%c0_13, %c6400] : memref<1x10880xf32, #tpu.memory_space<vmem>>, vector<1x128xf32>
    %42 = vector.broadcast %41 : vector<1x128xf32> to vector<8x128xf32>
    %43 = arith.addf %40, %42 : vector<8x128xf32>
    %c0_14 = arith.constant 0 : index
    %c0_15 = arith.constant 0 : index
    %44 = vector.load %arg3[%c0_14, %c0_15] : memref<128x2560xbf16, #tpu.memory_space<vmem>>, vector<128x384xbf16>
    %45 = arith.truncf %43 : vector<8x128xf32> to vector<8x128xbf16>
    %cst_16 = arith.constant dense<0.000000e+00> : vector<8x384xf32>
    %46 = tpu.matmul %45, %44, %cst_16 {dimension_numbers = #tpu.dot_dimension_numbers<[1], [0], [0], [1], [0, 0, 1, 1], [], []>} : vector<8x128xbf16>, vector<128x384xbf16>, vector<8x384xf32> -> vector<8x384xf32>
    %c0_17 = arith.constant 0 : index
    %c128 = arith.constant 128 : index
    %47 = vector.load %arg1[%c0_17, %c128] : memref<1x10880xf32, #tpu.memory_space<vmem>>, vector<1x384xf32>
    %48 = vector.broadcast %47 : vector<1x384xf32> to vector<8x384xf32>
    %49 = arith.addf %46, %48 : vector<8x384xf32>
    %c0_18 = arith.constant 0 : index
    %c512 = arith.constant 512 : index
    %50 = vector.load %arg1[%c0_18, %c512] : memref<1x10880xf32, #tpu.memory_space<vmem>>, vector<1x128xf32>
    %51 = vector.extract_strided_slice %49 {offsets = [0, 0], sizes = [8, 32], strides = [1, 1]} : vector<8x384xf32> to vector<8x32xf32>
    %52 = arith.truncf %51 : vector<8x32xf32> to vector<8x32xbf16>
    %53 = vector.extract_strided_slice %49 {offsets = [0, 128], sizes = [8, 32], strides = [1, 1]} : vector<8x384xf32> to vector<8x32xf32>
    %54 = arith.truncf %53 : vector<8x32xf32> to vector<8x32xbf16>
    %55 = vector.extract_strided_slice %49 {offsets = [0, 256], sizes = [8, 32], strides = [1, 1]} : vector<8x384xf32> to vector<8x32xf32>
    %56 = arith.truncf %55 : vector<8x32xf32> to vector<8x32xbf16>
    %cst_19 = arith.constant dense<0.000000e+00> : vector<8x8xf32>
    %57 = tpu.matmul %52, %54, %cst_19 {dimension_numbers = #tpu.dot_dimension_numbers<[1], [1], [0], [0], [0, 0, 1, 0], [], []>} : vector<8x32xbf16>, vector<8x32xbf16>, vector<8x8xf32> -> vector<8x8xf32>
    %cst_20 = arith.constant 0.176776692 : f32
    %58 = vector.broadcast %cst_20 : f32 to vector<8x8xf32>
    %59 = arith.mulf %57, %58 : vector<8x8xf32>
    %60 = math.exp %59 : vector<8x8xf32>
    %cst_21 = arith.constant dense<0.000000e+00> : vector<8xf32>
    %61 = vector.multi_reduction <add>, %60, %cst_21 [1] : vector<8x8xf32> to vector<8xf32>
    %62 = vector.shape_cast %61 : vector<8xf32> to vector<8x1xf32>
    %63 = tpu.reciprocal %62 {approx = true} : vector<8x1xf32> -> vector<8x1xf32>
    %64 = vector.broadcast %63 : vector<8x1xf32> to vector<8x8xf32>
    %65 = arith.mulf %60, %64 : vector<8x8xf32>
    %66 = arith.truncf %65 : vector<8x8xf32> to vector<8x8xbf16>
    %cst_22 = arith.constant dense<0.000000e+00> : vector<8x32xf32>
    %67 = tpu.matmul %66, %56, %cst_22 {dimension_numbers = #tpu.dot_dimension_numbers<[1], [0], [0], [1], [0, 0, 1, 1], [], []>} : vector<8x8xbf16>, vector<8x32xbf16>, vector<8x32xf32> -> vector<8x32xf32>
    %c0_23 = arith.constant 0 : index
    %c384 = arith.constant 384 : index
    %68 = vector.load %arg3[%c0_23, %c384] : memref<128x2560xbf16, #tpu.memory_space<vmem>>, vector<32x128xbf16>
    %69 = arith.truncf %67 : vector<8x32xf32> to vector<8x32xbf16>
    %cst_24 = arith.constant dense<0.000000e+00> : vector<8x128xf32>
    %70 = tpu.matmul %69, %68, %cst_24 {dimension_numbers = #tpu.dot_dimension_numbers<[1], [0], [0], [1], [0, 0, 1, 1], [], []>} : vector<8x32xbf16>, vector<32x128xbf16>, vector<8x128xf32> -> vector<8x128xf32>
    %71 = vector.broadcast %50 : vector<1x128xf32> to vector<8x128xf32>
    %72 = arith.addf %71, %70 : vector<8x128xf32>
    %73 = vector.extract_strided_slice %49 {offsets = [0, 32], sizes = [8, 32], strides = [1, 1]} : vector<8x384xf32> to vector<8x32xf32>
    %74 = arith.truncf %73 : vector<8x32xf32> to vector<8x32xbf16>
    %75 = vector.extract_strided_slice %49 {offsets = [0, 160], sizes = [8, 32], strides = [1, 1]} : vector<8x384xf32> to vector<8x32xf32>
    %76 = arith.truncf %75 : vector<8x32xf32> to vector<8x32xbf16>
    %77 = vector.extract_strided_slice %49 {offsets = [0, 288], sizes = [8, 32], strides = [1, 1]} : vector<8x384xf32> to vector<8x32xf32>
    %78 = arith.truncf %77 : vector<8x32xf32> to vector<8x32xbf16>
    %cst_25 = arith.constant dense<0.000000e+00> : vector<8x8xf32>
    %79 = tpu.matmul %74, %76, %cst_25 {dimension_numbers = #tpu.dot_dimension_numbers<[1], [1], [0], [0], [0, 0, 1, 0], [], []>} : vector<8x32xbf16>, vector<8x32xbf16>, vector<8x8xf32> -> vector<8x8xf32>
    %cst_26 = arith.constant 0.176776692 : f32
    %80 = vector.broadcast %cst_26 : f32 to vector<8x8xf32>
    %81 = arith.mulf %79, %80 : vector<8x8xf32>
    %82 = math.exp %81 : vector<8x8xf32>
    %cst_27 = arith.constant dense<0.000000e+00> : vector<8xf32>
    %83 = vector.multi_reduction <add>, %82, %cst_27 [1] : vector<8x8xf32> to vector<8xf32>
    %84 = vector.shape_cast %83 : vector<8xf32> to vector<8x1xf32>
    %85 = tpu.reciprocal %84 {approx = true} : vector<8x1xf32> -> vector<8x1xf32>
    %86 = vector.broadcast %85 : vector<8x1xf32> to vector<8x8xf32>
    %87 = arith.mulf %82, %86 : vector<8x8xf32>
    %88 = arith.truncf %87 : vector<8x8xf32> to vector<8x8xbf16>
    %cst_28 = arith.constant dense<0.000000e+00> : vector<8x32xf32>
    %89 = tpu.matmul %88, %78, %cst_28 {dimension_numbers = #tpu.dot_dimension_numbers<[1], [0], [0], [1], [0, 0, 1, 1], [], []>} : vector<8x8xbf16>, vector<8x32xbf16>, vector<8x32xf32> -> vector<8x32xf32>
    %c32 = arith.constant 32 : index
    %c384_29 = arith.constant 384 : index
    %90 = vector.load %arg3[%c32, %c384_29] : memref<128x2560xbf16, #tpu.memory_space<vmem>>, vector<32x128xbf16>
    %91 = arith.truncf %89 : vector<8x32xf32> to vector<8x32xbf16>
    %cst_30 = arith.constant dense<0.000000e+00> : vector<8x128xf32>
    %92 = tpu.matmul %91, %90, %cst_30 {dimension_numbers = #tpu.dot_dimension_numbers<[1], [0], [0], [1], [0, 0, 1, 1], [], []>} : vector<8x32xbf16>, vector<32x128xbf16>, vector<8x128xf32> -> vector<8x128xf32>
    %93 = arith.addf %72, %92 : vector<8x128xf32>
    %94 = vector.extract_strided_slice %49 {offsets = [0, 64], sizes = [8, 32], strides = [1, 1]} : vector<8x384xf32> to vector<8x32xf32>
    %95 = arith.truncf %94 : vector<8x32xf32> to vector<8x32xbf16>
    %96 = vector.extract_strided_slice %49 {offsets = [0, 192], sizes = [8, 32], strides = [1, 1]} : vector<8x384xf32> to vector<8x32xf32>
    %97 = arith.truncf %96 : vector<8x32xf32> to vector<8x32xbf16>
    %98 = vector.extract_strided_slice %49 {offsets = [0, 320], sizes = [8, 32], strides = [1, 1]} : vector<8x384xf32> to vector<8x32xf32>
    %99 = arith.truncf %98 : vector<8x32xf32> to vector<8x32xbf16>
    %cst_31 = arith.constant dense<0.000000e+00> : vector<8x8xf32>
    %100 = tpu.matmul %95, %97, %cst_31 {dimension_numbers = #tpu.dot_dimension_numbers<[1], [1], [0], [0], [0, 0, 1, 0], [], []>} : vector<8x32xbf16>, vector<8x32xbf16>, vector<8x8xf32> -> vector<8x8xf32>
    %cst_32 = arith.constant 0.176776692 : f32
    %101 = vector.broadcast %cst_32 : f32 to vector<8x8xf32>
    %102 = arith.mulf %100, %101 : vector<8x8xf32>
    %103 = math.exp %102 : vector<8x8xf32>
    %cst_33 = arith.constant dense<0.000000e+00> : vector<8xf32>
    %104 = vector.multi_reduction <add>, %103, %cst_33 [1] : vector<8x8xf32> to vector<8xf32>
    %105 = vector.shape_cast %104 : vector<8xf32> to vector<8x1xf32>
    %106 = tpu.reciprocal %105 {approx = true} : vector<8x1xf32> -> vector<8x1xf32>
    %107 = vector.broadcast %106 : vector<8x1xf32> to vector<8x8xf32>
    %108 = arith.mulf %103, %107 : vector<8x8xf32>
    %109 = arith.truncf %108 : vector<8x8xf32> to vector<8x8xbf16>
    %cst_34 = arith.constant dense<0.000000e+00> : vector<8x32xf32>
    %110 = tpu.matmul %109, %99, %cst_34 {dimension_numbers = #tpu.dot_dimension_numbers<[1], [0], [0], [1], [0, 0, 1, 1], [], []>} : vector<8x8xbf16>, vector<8x32xbf16>, vector<8x32xf32> -> vector<8x32xf32>
    %c64 = arith.constant 64 : index
    %c384_35 = arith.constant 384 : index
    %111 = vector.load %arg3[%c64, %c384_35] : memref<128x2560xbf16, #tpu.memory_space<vmem>>, vector<32x128xbf16>
    %112 = arith.truncf %110 : vector<8x32xf32> to vector<8x32xbf16>
    %cst_36 = arith.constant dense<0.000000e+00> : vector<8x128xf32>
    %113 = tpu.matmul %112, %111, %cst_36 {dimension_numbers = #tpu.dot_dimension_numbers<[1], [0], [0], [1], [0, 0, 1, 1], [], []>} : vector<8x32xbf16>, vector<32x128xbf16>, vector<8x128xf32> -> vector<8x128xf32>
    %114 = arith.addf %93, %113 : vector<8x128xf32>
    %115 = vector.extract_strided_slice %49 {offsets = [0, 96], sizes = [8, 32], strides = [1, 1]} : vector<8x384xf32> to vector<8x32xf32>
    %116 = arith.truncf %115 : vector<8x32xf32> to vector<8x32xbf16>
    %117 = vector.extract_strided_slice %49 {offsets = [0, 224], sizes = [8, 32], strides = [1, 1]} : vector<8x384xf32> to vector<8x32xf32>
    %118 = arith.truncf %117 : vector<8x32xf32> to vector<8x32xbf16>
    %119 = vector.extract_strided_slice %49 {offsets = [0, 352], sizes = [8, 32], strides = [1, 1]} : vector<8x384xf32> to vector<8x32xf32>
    %120 = arith.truncf %119 : vector<8x32xf32> to vector<8x32xbf16>
    %cst_37 = arith.constant dense<0.000000e+00> : vector<8x8xf32>
    %121 = tpu.matmul %116, %118, %cst_37 {dimension_numbers = #tpu.dot_dimension_numbers<[1], [1], [0], [0], [0, 0, 1, 0], [], []>} : vector<8x32xbf16>, vector<8x32xbf16>, vector<8x8xf32> -> vector<8x8xf32>
    %cst_38 = arith.constant 0.176776692 : f32
    %122 = vector.broadcast %cst_38 : f32 to vector<8x8xf32>
    %123 = arith.mulf %121, %122 : vector<8x8xf32>
    %124 = math.exp %123 : vector<8x8xf32>
    %cst_39 = arith.constant dense<0.000000e+00> : vector<8xf32>
    %125 = vector.multi_reduction <add>, %124, %cst_39 [1] : vector<8x8xf32> to vector<8xf32>
    %126 = vector.shape_cast %125 : vector<8xf32> to vector<8x1xf32>
    %127 = tpu.reciprocal %126 {approx = true} : vector<8x1xf32> -> vector<8x1xf32>
    %128 = vector.broadcast %127 : vector<8x1xf32> to vector<8x8xf32>
    %129 = arith.mulf %124, %128 : vector<8x8xf32>
    %130 = arith.truncf %129 : vector<8x8xf32> to vector<8x8xbf16>
    %cst_40 = arith.constant dense<0.000000e+00> : vector<8x32xf32>
    %131 = tpu.matmul %130, %120, %cst_40 {dimension_numbers = #tpu.dot_dimension_numbers<[1], [0], [0], [1], [0, 0, 1, 1], [], []>} : vector<8x8xbf16>, vector<8x32xbf16>, vector<8x32xf32> -> vector<8x32xf32>
    %c96 = arith.constant 96 : index
    %c384_41 = arith.constant 384 : index
    %132 = vector.load %arg3[%c96, %c384_41] : memref<128x2560xbf16, #tpu.memory_space<vmem>>, vector<32x128xbf16>
    %133 = arith.truncf %131 : vector<8x32xf32> to vector<8x32xbf16>
    %cst_42 = arith.constant dense<0.000000e+00> : vector<8x128xf32>
    %134 = tpu.matmul %133, %132, %cst_42 {dimension_numbers = #tpu.dot_dimension_numbers<[1], [0], [0], [1], [0, 0, 1, 1], [], []>} : vector<8x32xbf16>, vector<32x128xbf16>, vector<8x128xf32> -> vector<8x128xf32>
    %135 = arith.addf %114, %134 : vector<8x128xf32>
    %cst_43 = arith.constant 0.000000e+00 : f32
    %136 = vector.broadcast %cst_43 : f32 to vector<8x128xf32>
    %137 = arith.cmpf oge, %135, %136 : vector<8x128xf32>
    %cst_44 = arith.constant 0.00999999977 : f32
    %138 = vector.broadcast %cst_44 : f32 to vector<8x128xf32>
    %139 = arith.mulf %138, %135 : vector<8x128xf32>
    %140 = arith.select %137, %135, %139 : vector<8x128xi1>, vector<8x128xf32>
    %141 = arith.addf %140, %11 : vector<8x128xf32>
    %cst_45 = arith.constant dense<0.000000e+00> : vector<8xf32>
    %142 = vector.multi_reduction <add>, %141, %cst_45 [1] : vector<8x128xf32> to vector<8xf32>
    %143 = vector.shape_cast %142 : vector<8xf32> to vector<8x1xf32>
    %cst_46 = arith.constant 1.280000e+02 : f32
    %144 = vector.broadcast %cst_46 : f32 to vector<8x1xf32>
    %145 = arith.divf %143, %144 : vector<8x1xf32>
    %146 = arith.mulf %141, %141 : vector<8x128xf32>
    %cst_47 = arith.constant dense<0.000000e+00> : vector<8xf32>
    %147 = vector.multi_reduction <add>, %146, %cst_47 [1] : vector<8x128xf32> to vector<8xf32>
    %148 = vector.shape_cast %147 : vector<8xf32> to vector<8x1xf32>
    %cst_48 = arith.constant 1.280000e+02 : f32
    %149 = vector.broadcast %cst_48 : f32 to vector<8x1xf32>
    %150 = arith.divf %148, %149 : vector<8x1xf32>
    %151 = arith.mulf %145, %145 : vector<8x1xf32>
    %152 = arith.subf %150, %151 : vector<8x1xf32>
    %cst_49 = arith.constant 9.99999974E-6 : f32
    %153 = vector.broadcast %cst_49 : f32 to vector<8x1xf32>
    %154 = arith.addf %152, %153 : vector<8x1xf32>
    %155 = math.rsqrt %154 : vector<8x1xf32>
    %156 = vector.broadcast %145 : vector<8x1xf32> to vector<8x128xf32>
    %157 = arith.subf %141, %156 : vector<8x128xf32>
    %158 = vector.broadcast %155 : vector<8x1xf32> to vector<8x128xf32>
    %159 = arith.mulf %157, %158 : vector<8x128xf32>
    %c0_50 = arith.constant 0 : index
    %c6528 = arith.constant 6528 : index
    %160 = vector.load %arg1[%c0_50, %c6528] : memref<1x10880xf32, #tpu.memory_space<vmem>>, vector<1x128xf32>
    %161 = vector.broadcast %160 : vector<1x128xf32> to vector<8x128xf32>
    %162 = arith.mulf %159, %161 : vector<8x128xf32>
    %c0_51 = arith.constant 0 : index
    %c6656 = arith.constant 6656 : index
    %163 = vector.load %arg1[%c0_51, %c6656] : memref<1x10880xf32, #tpu.memory_space<vmem>>, vector<1x128xf32>
    %164 = vector.broadcast %163 : vector<1x128xf32> to vector<8x128xf32>
    %165 = arith.addf %162, %164 : vector<8x128xf32>
    %c0_52 = arith.constant 0 : index
    %c512_53 = arith.constant 512 : index
    %166 = vector.load %arg3[%c0_52, %c512_53] : memref<128x2560xbf16, #tpu.memory_space<vmem>>, vector<128x512xbf16>
    %167 = arith.truncf %165 : vector<8x128xf32> to vector<8x128xbf16>
    %cst_54 = arith.constant dense<0.000000e+00> : vector<8x512xf32>
    %168 = tpu.matmul %167, %166, %cst_54 {dimension_numbers = #tpu.dot_dimension_numbers<[1], [0], [0], [1], [0, 0, 1, 1], [], []>} : vector<8x128xbf16>, vector<128x512xbf16>, vector<8x512xf32> -> vector<8x512xf32>
    %c0_55 = arith.constant 0 : index
    %c640 = arith.constant 640 : index
    %169 = vector.load %arg1[%c0_55, %c640] : memref<1x10880xf32, #tpu.memory_space<vmem>>, vector<1x512xf32>
    %170 = vector.broadcast %169 : vector<1x512xf32> to vector<8x512xf32>
    %171 = arith.addf %168, %170 : vector<8x512xf32>
    %cst_56 = arith.constant 0.000000e+00 : f32
    %172 = vector.broadcast %cst_56 : f32 to vector<8x512xf32>
    %173 = arith.maximumf %171, %172 : vector<8x512xf32>
    %cst_57 = arith.constant dense<0.000000e+00> : vector<8xf32>
    %174 = vector.multi_reduction <add>, %173, %cst_57 [1] : vector<8x512xf32> to vector<8xf32>
    %175 = vector.shape_cast %174 : vector<8xf32> to vector<8x1xf32>
    %cst_58 = arith.constant 5.120000e+02 : f32
    %176 = vector.broadcast %cst_58 : f32 to vector<8x1xf32>
    %177 = arith.divf %175, %176 : vector<8x1xf32>
    %178 = arith.mulf %173, %173 : vector<8x512xf32>
    %cst_59 = arith.constant dense<0.000000e+00> : vector<8xf32>
    %179 = vector.multi_reduction <add>, %178, %cst_59 [1] : vector<8x512xf32> to vector<8xf32>
    %180 = vector.shape_cast %179 : vector<8xf32> to vector<8x1xf32>
    %cst_60 = arith.constant 5.120000e+02 : f32
    %181 = vector.broadcast %cst_60 : f32 to vector<8x1xf32>
    %182 = arith.divf %180, %181 : vector<8x1xf32>
    %183 = arith.mulf %177, %177 : vector<8x1xf32>
    %184 = arith.subf %182, %183 : vector<8x1xf32>
    %cst_61 = arith.constant 9.99999974E-6 : f32
    %185 = vector.broadcast %cst_61 : f32 to vector<8x1xf32>
    %186 = arith.addf %184, %185 : vector<8x1xf32>
    %187 = math.rsqrt %186 : vector<8x1xf32>
    %188 = vector.broadcast %177 : vector<8x1xf32> to vector<8x512xf32>
    %189 = arith.subf %173, %188 : vector<8x512xf32>
    %190 = vector.broadcast %187 : vector<8x1xf32> to vector<8x512xf32>
    %191 = arith.mulf %189, %190 : vector<8x512xf32>
    %c0_62 = arith.constant 0 : index
    %c6784 = arith.constant 6784 : index
    %192 = vector.load %arg1[%c0_62, %c6784] : memref<1x10880xf32, #tpu.memory_space<vmem>>, vector<1x512xf32>
    %193 = vector.broadcast %192 : vector<1x512xf32> to vector<8x512xf32>
    %194 = arith.mulf %191, %193 : vector<8x512xf32>
    %c0_63 = arith.constant 0 : index
    %c7296 = arith.constant 7296 : index
    %195 = vector.load %arg1[%c0_63, %c7296] : memref<1x10880xf32, #tpu.memory_space<vmem>>, vector<1x512xf32>
    %196 = vector.broadcast %195 : vector<1x512xf32> to vector<8x512xf32>
    %197 = arith.addf %194, %196 : vector<8x512xf32>
    %c0_64 = arith.constant 0 : index
    %c0_65 = arith.constant 0 : index
    %198 = vector.load %arg5[%c0_64, %c0_65] : memref<512x256xbf16, #tpu.memory_space<vmem>>, vector<512x128xbf16>
    %199 = arith.truncf %197 : vector<8x512xf32> to vector<8x512xbf16>
    %cst_66 = arith.constant dense<0.000000e+00> : vector<8x128xf32>
    %200 = tpu.matmul %199, %198, %cst_66 {dimension_numbers = #tpu.dot_dimension_numbers<[1], [0], [0], [1], [0, 0, 1, 1], [], []>} : vector<8x512xbf16>, vector<512x128xbf16>, vector<8x128xf32> -> vector<8x128xf32>
    %c0_67 = arith.constant 0 : index
    %c1152 = arith.constant 1152 : index
    %201 = vector.load %arg1[%c0_67, %c1152] : memref<1x10880xf32, #tpu.memory_space<vmem>>, vector<1x128xf32>
    %202 = vector.broadcast %201 : vector<1x128xf32> to vector<8x128xf32>
    %203 = arith.addf %200, %202 : vector<8x128xf32>
    %204 = arith.addf %203, %141 : vector<8x128xf32>
    %cst_68 = arith.constant dense<0.000000e+00> : vector<8xf32>
    %205 = vector.multi_reduction <add>, %15, %cst_68 [1] : vector<8x128xf32> to vector<8xf32>
    %206 = vector.shape_cast %205 : vector<8xf32> to vector<8x1xf32>
    %cst_69 = arith.constant 1.280000e+02 : f32
    %207 = vector.broadcast %cst_69 : f32 to vector<8x1xf32>
    %208 = arith.divf %206, %207 : vector<8x1xf32>
    %209 = arith.mulf %15, %15 : vector<8x128xf32>
    %cst_70 = arith.constant dense<0.000000e+00> : vector<8xf32>
    %210 = vector.multi_reduction <add>, %209, %cst_70 [1] : vector<8x128xf32> to vector<8xf32>
    %211 = vector.shape_cast %210 : vector<8xf32> to vector<8x1xf32>
    %cst_71 = arith.constant 1.280000e+02 : f32
    %212 = vector.broadcast %cst_71 : f32 to vector<8x1xf32>
    %213 = arith.divf %211, %212 : vector<8x1xf32>
    %214 = arith.mulf %208, %208 : vector<8x1xf32>
    %215 = arith.subf %213, %214 : vector<8x1xf32>
    %cst_72 = arith.constant 9.99999974E-6 : f32
    %216 = vector.broadcast %cst_72 : f32 to vector<8x1xf32>
    %217 = arith.addf %215, %216 : vector<8x1xf32>
    %218 = math.rsqrt %217 : vector<8x1xf32>
    %219 = vector.broadcast %208 : vector<8x1xf32> to vector<8x128xf32>
    %220 = arith.subf %15, %219 : vector<8x128xf32>
    %221 = vector.broadcast %218 : vector<8x1xf32> to vector<8x128xf32>
    %222 = arith.mulf %220, %221 : vector<8x128xf32>
    %c0_73 = arith.constant 0 : index
    %c7808 = arith.constant 7808 : index
    %223 = vector.load %arg1[%c0_73, %c7808] : memref<1x10880xf32, #tpu.memory_space<vmem>>, vector<1x128xf32>
    %224 = vector.broadcast %223 : vector<1x128xf32> to vector<8x128xf32>
    %225 = arith.mulf %222, %224 : vector<8x128xf32>
    %c0_74 = arith.constant 0 : index
    %c7936 = arith.constant 7936 : index
    %226 = vector.load %arg1[%c0_74, %c7936] : memref<1x10880xf32, #tpu.memory_space<vmem>>, vector<1x128xf32>
    %227 = vector.broadcast %226 : vector<1x128xf32> to vector<8x128xf32>
    %228 = arith.addf %225, %227 : vector<8x128xf32>
    %c0_75 = arith.constant 0 : index
    %c1024 = arith.constant 1024 : index
    %229 = vector.load %arg3[%c0_75, %c1024] : memref<128x2560xbf16, #tpu.memory_space<vmem>>, vector<128x384xbf16>
    %230 = arith.truncf %228 : vector<8x128xf32> to vector<8x128xbf16>
    %cst_76 = arith.constant dense<0.000000e+00> : vector<8x384xf32>
    %231 = tpu.matmul %230, %229, %cst_76 {dimension_numbers = #tpu.dot_dimension_numbers<[1], [0], [0], [1], [0, 0, 1, 1], [], []>} : vector<8x128xbf16>, vector<128x384xbf16>, vector<8x384xf32> -> vector<8x384xf32>
    %c0_77 = arith.constant 0 : index
    %c1408 = arith.constant 1408 : index
    %232 = vector.load %arg1[%c0_77, %c1408] : memref<1x10880xf32, #tpu.memory_space<vmem>>, vector<1x384xf32>
    %233 = vector.broadcast %232 : vector<1x384xf32> to vector<8x384xf32>
    %234 = arith.addf %231, %233 : vector<8x384xf32>
    %c0_78 = arith.constant 0 : index
    %c1792 = arith.constant 1792 : index
    %235 = vector.load %arg1[%c0_78, %c1792] : memref<1x10880xf32, #tpu.memory_space<vmem>>, vector<1x128xf32>
    %236 = vector.extract_strided_slice %234 {offsets = [0, 0], sizes = [8, 32], strides = [1, 1]} : vector<8x384xf32> to vector<8x32xf32>
    %237 = arith.truncf %236 : vector<8x32xf32> to vector<8x32xbf16>
    %238 = vector.extract_strided_slice %234 {offsets = [0, 128], sizes = [8, 32], strides = [1, 1]} : vector<8x384xf32> to vector<8x32xf32>
    %239 = arith.truncf %238 : vector<8x32xf32> to vector<8x32xbf16>
    %240 = vector.extract_strided_slice %234 {offsets = [0, 256], sizes = [8, 32], strides = [1, 1]} : vector<8x384xf32> to vector<8x32xf32>
    %241 = arith.truncf %240 : vector<8x32xf32> to vector<8x32xbf16>
    %cst_79 = arith.constant dense<0.000000e+00> : vector<8x8xf32>
    %242 = tpu.matmul %237, %239, %cst_79 {dimension_numbers = #tpu.dot_dimension_numbers<[1], [1], [0], [0], [0, 0, 1, 0], [], []>} : vector<8x32xbf16>, vector<8x32xbf16>, vector<8x8xf32> -> vector<8x8xf32>
    %cst_80 = arith.constant 0.176776692 : f32
    %243 = vector.broadcast %cst_80 : f32 to vector<8x8xf32>
    %244 = arith.mulf %242, %243 : vector<8x8xf32>
    %245 = math.exp %244 : vector<8x8xf32>
    %cst_81 = arith.constant dense<0.000000e+00> : vector<8xf32>
    %246 = vector.multi_reduction <add>, %245, %cst_81 [1] : vector<8x8xf32> to vector<8xf32>
    %247 = vector.shape_cast %246 : vector<8xf32> to vector<8x1xf32>
    %248 = tpu.reciprocal %247 {approx = true} : vector<8x1xf32> -> vector<8x1xf32>
    %249 = vector.broadcast %248 : vector<8x1xf32> to vector<8x8xf32>
    %250 = arith.mulf %245, %249 : vector<8x8xf32>
    %251 = arith.truncf %250 : vector<8x8xf32> to vector<8x8xbf16>
    %cst_82 = arith.constant dense<0.000000e+00> : vector<8x32xf32>
    %252 = tpu.matmul %251, %241, %cst_82 {dimension_numbers = #tpu.dot_dimension_numbers<[1], [0], [0], [1], [0, 0, 1, 1], [], []>} : vector<8x8xbf16>, vector<8x32xbf16>, vector<8x32xf32> -> vector<8x32xf32>
    %c0_83 = arith.constant 0 : index
    %c1408_84 = arith.constant 1408 : index
    %253 = vector.load %arg3[%c0_83, %c1408_84] : memref<128x2560xbf16, #tpu.memory_space<vmem>>, vector<32x128xbf16>
    %254 = arith.truncf %252 : vector<8x32xf32> to vector<8x32xbf16>
    %cst_85 = arith.constant dense<0.000000e+00> : vector<8x128xf32>
    %255 = tpu.matmul %254, %253, %cst_85 {dimension_numbers = #tpu.dot_dimension_numbers<[1], [0], [0], [1], [0, 0, 1, 1], [], []>} : vector<8x32xbf16>, vector<32x128xbf16>, vector<8x128xf32> -> vector<8x128xf32>
    %256 = vector.broadcast %235 : vector<1x128xf32> to vector<8x128xf32>
    %257 = arith.addf %256, %255 : vector<8x128xf32>
    %258 = vector.extract_strided_slice %234 {offsets = [0, 32], sizes = [8, 32], strides = [1, 1]} : vector<8x384xf32> to vector<8x32xf32>
    %259 = arith.truncf %258 : vector<8x32xf32> to vector<8x32xbf16>
    %260 = vector.extract_strided_slice %234 {offsets = [0, 160], sizes = [8, 32], strides = [1, 1]} : vector<8x384xf32> to vector<8x32xf32>
    %261 = arith.truncf %260 : vector<8x32xf32> to vector<8x32xbf16>
    %262 = vector.extract_strided_slice %234 {offsets = [0, 288], sizes = [8, 32], strides = [1, 1]} : vector<8x384xf32> to vector<8x32xf32>
    %263 = arith.truncf %262 : vector<8x32xf32> to vector<8x32xbf16>
    %cst_86 = arith.constant dense<0.000000e+00> : vector<8x8xf32>
    %264 = tpu.matmul %259, %261, %cst_86 {dimension_numbers = #tpu.dot_dimension_numbers<[1], [1], [0], [0], [0, 0, 1, 0], [], []>} : vector<8x32xbf16>, vector<8x32xbf16>, vector<8x8xf32> -> vector<8x8xf32>
    %cst_87 = arith.constant 0.176776692 : f32
    %265 = vector.broadcast %cst_87 : f32 to vector<8x8xf32>
    %266 = arith.mulf %264, %265 : vector<8x8xf32>
    %267 = math.exp %266 : vector<8x8xf32>
    %cst_88 = arith.constant dense<0.000000e+00> : vector<8xf32>
    %268 = vector.multi_reduction <add>, %267, %cst_88 [1] : vector<8x8xf32> to vector<8xf32>
    %269 = vector.shape_cast %268 : vector<8xf32> to vector<8x1xf32>
    %270 = tpu.reciprocal %269 {approx = true} : vector<8x1xf32> -> vector<8x1xf32>
    %271 = vector.broadcast %270 : vector<8x1xf32> to vector<8x8xf32>
    %272 = arith.mulf %267, %271 : vector<8x8xf32>
    %273 = arith.truncf %272 : vector<8x8xf32> to vector<8x8xbf16>
    %cst_89 = arith.constant dense<0.000000e+00> : vector<8x32xf32>
    %274 = tpu.matmul %273, %263, %cst_89 {dimension_numbers = #tpu.dot_dimension_numbers<[1], [0], [0], [1], [0, 0, 1, 1], [], []>} : vector<8x8xbf16>, vector<8x32xbf16>, vector<8x32xf32> -> vector<8x32xf32>
    %c32_90 = arith.constant 32 : index
    %c1408_91 = arith.constant 1408 : index
    %275 = vector.load %arg3[%c32_90, %c1408_91] : memref<128x2560xbf16, #tpu.memory_space<vmem>>, vector<32x128xbf16>
    %276 = arith.truncf %274 : vector<8x32xf32> to vector<8x32xbf16>
    %cst_92 = arith.constant dense<0.000000e+00> : vector<8x128xf32>
    %277 = tpu.matmul %276, %275, %cst_92 {dimension_numbers = #tpu.dot_dimension_numbers<[1], [0], [0], [1], [0, 0, 1, 1], [], []>} : vector<8x32xbf16>, vector<32x128xbf16>, vector<8x128xf32> -> vector<8x128xf32>
    %278 = arith.addf %257, %277 : vector<8x128xf32>
    %279 = vector.extract_strided_slice %234 {offsets = [0, 64], sizes = [8, 32], strides = [1, 1]} : vector<8x384xf32> to vector<8x32xf32>
    %280 = arith.truncf %279 : vector<8x32xf32> to vector<8x32xbf16>
    %281 = vector.extract_strided_slice %234 {offsets = [0, 192], sizes = [8, 32], strides = [1, 1]} : vector<8x384xf32> to vector<8x32xf32>
    %282 = arith.truncf %281 : vector<8x32xf32> to vector<8x32xbf16>
    %283 = vector.extract_strided_slice %234 {offsets = [0, 320], sizes = [8, 32], strides = [1, 1]} : vector<8x384xf32> to vector<8x32xf32>
    %284 = arith.truncf %283 : vector<8x32xf32> to vector<8x32xbf16>
    %cst_93 = arith.constant dense<0.000000e+00> : vector<8x8xf32>
    %285 = tpu.matmul %280, %282, %cst_93 {dimension_numbers = #tpu.dot_dimension_numbers<[1], [1], [0], [0], [0, 0, 1, 0], [], []>} : vector<8x32xbf16>, vector<8x32xbf16>, vector<8x8xf32> -> vector<8x8xf32>
    %cst_94 = arith.constant 0.176776692 : f32
    %286 = vector.broadcast %cst_94 : f32 to vector<8x8xf32>
    %287 = arith.mulf %285, %286 : vector<8x8xf32>
    %288 = math.exp %287 : vector<8x8xf32>
    %cst_95 = arith.constant dense<0.000000e+00> : vector<8xf32>
    %289 = vector.multi_reduction <add>, %288, %cst_95 [1] : vector<8x8xf32> to vector<8xf32>
    %290 = vector.shape_cast %289 : vector<8xf32> to vector<8x1xf32>
    %291 = tpu.reciprocal %290 {approx = true} : vector<8x1xf32> -> vector<8x1xf32>
    %292 = vector.broadcast %291 : vector<8x1xf32> to vector<8x8xf32>
    %293 = arith.mulf %288, %292 : vector<8x8xf32>
    %294 = arith.truncf %293 : vector<8x8xf32> to vector<8x8xbf16>
    %cst_96 = arith.constant dense<0.000000e+00> : vector<8x32xf32>
    %295 = tpu.matmul %294, %284, %cst_96 {dimension_numbers = #tpu.dot_dimension_numbers<[1], [0], [0], [1], [0, 0, 1, 1], [], []>} : vector<8x8xbf16>, vector<8x32xbf16>, vector<8x32xf32> -> vector<8x32xf32>
    %c64_97 = arith.constant 64 : index
    %c1408_98 = arith.constant 1408 : index
    %296 = vector.load %arg3[%c64_97, %c1408_98] : memref<128x2560xbf16, #tpu.memory_space<vmem>>, vector<32x128xbf16>
    %297 = arith.truncf %295 : vector<8x32xf32> to vector<8x32xbf16>
    %cst_99 = arith.constant dense<0.000000e+00> : vector<8x128xf32>
    %298 = tpu.matmul %297, %296, %cst_99 {dimension_numbers = #tpu.dot_dimension_numbers<[1], [0], [0], [1], [0, 0, 1, 1], [], []>} : vector<8x32xbf16>, vector<32x128xbf16>, vector<8x128xf32> -> vector<8x128xf32>
    %299 = arith.addf %278, %298 : vector<8x128xf32>
    %300 = vector.extract_strided_slice %234 {offsets = [0, 96], sizes = [8, 32], strides = [1, 1]} : vector<8x384xf32> to vector<8x32xf32>
    %301 = arith.truncf %300 : vector<8x32xf32> to vector<8x32xbf16>
    %302 = vector.extract_strided_slice %234 {offsets = [0, 224], sizes = [8, 32], strides = [1, 1]} : vector<8x384xf32> to vector<8x32xf32>
    %303 = arith.truncf %302 : vector<8x32xf32> to vector<8x32xbf16>
    %304 = vector.extract_strided_slice %234 {offsets = [0, 352], sizes = [8, 32], strides = [1, 1]} : vector<8x384xf32> to vector<8x32xf32>
    %305 = arith.truncf %304 : vector<8x32xf32> to vector<8x32xbf16>
    %cst_100 = arith.constant dense<0.000000e+00> : vector<8x8xf32>
    %306 = tpu.matmul %301, %303, %cst_100 {dimension_numbers = #tpu.dot_dimension_numbers<[1], [1], [0], [0], [0, 0, 1, 0], [], []>} : vector<8x32xbf16>, vector<8x32xbf16>, vector<8x8xf32> -> vector<8x8xf32>
    %cst_101 = arith.constant 0.176776692 : f32
    %307 = vector.broadcast %cst_101 : f32 to vector<8x8xf32>
    %308 = arith.mulf %306, %307 : vector<8x8xf32>
    %309 = math.exp %308 : vector<8x8xf32>
    %cst_102 = arith.constant dense<0.000000e+00> : vector<8xf32>
    %310 = vector.multi_reduction <add>, %309, %cst_102 [1] : vector<8x8xf32> to vector<8xf32>
    %311 = vector.shape_cast %310 : vector<8xf32> to vector<8x1xf32>
    %312 = tpu.reciprocal %311 {approx = true} : vector<8x1xf32> -> vector<8x1xf32>
    %313 = vector.broadcast %312 : vector<8x1xf32> to vector<8x8xf32>
    %314 = arith.mulf %309, %313 : vector<8x8xf32>
    %315 = arith.truncf %314 : vector<8x8xf32> to vector<8x8xbf16>
    %cst_103 = arith.constant dense<0.000000e+00> : vector<8x32xf32>
    %316 = tpu.matmul %315, %305, %cst_103 {dimension_numbers = #tpu.dot_dimension_numbers<[1], [0], [0], [1], [0, 0, 1, 1], [], []>} : vector<8x8xbf16>, vector<8x32xbf16>, vector<8x32xf32> -> vector<8x32xf32>
    %c96_104 = arith.constant 96 : index
    %c1408_105 = arith.constant 1408 : index
    %317 = vector.load %arg3[%c96_104, %c1408_105] : memref<128x2560xbf16, #tpu.memory_space<vmem>>, vector<32x128xbf16>
    %318 = arith.truncf %316 : vector<8x32xf32> to vector<8x32xbf16>
    %cst_106 = arith.constant dense<0.000000e+00> : vector<8x128xf32>
    %319 = tpu.matmul %318, %317, %cst_106 {dimension_numbers = #tpu.dot_dimension_numbers<[1], [0], [0], [1], [0, 0, 1, 1], [], []>} : vector<8x32xbf16>, vector<32x128xbf16>, vector<8x128xf32> -> vector<8x128xf32>
    %320 = arith.addf %299, %319 : vector<8x128xf32>
    %321 = tpu.concatenate %320, %15 in 1 : vector<8x128xf32>, vector<8x128xf32> -> vector<8x256xf32>
    %c0_107 = arith.constant 0 : index
    %c0_108 = arith.constant 0 : index
    %322 = vector.load %arg4[%c0_107, %c0_108] : memref<256x640xbf16, #tpu.memory_space<vmem>>, vector<256x256xbf16>
    %323 = arith.truncf %321 : vector<8x256xf32> to vector<8x256xbf16>
    %cst_109 = arith.constant dense<0.000000e+00> : vector<8x256xf32>
    %324 = tpu.matmul %323, %322, %cst_109 {dimension_numbers = #tpu.dot_dimension_numbers<[1], [0], [0], [1], [0, 0, 1, 1], [], []>} : vector<8x256xbf16>, vector<256x256xbf16>, vector<8x256xf32> -> vector<8x256xf32>
    %c0_110 = arith.constant 0 : index
    %c1920 = arith.constant 1920 : index
    %325 = vector.load %arg1[%c0_110, %c1920] : memref<1x10880xf32, #tpu.memory_space<vmem>>, vector<1x256xf32>
    %326 = vector.broadcast %325 : vector<1x256xf32> to vector<8x256xf32>
    %327 = arith.addf %324, %326 : vector<8x256xf32>
    %cst_111 = arith.constant 0.000000e+00 : f32
    %328 = vector.broadcast %cst_111 : f32 to vector<8x256xf32>
    %329 = arith.maximumf %327, %328 : vector<8x256xf32>
    %cst_112 = arith.constant dense<0.000000e+00> : vector<8xf32>
    %330 = vector.multi_reduction <add>, %321, %cst_112 [1] : vector<8x256xf32> to vector<8xf32>
    %331 = vector.shape_cast %330 : vector<8xf32> to vector<8x1xf32>
    %cst_113 = arith.constant 2.560000e+02 : f32
    %332 = vector.broadcast %cst_113 : f32 to vector<8x1xf32>
    %333 = arith.divf %331, %332 : vector<8x1xf32>
    %334 = arith.mulf %321, %321 : vector<8x256xf32>
    %cst_114 = arith.constant dense<0.000000e+00> : vector<8xf32>
    %335 = vector.multi_reduction <add>, %334, %cst_114 [1] : vector<8x256xf32> to vector<8xf32>
    %336 = vector.shape_cast %335 : vector<8xf32> to vector<8x1xf32>
    %cst_115 = arith.constant 2.560000e+02 : f32
    %337 = vector.broadcast %cst_115 : f32 to vector<8x1xf32>
    %338 = arith.divf %336, %337 : vector<8x1xf32>
    %339 = arith.mulf %333, %333 : vector<8x1xf32>
    %340 = arith.subf %338, %339 : vector<8x1xf32>
    %cst_116 = arith.constant 9.99999974E-6 : f32
    %341 = vector.broadcast %cst_116 : f32 to vector<8x1xf32>
    %342 = arith.addf %340, %341 : vector<8x1xf32>
    %343 = math.rsqrt %342 : vector<8x1xf32>
    %344 = vector.broadcast %333 : vector<8x1xf32> to vector<8x256xf32>
    %345 = arith.subf %321, %344 : vector<8x256xf32>
    %346 = vector.broadcast %343 : vector<8x1xf32> to vector<8x256xf32>
    %347 = arith.mulf %345, %346 : vector<8x256xf32>
    %c0_117 = arith.constant 0 : index
    %c8064 = arith.constant 8064 : index
    %348 = vector.load %arg1[%c0_117, %c8064] : memref<1x10880xf32, #tpu.memory_space<vmem>>, vector<1x256xf32>
    %349 = vector.broadcast %348 : vector<1x256xf32> to vector<8x256xf32>
    %350 = arith.mulf %347, %349 : vector<8x256xf32>
    %c0_118 = arith.constant 0 : index
    %c8320 = arith.constant 8320 : index
    %351 = vector.load %arg1[%c0_118, %c8320] : memref<1x10880xf32, #tpu.memory_space<vmem>>, vector<1x256xf32>
    %352 = vector.broadcast %351 : vector<1x256xf32> to vector<8x256xf32>
    %353 = arith.addf %350, %352 : vector<8x256xf32>
    %354 = arith.addf %353, %329 : vector<8x256xf32>
    %c0_119 = arith.constant 0 : index
    %c256 = arith.constant 256 : index
    %355 = vector.load %arg4[%c0_119, %c256] : memref<256x640xbf16, #tpu.memory_space<vmem>>, vector<256x384xbf16>
    %356 = arith.truncf %353 : vector<8x256xf32> to vector<8x256xbf16>
    %cst_120 = arith.constant dense<0.000000e+00> : vector<8x384xf32>
    %357 = tpu.matmul %356, %355, %cst_120 {dimension_numbers = #tpu.dot_dimension_numbers<[1], [0], [0], [1], [0, 0, 1, 1], [], []>} : vector<8x256xbf16>, vector<256x384xbf16>, vector<8x384xf32> -> vector<8x384xf32>
    %c0_121 = arith.constant 0 : index
    %c2176 = arith.constant 2176 : index
    %358 = vector.load %arg1[%c0_121, %c2176] : memref<1x10880xf32, #tpu.memory_space<vmem>>, vector<1x384xf32>
    %359 = vector.broadcast %358 : vector<1x384xf32> to vector<8x384xf32>
    %360 = arith.addf %357, %359 : vector<8x384xf32>
    %cst_122 = arith.constant 0.000000e+00 : f32
    %361 = vector.broadcast %cst_122 : f32 to vector<8x384xf32>
    %362 = arith.maximumf %360, %361 : vector<8x384xf32>
    %cst_123 = arith.constant dense<0.000000e+00> : vector<8xf32>
    %363 = vector.multi_reduction <add>, %19, %cst_123 [1] : vector<8x128xf32> to vector<8xf32>
    %364 = vector.shape_cast %363 : vector<8xf32> to vector<8x1xf32>
    %cst_124 = arith.constant 1.280000e+02 : f32
    %365 = vector.broadcast %cst_124 : f32 to vector<8x1xf32>
    %366 = arith.divf %364, %365 : vector<8x1xf32>
    %367 = arith.mulf %19, %19 : vector<8x128xf32>
    %cst_125 = arith.constant dense<0.000000e+00> : vector<8xf32>
    %368 = vector.multi_reduction <add>, %367, %cst_125 [1] : vector<8x128xf32> to vector<8xf32>
    %369 = vector.shape_cast %368 : vector<8xf32> to vector<8x1xf32>
    %cst_126 = arith.constant 1.280000e+02 : f32
    %370 = vector.broadcast %cst_126 : f32 to vector<8x1xf32>
    %371 = arith.divf %369, %370 : vector<8x1xf32>
    %372 = arith.mulf %366, %366 : vector<8x1xf32>
    %373 = arith.subf %371, %372 : vector<8x1xf32>
    %cst_127 = arith.constant 9.99999974E-6 : f32
    %374 = vector.broadcast %cst_127 : f32 to vector<8x1xf32>
    %375 = arith.addf %373, %374 : vector<8x1xf32>
    %376 = math.rsqrt %375 : vector<8x1xf32>
    %377 = vector.broadcast %366 : vector<8x1xf32> to vector<8x128xf32>
    %378 = arith.subf %19, %377 : vector<8x128xf32>
    %379 = vector.broadcast %376 : vector<8x1xf32> to vector<8x128xf32>
    %380 = arith.mulf %378, %379 : vector<8x128xf32>
    %c0_128 = arith.constant 0 : index
    %c8576 = arith.constant 8576 : index
    %381 = vector.load %arg1[%c0_128, %c8576] : memref<1x10880xf32, #tpu.memory_space<vmem>>, vector<1x128xf32>
    %382 = vector.broadcast %381 : vector<1x128xf32> to vector<8x128xf32>
    %383 = arith.mulf %380, %382 : vector<8x128xf32>
    %c0_129 = arith.constant 0 : index
    %c8704 = arith.constant 8704 : index
    %384 = vector.load %arg1[%c0_129, %c8704] : memref<1x10880xf32, #tpu.memory_space<vmem>>, vector<1x128xf32>
    %385 = vector.broadcast %384 : vector<1x128xf32> to vector<8x128xf32>
    %386 = arith.addf %383, %385 : vector<8x128xf32>
    %c0_130 = arith.constant 0 : index
    %c1536 = arith.constant 1536 : index
    %387 = vector.load %arg3[%c0_130, %c1536] : memref<128x2560xbf16, #tpu.memory_space<vmem>>, vector<128x384xbf16>
    %388 = arith.truncf %386 : vector<8x128xf32> to vector<8x128xbf16>
    %cst_131 = arith.constant dense<0.000000e+00> : vector<8x384xf32>
    %389 = tpu.matmul %388, %387, %cst_131 {dimension_numbers = #tpu.dot_dimension_numbers<[1], [0], [0], [1], [0, 0, 1, 1], [], []>} : vector<8x128xbf16>, vector<128x384xbf16>, vector<8x384xf32> -> vector<8x384xf32>
    %c0_132 = arith.constant 0 : index
    %c2688 = arith.constant 2688 : index
    %390 = vector.load %arg1[%c0_132, %c2688] : memref<1x10880xf32, #tpu.memory_space<vmem>>, vector<1x384xf32>
    %391 = vector.broadcast %390 : vector<1x384xf32> to vector<8x384xf32>
    %392 = arith.addf %389, %391 : vector<8x384xf32>
    %c0_133 = arith.constant 0 : index
    %c3072 = arith.constant 3072 : index
    %393 = vector.load %arg1[%c0_133, %c3072] : memref<1x10880xf32, #tpu.memory_space<vmem>>, vector<1x128xf32>
    %394 = vector.extract_strided_slice %392 {offsets = [0, 0], sizes = [8, 32], strides = [1, 1]} : vector<8x384xf32> to vector<8x32xf32>
    %395 = arith.truncf %394 : vector<8x32xf32> to vector<8x32xbf16>
    %396 = vector.extract_strided_slice %392 {offsets = [0, 128], sizes = [8, 32], strides = [1, 1]} : vector<8x384xf32> to vector<8x32xf32>
    %397 = arith.truncf %396 : vector<8x32xf32> to vector<8x32xbf16>
    %398 = vector.extract_strided_slice %392 {offsets = [0, 256], sizes = [8, 32], strides = [1, 1]} : vector<8x384xf32> to vector<8x32xf32>
    %399 = arith.truncf %398 : vector<8x32xf32> to vector<8x32xbf16>
    %cst_134 = arith.constant dense<0.000000e+00> : vector<8x8xf32>
    %400 = tpu.matmul %395, %397, %cst_134 {dimension_numbers = #tpu.dot_dimension_numbers<[1], [1], [0], [0], [0, 0, 1, 0], [], []>} : vector<8x32xbf16>, vector<8x32xbf16>, vector<8x8xf32> -> vector<8x8xf32>
    %cst_135 = arith.constant 0.176776692 : f32
    %401 = vector.broadcast %cst_135 : f32 to vector<8x8xf32>
    %402 = arith.mulf %400, %401 : vector<8x8xf32>
    %403 = math.exp %402 : vector<8x8xf32>
    %cst_136 = arith.constant dense<0.000000e+00> : vector<8xf32>
    %404 = vector.multi_reduction <add>, %403, %cst_136 [1] : vector<8x8xf32> to vector<8xf32>
    %405 = vector.shape_cast %404 : vector<8xf32> to vector<8x1xf32>
    %406 = tpu.reciprocal %405 {approx = true} : vector<8x1xf32> -> vector<8x1xf32>
    %407 = vector.broadcast %406 : vector<8x1xf32> to vector<8x8xf32>
    %408 = arith.mulf %403, %407 : vector<8x8xf32>
    %409 = arith.truncf %408 : vector<8x8xf32> to vector<8x8xbf16>
    %cst_137 = arith.constant dense<0.000000e+00> : vector<8x32xf32>
    %410 = tpu.matmul %409, %399, %cst_137 {dimension_numbers = #tpu.dot_dimension_numbers<[1], [0], [0], [1], [0, 0, 1, 1], [], []>} : vector<8x8xbf16>, vector<8x32xbf16>, vector<8x32xf32> -> vector<8x32xf32>
    %c0_138 = arith.constant 0 : index
    %c1920_139 = arith.constant 1920 : index
    %411 = vector.load %arg3[%c0_138, %c1920_139] : memref<128x2560xbf16, #tpu.memory_space<vmem>>, vector<32x128xbf16>
    %412 = arith.truncf %410 : vector<8x32xf32> to vector<8x32xbf16>
    %cst_140 = arith.constant dense<0.000000e+00> : vector<8x128xf32>
    %413 = tpu.matmul %412, %411, %cst_140 {dimension_numbers = #tpu.dot_dimension_numbers<[1], [0], [0], [1], [0, 0, 1, 1], [], []>} : vector<8x32xbf16>, vector<32x128xbf16>, vector<8x128xf32> -> vector<8x128xf32>
    %414 = vector.broadcast %393 : vector<1x128xf32> to vector<8x128xf32>
    %415 = arith.addf %414, %413 : vector<8x128xf32>
    %416 = vector.extract_strided_slice %392 {offsets = [0, 32], sizes = [8, 32], strides = [1, 1]} : vector<8x384xf32> to vector<8x32xf32>
    %417 = arith.truncf %416 : vector<8x32xf32> to vector<8x32xbf16>
    %418 = vector.extract_strided_slice %392 {offsets = [0, 160], sizes = [8, 32], strides = [1, 1]} : vector<8x384xf32> to vector<8x32xf32>
    %419 = arith.truncf %418 : vector<8x32xf32> to vector<8x32xbf16>
    %420 = vector.extract_strided_slice %392 {offsets = [0, 288], sizes = [8, 32], strides = [1, 1]} : vector<8x384xf32> to vector<8x32xf32>
    %421 = arith.truncf %420 : vector<8x32xf32> to vector<8x32xbf16>
    %cst_141 = arith.constant dense<0.000000e+00> : vector<8x8xf32>
    %422 = tpu.matmul %417, %419, %cst_141 {dimension_numbers = #tpu.dot_dimension_numbers<[1], [1], [0], [0], [0, 0, 1, 0], [], []>} : vector<8x32xbf16>, vector<8x32xbf16>, vector<8x8xf32> -> vector<8x8xf32>
    %cst_142 = arith.constant 0.176776692 : f32
    %423 = vector.broadcast %cst_142 : f32 to vector<8x8xf32>
    %424 = arith.mulf %422, %423 : vector<8x8xf32>
    %425 = math.exp %424 : vector<8x8xf32>
    %cst_143 = arith.constant dense<0.000000e+00> : vector<8xf32>
    %426 = vector.multi_reduction <add>, %425, %cst_143 [1] : vector<8x8xf32> to vector<8xf32>
    %427 = vector.shape_cast %426 : vector<8xf32> to vector<8x1xf32>
    %428 = tpu.reciprocal %427 {approx = true} : vector<8x1xf32> -> vector<8x1xf32>
    %429 = vector.broadcast %428 : vector<8x1xf32> to vector<8x8xf32>
    %430 = arith.mulf %425, %429 : vector<8x8xf32>
    %431 = arith.truncf %430 : vector<8x8xf32> to vector<8x8xbf16>
    %cst_144 = arith.constant dense<0.000000e+00> : vector<8x32xf32>
    %432 = tpu.matmul %431, %421, %cst_144 {dimension_numbers = #tpu.dot_dimension_numbers<[1], [0], [0], [1], [0, 0, 1, 1], [], []>} : vector<8x8xbf16>, vector<8x32xbf16>, vector<8x32xf32> -> vector<8x32xf32>
    %c32_145 = arith.constant 32 : index
    %c1920_146 = arith.constant 1920 : index
    %433 = vector.load %arg3[%c32_145, %c1920_146] : memref<128x2560xbf16, #tpu.memory_space<vmem>>, vector<32x128xbf16>
    %434 = arith.truncf %432 : vector<8x32xf32> to vector<8x32xbf16>
    %cst_147 = arith.constant dense<0.000000e+00> : vector<8x128xf32>
    %435 = tpu.matmul %434, %433, %cst_147 {dimension_numbers = #tpu.dot_dimension_numbers<[1], [0], [0], [1], [0, 0, 1, 1], [], []>} : vector<8x32xbf16>, vector<32x128xbf16>, vector<8x128xf32> -> vector<8x128xf32>
    %436 = arith.addf %415, %435 : vector<8x128xf32>
    %437 = vector.extract_strided_slice %392 {offsets = [0, 64], sizes = [8, 32], strides = [1, 1]} : vector<8x384xf32> to vector<8x32xf32>
    %438 = arith.truncf %437 : vector<8x32xf32> to vector<8x32xbf16>
    %439 = vector.extract_strided_slice %392 {offsets = [0, 192], sizes = [8, 32], strides = [1, 1]} : vector<8x384xf32> to vector<8x32xf32>
    %440 = arith.truncf %439 : vector<8x32xf32> to vector<8x32xbf16>
    %441 = vector.extract_strided_slice %392 {offsets = [0, 320], sizes = [8, 32], strides = [1, 1]} : vector<8x384xf32> to vector<8x32xf32>
    %442 = arith.truncf %441 : vector<8x32xf32> to vector<8x32xbf16>
    %cst_148 = arith.constant dense<0.000000e+00> : vector<8x8xf32>
    %443 = tpu.matmul %438, %440, %cst_148 {dimension_numbers = #tpu.dot_dimension_numbers<[1], [1], [0], [0], [0, 0, 1, 0], [], []>} : vector<8x32xbf16>, vector<8x32xbf16>, vector<8x8xf32> -> vector<8x8xf32>
    %cst_149 = arith.constant 0.176776692 : f32
    %444 = vector.broadcast %cst_149 : f32 to vector<8x8xf32>
    %445 = arith.mulf %443, %444 : vector<8x8xf32>
    %446 = math.exp %445 : vector<8x8xf32>
    %cst_150 = arith.constant dense<0.000000e+00> : vector<8xf32>
    %447 = vector.multi_reduction <add>, %446, %cst_150 [1] : vector<8x8xf32> to vector<8xf32>
    %448 = vector.shape_cast %447 : vector<8xf32> to vector<8x1xf32>
    %449 = tpu.reciprocal %448 {approx = true} : vector<8x1xf32> -> vector<8x1xf32>
    %450 = vector.broadcast %449 : vector<8x1xf32> to vector<8x8xf32>
    %451 = arith.mulf %446, %450 : vector<8x8xf32>
    %452 = arith.truncf %451 : vector<8x8xf32> to vector<8x8xbf16>
    %cst_151 = arith.constant dense<0.000000e+00> : vector<8x32xf32>
    %453 = tpu.matmul %452, %442, %cst_151 {dimension_numbers = #tpu.dot_dimension_numbers<[1], [0], [0], [1], [0, 0, 1, 1], [], []>} : vector<8x8xbf16>, vector<8x32xbf16>, vector<8x32xf32> -> vector<8x32xf32>
    %c64_152 = arith.constant 64 : index
    %c1920_153 = arith.constant 1920 : index
    %454 = vector.load %arg3[%c64_152, %c1920_153] : memref<128x2560xbf16, #tpu.memory_space<vmem>>, vector<32x128xbf16>
    %455 = arith.truncf %453 : vector<8x32xf32> to vector<8x32xbf16>
    %cst_154 = arith.constant dense<0.000000e+00> : vector<8x128xf32>
    %456 = tpu.matmul %455, %454, %cst_154 {dimension_numbers = #tpu.dot_dimension_numbers<[1], [0], [0], [1], [0, 0, 1, 1], [], []>} : vector<8x32xbf16>, vector<32x128xbf16>, vector<8x128xf32> -> vector<8x128xf32>
    %457 = arith.addf %436, %456 : vector<8x128xf32>
    %458 = vector.extract_strided_slice %392 {offsets = [0, 96], sizes = [8, 32], strides = [1, 1]} : vector<8x384xf32> to vector<8x32xf32>
    %459 = arith.truncf %458 : vector<8x32xf32> to vector<8x32xbf16>
    %460 = vector.extract_strided_slice %392 {offsets = [0, 224], sizes = [8, 32], strides = [1, 1]} : vector<8x384xf32> to vector<8x32xf32>
    %461 = arith.truncf %460 : vector<8x32xf32> to vector<8x32xbf16>
    %462 = vector.extract_strided_slice %392 {offsets = [0, 352], sizes = [8, 32], strides = [1, 1]} : vector<8x384xf32> to vector<8x32xf32>
    %463 = arith.truncf %462 : vector<8x32xf32> to vector<8x32xbf16>
    %cst_155 = arith.constant dense<0.000000e+00> : vector<8x8xf32>
    %464 = tpu.matmul %459, %461, %cst_155 {dimension_numbers = #tpu.dot_dimension_numbers<[1], [1], [0], [0], [0, 0, 1, 0], [], []>} : vector<8x32xbf16>, vector<8x32xbf16>, vector<8x8xf32> -> vector<8x8xf32>
    %cst_156 = arith.constant 0.176776692 : f32
    %465 = vector.broadcast %cst_156 : f32 to vector<8x8xf32>
    %466 = arith.mulf %464, %465 : vector<8x8xf32>
    %467 = math.exp %466 : vector<8x8xf32>
    %cst_157 = arith.constant dense<0.000000e+00> : vector<8xf32>
    %468 = vector.multi_reduction <add>, %467, %cst_157 [1] : vector<8x8xf32> to vector<8xf32>
    %469 = vector.shape_cast %468 : vector<8xf32> to vector<8x1xf32>
    %470 = tpu.reciprocal %469 {approx = true} : vector<8x1xf32> -> vector<8x1xf32>
    %471 = vector.broadcast %470 : vector<8x1xf32> to vector<8x8xf32>
    %472 = arith.mulf %467, %471 : vector<8x8xf32>
    %473 = arith.truncf %472 : vector<8x8xf32> to vector<8x8xbf16>
    %cst_158 = arith.constant dense<0.000000e+00> : vector<8x32xf32>
    %474 = tpu.matmul %473, %463, %cst_158 {dimension_numbers = #tpu.dot_dimension_numbers<[1], [0], [0], [1], [0, 0, 1, 1], [], []>} : vector<8x8xbf16>, vector<8x32xbf16>, vector<8x32xf32> -> vector<8x32xf32>
    %c96_159 = arith.constant 96 : index
    %c1920_160 = arith.constant 1920 : index
    %475 = vector.load %arg3[%c96_159, %c1920_160] : memref<128x2560xbf16, #tpu.memory_space<vmem>>, vector<32x128xbf16>
    %476 = arith.truncf %474 : vector<8x32xf32> to vector<8x32xbf16>
    %cst_161 = arith.constant dense<0.000000e+00> : vector<8x128xf32>
    %477 = tpu.matmul %476, %475, %cst_161 {dimension_numbers = #tpu.dot_dimension_numbers<[1], [0], [0], [1], [0, 0, 1, 1], [], []>} : vector<8x32xbf16>, vector<32x128xbf16>, vector<8x128xf32> -> vector<8x128xf32>
    %478 = arith.addf %457, %477 : vector<8x128xf32>
    %479 = arith.addf %478, %19 : vector<8x128xf32>
    %cst_162 = arith.constant dense<0.000000e+00> : vector<8xf32>
    %480 = vector.multi_reduction <add>, %479, %cst_162 [1] : vector<8x128xf32> to vector<8xf32>
    %481 = vector.shape_cast %480 : vector<8xf32> to vector<8x1xf32>
    %cst_163 = arith.constant 1.280000e+02 : f32
    %482 = vector.broadcast %cst_163 : f32 to vector<8x1xf32>
    %483 = arith.divf %481, %482 : vector<8x1xf32>
    %484 = arith.mulf %479, %479 : vector<8x128xf32>
    %cst_164 = arith.constant dense<0.000000e+00> : vector<8xf32>
    %485 = vector.multi_reduction <add>, %484, %cst_164 [1] : vector<8x128xf32> to vector<8xf32>
    %486 = vector.shape_cast %485 : vector<8xf32> to vector<8x1xf32>
    %cst_165 = arith.constant 1.280000e+02 : f32
    %487 = vector.broadcast %cst_165 : f32 to vector<8x1xf32>
    %488 = arith.divf %486, %487 : vector<8x1xf32>
    %489 = arith.mulf %483, %483 : vector<8x1xf32>
    %490 = arith.subf %488, %489 : vector<8x1xf32>
    %cst_166 = arith.constant 9.99999974E-6 : f32
    %491 = vector.broadcast %cst_166 : f32 to vector<8x1xf32>
    %492 = arith.addf %490, %491 : vector<8x1xf32>
    %493 = math.rsqrt %492 : vector<8x1xf32>
    %494 = vector.broadcast %483 : vector<8x1xf32> to vector<8x128xf32>
    %495 = arith.subf %479, %494 : vector<8x128xf32>
    %496 = vector.broadcast %493 : vector<8x1xf32> to vector<8x128xf32>
    %497 = arith.mulf %495, %496 : vector<8x128xf32>
    %c0_167 = arith.constant 0 : index
    %c8832 = arith.constant 8832 : index
    %498 = vector.load %arg1[%c0_167, %c8832] : memref<1x10880xf32, #tpu.memory_space<vmem>>, vector<1x128xf32>
    %499 = vector.broadcast %498 : vector<1x128xf32> to vector<8x128xf32>
    %500 = arith.mulf %497, %499 : vector<8x128xf32>
    %c0_168 = arith.constant 0 : index
    %c8960 = arith.constant 8960 : index
    %501 = vector.load %arg1[%c0_168, %c8960] : memref<1x10880xf32, #tpu.memory_space<vmem>>, vector<1x128xf32>
    %502 = vector.broadcast %501 : vector<1x128xf32> to vector<8x128xf32>
    %503 = arith.addf %500, %502 : vector<8x128xf32>
    %c0_169 = arith.constant 0 : index
    %c2048 = arith.constant 2048 : index
    %504 = vector.load %arg3[%c0_169, %c2048] : memref<128x2560xbf16, #tpu.memory_space<vmem>>, vector<128x512xbf16>
    %505 = arith.truncf %503 : vector<8x128xf32> to vector<8x128xbf16>
    %cst_170 = arith.constant dense<0.000000e+00> : vector<8x512xf32>
    %506 = tpu.matmul %505, %504, %cst_170 {dimension_numbers = #tpu.dot_dimension_numbers<[1], [0], [0], [1], [0, 0, 1, 1], [], []>} : vector<8x128xbf16>, vector<128x512xbf16>, vector<8x512xf32> -> vector<8x512xf32>
    %c0_171 = arith.constant 0 : index
    %c3200 = arith.constant 3200 : index
    %507 = vector.load %arg1[%c0_171, %c3200] : memref<1x10880xf32, #tpu.memory_space<vmem>>, vector<1x512xf32>
    %508 = vector.broadcast %507 : vector<1x512xf32> to vector<8x512xf32>
    %509 = arith.addf %506, %508 : vector<8x512xf32>
    %cst_172 = arith.constant 0.000000e+00 : f32
    %510 = vector.broadcast %cst_172 : f32 to vector<8x512xf32>
    %511 = arith.maximumf %509, %510 : vector<8x512xf32>
    %cst_173 = arith.constant dense<0.000000e+00> : vector<8xf32>
    %512 = vector.multi_reduction <add>, %511, %cst_173 [1] : vector<8x512xf32> to vector<8xf32>
    %513 = vector.shape_cast %512 : vector<8xf32> to vector<8x1xf32>
    %cst_174 = arith.constant 5.120000e+02 : f32
    %514 = vector.broadcast %cst_174 : f32 to vector<8x1xf32>
    %515 = arith.divf %513, %514 : vector<8x1xf32>
    %516 = arith.mulf %511, %511 : vector<8x512xf32>
    %cst_175 = arith.constant dense<0.000000e+00> : vector<8xf32>
    %517 = vector.multi_reduction <add>, %516, %cst_175 [1] : vector<8x512xf32> to vector<8xf32>
    %518 = vector.shape_cast %517 : vector<8xf32> to vector<8x1xf32>
    %cst_176 = arith.constant 5.120000e+02 : f32
    %519 = vector.broadcast %cst_176 : f32 to vector<8x1xf32>
    %520 = arith.divf %518, %519 : vector<8x1xf32>
    %521 = arith.mulf %515, %515 : vector<8x1xf32>
    %522 = arith.subf %520, %521 : vector<8x1xf32>
    %cst_177 = arith.constant 9.99999974E-6 : f32
    %523 = vector.broadcast %cst_177 : f32 to vector<8x1xf32>
    %524 = arith.addf %522, %523 : vector<8x1xf32>
    %525 = math.rsqrt %524 : vector<8x1xf32>
    %526 = vector.broadcast %515 : vector<8x1xf32> to vector<8x512xf32>
    %527 = arith.subf %511, %526 : vector<8x512xf32>
    %528 = vector.broadcast %525 : vector<8x1xf32> to vector<8x512xf32>
    %529 = arith.mulf %527, %528 : vector<8x512xf32>
    %c0_178 = arith.constant 0 : index
    %c9088 = arith.constant 9088 : index
    %530 = vector.load %arg1[%c0_178, %c9088] : memref<1x10880xf32, #tpu.memory_space<vmem>>, vector<1x512xf32>
    %531 = vector.broadcast %530 : vector<1x512xf32> to vector<8x512xf32>
    %532 = arith.mulf %529, %531 : vector<8x512xf32>
    %c0_179 = arith.constant 0 : index
    %c9600 = arith.constant 9600 : index
    %533 = vector.load %arg1[%c0_179, %c9600] : memref<1x10880xf32, #tpu.memory_space<vmem>>, vector<1x512xf32>
    %534 = vector.broadcast %533 : vector<1x512xf32> to vector<8x512xf32>
    %535 = arith.addf %532, %534 : vector<8x512xf32>
    %c0_180 = arith.constant 0 : index
    %c128_181 = arith.constant 128 : index
    %536 = vector.load %arg5[%c0_180, %c128_181] : memref<512x256xbf16, #tpu.memory_space<vmem>>, vector<512x128xbf16>
    %537 = arith.truncf %535 : vector<8x512xf32> to vector<8x512xbf16>
    %cst_182 = arith.constant dense<0.000000e+00> : vector<8x128xf32>
    %538 = tpu.matmul %537, %536, %cst_182 {dimension_numbers = #tpu.dot_dimension_numbers<[1], [0], [0], [1], [0, 0, 1, 1], [], []>} : vector<8x512xbf16>, vector<512x128xbf16>, vector<8x128xf32> -> vector<8x128xf32>
    %c0_183 = arith.constant 0 : index
    %c3712 = arith.constant 3712 : index
    %539 = vector.load %arg1[%c0_183, %c3712] : memref<1x10880xf32, #tpu.memory_space<vmem>>, vector<1x128xf32>
    %540 = vector.broadcast %539 : vector<1x128xf32> to vector<8x128xf32>
    %541 = arith.addf %538, %540 : vector<8x128xf32>
    %542 = arith.addf %541, %503 : vector<8x128xf32>
    %543 = tpu.concatenate %542, %354 in 1 : vector<8x128xf32>, vector<8x256xf32> -> vector<8x384xf32>
    %cst_184 = arith.constant dense<0.000000e+00> : vector<8xf32>
    %544 = vector.multi_reduction <add>, %543, %cst_184 [1] : vector<8x384xf32> to vector<8xf32>
    %545 = vector.shape_cast %544 : vector<8xf32> to vector<8x1xf32>
    %cst_185 = arith.constant 3.840000e+02 : f32
    %546 = vector.broadcast %cst_185 : f32 to vector<8x1xf32>
    %547 = arith.divf %545, %546 : vector<8x1xf32>
    %548 = arith.mulf %543, %543 : vector<8x384xf32>
    %cst_186 = arith.constant dense<0.000000e+00> : vector<8xf32>
    %549 = vector.multi_reduction <add>, %548, %cst_186 [1] : vector<8x384xf32> to vector<8xf32>
    %550 = vector.shape_cast %549 : vector<8xf32> to vector<8x1xf32>
    %cst_187 = arith.constant 3.840000e+02 : f32
    %551 = vector.broadcast %cst_187 : f32 to vector<8x1xf32>
    %552 = arith.divf %550, %551 : vector<8x1xf32>
    %553 = arith.mulf %547, %547 : vector<8x1xf32>
    %554 = arith.subf %552, %553 : vector<8x1xf32>
    %cst_188 = arith.constant 9.99999974E-6 : f32
    %555 = vector.broadcast %cst_188 : f32 to vector<8x1xf32>
    %556 = arith.addf %554, %555 : vector<8x1xf32>
    %557 = math.rsqrt %556 : vector<8x1xf32>
    %558 = vector.broadcast %547 : vector<8x1xf32> to vector<8x384xf32>
    %559 = arith.subf %543, %558 : vector<8x384xf32>
    %560 = vector.broadcast %557 : vector<8x1xf32> to vector<8x384xf32>
    %561 = arith.mulf %559, %560 : vector<8x384xf32>
    %c0_189 = arith.constant 0 : index
    %c10112 = arith.constant 10112 : index
    %562 = vector.load %arg1[%c0_189, %c10112] : memref<1x10880xf32, #tpu.memory_space<vmem>>, vector<1x384xf32>
    %563 = vector.broadcast %562 : vector<1x384xf32> to vector<8x384xf32>
    %564 = arith.mulf %561, %563 : vector<8x384xf32>
    %c0_190 = arith.constant 0 : index
    %c10496 = arith.constant 10496 : index
    %565 = vector.load %arg1[%c0_190, %c10496] : memref<1x10880xf32, #tpu.memory_space<vmem>>, vector<1x384xf32>
    %566 = vector.broadcast %565 : vector<1x384xf32> to vector<8x384xf32>
    %567 = arith.addf %564, %566 : vector<8x384xf32>
    %c0_i32_191 = arith.constant 0 : i32
    %568 = tpu.memref_slice %arg11[%c0_i32_191] : memref<2x!tpu.dma_semaphore, #tpu.memory_space<semaphore_mem>> -> memref<1x!tpu.dma_semaphore, #tpu.memory_space<semaphore_mem>>
    %569 = tpu.memref_squeeze %568 : memref<1x!tpu.dma_semaphore, #tpu.memory_space<semaphore_mem>> -> memref<!tpu.dma_semaphore, #tpu.memory_space<semaphore_mem>>
    tpu.wait_dma2 semaphore(%569 : memref<!tpu.dma_semaphore, #tpu.memory_space<semaphore_mem>>) src(%arg6 : memref<384x2048xbf16, #tpu.memory_space<any>>) dst(%arg9 : memref<384x2048xbf16, #tpu.memory_space<vmem>>)
    %c1_i32_192 = arith.constant 1 : i32
    %570 = tpu.memref_slice %arg11[%c1_i32_192] : memref<2x!tpu.dma_semaphore, #tpu.memory_space<semaphore_mem>> -> memref<1x!tpu.dma_semaphore, #tpu.memory_space<semaphore_mem>>
    %571 = tpu.memref_squeeze %570 : memref<1x!tpu.dma_semaphore, #tpu.memory_space<semaphore_mem>> -> memref<!tpu.dma_semaphore, #tpu.memory_space<semaphore_mem>>
    tpu.wait_dma2 semaphore(%571 : memref<!tpu.dma_semaphore, #tpu.memory_space<semaphore_mem>>) src(%arg7 : memref<1536x384xbf16, #tpu.memory_space<any>>) dst(%arg10 : memref<1536x384xbf16, #tpu.memory_space<vmem>>)
    %c0_193 = arith.constant 0 : index
    %c0_194 = arith.constant 0 : index
    %572 = vector.load %arg9[%c0_193, %c0_194] : memref<384x2048xbf16, #tpu.memory_space<vmem>>, vector<384x1536xbf16>
    %573 = arith.truncf %567 : vector<8x384xf32> to vector<8x384xbf16>
    %cst_195 = arith.constant dense<0.000000e+00> : vector<8x1536xf32>
    %574 = tpu.matmul %573, %572, %cst_195 {dimension_numbers = #tpu.dot_dimension_numbers<[1], [0], [0], [1], [0, 0, 1, 1], [], []>} : vector<8x384xbf16>, vector<384x1536xbf16>, vector<8x1536xf32> -> vector<8x1536xf32>
    %c0_196 = arith.constant 0 : index
    %c3840 = arith.constant 3840 : index
    %575 = vector.load %arg1[%c0_196, %c3840] : memref<1x10880xf32, #tpu.memory_space<vmem>>, vector<1x1536xf32>
    %576 = vector.broadcast %575 : vector<1x1536xf32> to vector<8x1536xf32>
    %577 = arith.addf %574, %576 : vector<8x1536xf32>
    %cst_197 = arith.constant 0.000000e+00 : f32
    %578 = vector.broadcast %cst_197 : f32 to vector<8x1536xf32>
    %579 = arith.maximumf %577, %578 : vector<8x1536xf32>
    %c0_198 = arith.constant 0 : index
    %c1536_199 = arith.constant 1536 : index
    %580 = vector.load %arg9[%c0_198, %c1536_199] : memref<384x2048xbf16, #tpu.memory_space<vmem>>, vector<384x384xbf16>
    %581 = arith.truncf %567 : vector<8x384xf32> to vector<8x384xbf16>
    %cst_200 = arith.constant dense<0.000000e+00> : vector<8x384xf32>
    %582 = tpu.matmul %581, %580, %cst_200 {dimension_numbers = #tpu.dot_dimension_numbers<[1], [0], [0], [1], [0, 0, 1, 1], [], []>} : vector<8x384xbf16>, vector<384x384xbf16>, vector<8x384xf32> -> vector<8x384xf32>
    %c0_201 = arith.constant 0 : index
    %c5376 = arith.constant 5376 : index
    %583 = vector.load %arg1[%c0_201, %c5376] : memref<1x10880xf32, #tpu.memory_space<vmem>>, vector<1x384xf32>
    %584 = vector.broadcast %583 : vector<1x384xf32> to vector<8x384xf32>
    %585 = arith.addf %582, %584 : vector<8x384xf32>
    %c0_202 = arith.constant 0 : index
    %c0_203 = arith.constant 0 : index
    %586 = vector.load %arg10[%c0_202, %c0_203] : memref<1536x384xbf16, #tpu.memory_space<vmem>>, vector<1536x384xbf16>
    %587 = arith.truncf %579 : vector<8x1536xf32> to vector<8x1536xbf16>
    %cst_204 = arith.constant dense<0.000000e+00> : vector<8x384xf32>
    %588 = tpu.matmul %587, %586, %cst_204 {dimension_numbers = #tpu.dot_dimension_numbers<[1], [0], [0], [1], [0, 0, 1, 1], [], []>} : vector<8x1536xbf16>, vector<1536x384xbf16>, vector<8x384xf32> -> vector<8x384xf32>
    %c0_205 = arith.constant 0 : index
    %c5760 = arith.constant 5760 : index
    %589 = vector.load %arg1[%c0_205, %c5760] : memref<1x10880xf32, #tpu.memory_space<vmem>>, vector<1x384xf32>
    %590 = vector.broadcast %589 : vector<1x384xf32> to vector<8x384xf32>
    %591 = arith.addf %588, %590 : vector<8x384xf32>
    %592 = arith.addf %542, %204 : vector<8x128xf32>
    %593 = tpu.concatenate %592, %354 in 1 : vector<8x128xf32>, vector<8x256xf32> -> vector<8x384xf32>
    %594 = arith.addf %591, %585 : vector<8x384xf32>
    %595 = arith.addf %594, %362 : vector<8x384xf32>
    %596 = arith.addf %595, %593 : vector<8x384xf32>
    %c0_206 = arith.constant 0 : index
    %c1920_207 = arith.constant 1920 : index
    %597 = vector.load %arg9[%c0_206, %c1920_207] : memref<384x2048xbf16, #tpu.memory_space<vmem>>, vector<384x16xbf16>
    %598 = arith.truncf %596 : vector<8x384xf32> to vector<8x384xbf16>
    %cst_208 = arith.constant dense<0.000000e+00> : vector<8x16xf32>
    %599 = tpu.matmul %598, %597, %cst_208 {dimension_numbers = #tpu.dot_dimension_numbers<[1], [0], [0], [1], [0, 0, 1, 1], [], []>} : vector<8x384xbf16>, vector<384x16xbf16>, vector<8x16xf32> -> vector<8x16xf32>
    %c0_209 = arith.constant 0 : index
    %c6144 = arith.constant 6144 : index
    %600 = vector.load %arg1[%c0_209, %c6144] : memref<1x10880xf32, #tpu.memory_space<vmem>>, vector<1x16xf32>
    %601 = vector.broadcast %600 : vector<1x16xf32> to vector<8x16xf32>
    %602 = arith.addf %599, %601 : vector<8x16xf32>
    %c0_210 = arith.constant 0 : index
    %c0_211 = arith.constant 0 : index
    %603 = vector.load %arg8[%c0_210, %c0_211] : memref<8x16xf32, #tpu.memory_space<vmem>>, vector<8x16xf32>
    tpu.vector_store %arg8[%c0_210, %c0_211], %602 {strides = array<i32>} : memref<8x16xf32, #tpu.memory_space<vmem>>, vector<8x16xf32>,
    return
  }
}

</mosaic_0001>

<bundles_post_ra>
// kernel: forward.1
= control target key start
LH: loop header
LB: loop body
LE: loop exit
PB: predicated region body
PF: predicated region fallthrough
CT: control target
= control target key end

     0   :  { %13 = vsyncpa [#allocation6], 0  ;;  %s10486_s0 = inlined_call_operand.vmem [shape: f32[8,112], index: 0, kind: input, shape index: {}]   ;;  %s10487_s1 = inlined_call_operand.hbm [shape: f32[1,10880], index: 1, kind: input, shape index: {}]   ;;  %s10488_s2 = inlined_call_operand.hbm [shape: bf16[112,384], index: 2, kind: input, shape index: {}]   ;;  %s10489_s3 = inlined_call_operand.hbm [shape: bf16[128,2560], index: 3, kind: input, shape index: {}]   ;;  %s10490_s4 = inlined_call_operand.hbm [shape: bf16[256,640], index: 4, kind: input, shape index: {}]   ;;  %s10491_s5 = inlined_call_operand.hbm [shape: bf16[512,256], index: 5, kind: input, shape index: {}]   ;;  %s10492_s6 = inlined_call_operand.hbm [shape: bf16[384,2048], index: 6, kind: input, shape index: {}]   ;;  %s10493_s7 = inlined_call_operand.hbm [shape: bf16[1536,384], index: 7, kind: input, shape index: {}]   ;;  %s10494_s8 = inlined_call_operand.hbm [shape: f32[8,16], index: 8, kind: output, shape index: {}]  }
   0x1   :  { %14 = vsyncpa [#allocation9], 0 }
   0x2   :  { %15 = vsyncpa [#allocation12], 0 }
   0x3   :  { %16 = vsyncpa [#allocation7], 0  ;;  %s9593_s27 = smov [#allocation8]   ;;  %s9449_s9 = scalar_lea.hbm %s10488_s2, 2688 }
   0x4   :  { %s34_s28 = sshll.u32 %s9593_s27, 4  ;;  %p9450_p0 = scmp.ne.s32.totalorder %s10488_s2, %s9449_s9  ;;  %s35_s28 = int_to_ptr.vmem [resolvable:$true] %s34_s28 }
   0x5   :  { %p9453_p1 = scmp.lt.u32.totalorder %s9449_s9, %s10488_s2 }
   0x7   :  { %p9455_p2 = pnand %p9453_p1, %p9450_p0 }
   0x9   :  { %9458 = shalt.err (!%p9455_p2)
}
   0xa   :  { %s9459_s14 = scalar_lea.vmem %s35_s28, 2688  ;;  %p9464_p4 = scmp.lt.s32.totalorder %s35_s28, %s35_s28 }
   0xb   :  { %p9460_p3 = scmp.ne.s32.totalorder %s35_s28, %s9459_s14  ;;  %p9465_p5 = scmp.lt.s32.totalorder %s9459_s14, %s9459_s14 }
   0xd   :  { %p9466_p6 = por %p9465_p5, %p9464_p4 }
   0xf   :  { %p9467_p7 = pnand %p9466_p6, %p9460_p3 }
  0x11   :  { %9470 = shalt.err (!%p9467_p7)
}
  0x12   :  { %s9594_s15 = smov 192   ;;  %s9595_s16 = smov 12  }
  0x13   :  { %40 = dma.hbm_to_vmem [thread:$0]  %s10488_s2, 2688, %s35_s28, [#allocation9], %s9594_s15, %s9594_s15, %s9595_s16  }
  0x14   :  { %s9596_s19 = smov [#allocation11]   ;;  %s9471_s23 = scalar_lea.hbm %s10490_s4, 10240 }
  0x15   :  { %s58_s20 = sshll.u32 %s9596_s19, 4  ;;  %p9472_p8 = scmp.ne.s32.totalorder %s10490_s4, %s9471_s23  ;;  %s59_s20 = int_to_ptr.vmem [resolvable:$true] %s58_s20 }
  0x16   :  { %p9475_p9 = scmp.lt.u32.totalorder %s9471_s23, %s10490_s4 }
  0x18   :  { %p9477_p10 = pnand %p9475_p9, %p9472_p8 }
  0x1a   :  { %9480 = shalt.err (!%p9477_p10)
}
  0x1b   :  { %s9481_s29 = scalar_lea.vmem %s59_s20, 10240  ;;  %p9486_p12 = scmp.lt.s32.totalorder %s59_s20, %s59_s20 }
  0x1c   :  { %p9482_p11 = scmp.ne.s32.totalorder %s59_s20, %s9481_s29  ;;  %p9487_p13 = scmp.lt.s32.totalorder %s9481_s29, %s9481_s29 }
  0x1e   :  { %p9488_p0 = por %p9487_p13, %p9486_p12 }
  0x20   :  { %p9489_p1 = pnand %p9488_p0, %p9482_p11 }
  0x22   :  { %9492 = shalt.err (!%p9489_p1)
}
  0x23   :  { %s9597_s2 = smov 320   ;;  %s9598_s28 = smov 20  }
  0x24   :  { %64 = dma.hbm_to_vmem [thread:$0]  %s10490_s4, 10240, %s59_s20, [#allocation12], %s9597_s2, %s9597_s2, %s9598_s28  }
  0x25   :  { %s9599_s10 = smov [#allocation5]   ;;  %s9600_s12 = smov [#allocation10]  }
  0x26   :  { %s25_s11 = sshll.u32 %s9599_s10, 4  ;;  %s46_s13 = sshll.u32 %s9600_s12, 4  ;;  %s26_s11 = int_to_ptr.vmem [resolvable:$true] %s25_s11  ;;  %s9697_s13 = int_to_ptr.vmem [resolvable:$true] %s46_s13 }
  0x27   :  { %s9493_s17 = scalar_lea.hbm %s10487_s1, 1360 }
  0x28   :  { %p9494_p2 = scmp.ne.s32.totalorder %s10487_s1, %s9493_s17  ;;  %p9497_p3 = scmp.lt.u32.totalorder %s9493_s17, %s10487_s1 }
  0x2a   :  { %p9499_p4 = pnand %p9497_p3, %p9494_p2 }
  0x2c   :  { %9502 = shalt.err (!%p9499_p4)
}
  0x2d   :  { %s9503_s4 = scalar_lea.vmem %s26_s11, 1360  ;;  %s9507_s20 = scalar_lea.vmem %s26_s11, 1376 }
  0x2e   :  { %p9504_p5 = scmp.ne.s32.totalorder %s26_s11, %s9503_s4  ;;  %p9508_p6 = scmp.lt.s32.totalorder %s26_s11, %s26_s11 }
  0x2f   :  { %p9509_p7 = scmp.lt.s32.totalorder %s9507_s20, %s9503_s4 }
  0x31   :  { %p9510_p8 = por %p9509_p7, %p9508_p6 }
  0x33   :  { %p9511_p9 = pnand %p9510_p8, %p9504_p5 }
  0x35   :  { %9514 = shalt.err (!%p9511_p9)
}
  0x36   :  { %28 = dma.hbm_to_vmem [thread:$0]  %s10487_s1, 1360, %s26_s11, [#allocation6]  }
  0x37   :  { %s9515_s27 = scalar_lea.hbm %s10489_s3, 20480 }
  0x38   :  { %p9516_p10 = scmp.ne.s32.totalorder %s10489_s3, %s9515_s27  ;;  %p9519_p11 = scmp.lt.u32.totalorder %s9515_s27, %s10489_s3 }
  0x3a   :  { %p9521_p12 = pnand %p9519_p11, %p9516_p10 }
  0x3c   :  { %9524 = shalt.err (!%p9521_p12)
}
  0x3d   :  { %s9525_s9 = scalar_lea.vmem %s9697_s13, 20480  ;;  %p9530_p0 = scmp.lt.s32.totalorder %s9697_s13, %s9697_s13 }
  0x3e   :  { %p9526_p13 = scmp.ne.s32.totalorder %s9697_s13, %s9525_s9  ;;  %p9531_p1 = scmp.lt.s32.totalorder %s9525_s9, %s9525_s9 }
  0x40   :  { %p9532_p2 = por %p9531_p1, %p9530_p0 }
  0x42   :  { %p9533_p3 = pnand %p9532_p2, %p9526_p13 }
  0x44   :  { %9536 = shalt.err (!%p9533_p3)
}
  0x45   :  { %s9601_s1 = smov 1280   ;;  %s9602_s10 = smov 80  }
  0x46   :  { %52 = dma.hbm_to_vmem [thread:$0]  %s10489_s3, 20480, %s9697_s13, [#allocation9], %s9601_s1, %s9601_s1, %s9602_s10  }
  0x47   :  { %s9603_s14 = smov [#allocation13]   ;;  %s9537_s19 = scalar_lea.hbm %s10491_s5, 8192 }
  0x48   :  { %s70_s16 = sshll.u32 %s9603_s14, 4  ;;  %p9538_p4 = scmp.ne.s32.totalorder %s10491_s5, %s9537_s19  ;;  %s71_s16 = int_to_ptr.vmem [resolvable:$true] %s70_s16 }
  0x49   :  { %p9541_p5 = scmp.lt.u32.totalorder %s9537_s19, %s10491_s5 }
  0x4b   :  { %p9543_p6 = pnand %p9541_p5, %p9538_p4 }
  0x4d   :  { %9546 = shalt.err (!%p9543_p6)
}
  0x4e   :  { %s9547_s23 = scalar_lea.vmem %s71_s16, 8192  ;;  %p9552_p8 = scmp.lt.s32.totalorder %s71_s16, %s71_s16 }
  0x4f   :  { %p9548_p7 = scmp.ne.s32.totalorder %s71_s16, %s9547_s23  ;;  %p9553_p9 = scmp.lt.s32.totalorder %s9547_s23, %s9547_s23 }
  0x51   :  { %p9554_p10 = por %p9553_p9, %p9552_p8 }
  0x53   :  { %p9555_p11 = pnand %p9554_p10, %p9548_p7 }
  0x55   :  { %9558 = shalt.err (!%p9555_p11)
}
  0x56   :  { %s9604_s3 = smov 128   ;;  %s9605_s13 = smov 8  }
  0x57   :  { %76 = dma.hbm_to_vmem [thread:$0]  %s10491_s5, 8192, %s71_s16, [#allocation12], %s9604_s3, %s9604_s3, %s9605_s13  }
  0x58   :  { %9581 = dma.done.wait [#allocation6], 1360  }
  0x59   :  { %9582 = vsyncadd [#allocation6], 4294965936 }
  0x5a   :  { %9583 = dma.done.wait [#allocation9], 23168  }
  0x5b   :  { %9584 = vsyncadd [#allocation9], 4294944128 }
  0x5c   :  { %9585 = dma.done.wait [#allocation12], 18432  }
  0x5d   :  { %9586 = vsyncadd [#allocation12], 4294948864  ;;  %s97_s26 = sld [smem:[#allocation0]]   ;;  %s9606_s27 = smov 2048   ;;  %v9607_v0 = vmov 0   ;;  %vm305_vm0 = vcmask 916480  }
  0x5e   :  { %109 = sst [smem:[#allocation16]] %s9606_s27  ;;  %341 = vmatprep.mubr.bf16.mxu0 %v9607_v0  ;;  %s9608_s29 = smov 16   ;;  %v9621_v18 = vmov 0.0   ;;  %vm9622_vm1 = vmmov 0   ;;  %vm707_vm2 = vcmask 261120   ;;  %vm767_vm3 = vcmask 1043456  }
  0x5f   :  { %111 = sst [smem:[#allocation16 + $0x1]] %s9606_s27  ;;  %s9609_s2 = smov 64   ;;  %8513 = vmatprep.subr.bf16.mxu1 %v9621_v18  ;;  %8527 = vmatprep.mubr.msk.bf16.mxu1 %vm9622_vm1, %v9621_v18  ;;  %vm757_vm4 = vcmask 64512  }
  0x60   :  { %113 = sst [smem:[#allocation16 + $0x2]] %s9608_s29  ;;  %s9610_s5 = smov [#allocation2]  }
  0x61   :  { %115 = sst [smem:[#allocation16 + $0x3]] %s9609_s2  ;;  %s105_s28 = sshll.u32 %s9610_s5, 4  ;;  %s106_s28 = int_to_ptr.vmem [resolvable:$true] %s105_s28 }
  0x62   :  { %117 = sst [smem:[#allocation16 + $0x4]] %s9604_s3  ;;  %s9611_s30 = smov 1024  }
  0x63   :  { %121 = sst [smem:[#allocation16 + $0x6]] %s9611_s30  ;;  %s7702_s9 = sshll.u32 %s97_s26, 26 }
  0x64   :  { %123 = sst [smem:[#allocation16 + $0x7]] %s9609_s2  ;;  %s7703_s1 = sadd.s32 134217728, %s7702_s9 }
  0x65   :  { %s9612_s10 = smov 2   ;;  %s9613_s11 = smov 4  }
  0x66   :  { %119 = sst [smem:[#allocation16 + $0x5]] %s9612_s10  ;;  %s9614_s12 = smov [#allocation4]  }
  0x67   :  { %125 = sst [smem:[#allocation16 + $0x8]] %s9613_s11  ;;  %s9615_s14 = smov [#allocation15]  }
  0x68   :  { %127 = dma.general %s10492_s6, 49152, %s106_s28, %s9614_s12, %s9615_s14, [#allocation16], %s7703_s1, 0  }
  0x69   :  { %s9616_s18 = smov 384   ;;  %s9617_s19 = smov 3  }
  0x6a   :  { %144 = sst [smem:[#allocation18]] %s9616_s18  ;;  %s9618_s21 = smov [#allocation3]  }
  0x6b   :  { %146 = sst [smem:[#allocation18 + $0x1]] %s9616_s18  ;;  %s140_s22 = sshll.u32 %s9618_s21, 4  ;;  %s141_s22 = int_to_ptr.vmem [resolvable:$true] %s140_s22 }
  0x6c   :  { %148 = sst [smem:[#allocation18 + $0x2]] %s9617_s19  ;;  %s9619_s4 = smov [#allocation4 + $0x1]  }
  0x6d   :  { %150 = sst [smem:[#allocation18 + $0x3]] %s9609_s2  ;;  %s9620_s6 = smov [#allocation17]  }
  0x6e   :  { %152 = sst [smem:[#allocation18 + $0x4]] %s9604_s3  ;;  %s9624_s3 = smov 32  }
  0x6f   :  { %154 = sst [smem:[#allocation18 + $0x5]] %s9612_s10 }
  0x70   :  { %156 = sst [smem:[#allocation18 + $0x6]] %s9594_s15 }
  0x71   :  { %158 = sst [smem:[#allocation18 + $0x7]] %s9609_s2 }
  0x72   :  { %160 = sst [smem:[#allocation18 + $0x8]] %s9613_s11 }
  0x73   :  { %162 = dma.general %s10493_s7, 36864, %s141_s22, %s9619_s4, %s9620_s6, [#allocation18], %s7703_s1, 0  }
  0x74   :  { %v8963_v1 = vld [vmem:[#allocation8 + $0x4] ss:$12 sps:$4 sm:$0xff]   ;;  %v8965_v2 = vld [vmem:[#allocation8] ss:$12 sps:$4 sm:$0xff]   ;;  %v8966_v3 = vld [vmem:[#allocation8 + $0x1c] ss:$12 sps:$4 sm:$0xff]  }
  0x75   :  { %309 = vmatprep.subr.bf16.mxu0 %v8963_v1  ;;  %v8968_v4 = vld [vmem:[#allocation8 + $0x18] ss:$12 sps:$4 sm:$0xff]   ;;  %v8969_v5 = vld [vmem:[#allocation8 + $0x34] ss:$12 sps:$4 sm:$0xff]   ;;  %v8971_v6 = vld [vmem:[#allocation8 + $0x30] ss:$12 sps:$4 sm:$0xff]  }
  0x76   :  { %310 = vmatpush1.bf16.msra.mxu0 %v8965_v2  ;;  %v8972_v7 = vld [vmem:[#allocation8 + $0x4c] ss:$12 sps:$4 sm:$0xff]   ;;  %v8974_v8 = vld [vmem:[#allocation8 + $0x48] ss:$12 sps:$4 sm:$0xff]   ;;  %v8975_v9 = vld [vmem:[#allocation8 + $0x64] ss:$12 sps:$4 sm:$0xff]  }
  0x77   :  { %311 = vmatprep.subr.bf16.mxu0 %v8966_v3  ;;  %v8977_v10 = vld [vmem:[#allocation8 + $0x60] ss:$12 sps:$4 sm:$0xff]   ;;  %v8978_v11 = vld [vmem:[#allocation8 + $0x7c] ss:$12 sps:$4 sm:$0xff]   ;;  %v8980_v12 = vld [vmem:[#allocation8 + $0x78] ss:$12 sps:$4 sm:$0xff]  }
  0x78   :  { %v8981_v13 = vld [vmem:[#allocation8 + $0x94] ss:$12 sps:$4 sm:$0xff]   ;;  %v8983_v14 = vld [vmem:[#allocation8 + $0x90] ss:$12 sps:$4 sm:$0xff]   ;;  %v8991_v20 = vld [vmem:[#allocation10] ss:$80 sps:$4 sm:$0xff]  }
  0x79   :  { %v163_v15 = vld [vmem:[%s10486_s0] sm:$0xff]  ;;  %v8986_v22 = vld [vmem:[#allocation8 + $0x38] ss:$12 sps:$4 sm:$0xff]   ;;  %s9623_s0 = smov 96  }
  0x7a   :  { %312 = vmatpush1.bf16.msra.mxu0 %v8968_v4  ;;  %v192_v16 = vpack.c.bf16 %v163_v15, %v163_v15  ;;  %v8984_v17 = vld [vmem:[#allocation8 + $0x8] ss:$12 sps:$4 sm:$0xff]   ;;  %v8985_v19 = vld [vmem:[#allocation8 + $0x20] ss:$12 sps:$4 sm:$0xff]   ;;  %v8987_v23 = vld [vmem:[#allocation8 + $0x50] ss:$12 sps:$4 sm:$0xff]  }
  0x7b   :  { %313 = vmatprep.subr.bf16.mxu0 %v8969_v5  ;;  %8514 = vmatpush3.bf16.msra.mxu1 %v8984_v17  ;;  %v8993_v21 = vld [vmem:[#allocation10 + $0x4] ss:$80 sps:$4 sm:$0xff]   ;;  %v8988_v24 = vld [vmem:[#allocation8 + $0x68] ss:$12 sps:$4 sm:$0xff]   ;;  %v8990_v26 = vld [vmem:[#allocation8 + $0x98] ss:$12 sps:$4 sm:$0xff]  }
  0x7c   :  { %8515 = vmatprep.subr.bf16.mxu1 %v9621_v18  ;;  %v8989_v25 = vld [vmem:[#allocation8 + $0x80] ss:$12 sps:$4 sm:$0xff]   ;;  %v7729_v28 = vld [vmem:[#allocation5] ss:$0 sm:$0xff] }
  0x7d   :  { %v8994_v27 = vld [vmem:[#allocation10 + $0x8] ss:$80 sps:$4 sm:$0xff]   ;;  %v8997_v35 = vld [vmem:[#allocation10 + $0xa4] ss:$80 sps:$4 sm:$0xff]   ;;  %v8995_v36 = vld [vmem:[#allocation10 + $0xa0] ss:$80 sps:$4 sm:$0xff]  }
  0x7e   :  { %314 = vmatpush1.bf16.msra.mxu0 %v8971_v6  ;;  %v8998_v37 = vld [vmem:[#allocation10 + $0xa8] ss:$80 sps:$4 sm:$0xff]   ;;  %v9001_v38 = vld [vmem:[#allocation10 + $0x144] ss:$80 sps:$4 sm:$0xff]   ;;  %v8999_v39 = vld [vmem:[#allocation10 + $0x140] ss:$80 sps:$4 sm:$0xff]  }
  0x7f   :  { %315 = vmatprep.subr.bf16.mxu0 %v8972_v7  ;;  %8516 = vmatpush3.bf16.msra.mxu1 %v8985_v19  ;;  %v9002_v40 = vld [vmem:[#allocation10 + $0x148] ss:$80 sps:$4 sm:$0xff]   ;;  %v9005_v41 = vld [vmem:[#allocation10 + $0x1e4] ss:$80 sps:$4 sm:$0xff]   ;;  %v9003_v42 = vld [vmem:[#allocation10 + $0x1e0] ss:$80 sps:$4 sm:$0xff]  }
  0x80   :  { %8517 = vmatprep.subr.bf16.mxu1 %v9621_v18  ;;  %v9006_v43 = vld [vmem:[#allocation10 + $0x1e8] ss:$80 sps:$4 sm:$0xff]   ;;  %v9007_v44 = vld [vmem:[#allocation10 + $0x280] ss:$80 sps:$4 sm:$0xff]   ;;  %v9009_v45 = vld [vmem:[#allocation10 + $0x284] ss:$80 sps:$4 sm:$0xff]  }
  0x81   :  { %v9010_v46 = vld [vmem:[#allocation10 + $0x288] ss:$80 sps:$4 sm:$0xff]   ;;  %v9013_v47 = vld [vmem:[#allocation10 + $0x324] ss:$80 sps:$4 sm:$0xff]   ;;  %v9011_v48 = vld [vmem:[#allocation10 + $0x320] ss:$80 sps:$4 sm:$0xff]  }
  0x82   :  { %316 = vmatpush1.bf16.msra.mxu0 %v8974_v8  ;;  %v9014_v49 = vld [vmem:[#allocation10 + $0x328] ss:$80 sps:$4 sm:$0xff]   ;;  %v9017_v50 = vld [vmem:[#allocation10 + $0x3c4] ss:$80 sps:$4 sm:$0xff]   ;;  %v9015_v51 = vld [vmem:[#allocation10 + $0x3c0] ss:$80 sps:$4 sm:$0xff]  }
  0x83   :  { %317 = vmatprep.subr.bf16.mxu0 %v8975_v9  ;;  %8518 = vmatpush3.bf16.msra.mxu1 %v8986_v22  ;;  %v9018_v52 = vld [vmem:[#allocation10 + $0x3c8] ss:$80 sps:$4 sm:$0xff]   ;;  %v9021_v53 = vld [vmem:[#allocation10 + $0x464] ss:$80 sps:$4 sm:$0xff]   ;;  %v9019_v54 = vld [vmem:[#allocation10 + $0x460] ss:$80 sps:$4 sm:$0xff]  }
  0x84   :  { %8519 = vmatprep.subr.bf16.mxu1 %v9621_v18  ;;  %v9022_v55 = vld [vmem:[#allocation10 + $0x468] ss:$80 sps:$4 sm:$0xff]   ;;  %v7732_v6 = vld [vmem:[#allocation5 + $0x31] ss:$0 sm:$0xff]  ;;  %v7733_v8 = vld [vmem:[#allocation5 + $0x32] ss:$0 sm:$0xff] }
  0x85   :  { %v477_v15 = vld [vmem:[#allocation5 + $0x1] sm:$0x7] }
  0x86   :  { %318 = vmatpush1.bf16.msra.mxu0 %v8977_v10 }
  0x87   :  { %319 = vmatprep.subr.bf16.mxu0 %v8978_v11  ;;  %8520 = vmatpush3.bf16.msra.mxu1 %v8987_v23 }
  0x88   :  { %8521 = vmatprep.subr.bf16.mxu1 %v9621_v18 }
  0x8a   :  { %320 = vmatpush1.bf16.msra.mxu0 %v8980_v12  ;;  %v479_v12 = vlaneseq }
  0x8b   :  { %321 = vmatprep.subr.bf16.mxu0 %v8981_v13  ;;  %8522 = vmatpush3.bf16.msra.mxu1 %v8988_v24 }
  0x8c   :  { %8523 = vmatprep.subr.bf16.mxu1 %v9621_v18  ;;  %v9797_v13 = vshrl.u32 %v479_v12, 7 }
  0x8e   :  { %322 = vmatpush1.bf16.msra.mxu0 %v8983_v14  ;;  %v9800_v14 = vsub.s32 0, %v9797_v13  ;;  %v9806_v17 = vsub.s32 2, %v9797_v13 }
  0x8f   :  { %622 = vmatprep.subr.bf16.mxu0 %v8993_v21  ;;  %8524 = vmatpush3.bf16.msra.mxu1 %v8989_v25 }
  0x90   :  { %8525 = vmatprep.subr.bf16.mxu1 %v9621_v18  ;;  %v482_v19 = vrot.slane %v477_v15, %v9800_v14  ;;  %v490_v21 = vrot.slane %v477_v15, %v9806_v17 }
  0x91   :  { %7727 = vmatmul.mubr.msk.bf16.vlgmr.msra.gmra.mrb[0].mxu0 %vm305_vm0, %v192_v16 }
  0x92   :  { %654 = vmatprep.mubr.bf16.mxu0 %v9607_v0  ;;  %623 = vmatpush1.bf16.msra.mxu0 %v8991_v20 }
  0x93   :  { %8526 = vmatpush3.bf16.msra.mxu1 %v8990_v26  ;;  %624 = vmatprep.subr.bf16.mxu0 %v8997_v35 }
  0x94   :  { %8531 = vmatprep.subr.bf16.mxu1 %v9621_v18 }
  0x96   :  { %8528 = vmatmul.mubr.msk.bf16.vlgmr.msra.gmra.mrb[0].mxu1 %vm305_vm0, %v192_v16  ;;  %625 = vmatpush1.bf16.msra.mxu0 %v8995_v36  ;;  %v9803_v16 = vsub.s32 1, %v9797_v13 }
  0x97   :  { %8532 = vmatpush3.bf16.msra.mxu1 %v8994_v27  ;;  %8547 = vmatprep.mubr.msk.bf16.mxu1 %vm9622_vm1, %v9621_v18 }
  0x98   :  { %8533 = vmatprep.subr.bf16.mxu1 %v9621_v18  ;;  %626 = vmatprep.subr.bf16.mxu0 %v9001_v38  ;;  %v486_v20 = vrot.slane %v477_v15, %v9803_v16 }
  0x9a   :  { %627 = vmatpush1.bf16.msra.mxu0 %v8999_v39 }
  0x9b   :  { %8534 = vmatpush3.bf16.msra.mxu1 %v8998_v37  ;;  %628 = vmatprep.subr.bf16.mxu0 %v9005_v41 }
  0x9c   :  { %8535 = vmatprep.subr.bf16.mxu1 %v9621_v18 }
  0x9e   :  { %629 = vmatpush1.bf16.msra.mxu0 %v9003_v42 }
  0x9f   :  { %8536 = vmatpush3.bf16.msra.mxu1 %v9002_v40  ;;  %630 = vmatprep.subr.bf16.mxu0 %v9009_v45 }
  0xa0   :  { %8537 = vmatprep.subr.bf16.mxu1 %v9621_v18 }
  0xa2   :  { %631 = vmatpush1.bf16.msra.mxu0 %v9007_v44 }
  0xa3   :  { %8538 = vmatpush3.bf16.msra.mxu1 %v9006_v43  ;;  %632 = vmatprep.subr.bf16.mxu0 %v9013_v47 }
  0xa4   :  { %8539 = vmatprep.subr.bf16.mxu1 %v9621_v18 }
  0xa6   :  { %633 = vmatpush1.bf16.msra.mxu0 %v9011_v48 }
  0xa7   :  { %8540 = vmatpush3.bf16.msra.mxu1 %v9010_v46  ;;  %634 = vmatprep.subr.bf16.mxu0 %v9017_v50 }
  0xa8   :  { %8541 = vmatprep.subr.bf16.mxu1 %v9621_v18 }
  0xaa   :  { %635 = vmatpush1.bf16.msra.mxu0 %v9015_v51  ;;  %v9023_v51 = vld [vmem:[#allocation10 + $0xc] ss:$80 sps:$4 sm:$0xff]  }
  0xab   :  { %8542 = vmatpush3.bf16.msra.mxu1 %v9014_v49  ;;  %636 = vmatprep.subr.bf16.mxu0 %v9021_v53  ;;  %v9024_v53 = vld [vmem:[#allocation10 + $0xac] ss:$80 sps:$4 sm:$0xff]  }
  0xac   :  { %8543 = vmatprep.subr.bf16.mxu1 %v9621_v18 }
  0xae   :  { %637 = vmatpush1.bf16.msra.mxu0 %v9019_v54 }
  0xaf   :  { %8544 = vmatpush3.bf16.msra.mxu1 %v9018_v52  ;;  %8577 = vmatprep.subr.bf16.mxu0 %v9621_v18 }
  0xb0   :  { %8545 = vmatprep.subr.bf16.mxu1 %v9621_v18 }
  0xb3   :  { %8546 = vmatpush3.bf16.msra.mxu1 %v9022_v55 }
  0xb4   :  { %8551 = vmatprep.subr.bf16.mxu1 %v9621_v18 }
 0x164   :  { %v343_v29 = vpop.f32.mrb[0].mxu0 }
 0x165   :  { %v9775_v30 = vadd.f32 %v7729_v28, %v343_v29  ;;  %v9777_v31 = vpop.f32.mrb[1].mxu0 }
 0x166   :  { %v347_v32 = vpop.f32.mrb[2].mxu0 }
 0x167   :  { %414 = vadd.xlane.f32.xlu0 %v9775_v30  ;;  %v348_v33 = vpop.f32.mrb[3].mxu0  ;;  %v418_v34 = vmul.f32 %v9775_v30, %v9775_v30 }
 0x169   :  { %v9790_v56 = vpop.f32.mrb[0].mxu1 }
 0x16a   :  { %v8529_v57 = vpop.f32.mrb[1].mxu1 }
 0x16b   :  { %419 = vadd.xlane.f32.xlu0 %v418_v34  ;;  %v387_v58 = vpop.f32.mrb[2].mxu1 }
 0x16c   :  { %v8530_v59 = vpop.f32.mrb[3].mxu1 }
 0x1f4   :  { %v415_v60 = vpop.xlane.xlu0 %414 }
 0x1f5   :  { %v417_v61 = vmul.f32 0.0078125, %v415_v60 }
 0x1f7   :  { %v422_v63 = vmul.f32 %v417_v61, %v417_v61  ;;  %v426_v4 = vsub.f32 %v9775_v30, %v417_v61 }
 0x1f8   :  { %v420_v62 = vpop.xlane.xlu0 %419 }
 0x1f9   :  { %v421_v1 = vmul.f32 0.0078125, %v420_v62 }
 0x1fb   :  { %v423_v2 = vsub.f32 %v421_v1, %v422_v63 }
 0x1fd   :  { %v424_v3 = vadd.f32 1e-05, %v423_v2 }
 0x1ff   :  { %9383 = vrsqrt.f32 %v424_v3 }
 0x209   :  { %v9384_v5 = vpop.eup %9383 }
 0x20a   :  { %v427_v7 = vmul.f32 %v9384_v5, %v426_v4 }
 0x20c   :  { %v435_v9 = vmul.f32 %v7732_v6, %v427_v7 }
 0x20e   :  { %v443_v10 = vadd.f32 %v7733_v8, %v435_v9 }
 0x210   :  { %v476_v11 = vpack.c.bf16 %v443_v10, %v443_v10 }
 0x212   :  { %655 = vmatmul.mubr.bf16.vlgmr.msra.gmra.mrb[4].mxu0 %v476_v11  ;;  %8548 = vmatmul.mubr.bf16.vlgmr.msra.gmra.mrb[4].mxu1 %v476_v11 }
 0x213   :  { %8553 = vmatprep.mubr.msk.bf16.mxu1 %vm9622_vm1, %v9621_v18  ;;  %8579 = vmatprep.mubr.msk.bf16.mxu0 %vm9622_vm1, %v9621_v18 }
 0x2e5   :  { %v656_v22 = vpop.f32.mrb[4].mxu0  ;;  %v697_v23 = vpop.f32.mrb[4].mxu1 }
 0x2e6   :  { %v657_v24 = vadd.f32 %v656_v22, %v482_v19  ;;  %v658_v25 = vpop.f32.mrb[5].mxu0  ;;  %v8549_v26 = vpop.f32.mrb[5].mxu1  ;;  %v698_v33 = vadd.f32 %v697_v23, %v490_v21 }
 0x2e7   :  { %v659_v27 = vadd.f32 %v658_v25, %v486_v20  ;;  %v660_v28 = vpop.f32.mrb[6].mxu0  ;;  %v700_v29 = vpop.f32.mrb[6].mxu1 }
 0x2e8   :  { %v704_v32 = vpack.c.bf16 %v657_v24, %v657_v24  ;;  %v661_v34 = vpop.f32.mrb[7].mxu0  ;;  %v8550_v35 = vpop.f32.mrb[7].mxu1  ;;  %v9813_v38 = vpack.c.bf16 %v698_v33, %v698_v33 }
 0x2e9   :  { %v705_v36 = vpack.c.bf16 %v659_v27, %v659_v27 }
 0x2ea   :  { %879 = vrot.lane.b32.xlu0 %v704_v32, %s9623_s0  ;;  %v769_v39 = vsel %vm767_vm3, %v9813_v38, 0 }
 0x2eb   :  { %v712_v37 = vsel %vm707_vm2, %v705_v36, 0 }
 0x2ec   :  { %8552 = vmatpush3.bf16.xpose.msra.mxu1 %v712_v37 }
 0x2ed   :  { %8557 = vmatprep.subr.bf16.mxu1 %v9621_v18 }
 0x2ee   :  { %1108 = vrot.lane.b32.xlu0 %v9813_v38, %s9609_s2 }
 0x2f2   :  { %1219 = vrot.lane.b32.xlu0 %v705_v36, %s9624_s3 }
 0x2f3   :  { %8554 = vmatmul.mubr.msk.bf16.vlgmr.msra.gmra.mrb[8].mxu1 %vm707_vm2, %v704_v32 }
 0x2f4   :  { %8558 = vmatpush3.bf16.msra.mxu1 %v769_v39  ;;  %8559 = vmatprep.mubr.msk.bf16.mxu1 %vm9622_vm1, %v9621_v18 }
 0x2f5   :  { %8563 = vmatprep.subr.bf16.mxu1 %v9621_v18 }
 0x2f6   :  { %1217 = vrot.lane.b32.xlu0 %v704_v32, %s9624_s3 }
 0x35c   :  { %v880_v63 = vpop.permute.xlu0 %879 }
 0x360   :  { %v1109_v2 = vpop.permute.xlu0 %1108 }
 0x361   :  { %v1114_v4 = vsel %vm767_vm3, %v1109_v2, 0 }
 0x3c6   :  { %v748_v40 = vpop.f32.mrb[8].mxu1 }
 0x3c7   :  { %v754_v41 = vmul.f32 0.17677669, %v748_v40  ;;  %v8555_v42 = vpop.f32.mrb[9].mxu1 }
 0x3c8   :  { %v751_v43 = vpop.f32.mrb[10].mxu1  ;;  %v9025_v42 = vld [vmem:[#allocation10 + $0x14c] ss:$80 sps:$4 sm:$0xff]  }
 0x3c9   :  { %v755_v44 = vmul.f32 1.442695, %v754_v41  ;;  %v8556_v45 = vpop.f32.mrb[11].mxu1 }
 0x3cb   :  { %9385 = vpow2.f32 %v755_v44 }
 0x3d5   :  { %v9386_v46 = vpop.eup %9385 }
 0x3d6   :  { %v758_v47 = vsel %vm757_vm4, %v9386_v46, 0.0 }
 0x3d7   :  { %759 = vadd.xlane.f32.xlu1 %v758_v47  ;;  %v9026_v47 = vld [vmem:[#allocation10 + $0x1ec] ss:$80 sps:$4 sm:$0xff]  }
 0x3e8   :  { %882 = vrot.lane.b32.xlu1 %v705_v36, %s9623_s0 }
 0x3ec   :  { %1051 = vrot.lane.b32.xlu1 %v705_v36, %s9609_s2 }
 0x3f0   :  { %1049 = vrot.lane.b32.xlu1 %v704_v32, %s9609_s2  ;;  %v1220_v32 = vpop.permute.xlu0 %1219 }
 0x3f4   :  { %v1218_v33 = vpop.permute.xlu0 %1217 }
 0x464   :  { %v760_v48 = vpop.xlane.xlu1 %759 }
 0x465   :  { %9387 = vrcp.f32 %v760_v48 }
 0x468   :  { %v883_v54 = vpop.permute.xlu1 %882 }
 0x469   :  { %v888_v60 = vsel %vm707_vm2, %v883_v54, 0  ;;  %v9028_v54 = vld [vmem:[#allocation10 + $0x32c] ss:$80 sps:$4 sm:$0xff]  }
 0x46c   :  { %v1052_v62 = vpop.permute.xlu1 %1051 }
 0x46d   :  { %v1057_v1 = vsel %vm707_vm2, %v1052_v62, 0 }
 0x46f   :  { %v9388_v49 = vpop.eup %9387 }
 0x470   :  { %v762_v50 = vmul.f32 %v9388_v49, %v9386_v46  ;;  %v1050_v3 = vpop.permute.xlu1 %1049  ;;  %v1225_v46 = vsel %vm707_vm2, %v1220_v32, 0  ;;  %v9027_v49 = vld [vmem:[#allocation10 + $0x28c] ss:$80 sps:$4 sm:$0xff]   ;;  %v9037_v32 = vld [vmem:[#allocation10 + $0xb0] ss:$80 sps:$4 sm:$0xff]  }
 0x472   :  { %v763_v52 = vpack.c.bf16 %v762_v50, %v762_v50 }
 0x474   :  { %8560 = vmatmul.mubr.msk.bf16.vlgmr.msra.gmra.mrb[12].mxu1 %vm757_vm4, %v763_v52 }
 0x475   :  { %8564 = vmatpush3.bf16.msra.mxu1 %v9023_v51  ;;  %8567 = vmatprep.mubr.msk.bf16.mxu1 %vm9622_vm1, %v9621_v18 }
 0x476   :  { %8565 = vmatprep.subr.bf16.mxu1 %v9621_v18 }
 0x479   :  { %8566 = vmatpush3.bf16.msra.mxu1 %v9024_v53 }
 0x47a   :  { %8571 = vmatprep.subr.bf16.mxu1 %v9621_v18 }
 0x547   :  { %v805_v55 = vpop.f32.mrb[12].mxu1 }
 0x548   :  { %v815_v57 = vpack.c.bf16 %v805_v55, %v805_v55  ;;  %v8561_v58 = vpop.f32.mrb[13].mxu1 }
 0x549   :  { %v808_v59 = vpop.f32.mrb[14].mxu1 }
 0x54a   :  { %v8562_v61 = vpop.f32.mrb[15].mxu1  ;;  %8568 = vmatmul.mubr.msk.bf16.vlgmr.msra.gmra.mrb[16].mxu1 %vm707_vm2, %v815_v57 }
 0x54b   :  { %8572 = vmatpush3.bf16.xpose.msra.mxu1 %v888_v60  ;;  %8573 = vmatprep.mubr.msk.bf16.mxu1 %vm9622_vm1, %v9621_v18 }
 0x54c   :  { %8591 = vmatprep.subr.bf16.mxu1 %v9621_v18 }
 0x552   :  { %8574 = vmatmul.mubr.msk.bf16.vlgmr.msra.gmra.mrb[20].mxu1 %vm707_vm2, %v880_v63 }
 0x553   :  { %8592 = vmatpush3.bf16.xpose.msra.mxu1 %v1057_v1  ;;  %8593 = vmatprep.mubr.msk.bf16.mxu1 %vm9622_vm1, %v9621_v18 }
 0x554   :  { %8597 = vmatprep.subr.bf16.mxu1 %v9621_v18 }
 0x55a   :  { %8594 = vmatmul.mubr.msk.bf16.vlgmr.msra.gmra.mrb[24].mxu1 %vm707_vm2, %v1050_v3 }
 0x55b   :  { %8598 = vmatpush3.bf16.msra.mxu1 %v1114_v4  ;;  %8599 = vmatprep.mubr.msk.bf16.mxu1 %vm9622_vm1, %v9621_v18 }
 0x55c   :  { %8611 = vmatprep.subr.bf16.mxu1 %v9621_v18 }
 0x61d   :  { %v9850_v5 = vpop.f32.mrb[16].mxu1 }
 0x61e   :  { %v8569_v6 = vpop.f32.mrb[17].mxu1 }
 0x61f   :  { %v868_v7 = vpop.f32.mrb[18].mxu1 }
 0x620   :  { %v8570_v8 = vpop.f32.mrb[19].mxu1 }
 0x625   :  { %v924_v9 = vpop.f32.mrb[20].mxu1 }
 0x626   :  { %v930_v10 = vmul.f32 0.17677669, %v924_v9  ;;  %v8575_v11 = vpop.f32.mrb[21].mxu1 }
 0x627   :  { %v927_v12 = vpop.f32.mrb[22].mxu1 }
 0x628   :  { %v931_v15 = vmul.f32 1.442695, %v930_v10  ;;  %v8576_v19 = vpop.f32.mrb[23].mxu1  ;;  %v9029_v12 = vld [vmem:[#allocation10 + $0x3cc] ss:$80 sps:$4 sm:$0xff]  }
 0x62a   :  { %9389 = vpow2.f32 %v931_v15 }
 0x62d   :  { %v1093_v20 = vpop.f32.mrb[24].mxu1 }
 0x62e   :  { %v1099_v21 = vmul.f32 0.17677669, %v1093_v20  ;;  %v8595_v22 = vpop.f32.mrb[25].mxu1 }
 0x62f   :  { %v1096_v23 = vpop.f32.mrb[26].mxu1 }
 0x630   :  { %v1100_v24 = vmul.f32 1.442695, %v1099_v21  ;;  %v8596_v25 = vpop.f32.mrb[27].mxu1 }
 0x631   :  { %v9033_v25 = vld [vmem:[#allocation10 + $0x14] ss:$80 sps:$4 sm:$0xff]  }
 0x632   :  { %9391 = vpow2.f32 %v1100_v24  ;;  %v9031_v24 = vld [vmem:[#allocation10 + $0x10] ss:$80 sps:$4 sm:$0xff]  }
 0x634   :  { %v9390_v26 = vpop.eup %9389 }
 0x635   :  { %v933_v27 = vsel %vm757_vm4, %v9390_v26, 0.0 }
 0x636   :  { %934 = vadd.xlane.f32.xlu0 %v933_v27  ;;  %v9036_v27 = vld [vmem:[#allocation10 + $0x1c] ss:$80 sps:$4 sm:$0xff]  }
 0x63c   :  { %v9392_v28 = vpop.eup %9391 }
 0x63d   :  { %v1102_v29 = vsel %vm757_vm4, %v9392_v28, 0.0 }
 0x63e   :  { %1103 = vadd.xlane.f32.xlu1 %v1102_v29  ;;  %v9042_v29 = vld [vmem:[#allocation10 + $0xbc] ss:$80 sps:$4 sm:$0xff]  }
 0x64f   :  { %940 = vrot.lane.b32.xlu1 %v9813_v38, %s9623_s0 }
 0x6c3   :  { %v935_v34 = vpop.xlane.xlu0 %934 }
 0x6c4   :  { %9393 = vrcp.f32 %v935_v34  ;;  %v7763_v34 = vld [vmem:[#allocation5 + $0x4] ss:$0 sm:$0xff] }
 0x6cb   :  { %v1104_v35 = vpop.xlane.xlu1 %1103 }
 0x6cc   :  { %9395 = vrcp.f32 %v1104_v35  ;;  %v877_v35 = vadd.f32 %v7763_v34, %v9850_v5  ;;  %v1451_v34 = vld [vmem:[#allocation5 + $0x5] sm:$0xf] }
 0x6ce   :  { %v9394_v36 = vpop.eup %9393 }
 0x6cf   :  { %v937_v37 = vmul.f32 %v9394_v36, %v9390_v26  ;;  %v941_v39 = vpop.permute.xlu1 %940  ;;  %v9034_v26 = vld [vmem:[#allocation10 + $0x18] ss:$80 sps:$4 sm:$0xff]  }
 0x6d0   :  { %v946_v40 = vsel %vm767_vm3, %v941_v39, 0 }
 0x6d1   :  { %8578 = vmatpush3.bf16.msra.mxu0 %v946_v40  ;;  %v938_v41 = vpack.c.bf16 %v937_v37, %v937_v37 }
 0x6d2   :  { %8583 = vmatprep.subr.bf16.mxu0 %v9621_v18 }
 0x6d4   :  { %8580 = vmatmul.mubr.msk.bf16.vlgmr.msra.gmra.mrb[8].mxu0 %vm757_vm4, %v938_v41 }
 0x6d5   :  { %8584 = vmatpush3.bf16.msra.mxu0 %v9025_v42  ;;  %8587 = vmatprep.mubr.msk.bf16.mxu0 %vm9622_vm1, %v9621_v18 }
 0x6d6   :  { %v9396_v43 = vpop.eup %9395  ;;  %8585 = vmatprep.subr.bf16.mxu0 %v9621_v18 }
 0x6d7   :  { %v1106_v44 = vmul.f32 %v9396_v43, %v9392_v28  ;;  %v9039_v28 = vld [vmem:[#allocation10 + $0xb4] ss:$80 sps:$4 sm:$0xff]   ;;  %v7730_v43 = vld [vmem:[#allocation5 + $0xa] ss:$0 sm:$0xff] }
 0x6d9   :  { %v1107_v45 = vpack.c.bf16 %v1106_v44, %v1106_v44  ;;  %8586 = vmatpush3.bf16.msra.mxu0 %v9026_v47 }
 0x6da   :  { %8603 = vmatprep.subr.bf16.mxu0 %v9621_v18 }
 0x6db   :  { %8600 = vmatmul.mubr.msk.bf16.vlgmr.msra.gmra.mrb[28].mxu1 %vm757_vm4, %v1107_v45 }
 0x6dc   :  { %8612 = vmatpush3.bf16.xpose.msra.mxu1 %v1225_v46  ;;  %8613 = vmatprep.mubr.msk.bf16.mxu1 %vm9622_vm1, %v9621_v18  ;;  %v9893_v46 = vadd.f32 %v7730_v43, %v9777_v31  ;;  %v9051_v31 = vld [vmem:[#allocation10 + $0x1f4] ss:$80 sps:$4 sm:$0xff]  }
 0x6dd   :  { %1633 = vmatprep.subr.bf16.mxu1 %v9033_v25 }
 0x6de   :  { %v9900_v47 = vmul.f32 %v9893_v46, %v9893_v46 }
 0x6e3   :  { %8614 = vmatmul.mubr.msk.bf16.vlgmr.msra.gmra.mrb[32].mxu1 %vm707_vm2, %v1218_v33  ;;  %v9040_v33 = vld [vmem:[#allocation10 + $0xb8] ss:$80 sps:$4 sm:$0xff]  }
 0x6e4   :  { %1665 = vmatprep.mubr.bf16.mxu1 %v9607_v0  ;;  %1634 = vmatpush1.bf16.msra.mxu1 %v9031_v24  ;;  %v7780_v24 = vld [vmem:[#allocation5 + $0x34] ss:$0 sm:$0xff] }
 0x6e5   :  { %1635 = vmatprep.subr.bf16.mxu1 %v9039_v28  ;;  %v9079_v28 = vld [vmem:[#allocation13 + $0x80] ss:$8 sps:$4 sm:$0xff]  }
 0x6e8   :  { %1636 = vmatpush1.bf16.msra.mxu1 %v9037_v32  ;;  %v9081_v32 = vld [vmem:[#allocation13] ss:$8 sps:$4 sm:$0xff]  }
 0x7a7   :  { %v982_v48 = vpop.f32.mrb[8].mxu0 }
 0x7a8   :  { %v992_v50 = vpack.c.bf16 %v982_v48, %v982_v48  ;;  %v8581_v51 = vpop.f32.mrb[9].mxu0  ;;  %v9045_v48 = vld [vmem:[#allocation10 + $0x154] ss:$80 sps:$4 sm:$0xff]  }
 0x7a9   :  { %v985_v52 = vpop.f32.mrb[10].mxu0  ;;  %1637 = vmatprep.subr.bf16.mxu1 %v9045_v48  ;;  %v9054_v51 = vld [vmem:[#allocation10 + $0x1fc] ss:$80 sps:$4 sm:$0xff]  }
 0x7aa   :  { %v8582_v53 = vpop.f32.mrb[11].mxu0  ;;  %8588 = vmatmul.mubr.msk.bf16.vlgmr.msra.gmra.mrb[12].mxu0 %vm707_vm2, %v992_v50  ;;  %v9043_v50 = vld [vmem:[#allocation10 + $0x150] ss:$80 sps:$4 sm:$0xff]  }
 0x7ab   :  { %8604 = vmatpush3.bf16.msra.mxu0 %v9027_v49  ;;  %8607 = vmatprep.mubr.msk.bf16.mxu0 %vm9622_vm1, %v9621_v18  ;;  %v9048_v49 = vld [vmem:[#allocation10 + $0x15c] ss:$80 sps:$4 sm:$0xff]   ;;  %v9049_v52 = vld [vmem:[#allocation10 + $0x1f0] ss:$80 sps:$4 sm:$0xff]   ;;  %v9052_v53 = vld [vmem:[#allocation10 + $0x1f8] ss:$80 sps:$4 sm:$0xff]  }
 0x7ac   :  { %8605 = vmatprep.subr.bf16.mxu0 %v9621_v18  ;;  %1638 = vmatpush1.bf16.msra.mxu1 %v9043_v50 }
 0x7ad   :  { %1639 = vmatprep.subr.bf16.mxu1 %v9051_v31 }
 0x7ae   :  { %v1150_v55 = vpop.f32.mrb[28].mxu1 }
 0x7af   :  { %v8601_v57 = vpop.f32.mrb[29].mxu1  ;;  %8606 = vmatpush3.bf16.msra.mxu0 %v9028_v54  ;;  %v1160_v60 = vpack.c.bf16 %v1150_v55, %v1150_v55  ;;  %v9057_v54 = vld [vmem:[#allocation10 + $0x294] ss:$80 sps:$4 sm:$0xff]   ;;  %v9055_v55 = vld [vmem:[#allocation10 + $0x290] ss:$80 sps:$4 sm:$0xff]  }
 0x7b0   :  { %v1153_v58 = vpop.f32.mrb[30].mxu1  ;;  %8617 = vmatprep.subr.bf16.mxu0 %v9621_v18  ;;  %1640 = vmatpush1.bf16.msra.mxu1 %v9049_v52  ;;  %v9058_v57 = vld [vmem:[#allocation10 + $0x298] ss:$80 sps:$4 sm:$0xff]  }
 0x7b1   :  { %v8602_v59 = vpop.f32.mrb[31].mxu1  ;;  %v9060_v58 = vld [vmem:[#allocation10 + $0x29c] ss:$80 sps:$4 sm:$0xff]   ;;  %1641 = vmatprep.subr.bf16.mxu1 %v9057_v54 }
 0x7b2   :  { %v9063_v59 = vld [vmem:[#allocation10 + $0x334] ss:$80 sps:$4 sm:$0xff]  }
 0x7b4   :  { %1642 = vmatpush1.bf16.msra.mxu1 %v9055_v55 }
 0x7b5   :  { %1643 = vmatprep.subr.bf16.mxu1 %v9063_v59 }
 0x7b6   :  { %8608 = vmatmul.mubr.msk.bf16.vlgmr.msra.gmra.mrb[12].mxu0 %vm707_vm2, %v1160_v60  ;;  %v1261_v61 = vpop.f32.mrb[32].mxu1  ;;  %v9066_v60 = vld [vmem:[#allocation10 + $0x33c] ss:$80 sps:$4 sm:$0xff]  }
 0x7b7   :  { %v1267_v62 = vmul.f32 0.17677669, %v1261_v61  ;;  %v8615_v63 = vpop.f32.mrb[33].mxu1  ;;  %8619 = vmatprep.mubr.msk.bf16.mxu0 %vm9622_vm1, %v9621_v18  ;;  %v9061_v61 = vld [vmem:[#allocation10 + $0x330] ss:$80 sps:$4 sm:$0xff]  }
 0x7b8   :  { %v1264_v1 = vpop.f32.mrb[34].mxu1  ;;  %v9069_v63 = vld [vmem:[#allocation10 + $0x3d4] ss:$80 sps:$4 sm:$0xff]   ;;  %1644 = vmatpush1.bf16.msra.mxu1 %v9061_v61 }
 0x7b9   :  { %v1268_v2 = vmul.f32 1.442695, %v1267_v62  ;;  %v8616_v3 = vpop.f32.mrb[35].mxu1  ;;  %v9064_v62 = vld [vmem:[#allocation10 + $0x338] ss:$80 sps:$4 sm:$0xff]   ;;  %1645 = vmatprep.subr.bf16.mxu1 %v9069_v63 }
 0x7ba   :  { %v9072_v1 = vld [vmem:[#allocation10 + $0x3dc] ss:$80 sps:$4 sm:$0xff]   ;;  %v9070_v3 = vld [vmem:[#allocation10 + $0x3d8] ss:$80 sps:$4 sm:$0xff]  }
 0x7bb   :  { %9397 = vpow2.f32 %v1268_v2  ;;  %v9067_v2 = vld [vmem:[#allocation10 + $0x3d0] ss:$80 sps:$4 sm:$0xff]  }
 0x7bc   :  { %1646 = vmatpush1.bf16.msra.mxu1 %v9067_v2 }
 0x7c5   :  { %v9398_v4 = vpop.eup %9397 }
 0x7c6   :  { %v1270_v6 = vsel %vm757_vm4, %v9398_v4, 0.0 }
 0x7c7   :  { %1271 = vadd.xlane.f32.xlu0 %v1270_v6  ;;  %v9078_v6 = vld [vmem:[#allocation10 + $0x47c] ss:$80 sps:$4 sm:$0xff]  }
 0x7dd   :  { %1276 = vrot.lane.b32.xlu0 %v9813_v38, %s9624_s3  ;;  %v9030_v38 = vld [vmem:[#allocation10 + $0x46c] ss:$80 sps:$4 sm:$0xff]  }
 0x854   :  { %v1272_v7 = vpop.xlane.xlu0 %1271 }
 0x855   :  { %9399 = vrcp.f32 %v1272_v7  ;;  %v9073_v7 = vld [vmem:[#allocation10 + $0x470] ss:$80 sps:$4 sm:$0xff]  }
 0x858   :  { %v1277_v8 = vpop.permute.xlu0 %1276 }
 0x859   :  { %v1282_v9 = vsel %vm767_vm3, %v1277_v8, 0  ;;  %v9076_v8 = vld [vmem:[#allocation10 + $0x478] ss:$80 sps:$4 sm:$0xff]  }
 0x85a   :  { %8618 = vmatpush3.bf16.msra.mxu0 %v1282_v9 }
 0x85b   :  { %8623 = vmatprep.subr.bf16.mxu0 %v9621_v18 }
 0x85f   :  { %v9400_v10 = vpop.eup %9399 }
 0x860   :  { %v1274_v11 = vmul.f32 %v9400_v10, %v9398_v4  ;;  %v9075_v4 = vld [vmem:[#allocation10 + $0x474] ss:$80 sps:$4 sm:$0xff]  }
 0x861   :  { %1647 = vmatprep.subr.bf16.mxu1 %v9075_v4 }
 0x862   :  { %v1275_v15 = vpack.c.bf16 %v1274_v11, %v1274_v11  ;;  %1648 = vmatpush1.bf16.msra.mxu1 %v9073_v7  ;;  %v9084_v7 = vld [vmem:[#allocation13 + $0x190] ss:$8 sps:$4 sm:$0xff]  }
 0x863   :  { %8135 = vmatprep.subr.bf16.mxu1 %v9079_v28  ;;  %v9101_v28 = vld [vmem:[#allocation13 + $0x50] ss:$8 sps:$4 sm:$0xff]  }
 0x864   :  { %8620 = vmatmul.mubr.msk.bf16.vlgmr.msra.gmra.mrb[16].mxu0 %vm757_vm4, %v1275_v15 }
 0x865   :  { %8624 = vmatpush3.bf16.msra.mxu0 %v9029_v12  ;;  %8627 = vmatprep.mubr.msk.bf16.mxu0 %vm9622_vm1, %v9621_v18 }
 0x866   :  { %8625 = vmatprep.subr.bf16.mxu0 %v9621_v18 }
 0x869   :  { %8626 = vmatpush3.bf16.msra.mxu0 %v9030_v38 }
 0x86a   :  { %1674 = vmatprep.subr.bf16.mxu0 %v9036_v27 }
 0x937   :  { %v1318_v19 = vpop.f32.mrb[16].mxu0 }
 0x938   :  { %v1328_v20 = vpack.c.bf16 %v1318_v19, %v1318_v19  ;;  %v8621_v21 = vpop.f32.mrb[17].mxu0 }
 0x939   :  { %v1321_v22 = vpop.f32.mrb[18].mxu0 }
 0x93a   :  { %v8622_v23 = vpop.f32.mrb[19].mxu0  ;;  %8628 = vmatmul.mubr.msk.bf16.vlgmr.msra.gmra.mrb[12].mxu0 %vm707_vm2, %v1328_v20  ;;  %v7779_v22 = vld [vmem:[#allocation5 + $0x33] ss:$0 sm:$0xff] }
 0x93b   :  { %1706 = vmatprep.mubr.bf16.mxu0 %v9607_v0  ;;  %1675 = vmatpush1.bf16.msra.mxu0 %v9034_v26 }
 0x93c   :  { %1676 = vmatprep.subr.bf16.mxu0 %v9042_v29  ;;  %v9080_v29 = vld [vmem:[#allocation13 + $0x180] ss:$8 sps:$4 sm:$0xff]  }
 0x93f   :  { %1677 = vmatpush1.bf16.msra.mxu0 %v9040_v33  ;;  %v9082_v33 = vld [vmem:[#allocation13 + $0x100] ss:$8 sps:$4 sm:$0xff]  }
 0x940   :  { %1678 = vmatprep.subr.bf16.mxu0 %v9048_v49 }
 0xa0d   :  { %v1378_v36 = vpop.f32.mrb[12].mxu0 }
 0xa0e   :  { %v8872_v37 = vadd.f32 %v1378_v36, %v877_v35  ;;  %v8629_v39 = vpop.f32.mrb[13].mxu0  ;;  %v9905_v35 = vsub.s32 3, %v9797_v13  ;;  %v1456_v36 = vrot.slane %v1451_v34, %v9800_v14 }
 0xa0f   :  { %v1381_v40 = vpop.f32.mrb[14].mxu0  ;;  %v1460_v39 = vrot.slane %v1451_v34, %v9803_v16 }
 0xa10   :  { %vm1385_vm5 = vcmp.ge.f32.partialorder %v8872_v37, 0.0  ;;  %v1386_v41 = vmul.f32 0.01, %v8872_v37  ;;  %v8630_v42 = vpop.f32.mrb[15].mxu0 }
 0xa11   :  { %v1468_v42 = vrot.slane %v1451_v34, %v9905_v35 }
 0xa12   :  { %v1387_v44 = vsel %vm1385_vm5, %v8872_v37, %v1386_v41  ;;  %v1464_v37 = vrot.slane %v1451_v34, %v9806_v17  ;;  %v9105_v34 = vld [vmem:[#allocation13 + $0x60] ss:$8 sps:$4 sm:$0xff]  }
 0xa13   :  { %v9890_v45 = vadd.f32 %v1387_v44, %v9775_v30  ;;  %v9046_v30 = vld [vmem:[#allocation10 + $0x158] ss:$80 sps:$4 sm:$0xff]  }
 0xa14   :  { %1679 = vmatpush1.bf16.msra.mxu0 %v9046_v30 }
 0xa15   :  { %1389 = vadd.xlane.f32.xlu1 %v9890_v45  ;;  %v1392_v5 = vmul.f32 %v9890_v45, %v9890_v45  ;;  %1680 = vmatprep.subr.bf16.mxu0 %v9054_v51 }
 0xa17   :  { %1393 = vadd.xlane.f32.xlu0 %v1392_v5 }
 0xa18   :  { %1681 = vmatpush1.bf16.msra.mxu0 %v9052_v53 }
 0xa19   :  { %1682 = vmatprep.subr.bf16.mxu0 %v9060_v58 }
 0xa1b   :  { %2152 = vadd.xlane.f32.xlu0 %v9900_v47 }
 0xa1c   :  { %1683 = vmatpush1.bf16.msra.mxu0 %v9058_v57 }
 0xa1d   :  { %1684 = vmatprep.subr.bf16.mxu0 %v9066_v60 }
 0xa20   :  { %1685 = vmatpush1.bf16.msra.mxu0 %v9064_v62 }
 0xa21   :  { %1686 = vmatprep.subr.bf16.mxu0 %v9072_v1 }
 0xa24   :  { %1687 = vmatpush1.bf16.msra.mxu0 %v9070_v3 }
 0xa25   :  { %1688 = vmatprep.subr.bf16.mxu0 %v9078_v6  ;;  %v9083_v6 = vld [vmem:[#allocation13 + $0x90] ss:$8 sps:$4 sm:$0xff]  }
 0xa28   :  { %1689 = vmatpush1.bf16.msra.mxu0 %v9076_v8  ;;  %v9085_v8 = vld [vmem:[#allocation13 + $0x10] ss:$8 sps:$4 sm:$0xff]  }
 0xa29   :  { %8157 = vmatprep.subr.bf16.mxu0 %v9080_v29  ;;  %v9102_v29 = vld [vmem:[#allocation13 + $0x150] ss:$8 sps:$4 sm:$0xff]  }
 0xaa2   :  { %v1390_v9 = vpop.xlane.xlu1 %1389 }
 0xaa3   :  { %v1391_v10 = vmul.f32 0.0078125, %v1390_v9  ;;  %v9086_v9 = vld [vmem:[#allocation13 + $0x110] ss:$8 sps:$4 sm:$0xff]  }
 0xaa4   :  { %v1394_v11 = vpop.xlane.xlu0 %1393 }
 0xaa5   :  { %v1396_v12 = vmul.f32 %v1391_v10, %v1391_v10  ;;  %v1395_v15 = vmul.f32 0.0078125, %v1394_v11  ;;  %v1400_v20 = vsub.f32 %v9890_v45, %v1391_v10  ;;  %v9087_v10 = vld [vmem:[#allocation13 + $0xa0] ss:$8 sps:$4 sm:$0xff]  }
 0xaa6   :  { %v9088_v11 = vld [vmem:[#allocation13 + $0x1a0] ss:$8 sps:$4 sm:$0xff]  }
 0xaa7   :  { %v1397_v38 = vsub.f32 %v1395_v15, %v1396_v12  ;;  %v9089_v12 = vld [vmem:[#allocation13 + $0x20] ss:$8 sps:$4 sm:$0xff]  }
 0xaa8   :  { %v9090_v15 = vld [vmem:[#allocation13 + $0x120] ss:$8 sps:$4 sm:$0xff]  }
 0xaa9   :  { %v1398_v19 = vadd.f32 1e-05, %v1397_v38  ;;  %v9091_v38 = vld [vmem:[#allocation13 + $0xb0] ss:$8 sps:$4 sm:$0xff]  }
 0xaab   :  { %9401 = vrsqrt.f32 %v1398_v19  ;;  %v9092_v19 = vld [vmem:[#allocation13 + $0x1b0] ss:$8 sps:$4 sm:$0xff]  }
 0xab5   :  { %v9402_v21 = vpop.eup %9401 }
 0xab6   :  { %v1401_v23 = vmul.f32 %v9402_v21, %v1400_v20  ;;  %v9093_v20 = vld [vmem:[#allocation13 + $0x30] ss:$8 sps:$4 sm:$0xff]  }
 0xab7   :  { %v9094_v21 = vld [vmem:[#allocation13 + $0x130] ss:$8 sps:$4 sm:$0xff]  }
 0xab8   :  { %v1409_v25 = vmul.f32 %v7779_v22, %v1401_v23  ;;  %v9095_v22 = vld [vmem:[#allocation13 + $0xc0] ss:$8 sps:$4 sm:$0xff]  }
 0xab9   :  { %v9096_v23 = vld [vmem:[#allocation13 + $0x1c0] ss:$8 sps:$4 sm:$0xff]  }
 0xaba   :  { %v1417_v26 = vadd.f32 %v7780_v24, %v1409_v25  ;;  %v9097_v24 = vld [vmem:[#allocation13 + $0x40] ss:$8 sps:$4 sm:$0xff]  }
 0xabb   :  { %v9098_v25 = vld [vmem:[#allocation13 + $0x140] ss:$8 sps:$4 sm:$0xff]  }
 0xabc   :  { %v1450_v27 = vpack.c.bf16 %v1417_v26, %v1417_v26  ;;  %v9099_v26 = vld [vmem:[#allocation13 + $0xd0] ss:$8 sps:$4 sm:$0xff]  }
 0xabe   :  { %1666 = vmatmul.mubr.bf16.vlgmr.msra.gmra.mrb[36].mxu1 %v1450_v27  ;;  %1707 = vmatmul.mubr.bf16.vlgmr.msra.gmra.mrb[20].mxu0 %v1450_v27  ;;  %v9100_v27 = vld [vmem:[#allocation13 + $0x1d0] ss:$8 sps:$4 sm:$0xff]  }
 0xabf   :  { %8136 = vmatpush3.bf16.msra.mxu1 %v9081_v32  ;;  %8158 = vmatpush3.bf16.msra.mxu0 %v9082_v33  ;;  %v9103_v32 = vld [vmem:[#allocation13 + $0xe0] ss:$8 sps:$4 sm:$0xff]  }
 0xac0   :  { %8137 = vmatprep.subr.bf16.mxu1 %v9083_v6  ;;  %8159 = vmatprep.subr.bf16.mxu0 %v9084_v7  ;;  %v9104_v33 = vld [vmem:[#allocation13 + $0x1e0] ss:$8 sps:$4 sm:$0xff]  }
 0xac3   :  { %8138 = vmatpush3.bf16.msra.mxu1 %v9085_v8  ;;  %8160 = vmatpush3.bf16.msra.mxu0 %v9086_v9 }
 0xac4   :  { %8139 = vmatprep.subr.bf16.mxu1 %v9087_v10  ;;  %8161 = vmatprep.subr.bf16.mxu0 %v9088_v11  ;;  %v2153_v10 = vpop.xlane.xlu0 %2152 }
 0xac7   :  { %8140 = vmatpush3.bf16.msra.mxu1 %v9089_v12  ;;  %8162 = vmatpush3.bf16.msra.mxu0 %v9090_v15 }
 0xac8   :  { %8141 = vmatprep.subr.bf16.mxu1 %v9091_v38  ;;  %8163 = vmatprep.subr.bf16.mxu0 %v9092_v19 }
 0xacb   :  { %8142 = vmatpush3.bf16.msra.mxu1 %v9093_v20  ;;  %8164 = vmatpush3.bf16.msra.mxu0 %v9094_v21  ;;  %v2154_v20 = vmul.f32 0.0078125, %v2153_v10 }
 0xacc   :  { %8143 = vmatprep.subr.bf16.mxu1 %v9095_v22  ;;  %8165 = vmatprep.subr.bf16.mxu0 %v9096_v23 }
 0xacf   :  { %8144 = vmatpush3.bf16.msra.mxu1 %v9097_v24  ;;  %8166 = vmatpush3.bf16.msra.mxu0 %v9098_v25 }
 0xad0   :  { %8145 = vmatprep.subr.bf16.mxu1 %v9099_v26  ;;  %8167 = vmatprep.subr.bf16.mxu0 %v9100_v27 }
 0xad3   :  { %8146 = vmatpush3.bf16.msra.mxu1 %v9101_v28  ;;  %8168 = vmatpush3.bf16.msra.mxu0 %v9102_v29  ;;  %v9111_v28 = vld [vmem:[#allocation10 + $0x20] ss:$80 sps:$4 sm:$0xff]  }
 0xad4   :  { %8147 = vmatprep.subr.bf16.mxu1 %v9103_v32  ;;  %8169 = vmatprep.subr.bf16.mxu0 %v9104_v33  ;;  %v9114_v32 = vld [vmem:[#allocation10 + $0x28] ss:$80 sps:$4 sm:$0xff]  }
 0xad7   :  { %8148 = vmatpush3.bf16.msra.mxu1 %v9105_v34  ;;  %v9117_v34 = vld [vmem:[#allocation10 + $0xc4] ss:$80 sps:$4 sm:$0xff]  }
 0xb91   :  { %v1667_v40 = vpop.f32.mrb[36].mxu1  ;;  %v1708_v41 = vpop.f32.mrb[20].mxu0 }
 0xb92   :  { %v1668_v43 = vadd.f32 %v1667_v40, %v1456_v36  ;;  %v1709_v44 = vadd.f32 %v1708_v41, %v1464_v37  ;;  %v1669_v5 = vpop.f32.mrb[37].mxu1  ;;  %v1710_v48 = vpop.f32.mrb[21].mxu0  ;;  %v9106_v36 = vld [vmem:[#allocation13 + $0x160] ss:$8 sps:$4 sm:$0xff]   ;;  %v9107_v37 = vld [vmem:[#allocation13 + $0xf0] ss:$8 sps:$4 sm:$0xff]  }
 0xb93   :  { %v1670_v49 = vadd.f32 %v1669_v5, %v1460_v39  ;;  %v1671_v50 = vpop.f32.mrb[38].mxu1  ;;  %v1712_v30 = vpop.f32.mrb[22].mxu0  ;;  %v1711_v55 = vadd.f32 %v1710_v48, %v1468_v42  ;;  %8170 = vmatpush3.bf16.msra.mxu0 %v9106_v36  ;;  %v9108_v39 = vld [vmem:[#allocation13 + $0x1f0] ss:$8 sps:$4 sm:$0xff]   ;;  %8149 = vmatprep.subr.bf16.mxu1 %v9107_v37  ;;  %v9113_v42 = vld [vmem:[#allocation10 + $0x24] ss:$80 sps:$4 sm:$0xff]  }
 0xb94   :  { %v9911_v31 = vmax.f32 %v1668_v43, 0.0  ;;  %v1672_v51 = vpop.f32.mrb[39].mxu1  ;;  %v1713_v52 = vpop.f32.mrb[23].mxu0  ;;  %v9913_v53 = vmax.f32 %v1709_v44, 0.0  ;;  %v9109_v40 = vld [vmem:[#allocation13 + $0x70] ss:$8 sps:$4 sm:$0xff]   ;;  %8171 = vmatprep.subr.bf16.mxu0 %v9108_v39 }
 0xb95   :  { %v9915_v54 = vmax.f32 %v1670_v49, 0.0  ;;  %v9923_v60 = vmax.f32 %v1711_v55, 0.0  ;;  %v9110_v41 = vld [vmem:[#allocation13 + $0x170] ss:$8 sps:$4 sm:$0xff]   ;;  %8150 = vmatpush3.bf16.msra.mxu1 %v9109_v40  ;;  %v9121_v40 = vld [vmem:[#allocation10 + $0x164] ss:$80 sps:$4 sm:$0xff]  }
 0xb96   :  { %v1726_v57 = vmul.f32 %v9911_v31, %v9911_v31  ;;  %v1728_v62 = vmul.f32 %v9913_v53, %v9913_v53  ;;  %2355 = vmatprep.subr.bf16.mxu1 %v9113_v42  ;;  %v1748_v51 = vld [vmem:[#allocation5 + $0x35] sm:$0xf]  ;;  %v9115_v37 = vld [vmem:[#allocation10 + $0xc0] ss:$80 sps:$4 sm:$0xff]  }
 0xb97   :  { %v1727_v58 = vmul.f32 %v9915_v54, %v9915_v54  ;;  %v1719_v59 = vadd.f32 %v9915_v54, %v9911_v31  ;;  %v1729_v3 = vmul.f32 %v9923_v60, %v9923_v60  ;;  %8172 = vmatpush3.bf16.msra.mxu0 %v9110_v41  ;;  %v1757_v55 = vrot.slane %v1748_v51, %v9803_v16  ;;  %v9118_v39 = vld [vmem:[#allocation10 + $0xc8] ss:$80 sps:$4 sm:$0xff]   ;;  %v9119_v41 = vld [vmem:[#allocation10 + $0x160] ss:$80 sps:$4 sm:$0xff]  }
 0xb98   :  { %8631 = vmatprep.subr.bf16.mxu0 %v9621_v18  ;;  %v9122_v42 = vld [vmem:[#allocation10 + $0x168] ss:$80 sps:$4 sm:$0xff]  }
 0xb99   :  { %v1720_v61 = vadd.f32 %v1719_v59, %v9913_v53  ;;  %v1730_v63 = vadd.f32 %v1727_v58, %v1726_v57  ;;  %v1774_v57 = vld [vmem:[#allocation5 + $0x39] sm:$0xf]  ;;  %v1765_v59 = vrot.slane %v1748_v51, %v9905_v35 }
 0xb9a   :  { %v1783_v6 = vrot.slane %v1774_v57, %v9803_v16  ;;  %v1791_v7 = vrot.slane %v1774_v57, %v9905_v35  ;;  %v1779_v8 = vrot.slane %v1774_v57, %v9800_v14  ;;  %v1787_v9 = vrot.slane %v1774_v57, %v9806_v17  ;;  %v9134_v57 = vld [vmem:[#allocation10 + $0x348] ss:$80 sps:$4 sm:$0xff]  }
 0xb9b   :  { %v1721_v1 = vadd.f32 %v1720_v61, %v9923_v60  ;;  %v1731_v2 = vadd.f32 %v1730_v63, %v1728_v62  ;;  %v1753_v61 = vrot.slane %v1748_v51, %v9800_v14  ;;  %v1761_v62 = vrot.slane %v1748_v51, %v9806_v17 }
 0xb9d   :  { %1722 = vadd.xlane.f32.xlu1 %v1721_v1  ;;  %v1732_v4 = vadd.f32 %v1731_v2, %v1729_v3 }
 0xba1   :  { %1733 = vadd.xlane.f32.xlu1 %v1732_v4 }
 0xba5   :  { %2148 = vadd.xlane.f32.xlu1 %v9893_v46 }
 0xc2a   :  { %v1723_v43 = vpop.xlane.xlu1 %1722 }
 0xc2b   :  { %v1725_v44 = vmul.f32 0.001953125, %v1723_v43  ;;  %v9125_v43 = vld [vmem:[#allocation10 + $0x204] ss:$80 sps:$4 sm:$0xff]  }
 0xc2d   :  { %v1736_v48 = vmul.f32 %v1725_v44, %v1725_v44  ;;  %v1740_v63 = vsub.f32 %v9911_v31, %v1725_v44  ;;  %v1742_v1 = vsub.f32 %v9913_v53, %v1725_v44  ;;  %v1741_v2 = vsub.f32 %v9915_v54, %v1725_v44 }
 0xc2e   :  { %v1734_v5 = vpop.xlane.xlu1 %1733  ;;  %v1743_v3 = vsub.f32 %v9923_v60, %v1725_v44  ;;  %v9123_v44 = vld [vmem:[#allocation10 + $0x200] ss:$80 sps:$4 sm:$0xff]  }
 0xc2f   :  { %v1735_v49 = vmul.f32 0.001953125, %v1734_v5  ;;  %v9126_v5 = vld [vmem:[#allocation10 + $0x208] ss:$80 sps:$4 sm:$0xff]  }
 0xc31   :  { %v1737_v50 = vsub.f32 %v1735_v49, %v1736_v48  ;;  %v9129_v48 = vld [vmem:[#allocation10 + $0x2a4] ss:$80 sps:$4 sm:$0xff]   ;;  %v9127_v49 = vld [vmem:[#allocation10 + $0x2a0] ss:$80 sps:$4 sm:$0xff]  }
 0xc32   :  { %v2149_v52 = vpop.xlane.xlu1 %2148 }
 0xc33   :  { %v1738_v30 = vadd.f32 1e-05, %v1737_v50  ;;  %v9934_v58 = vmul.f32 0.0078125, %v2149_v52  ;;  %v9130_v50 = vld [vmem:[#allocation10 + $0x2a8] ss:$80 sps:$4 sm:$0xff]  }
 0xc35   :  { %9403 = vrsqrt.f32 %v1738_v30  ;;  %v2155_v53 = vmul.f32 %v9934_v58, %v9934_v58  ;;  %v9133_v30 = vld [vmem:[#allocation10 + $0x344] ss:$80 sps:$4 sm:$0xff]   ;;  %v2159_v52 = vsub.f32 %v9893_v46, %v9934_v58  ;;  %v7847_v58 = vld [vmem:[#allocation5 + $0x3e] ss:$0 sm:$0xff] }
 0xc37   :  { %v2156_v25 = vsub.f32 %v2154_v20, %v2155_v53 }
 0xc39   :  { %v2157_v36 = vadd.f32 1e-05, %v2156_v25 }
 0xc3b   :  { %9405 = vrsqrt.f32 %v2157_v36 }
 0xc3f   :  { %v9404_v4 = vpop.eup %9403 }
 0xc40   :  { %v1745_v11 = vmul.f32 %v9404_v4, %v1741_v2  ;;  %v1747_v12 = vmul.f32 %v9404_v4, %v1743_v3  ;;  %v1744_v15 = vmul.f32 %v9404_v4, %v1740_v63  ;;  %v1746_v31 = vmul.f32 %v9404_v4, %v1742_v1  ;;  %v9135_v63 = vld [vmem:[#allocation10 + $0x3e0] ss:$80 sps:$4 sm:$0xff]   ;;  %v9138_v1 = vld [vmem:[#allocation10 + $0x3e8] ss:$80 sps:$4 sm:$0xff]   ;;  %v9141_v3 = vld [vmem:[#allocation10 + $0x484] ss:$80 sps:$4 sm:$0xff]  }
 0xc41   :  { %v9139_v4 = vld [vmem:[#allocation10 + $0x480] ss:$80 sps:$4 sm:$0xff]  }
 0xc42   :  { %v1771_v54 = vmul.f32 %v1757_v55, %v1745_v11  ;;  %v1773_v38 = vmul.f32 %v1765_v59, %v1747_v12  ;;  %v1770_v60 = vmul.f32 %v1753_v61, %v1744_v15  ;;  %v1772_v19 = vmul.f32 %v1761_v62, %v1746_v31  ;;  %v9131_v55 = vld [vmem:[#allocation10 + $0x340] ss:$80 sps:$4 sm:$0xff]   ;;  %v9137_v61 = vld [vmem:[#allocation10 + $0x3e4] ss:$80 sps:$4 sm:$0xff]   ;;  %v7846_v62 = vld [vmem:[#allocation5 + $0x3d] ss:$0 sm:$0xff] }
 0xc43   :  { %v7813_v11 = vld [vmem:[#allocation5 + $0x9] ss:$0 sm:$0xff] }
 0xc44   :  { %v1797_v21 = vadd.f32 %v1783_v6, %v1771_v54  ;;  %v1799_v22 = vadd.f32 %v1791_v7, %v1773_v38  ;;  %v1796_v23 = vadd.f32 %v1779_v8, %v1770_v60  ;;  %v1798_v24 = vadd.f32 %v1787_v9, %v1772_v19  ;;  %v9142_v6 = vld [vmem:[#allocation10 + $0x488] ss:$80 sps:$4 sm:$0xff]  }
 0xc45   :  { %v9406_v51 = vpop.eup %9405 }
 0xc46   :  { %v1865_v26 = vpack.c.bf16 %v1797_v21, %v1797_v21  ;;  %v1867_v27 = vpack.c.bf16 %v1799_v22, %v1799_v22  ;;  %v1864_v29 = vpack.c.bf16 %v1796_v23, %v1796_v23  ;;  %v1866_v33 = vpack.c.bf16 %v1798_v24, %v1798_v24  ;;  %v2210_v23 = vld [vmem:[#allocation5 + $0xb] sm:$0x7] }
 0xc47   :  { %v2160_v59 = vmul.f32 %v9406_v51, %v2159_v52  ;;  %v2219_v24 = vrot.slane %v2210_v23, %v9803_v16 }
 0xc48   :  { %2099 = vmatprep.mubr.bf16.mxu1 %v1865_v26  ;;  %2139 = vmatprep.mubr.bf16.mxu0 %v1867_v27 }
 0xc49   :  { %2100 = vmatmul.mubr.bf16.vlgmr.msra.gmra.mrb[40].mxu1 %v1864_v29  ;;  %2140 = vmatmul.mubr.bf16.vlgmr.msra.gmra.mrb[24].mxu0 %v1866_v33  ;;  %v2168_v2 = vmul.f32 %v7846_v62, %v2160_v59  ;;  %v2223_v29 = vrot.slane %v2210_v23, %v9806_v17  ;;  %v9143_v59 = vld [vmem:[#allocation10 + $0x2c] ss:$80 sps:$4 sm:$0xff]  }
 0xc4a   :  { %2356 = vmatpush1.bf16.msra.mxu1 %v9111_v28  ;;  %8632 = vmatpush3.bf16.msra.mxu0 %v9114_v32 }
 0xc4b   :  { %2357 = vmatprep.subr.bf16.mxu1 %v9117_v34  ;;  %8633 = vmatprep.subr.bf16.mxu0 %v9621_v18  ;;  %v2176_v7 = vadd.f32 %v7847_v58, %v2168_v2 }
 0xc4c   :  { %2387 = vmatprep.mubr.bf16.mxu1 %v9607_v0  ;;  %8647 = vmatprep.mubr.msk.bf16.mxu0 %vm9622_vm1, %v9621_v18 }
 0xc4d   :  { %v2209_v8 = vpack.c.bf16 %v2176_v7, %v2176_v7 }
 0xc4e   :  { %2358 = vmatpush1.bf16.msra.mxu1 %v9115_v37  ;;  %8634 = vmatpush3.bf16.msra.mxu0 %v9118_v39  ;;  %v2215_v39 = vrot.slane %v2210_v23, %v9800_v14 }
 0xc4f   :  { %2359 = vmatprep.subr.bf16.mxu1 %v9121_v40  ;;  %8635 = vmatprep.subr.bf16.mxu0 %v9621_v18 }
 0xc52   :  { %2360 = vmatpush1.bf16.msra.mxu1 %v9119_v41  ;;  %8636 = vmatpush3.bf16.msra.mxu0 %v9122_v42 }
 0xc53   :  { %2361 = vmatprep.subr.bf16.mxu1 %v9125_v43  ;;  %8637 = vmatprep.subr.bf16.mxu0 %v9621_v18 }
 0xc56   :  { %2362 = vmatpush1.bf16.msra.mxu1 %v9123_v44  ;;  %8638 = vmatpush3.bf16.msra.mxu0 %v9126_v5 }
 0xc57   :  { %2363 = vmatprep.subr.bf16.mxu1 %v9129_v48  ;;  %8639 = vmatprep.subr.bf16.mxu0 %v9621_v18 }
 0xc5a   :  { %2364 = vmatpush1.bf16.msra.mxu1 %v9127_v49  ;;  %8640 = vmatpush3.bf16.msra.mxu0 %v9130_v50 }
 0xc5b   :  { %2365 = vmatprep.subr.bf16.mxu1 %v9133_v30  ;;  %8641 = vmatprep.subr.bf16.mxu0 %v9621_v18 }
 0xc5e   :  { %2366 = vmatpush1.bf16.msra.mxu1 %v9131_v55  ;;  %8642 = vmatpush3.bf16.msra.mxu0 %v9134_v57 }
 0xc5f   :  { %2367 = vmatprep.subr.bf16.mxu1 %v9137_v61  ;;  %8643 = vmatprep.subr.bf16.mxu0 %v9621_v18 }
 0xc62   :  { %2368 = vmatpush1.bf16.msra.mxu1 %v9135_v63  ;;  %8644 = vmatpush3.bf16.msra.mxu0 %v9138_v1 }
 0xc63   :  { %2369 = vmatprep.subr.bf16.mxu1 %v9141_v3  ;;  %8645 = vmatprep.subr.bf16.mxu0 %v9621_v18 }
 0xc66   :  { %2370 = vmatpush1.bf16.msra.mxu1 %v9139_v4  ;;  %8646 = vmatpush3.bf16.msra.mxu0 %v9142_v6 }
 0xc67   :  { %8651 = vmatprep.subr.bf16.mxu1 %v9621_v18  ;;  %8663 = vmatprep.subr.bf16.mxu0 %v9621_v18 }
 0xc69   :  { %2388 = vmatmul.mubr.bf16.vlgmr.msra.gmra.mrb[44].mxu1 %v2209_v8  ;;  %8648 = vmatmul.mubr.bf16.vlgmr.msra.gmra.mrb[28].mxu0 %v2209_v8 }
 0xc6a   :  { %8653 = vmatprep.mubr.msk.bf16.mxu1 %vm9622_vm1, %v9621_v18  ;;  %8667 = vmatprep.mubr.msk.bf16.mxu0 %vm9622_vm1, %v9621_v18 }
 0xc6b   :  { %8664 = vmatpush3.bf16.msra.mxu0 %v9143_v59 }
 0xc6c   :  { %8665 = vmatprep.subr.bf16.mxu0 %v9621_v18 }
 0xd1c   :  { %v8151_v9 = vpop.f32.mrb[40].mxu1  ;;  %v8173_v10 = vpop.f32.mrb[24].mxu0 }
 0xd1d   :  { %v8152_v12 = vpop.f32.mrb[41].mxu1  ;;  %v8174_v15 = vpop.f32.mrb[25].mxu0 }
 0xd1e   :  { %v8153_v31 = vadd.f32 %v8152_v12, %v8151_v9  ;;  %v8175_v53 = vadd.f32 %v8174_v15, %v8173_v10  ;;  %v8154_v54 = vpop.f32.mrb[42].mxu1  ;;  %v8176_v38 = vpop.f32.mrb[26].mxu0  ;;  %v9144_v10 = vld [vmem:[#allocation10 + $0xcc] ss:$80 sps:$4 sm:$0xff]  }
 0xd1f   :  { %v8155_v60 = vpop.f32.mrb[43].mxu1  ;;  %v8177_v19 = vpop.f32.mrb[27].mxu0  ;;  %8666 = vmatpush3.bf16.msra.mxu0 %v9144_v10 }
 0xd20   :  { %v2102_v20 = vadd.f32 %v8153_v31, %v7813_v11  ;;  %8677 = vmatprep.subr.bf16.mxu0 %v9621_v18 }
 0xd22   :  { %v2142_v21 = vadd.f32 %v8175_v53, %v2102_v20 }
 0xd24   :  { %v9968_v22 = vadd.f32 %v2142_v21, %v9890_v45 }
 0xd3c   :  { %v2389_v25 = vpop.f32.mrb[44].mxu1  ;;  %v2430_v26 = vpop.f32.mrb[28].mxu0 }
 0xd3d   :  { %v2391_v27 = vpop.f32.mrb[45].mxu1  ;;  %v8649_v28 = vpop.f32.mrb[29].mxu0  ;;  %v2431_v41 = vadd.f32 %v2430_v26, %v2223_v29  ;;  %v2390_v42 = vadd.f32 %v2389_v25, %v2215_v39 }
 0xd3e   :  { %v2392_v32 = vadd.f32 %v2391_v27, %v2219_v24  ;;  %v2393_v33 = vpop.f32.mrb[46].mxu1  ;;  %v2433_v34 = vpop.f32.mrb[30].mxu0 }
 0xd3f   :  { %v2394_v36 = vpop.f32.mrb[47].mxu1  ;;  %v8650_v37 = vpop.f32.mrb[31].mxu0  ;;  %v9976_v43 = vpack.c.bf16 %v2431_v41, %v2431_v41  ;;  %v2437_v44 = vpack.c.bf16 %v2390_v42, %v2390_v42 }
 0xd40   :  { %v2438_v40 = vpack.c.bf16 %v2392_v32, %v2392_v32 }
 0xd41   :  { %v2499_v5 = vsel %vm767_vm3, %v9976_v43, 0 }
 0xd42   :  { %2612 = vrot.lane.b32.xlu0 %v2438_v40, %s9623_s0  ;;  %v2444_v45 = vsel %vm707_vm2, %v2438_v40, 0 }
 0xd43   :  { %8652 = vmatpush3.bf16.xpose.msra.mxu1 %v2444_v45 }
 0xd44   :  { %8657 = vmatprep.subr.bf16.mxu1 %v9621_v18 }
 0xd4a   :  { %8654 = vmatmul.mubr.msk.bf16.vlgmr.msra.gmra.mrb[48].mxu1 %vm707_vm2, %v2437_v44 }
 0xd4b   :  { %8658 = vmatpush3.bf16.msra.mxu1 %v2499_v5  ;;  %8659 = vmatprep.mubr.msk.bf16.mxu1 %vm9622_vm1, %v9621_v18 }
 0xd4c   :  { %8671 = vmatprep.subr.bf16.mxu1 %v9621_v18 }
 0xdb4   :  { %v2613_v2 = vpop.permute.xlu0 %2612 }
 0xdb5   :  { %v2618_v58 = vsel %vm707_vm2, %v2613_v2, 0 }
 0xe1d   :  { %v2480_v48 = vpop.f32.mrb[48].mxu1 }
 0xe1e   :  { %v2486_v49 = vmul.f32 0.17677669, %v2480_v48  ;;  %v8655_v50 = vpop.f32.mrb[49].mxu1  ;;  %v9145_v48 = vld [vmem:[#allocation10 + $0x16c] ss:$80 sps:$4 sm:$0xff]  }
 0xe1f   :  { %v2483_v30 = vpop.f32.mrb[50].mxu1 }
 0xe20   :  { %v2487_v51 = vmul.f32 1.442695, %v2486_v49  ;;  %v8656_v52 = vpop.f32.mrb[51].mxu1 }
 0xe21   :  { %v9146_v52 = vld [vmem:[#allocation10 + $0x20c] ss:$80 sps:$4 sm:$0xff]  }
 0xe22   :  { %9407 = vpow2.f32 %v2487_v51  ;;  %v3148_v51 = vpack.c.bf16 %v9893_v46, %v9893_v46 }
 0xe2c   :  { %v9408_v55 = vpop.eup %9407 }
 0xe2d   :  { %v2489_v57 = vsel %vm757_vm4, %v9408_v55, 0.0 }
 0xe2e   :  { %2490 = vadd.xlane.f32.xlu1 %v2489_v57  ;;  %v9147_v57 = vld [vmem:[#allocation10 + $0x2ac] ss:$80 sps:$4 sm:$0xff]  }
 0xe3f   :  { %2609 = vrot.lane.b32.xlu1 %v2437_v44, %s9623_s0 }
 0xe43   :  { %2781 = vrot.lane.b32.xlu1 %v2438_v40, %s9609_s2 }
 0xe47   :  { %2779 = vrot.lane.b32.xlu1 %v2437_v44, %s9609_s2 }
 0xe4b   :  { %2838 = vrot.lane.b32.xlu1 %v9976_v43, %s9609_s2 }
 0xe4f   :  { %2949 = vrot.lane.b32.xlu1 %v2438_v40, %s9624_s3 }
 0xe53   :  { %2947 = vrot.lane.b32.xlu1 %v2437_v44, %s9624_s3 }
 0xebb   :  { %v2491_v61 = vpop.xlane.xlu1 %2490 }
 0xebc   :  { %9409 = vrcp.f32 %v2491_v61 }
 0xebf   :  { %v2610_v63 = vpop.permute.xlu1 %2609 }
 0xec3   :  { %v2782_v4 = vpop.permute.xlu1 %2781 }
 0xec4   :  { %v2787_v7 = vsel %vm707_vm2, %v2782_v4, 0 }
 0xec6   :  { %v9410_v62 = vpop.eup %9409 }
 0xec7   :  { %v2493_v1 = vmul.f32 %v9410_v62, %v9408_v55  ;;  %v2780_v6 = vpop.permute.xlu1 %2779 }
 0xec9   :  { %v2494_v3 = vpack.c.bf16 %v2493_v1, %v2493_v1  ;;  %v9148_v1 = vld [vmem:[#allocation10 + $0x34c] ss:$80 sps:$4 sm:$0xff]  }
 0xecb   :  { %8660 = vmatmul.mubr.msk.bf16.vlgmr.msra.gmra.mrb[52].mxu1 %vm757_vm4, %v2494_v3  ;;  %v2839_v8 = vpop.permute.xlu1 %2838 }
 0xecc   :  { %8672 = vmatpush3.bf16.xpose.msra.mxu1 %v2618_v58  ;;  %8673 = vmatprep.mubr.msk.bf16.mxu1 %vm9622_vm1, %v9621_v18  ;;  %v2844_v9 = vsel %vm767_vm3, %v2839_v8, 0 }
 0xecd   :  { %8691 = vmatprep.subr.bf16.mxu1 %v9621_v18 }
 0xecf   :  { %v2950_v36 = vpop.permute.xlu1 %2949 }
 0xed0   :  { %v2955_v30 = vsel %vm707_vm2, %v2950_v36, 0  ;;  %v9163_v36 = vld [vmem:[#allocation11 + $0xa0] ss:$20 sps:$4 sm:$0xff]  }
 0xed3   :  { %8674 = vmatmul.mubr.msk.bf16.vlgmr.msra.gmra.mrb[56].mxu1 %vm707_vm2, %v2610_v63  ;;  %v2948_v37 = vpop.permute.xlu1 %2947 }
 0xed4   :  { %8692 = vmatpush3.bf16.xpose.msra.mxu1 %v2787_v7  ;;  %8693 = vmatprep.mubr.msk.bf16.mxu1 %vm9622_vm1, %v9621_v18 }
 0xed5   :  { %8697 = vmatprep.subr.bf16.mxu1 %v9621_v18 }
 0xedb   :  { %8694 = vmatmul.mubr.msk.bf16.vlgmr.msra.gmra.mrb[60].mxu1 %vm707_vm2, %v2780_v6 }
 0xedc   :  { %8698 = vmatpush3.bf16.msra.mxu1 %v2844_v9  ;;  %8699 = vmatprep.mubr.msk.bf16.mxu1 %vm9622_vm1, %v9621_v18 }
 0xedd   :  { %8711 = vmatprep.subr.bf16.mxu1 %v9621_v18 }
 0xf9e   :  { %v2535_v11 = vpop.f32.mrb[52].mxu1 }
 0xf9f   :  { %v2545_v12 = vpack.c.bf16 %v2535_v11, %v2535_v11  ;;  %v8661_v15 = vpop.f32.mrb[53].mxu1 }
 0xfa0   :  { %v2538_v31 = vpop.f32.mrb[54].mxu1 }
 0xfa1   :  { %v8662_v53 = vpop.f32.mrb[55].mxu1  ;;  %8668 = vmatmul.mubr.msk.bf16.vlgmr.msra.gmra.mrb[32].mxu0 %vm707_vm2, %v2545_v12 }
 0xfa2   :  { %8679 = vmatprep.mubr.msk.bf16.mxu0 %vm9622_vm1, %v9621_v18 }
 0xfa6   :  { %v2654_v54 = vpop.f32.mrb[56].mxu1 }
 0xfa7   :  { %v2660_v38 = vmul.f32 0.17677669, %v2654_v54  ;;  %v8675_v60 = vpop.f32.mrb[57].mxu1 }
 0xfa8   :  { %v2657_v19 = vpop.f32.mrb[58].mxu1 }
 0xfa9   :  { %v2661_v20 = vmul.f32 1.442695, %v2660_v38  ;;  %v8676_v21 = vpop.f32.mrb[59].mxu1 }
 0xfab   :  { %9411 = vpow2.f32 %v2661_v20  ;;  %v9149_v20 = vld [vmem:[#allocation10 + $0x3ec] ss:$80 sps:$4 sm:$0xff]  }
 0xfae   :  { %v2823_v23 = vpop.f32.mrb[60].mxu1 }
 0xfaf   :  { %v2829_v24 = vmul.f32 0.17677669, %v2823_v23  ;;  %v8695_v25 = vpop.f32.mrb[61].mxu1  ;;  %v9150_v23 = vld [vmem:[#allocation10 + $0x48c] ss:$80 sps:$4 sm:$0xff]  }
 0xfb0   :  { %v2826_v26 = vpop.f32.mrb[62].mxu1  ;;  %v9153_v25 = vld [vmem:[#allocation11 + $0x4] ss:$20 sps:$4 sm:$0xff]  }
 0xfb1   :  { %v2830_v27 = vmul.f32 1.442695, %v2829_v24  ;;  %v8696_v28 = vpop.f32.mrb[63].mxu1  ;;  %v9151_v24 = vld [vmem:[#allocation11] ss:$20 sps:$4 sm:$0xff]  }
 0xfb2   :  { %v9156_v26 = vld [vmem:[#allocation11 + $0x2c] ss:$20 sps:$4 sm:$0xff]   ;;  %v9159_v28 = vld [vmem:[#allocation11 + $0x54] ss:$20 sps:$4 sm:$0xff]  }
 0xfb3   :  { %9413 = vpow2.f32 %v2830_v27  ;;  %v9154_v27 = vld [vmem:[#allocation11 + $0x28] ss:$20 sps:$4 sm:$0xff]  }
 0xfb5   :  { %v9412_v29 = vpop.eup %9411 }
 0xfb6   :  { %v2663_v32 = vsel %vm757_vm4, %v9412_v29, 0.0 }
 0xfb7   :  { %2664 = vadd.xlane.f32.xlu1 %v2663_v32  ;;  %v9162_v32 = vld [vmem:[#allocation11 + $0x7c] ss:$20 sps:$4 sm:$0xff]  }
 0xfbd   :  { %v9414_v33 = vpop.eup %9413 }
 0xfbe   :  { %v2832_v34 = vsel %vm757_vm4, %v9414_v33, 0.0 }
 0xfbf   :  { %2833 = vadd.xlane.f32.xlu0 %v2832_v34  ;;  %v9165_v34 = vld [vmem:[#allocation11 + $0xa4] ss:$20 sps:$4 sm:$0xff]  }
 0xfd5   :  { %2670 = vrot.lane.b32.xlu0 %v9976_v43, %s9623_s0 }
 0xfd9   :  { %3006 = vrot.lane.b32.xlu0 %v9976_v43, %s9624_s3 }
0x1044   :  { %v2665_v39 = vpop.xlane.xlu1 %2664 }
0x1045   :  { %9415 = vrcp.f32 %v2665_v39  ;;  %v9166_v39 = vld [vmem:[#allocation11 + $0xc8] ss:$20 sps:$4 sm:$0xff]  }
0x104c   :  { %v2834_v40 = vpop.xlane.xlu0 %2833 }
0x104d   :  { %9417 = vrcp.f32 %v2834_v40  ;;  %v9171_v40 = vld [vmem:[#allocation11 + $0xf4] ss:$20 sps:$4 sm:$0xff]  }
0x104f   :  { %v9416_v41 = vpop.eup %9415 }
0x1050   :  { %v2667_v45 = vmul.f32 %v9416_v41, %v9412_v29  ;;  %v2671_v42 = vpop.permute.xlu0 %2670  ;;  %v9157_v29 = vld [vmem:[#allocation11 + $0x50] ss:$20 sps:$4 sm:$0xff]  }
0x1051   :  { %v2676_v44 = vsel %vm767_vm3, %v2671_v42, 0  ;;  %v9169_v41 = vld [vmem:[#allocation11 + $0xf0] ss:$20 sps:$4 sm:$0xff]   ;;  %v9172_v42 = vld [vmem:[#allocation11 + $0x118] ss:$20 sps:$4 sm:$0xff]  }
0x1052   :  { %8678 = vmatpush3.bf16.msra.mxu0 %v2676_v44  ;;  %v2668_v5 = vpack.c.bf16 %v2667_v45, %v2667_v45  ;;  %v9174_v45 = vld [vmem:[#allocation11 + $0x11c] ss:$20 sps:$4 sm:$0xff]   ;;  %v9177_v44 = vld [vmem:[#allocation11 + $0x144] ss:$20 sps:$4 sm:$0xff]  }
0x1053   :  { %8683 = vmatprep.subr.bf16.mxu0 %v9621_v18 }
0x1054   :  { %v3007_v6 = vpop.permute.xlu0 %3006 }
0x1055   :  { %8680 = vmatmul.mubr.msk.bf16.vlgmr.msra.gmra.mrb[36].mxu0 %vm757_vm4, %v2668_v5  ;;  %v3012_v8 = vsel %vm767_vm3, %v3007_v6, 0  ;;  %v9175_v5 = vld [vmem:[#allocation11 + $0x140] ss:$20 sps:$4 sm:$0xff]   ;;  %v9196_v6 = vld [vmem:[#allocation11 + $0x258] ss:$20 sps:$4 sm:$0xff]  }
0x1056   :  { %8684 = vmatpush3.bf16.msra.mxu0 %v9145_v48  ;;  %8687 = vmatprep.mubr.msk.bf16.mxu0 %vm9622_vm1, %v9621_v18  ;;  %v9180_v48 = vld [vmem:[#allocation11 + $0x16c] ss:$20 sps:$4 sm:$0xff]  }
0x1057   :  { %v9418_v43 = vpop.eup %9417  ;;  %8685 = vmatprep.subr.bf16.mxu0 %v9621_v18 }
0x1058   :  { %v2836_v49 = vmul.f32 %v9418_v43, %v9414_v33  ;;  %v9160_v33 = vld [vmem:[#allocation11 + $0x78] ss:$20 sps:$4 sm:$0xff]   ;;  %v9178_v43 = vld [vmem:[#allocation11 + $0x168] ss:$20 sps:$4 sm:$0xff]  }
0x105a   :  { %v2837_v50 = vpack.c.bf16 %v2836_v49, %v2836_v49  ;;  %8686 = vmatpush3.bf16.msra.mxu0 %v9146_v52  ;;  %v9183_v49 = vld [vmem:[#allocation11 + $0x194] ss:$20 sps:$4 sm:$0xff]   ;;  %v9189_v52 = vld [vmem:[#allocation11 + $0x1e4] ss:$20 sps:$4 sm:$0xff]  }
0x105b   :  { %8703 = vmatprep.subr.bf16.mxu0 %v9621_v18 }
0x105c   :  { %8700 = vmatmul.mubr.msk.bf16.vlgmr.msra.gmra.mrb[64].mxu1 %vm757_vm4, %v2837_v50  ;;  %v9181_v50 = vld [vmem:[#allocation11 + $0x190] ss:$20 sps:$4 sm:$0xff]  }
0x105d   :  { %8712 = vmatpush3.bf16.xpose.msra.mxu1 %v2955_v30  ;;  %8713 = vmatprep.mubr.msk.bf16.mxu1 %vm9622_vm1, %v9621_v18  ;;  %v9186_v30 = vld [vmem:[#allocation11 + $0x1bc] ss:$20 sps:$4 sm:$0xff]  }
0x105e   :  { %3321 = vmatprep.subr.bf16.mxu1 %v9153_v25  ;;  %v9225_v25 = vld [vmem:[#allocation11 + $0x14c] ss:$20 sps:$4 sm:$0xff]  }
0x1064   :  { %8714 = vmatmul.mubr.msk.bf16.vlgmr.msra.gmra.mrb[68].mxu1 %vm707_vm2, %v2948_v37  ;;  %v9168_v37 = vld [vmem:[#allocation11 + $0xcc] ss:$20 sps:$4 sm:$0xff]  }
0x1065   :  { %3353 = vmatprep.mubr.bf16.mxu1 %v3148_v51  ;;  %3322 = vmatpush1.bf16.msra.mxu1 %v9151_v24  ;;  %v9184_v51 = vld [vmem:[#allocation11 + $0x1b8] ss:$20 sps:$4 sm:$0xff]   ;;  %v9220_v24 = vld [vmem:[#allocation11 + $0x120] ss:$20 sps:$4 sm:$0xff]  }
0x1066   :  { %3323 = vmatprep.subr.bf16.mxu1 %v9156_v26  ;;  %v9223_v26 = vld [vmem:[#allocation11 + $0x148] ss:$20 sps:$4 sm:$0xff]  }
0x1069   :  { %3324 = vmatpush1.bf16.msra.mxu1 %v9154_v27  ;;  %v9230_v27 = vld [vmem:[#allocation11 + $0x174] ss:$20 sps:$4 sm:$0xff]  }
0x106a   :  { %3325 = vmatprep.subr.bf16.mxu1 %v9159_v28  ;;  %v9228_v28 = vld [vmem:[#allocation11 + $0x170] ss:$20 sps:$4 sm:$0xff]  }
0x106d   :  { %3326 = vmatpush1.bf16.msra.mxu1 %v9157_v29  ;;  %v7877_v29 = vld [vmem:[#allocation5 + $0xe] ss:$0 sm:$0xff] }
0x106e   :  { %3327 = vmatprep.subr.bf16.mxu1 %v9162_v32 }
0x1071   :  { %3328 = vmatpush1.bf16.msra.mxu1 %v9160_v33 }
0x1072   :  { %3329 = vmatprep.subr.bf16.mxu1 %v9165_v34 }
0x1075   :  { %3330 = vmatpush1.bf16.msra.mxu1 %v9163_v36 }
0x1076   :  { %3331 = vmatprep.subr.bf16.mxu1 %v9168_v37  ;;  %v9227_v37 = vld [vmem:[#allocation11 + $0x10] ss:$20 sps:$4 sm:$0xff]  }
0x1079   :  { %3332 = vmatpush1.bf16.msra.mxu1 %v9166_v39 }
0x107a   :  { %3333 = vmatprep.subr.bf16.mxu1 %v9171_v40 }
0x107d   :  { %3334 = vmatpush1.bf16.msra.mxu1 %v9169_v41 }
0x107e   :  { %3335 = vmatprep.subr.bf16.mxu1 %v9174_v45 }
0x1081   :  { %3336 = vmatpush1.bf16.msra.mxu1 %v9172_v42  ;;  %v7731_v42 = vld [vmem:[#allocation5 + $0x14] ss:$0 sm:$0xff] }
0x1082   :  { %3337 = vmatprep.subr.bf16.mxu1 %v9177_v44 }
0x1085   :  { %3338 = vmatpush1.bf16.msra.mxu1 %v9175_v5  ;;  %v10058_v5 = vadd.f32 %v7731_v42, %v9790_v56  ;;  %v9240_v56 = vld [vmem:[#allocation11 + $0x1c4] ss:$20 sps:$4 sm:$0xff]  }
0x1086   :  { %3339 = vmatprep.subr.bf16.mxu1 %v9180_v48 }
0x1087   :  { %v3838_v48 = vmul.f32 %v10058_v5, %v10058_v5 }
0x1089   :  { %3340 = vmatpush1.bf16.msra.mxu1 %v9178_v43  ;;  %v9231_v43 = vld [vmem:[#allocation11 + $0x178] ss:$20 sps:$4 sm:$0xff]  }
0x108a   :  { %3341 = vmatprep.subr.bf16.mxu1 %v9183_v49  ;;  %v9232_v49 = vld [vmem:[#allocation11 + $0x38] ss:$20 sps:$4 sm:$0xff]  }
0x108d   :  { %3342 = vmatpush1.bf16.msra.mxu1 %v9181_v50  ;;  %v9235_v50 = vld [vmem:[#allocation11 + $0x19c] ss:$20 sps:$4 sm:$0xff]  }
0x108e   :  { %3343 = vmatprep.subr.bf16.mxu1 %v9186_v30  ;;  %v9236_v30 = vld [vmem:[#allocation11 + $0x1a0] ss:$20 sps:$4 sm:$0xff]  }
0x1091   :  { %3344 = vmatpush1.bf16.msra.mxu1 %v9184_v51  ;;  %v9233_v51 = vld [vmem:[#allocation11 + $0x198] ss:$20 sps:$4 sm:$0xff]  }
0x1092   :  { %3345 = vmatprep.subr.bf16.mxu1 %v9189_v52  ;;  %v9237_v52 = vld [vmem:[#allocation11 + $0x60] ss:$20 sps:$4 sm:$0xff]  }
0x1128   :  { %v2712_v55 = vpop.f32.mrb[36].mxu0 }
0x1129   :  { %v2722_v59 = vpack.c.bf16 %v2712_v55, %v2712_v55  ;;  %v8681_v61 = vpop.f32.mrb[37].mxu0  ;;  %v9187_v55 = vld [vmem:[#allocation11 + $0x1e0] ss:$20 sps:$4 sm:$0xff]  }
0x112a   :  { %v2715_v62 = vpop.f32.mrb[38].mxu0  ;;  %3346 = vmatpush1.bf16.msra.mxu1 %v9187_v55  ;;  %v9195_v61 = vld [vmem:[#allocation11 + $0x234] ss:$20 sps:$4 sm:$0xff]  }
0x112b   :  { %v8682_v63 = vpop.f32.mrb[39].mxu0  ;;  %8688 = vmatmul.mubr.msk.bf16.vlgmr.msra.gmra.mrb[32].mxu0 %vm707_vm2, %v2722_v59  ;;  %v9190_v59 = vld [vmem:[#allocation11 + $0x208] ss:$20 sps:$4 sm:$0xff]   ;;  %v9193_v62 = vld [vmem:[#allocation11 + $0x230] ss:$20 sps:$4 sm:$0xff]  }
0x112c   :  { %8704 = vmatpush3.bf16.msra.mxu0 %v9147_v57  ;;  %8707 = vmatprep.mubr.msk.bf16.mxu0 %vm9622_vm1, %v9621_v18  ;;  %v9192_v57 = vld [vmem:[#allocation11 + $0x20c] ss:$20 sps:$4 sm:$0xff]  }
0x112d   :  { %8705 = vmatprep.subr.bf16.mxu0 %v9621_v18  ;;  %3347 = vmatprep.subr.bf16.mxu1 %v9192_v57  ;;  %v9238_v55 = vld [vmem:[#allocation11 + $0x1c0] ss:$20 sps:$4 sm:$0xff]   ;;  %v9242_v57 = vld [vmem:[#allocation11 + $0x88] ss:$20 sps:$4 sm:$0xff]  }
0x112e   :  { %3348 = vmatpush1.bf16.msra.mxu1 %v9190_v59  ;;  %v9245_v59 = vld [vmem:[#allocation11 + $0x1ec] ss:$20 sps:$4 sm:$0xff]  }
0x112f   :  { %v2880_v2 = vpop.f32.mrb[64].mxu1  ;;  %3349 = vmatprep.subr.bf16.mxu1 %v9195_v61  ;;  %v9246_v61 = vld [vmem:[#allocation11 + $0x1f0] ss:$20 sps:$4 sm:$0xff]  }
0x1130   :  { %v8701_v3 = vpop.f32.mrb[65].mxu1  ;;  %8706 = vmatpush3.bf16.msra.mxu0 %v9148_v1  ;;  %v2890_v7 = vpack.c.bf16 %v2880_v2, %v2880_v2 }
0x1131   :  { %v2883_v58 = vpop.f32.mrb[66].mxu1  ;;  %8717 = vmatprep.subr.bf16.mxu0 %v9621_v18 }
0x1132   :  { %v8702_v4 = vpop.f32.mrb[67].mxu1  ;;  %3350 = vmatpush1.bf16.msra.mxu1 %v9193_v62  ;;  %v9243_v62 = vld [vmem:[#allocation11 + $0x1e8] ss:$20 sps:$4 sm:$0xff]  }
0x1133   :  { %v9198_v4 = vld [vmem:[#allocation11 + $0x25c] ss:$20 sps:$4 sm:$0xff]  }
0x1134   :  { %3351 = vmatprep.subr.bf16.mxu1 %v9198_v4  ;;  %v9255_v4 = vld [vmem:[#allocation11 + $0x23c] ss:$20 sps:$4 sm:$0xff]  }
0x1136   :  { %3352 = vmatpush1.bf16.msra.mxu1 %v9196_v6  ;;  %v9256_v6 = vld [vmem:[#allocation11 + $0x240] ss:$20 sps:$4 sm:$0xff]  }
0x1137   :  { %8708 = vmatmul.mubr.msk.bf16.vlgmr.msra.gmra.mrb[32].mxu0 %vm707_vm2, %v2890_v7  ;;  %v2991_v9 = vpop.f32.mrb[68].mxu1  ;;  %v9199_v7 = vld [vmem:[#allocation11 + $0x8] ss:$20 sps:$4 sm:$0xff]  }
0x1138   :  { %v2997_v10 = vmul.f32 0.17677669, %v2991_v9  ;;  %8718 = vmatpush3.bf16.msra.mxu0 %v3012_v8  ;;  %v8715_v11 = vpop.f32.mrb[69].mxu1  ;;  %8719 = vmatprep.mubr.msk.bf16.mxu0 %vm9622_vm1, %v9621_v18  ;;  %v9201_v8 = vld [vmem:[#allocation11 + $0xc] ss:$20 sps:$4 sm:$0xff]  }
0x1139   :  { %v2994_v12 = vpop.f32.mrb[70].mxu1  ;;  %8723 = vmatprep.subr.bf16.mxu0 %v9621_v18  ;;  %v9204_v9 = vld [vmem:[#allocation11 + $0x34] ss:$20 sps:$4 sm:$0xff]   ;;  %v9207_v11 = vld [vmem:[#allocation11 + $0x5c] ss:$20 sps:$4 sm:$0xff]  }
0x113a   :  { %v2998_v15 = vmul.f32 1.442695, %v2997_v10  ;;  %v8716_v31 = vpop.f32.mrb[71].mxu1  ;;  %v9202_v10 = vld [vmem:[#allocation11 + $0x30] ss:$20 sps:$4 sm:$0xff]  }
0x113b   :  { %v9226_v12 = vld [vmem:[#allocation11 + $0x150] ss:$20 sps:$4 sm:$0xff]  }
0x113c   :  { %9419 = vpow2.f32 %v2998_v15  ;;  %v9205_v15 = vld [vmem:[#allocation11 + $0x58] ss:$20 sps:$4 sm:$0xff]   ;;  %8216 = vmatprep.subr.bf16.mxu1 %v9226_v12  ;;  %v9262_v12 = vld [vmem:[#allocation11 + $0x128] ss:$20 sps:$4 sm:$0xff]  }
0x113d   :  { %v9210_v31 = vld [vmem:[#allocation11 + $0x84] ss:$20 sps:$4 sm:$0xff]  }
0x1146   :  { %v9420_v53 = vpop.eup %9419 }
0x1147   :  { %v3000_v54 = vsel %vm757_vm4, %v9420_v53, 0.0 }
0x1148   :  { %3001 = vadd.xlane.f32.xlu1 %v3000_v54  ;;  %v9213_v54 = vld [vmem:[#allocation11 + $0xac] ss:$20 sps:$4 sm:$0xff]  }
0x11d5   :  { %v3002_v38 = vpop.xlane.xlu1 %3001 }
0x11d6   :  { %9421 = vrcp.f32 %v3002_v38  ;;  %v9211_v38 = vld [vmem:[#allocation11 + $0xa8] ss:$20 sps:$4 sm:$0xff]  }
0x11e0   :  { %v9422_v60 = vpop.eup %9421 }
0x11e1   :  { %v3004_v19 = vmul.f32 %v9422_v60, %v9420_v53  ;;  %v9208_v53 = vld [vmem:[#allocation11 + $0x80] ss:$20 sps:$4 sm:$0xff]  }
0x11e2   :  { %v9216_v60 = vld [vmem:[#allocation11 + $0xd4] ss:$20 sps:$4 sm:$0xff]  }
0x11e3   :  { %v3005_v21 = vpack.c.bf16 %v3004_v19, %v3004_v19  ;;  %v9214_v19 = vld [vmem:[#allocation11 + $0xd0] ss:$20 sps:$4 sm:$0xff]  }
0x11e5   :  { %8720 = vmatmul.mubr.msk.bf16.vlgmr.msra.gmra.mrb[40].mxu0 %vm757_vm4, %v3005_v21  ;;  %v9217_v21 = vld [vmem:[#allocation11 + $0xf8] ss:$20 sps:$4 sm:$0xff]  }
0x11e6   :  { %8724 = vmatpush3.bf16.msra.mxu0 %v9149_v20  ;;  %8727 = vmatprep.mubr.msk.bf16.mxu0 %vm9622_vm1, %v9621_v18  ;;  %v9219_v20 = vld [vmem:[#allocation11 + $0xfc] ss:$20 sps:$4 sm:$0xff]  }
0x11e7   :  { %8725 = vmatprep.subr.bf16.mxu0 %v9621_v18 }
0x11ea   :  { %8726 = vmatpush3.bf16.msra.mxu0 %v9150_v23  ;;  %v9222_v23 = vld [vmem:[#allocation11 + $0x124] ss:$20 sps:$4 sm:$0xff]  }
0x11eb   :  { %3751 = vmatprep.subr.bf16.mxu0 %v9201_v8  ;;  %v9257_v8 = vld [vmem:[#allocation11 + $0x100] ss:$20 sps:$4 sm:$0xff]  }
0x12b8   :  { %v3048_v63 = vpop.f32.mrb[40].mxu0 }
0x12b9   :  { %v3058_v1 = vpack.c.bf16 %v3048_v63, %v3048_v63  ;;  %v8721_v2 = vpop.f32.mrb[41].mxu0  ;;  %v9247_v63 = vld [vmem:[#allocation11 + $0xb0] ss:$20 sps:$4 sm:$0xff]  }
0x12ba   :  { %v3051_v3 = vpop.f32.mrb[42].mxu0  ;;  %v9250_v2 = vld [vmem:[#allocation11 + $0x214] ss:$20 sps:$4 sm:$0xff]  }
0x12bb   :  { %v8722_v58 = vpop.f32.mrb[43].mxu0  ;;  %8728 = vmatmul.mubr.msk.bf16.vlgmr.msra.gmra.mrb[32].mxu0 %vm707_vm2, %v3058_v1  ;;  %v9248_v1 = vld [vmem:[#allocation11 + $0x210] ss:$20 sps:$4 sm:$0xff]   ;;  %v9251_v3 = vld [vmem:[#allocation11 + $0x218] ss:$20 sps:$4 sm:$0xff]  }
0x12bc   :  { %3752 = vmatpush1.bf16.msra.mxu0 %v9199_v7  ;;  %v9252_v58 = vld [vmem:[#allocation11 + $0xd8] ss:$20 sps:$4 sm:$0xff]  }
0x12bd   :  { %3753 = vmatprep.subr.bf16.mxu0 %v9204_v9  ;;  %v9253_v7 = vld [vmem:[#allocation11 + $0x238] ss:$20 sps:$4 sm:$0xff]  }
0x12be   :  { %v9260_v9 = vld [vmem:[#allocation11 + $0x264] ss:$20 sps:$4 sm:$0xff]  }
0x12c0   :  { %3754 = vmatpush1.bf16.msra.mxu0 %v9202_v10  ;;  %v9261_v10 = vld [vmem:[#allocation11 + $0x268] ss:$20 sps:$4 sm:$0xff]  }
0x12c1   :  { %3755 = vmatprep.subr.bf16.mxu0 %v9207_v11  ;;  %v9258_v11 = vld [vmem:[#allocation11 + $0x260] ss:$20 sps:$4 sm:$0xff]  }
0x12c4   :  { %3756 = vmatpush1.bf16.msra.mxu0 %v9205_v15  ;;  %v9265_v15 = vld [vmem:[#allocation10 + $0x34] ss:$80 sps:$4 sm:$0xff]  }
0x12c5   :  { %3757 = vmatprep.subr.bf16.mxu0 %v9210_v31 }
0x12c8   :  { %3758 = vmatpush1.bf16.msra.mxu0 %v9208_v53 }
0x12c9   :  { %3759 = vmatprep.subr.bf16.mxu0 %v9213_v54 }
0x12cc   :  { %3760 = vmatpush1.bf16.msra.mxu0 %v9211_v38 }
0x12cd   :  { %3761 = vmatprep.subr.bf16.mxu0 %v9216_v60 }
0x12d0   :  { %3762 = vmatpush1.bf16.msra.mxu0 %v9214_v19 }
0x12d1   :  { %3763 = vmatprep.subr.bf16.mxu0 %v9219_v20 }
0x12d4   :  { %3764 = vmatpush1.bf16.msra.mxu0 %v9217_v21 }
0x12d5   :  { %3765 = vmatprep.subr.bf16.mxu0 %v9222_v23  ;;  %v3382_v23 = vld [vmem:[#allocation5 + $0x3f] sm:$0x3] }
0x12d8   :  { %3766 = vmatpush1.bf16.msra.mxu0 %v9220_v24  ;;  %v3396_v24 = vld [vmem:[#allocation5 + $0x41] sm:$0x3] }
0x12d9   :  { %3767 = vmatprep.subr.bf16.mxu0 %v9225_v25 }
0x12dc   :  { %3768 = vmatpush1.bf16.msra.mxu0 %v9223_v26 }
0x12dd   :  { %3769 = vmatprep.subr.bf16.mxu0 %v9230_v27  ;;  %v3387_v27 = vrot.slane %v3382_v23, %v9800_v14 }
0x12e0   :  { %3770 = vmatpush1.bf16.msra.mxu0 %v9228_v28  ;;  %v3391_v28 = vrot.slane %v3382_v23, %v9803_v16 }
0x12e1   :  { %3771 = vmatprep.subr.bf16.mxu0 %v9235_v50 }
0x12e4   :  { %3772 = vmatpush1.bf16.msra.mxu0 %v9233_v51  ;;  %v9269_v51 = vld [vmem:[#allocation10 + $0xd4] ss:$80 sps:$4 sm:$0xff]  }
0x12e5   :  { %3773 = vmatprep.subr.bf16.mxu0 %v9240_v56  ;;  %v9267_v56 = vld [vmem:[#allocation10 + $0xd0] ss:$80 sps:$4 sm:$0xff]  }
0x12e8   :  { %3774 = vmatpush1.bf16.msra.mxu0 %v9238_v55  ;;  %v9273_v55 = vld [vmem:[#allocation10 + $0x174] ss:$80 sps:$4 sm:$0xff]  }
0x12e9   :  { %3775 = vmatprep.subr.bf16.mxu0 %v9245_v59  ;;  %v9274_v59 = vld [vmem:[#allocation10 + $0x178] ss:$80 sps:$4 sm:$0xff]  }
0x12ec   :  { %3776 = vmatpush1.bf16.msra.mxu0 %v9243_v62  ;;  %v9275_v62 = vld [vmem:[#allocation10 + $0x210] ss:$80 sps:$4 sm:$0xff]  }
0x12ed   :  { %3777 = vmatprep.subr.bf16.mxu0 %v9250_v2  ;;  %v9279_v2 = vld [vmem:[#allocation10 + $0x2b0] ss:$80 sps:$4 sm:$0xff]  }
0x12f0   :  { %3778 = vmatpush1.bf16.msra.mxu0 %v9248_v1  ;;  %v9281_v1 = vld [vmem:[#allocation10 + $0x2b4] ss:$80 sps:$4 sm:$0xff]  }
0x12f1   :  { %3779 = vmatprep.subr.bf16.mxu0 %v9255_v4 }
0x12f4   :  { %3780 = vmatpush1.bf16.msra.mxu0 %v9253_v7  ;;  %v9283_v7 = vld [vmem:[#allocation10 + $0x350] ss:$80 sps:$4 sm:$0xff]  }
0x12f5   :  { %3781 = vmatprep.subr.bf16.mxu0 %v9260_v9  ;;  %v9289_v9 = vld [vmem:[#allocation10 + $0x3f4] ss:$80 sps:$4 sm:$0xff]  }
0x12f8   :  { %3782 = vmatpush1.bf16.msra.mxu0 %v9258_v11  ;;  %v7973_v11 = vld [vmem:[#allocation5 + $0x43] ss:$0 sm:$0xff] }
0x12f9   :  { %4042 = vmatprep.subr.bf16.mxu0 %v9265_v15  ;;  %v9290_v15 = vld [vmem:[#allocation10 + $0x3f8] ss:$80 sps:$4 sm:$0xff]  }
0x138e   :  { %v3108_v32 = vpop.f32.mrb[32].mxu0 }
0x138f   :  { %v10048_v33 = vadd.f32 %v7877_v29, %v3108_v32  ;;  %v8729_v34 = vpop.f32.mrb[33].mxu0 }
0x1390   :  { %v3111_v36 = vpop.f32.mrb[34].mxu0  ;;  %v3401_v34 = vrot.slane %v3396_v24, %v9800_v14 }
0x1391   :  { %v8730_v39 = vpop.f32.mrb[35].mxu0  ;;  %v3364_v40 = vadd.f32 %v10048_v33, %v9893_v46  ;;  %v3147_v41 = vpack.c.bf16 %v10048_v33, %v10048_v33  ;;  %v3369_v45 = vmul.f32 %v10048_v33, %v10048_v33 }
0x1392   :  { %v3405_v39 = vrot.slane %v3396_v24, %v9803_v16 }
0x1393   :  { %3365 = vadd.xlane.f32.xlu1 %v3364_v40  ;;  %3354 = vmatmul.mubr.bf16.vlgmr.msra.gmra.mrb[72].mxu1 %v3147_v41  ;;  %v3370_v44 = vadd.f32 %v3369_v45, %v9900_v47  ;;  %v9241_v47 = vld [vmem:[#allocation11 + $0x1c8] ss:$20 sps:$4 sm:$0xff]  }
0x1394   :  { %8217 = vmatpush3.bf16.msra.mxu1 %v9227_v37 }
0x1395   :  { %3371 = vadd.xlane.f32.xlu0 %v3370_v44  ;;  %8218 = vmatprep.subr.bf16.mxu1 %v9231_v43 }
0x1397   :  { %3835 = vadd.xlane.f32.xlu1 %v10058_v5 }
0x1398   :  { %8219 = vmatpush3.bf16.msra.mxu1 %v9232_v49  ;;  %v9263_v49 = vld [vmem:[#allocation10 + $0x30] ss:$80 sps:$4 sm:$0xff]  }
0x1399   :  { %8220 = vmatprep.subr.bf16.mxu1 %v9236_v30  ;;  %v9266_v30 = vld [vmem:[#allocation10 + $0x38] ss:$80 sps:$4 sm:$0xff]  }
0x139b   :  { %3839 = vadd.xlane.f32.xlu1 %v3838_v48 }
0x139c   :  { %8221 = vmatpush3.bf16.msra.mxu1 %v9237_v52 }
0x139d   :  { %8222 = vmatprep.subr.bf16.mxu1 %v9241_v47  ;;  %v9270_v47 = vld [vmem:[#allocation10 + $0xd8] ss:$80 sps:$4 sm:$0xff]  }
0x13a0   :  { %8223 = vmatpush3.bf16.msra.mxu1 %v9242_v57  ;;  %v9271_v57 = vld [vmem:[#allocation10 + $0x170] ss:$80 sps:$4 sm:$0xff]  }
0x13a1   :  { %8224 = vmatprep.subr.bf16.mxu1 %v9246_v61  ;;  %v9277_v61 = vld [vmem:[#allocation10 + $0x214] ss:$80 sps:$4 sm:$0xff]  }
0x13a4   :  { %8225 = vmatpush3.bf16.msra.mxu1 %v9247_v63  ;;  %v9278_v63 = vld [vmem:[#allocation10 + $0x218] ss:$80 sps:$4 sm:$0xff]  }
0x13a5   :  { %8226 = vmatprep.subr.bf16.mxu1 %v9251_v3  ;;  %v9282_v3 = vld [vmem:[#allocation10 + $0x2b8] ss:$80 sps:$4 sm:$0xff]  }
0x13a8   :  { %8227 = vmatpush3.bf16.msra.mxu1 %v9252_v58  ;;  %v9285_v58 = vld [vmem:[#allocation10 + $0x354] ss:$80 sps:$4 sm:$0xff]  }
0x13a9   :  { %8228 = vmatprep.subr.bf16.mxu1 %v9256_v6 }
0x13ac   :  { %8229 = vmatpush3.bf16.msra.mxu1 %v9257_v8  ;;  %v9286_v8 = vld [vmem:[#allocation10 + $0x358] ss:$80 sps:$4 sm:$0xff]  }
0x13ad   :  { %8230 = vmatprep.subr.bf16.mxu1 %v9261_v10 }
0x13b0   :  { %8231 = vmatpush3.bf16.msra.mxu1 %v9262_v12  ;;  %v9287_v12 = vld [vmem:[#allocation10 + $0x3f0] ss:$80 sps:$4 sm:$0xff]  }
0x13b1   :  { %8731 = vmatprep.subr.bf16.mxu1 %v9621_v18 }
0x1420   :  { %v3366_v31 = vpop.xlane.xlu1 %3365 }
0x1421   :  { %v3368_v53 = vmul.f32 0.00390625, %v3366_v31  ;;  %v9293_v31 = vld [vmem:[#allocation10 + $0x494] ss:$80 sps:$4 sm:$0xff]  }
0x1422   :  { %v3372_v54 = vpop.xlane.xlu0 %3371 }
0x1423   :  { %v3373_v38 = vmul.f32 0.00390625, %v3372_v54  ;;  %v3374_v60 = vmul.f32 %v3368_v53, %v3368_v53  ;;  %v3378_v25 = vsub.f32 %v10048_v33, %v3368_v53  ;;  %v3379_v26 = vsub.f32 %v9893_v46, %v3368_v53  ;;  %v7974_v54 = vld [vmem:[#allocation5 + $0x44] ss:$0 sm:$0xff] }
0x1424   :  { %v3836_v21 = vpop.xlane.xlu1 %3835 }
0x1425   :  { %v3375_v19 = vsub.f32 %v3373_v38, %v3374_v60  ;;  %v3837_v36 = vmul.f32 0.0078125, %v3836_v21  ;;  %v9291_v38 = vld [vmem:[#allocation10 + $0x490] ss:$80 sps:$4 sm:$0xff]   ;;  %v9294_v60 = vld [vmem:[#allocation10 + $0x498] ss:$80 sps:$4 sm:$0xff]  }
0x1426   :  { %v3149_v21 = vld [vmem:[#allocation5 + $0xf] sm:$0x3] }
0x1427   :  { %v3376_v20 = vadd.f32 1e-05, %v3375_v19  ;;  %v3842_v44 = vmul.f32 %v3837_v36, %v3837_v36  ;;  %v3846_v6 = vsub.f32 %v10058_v5, %v3837_v36  ;;  %v3154_v23 = vrot.slane %v3149_v21, %v9800_v14 }
0x1428   :  { %v3840_v32 = vpop.xlane.xlu1 %3839  ;;  %v3158_v24 = vrot.slane %v3149_v21, %v9803_v16 }
0x1429   :  { %9423 = vrsqrt.f32 %v3376_v20  ;;  %v3841_v41 = vmul.f32 0.0078125, %v3840_v32 }
0x142b   :  { %v3843_v48 = vsub.f32 %v3841_v41, %v3842_v44 }
0x142d   :  { %v3844_v52 = vadd.f32 1e-05, %v3843_v48 }
0x142f   :  { %9425 = vrsqrt.f32 %v3844_v52 }
0x1433   :  { %v9424_v29 = vpop.eup %9423 }
0x1434   :  { %v3381_v37 = vmul.f32 %v9424_v29, %v3379_v26  ;;  %v3380_v40 = vmul.f32 %v9424_v29, %v3378_v25 }
0x1436   :  { %v3395_v45 = vmul.f32 %v3391_v28, %v3381_v37  ;;  %v3394_v42 = vmul.f32 %v3387_v27, %v3380_v40  ;;  %v3478_v40 = vld [vmem:[#allocation5 + $0x11] sm:$0x7] }
0x1437   :  { %v3483_v41 = vrot.slane %v3478_v40, %v9800_v14  ;;  %v3491_v48 = vrot.slane %v3478_v40, %v9806_v17 }
0x1438   :  { %v10070_v33 = vadd.f32 %v3405_v39, %v3395_v45  ;;  %v10072_v46 = vadd.f32 %v3401_v34, %v3394_v42  ;;  %v3487_v45 = vrot.slane %v3478_v40, %v9803_v16 }
0x1439   :  { %v9426_v4 = vpop.eup %9425 }
0x143a   :  { %v3477_v43 = vpack.c.bf16 %v10070_v33, %v10070_v33  ;;  %v3476_v50 = vpack.c.bf16 %v10072_v46, %v10072_v46  ;;  %v3847_v10 = vmul.f32 %v9426_v4, %v3846_v6 }
0x143c   :  { %3783 = vmatprep.mubr.bf16.mxu0 %v3477_v43  ;;  %3824 = vmatprep.mubr.bf16.mxu1 %v3477_v43  ;;  %v3855_v53 = vmul.f32 %v7973_v11, %v3847_v10 }
0x143d   :  { %3784 = vmatmul.mubr.bf16.vlgmr.msra.gmra.mrb[44].mxu0 %v3476_v50  ;;  %3825 = vmatmul.mubr.bf16.vlgmr.msra.gmra.mrb[76].mxu1 %v3476_v50 }
0x143e   :  { %4043 = vmatpush1.bf16.msra.mxu0 %v9263_v49  ;;  %8732 = vmatpush3.bf16.msra.mxu1 %v9266_v30  ;;  %v3863_v19 = vadd.f32 %v7974_v54, %v3855_v53 }
0x143f   :  { %4044 = vmatprep.subr.bf16.mxu0 %v9269_v51  ;;  %8733 = vmatprep.subr.bf16.mxu1 %v9621_v18 }
0x1440   :  { %4074 = vmatprep.mubr.bf16.mxu0 %v9607_v0  ;;  %8747 = vmatprep.mubr.msk.bf16.mxu1 %vm9622_vm1, %v9621_v18  ;;  %v3896_v20 = vpack.c.bf16 %v3863_v19, %v3863_v19 }
0x1442   :  { %4045 = vmatpush1.bf16.msra.mxu0 %v9267_v56  ;;  %8734 = vmatpush3.bf16.msra.mxu1 %v9270_v47 }
0x1443   :  { %4046 = vmatprep.subr.bf16.mxu0 %v9273_v55  ;;  %8735 = vmatprep.subr.bf16.mxu1 %v9621_v18 }
0x1446   :  { %4047 = vmatpush1.bf16.msra.mxu0 %v9271_v57  ;;  %8736 = vmatpush3.bf16.msra.mxu1 %v9274_v59 }
0x1447   :  { %4048 = vmatprep.subr.bf16.mxu0 %v9277_v61  ;;  %8737 = vmatprep.subr.bf16.mxu1 %v9621_v18  ;;  %v3897_v61 = vld [vmem:[#allocation5 + $0x15] sm:$0x7] }
0x1448   :  { %v3910_v4 = vrot.slane %v3897_v61, %v9806_v17 }
0x144a   :  { %4049 = vmatpush1.bf16.msra.mxu0 %v9275_v62  ;;  %8738 = vmatpush3.bf16.msra.mxu1 %v9278_v63  ;;  %v3906_v62 = vrot.slane %v3897_v61, %v9803_v16  ;;  %v3902_v63 = vrot.slane %v3897_v61, %v9800_v14 }
0x144b   :  { %4050 = vmatprep.subr.bf16.mxu0 %v9281_v1  ;;  %8739 = vmatprep.subr.bf16.mxu1 %v9621_v18 }
0x144e   :  { %4051 = vmatpush1.bf16.msra.mxu0 %v9279_v2  ;;  %8740 = vmatpush3.bf16.msra.mxu1 %v9282_v3 }
0x144f   :  { %4052 = vmatprep.subr.bf16.mxu0 %v9285_v58  ;;  %8741 = vmatprep.subr.bf16.mxu1 %v9621_v18 }
0x1452   :  { %4053 = vmatpush1.bf16.msra.mxu0 %v9283_v7  ;;  %8742 = vmatpush3.bf16.msra.mxu1 %v9286_v8 }
0x1453   :  { %4054 = vmatprep.subr.bf16.mxu0 %v9289_v9  ;;  %8743 = vmatprep.subr.bf16.mxu1 %v9621_v18 }
0x1456   :  { %4055 = vmatpush1.bf16.msra.mxu0 %v9287_v12  ;;  %8744 = vmatpush3.bf16.msra.mxu1 %v9290_v15 }
0x1457   :  { %4056 = vmatprep.subr.bf16.mxu0 %v9293_v31  ;;  %8745 = vmatprep.subr.bf16.mxu1 %v9621_v18 }
0x145a   :  { %4057 = vmatpush1.bf16.msra.mxu0 %v9291_v38  ;;  %8746 = vmatpush3.bf16.msra.mxu1 %v9294_v60 }
0x145b   :  { %8751 = vmatprep.subr.bf16.mxu0 %v9621_v18  ;;  %8771 = vmatprep.subr.bf16.mxu1 %v9621_v18 }
0x145d   :  { %4075 = vmatmul.mubr.bf16.vlgmr.msra.gmra.mrb[48].mxu0 %v3896_v20  ;;  %8748 = vmatmul.mubr.bf16.vlgmr.msra.gmra.mrb[80].mxu1 %v3896_v20 }
0x145e   :  { %8753 = vmatprep.mubr.msk.bf16.mxu0 %vm9622_vm1, %v9621_v18  ;;  %8773 = vmatprep.mubr.msk.bf16.mxu1 %vm9622_vm1, %v9621_v18 }
0x1466   :  { %v3355_v25 = vpop.f32.mrb[72].mxu1 }
0x1467   :  { %v3356_v26 = vadd.f32 %v3355_v25, %v3154_v23  ;;  %v3357_v27 = vpop.f32.mrb[73].mxu1 }
0x1468   :  { %v3358_v28 = vadd.f32 %v3357_v27, %v3158_v24  ;;  %v3359_v29 = vpop.f32.mrb[74].mxu1 }
0x1469   :  { %v3362_v32 = vmax.f32 %v3356_v26, 0.0  ;;  %v3360_v34 = vpop.f32.mrb[75].mxu1 }
0x146a   :  { %v3363_v36 = vmax.f32 %v3358_v28, 0.0 }
0x146b   :  { %v10098_v37 = vadd.f32 %v10072_v46, %v3362_v32 }
0x146c   :  { %v10101_v39 = vadd.f32 %v10070_v33, %v3363_v36 }
0x1510   :  { %v3785_v42 = vpop.f32.mrb[44].mxu0  ;;  %v8232_v44 = vpop.f32.mrb[76].mxu1 }
0x1511   :  { %v10106_v43 = vadd.f32 %v3785_v42, %v3483_v41  ;;  %v3787_v49 = vpop.f32.mrb[45].mxu0  ;;  %v8233_v50 = vpop.f32.mrb[77].mxu1 }
0x1512   :  { %v10108_v30 = vadd.f32 %v3787_v49, %v3487_v45  ;;  %v8234_v46 = vadd.f32 %v8233_v50, %v8232_v44  ;;  %v3789_v51 = vpop.f32.mrb[46].mxu0  ;;  %v8235_v52 = vpop.f32.mrb[78].mxu1 }
0x1513   :  { %v3832_v33 = vmax.f32 %v10106_v43, 0.0  ;;  %v3790_v56 = vpop.f32.mrb[47].mxu0  ;;  %v8236_v47 = vpop.f32.mrb[79].mxu1  ;;  %v9296_v52 = vld [vmem:[#allocation10 + $0xdc] ss:$80 sps:$4 sm:$0xff]  }
0x1514   :  { %v3833_v55 = vmax.f32 %v10108_v30, 0.0  ;;  %v10112_v57 = vadd.f32 %v8234_v46, %v3491_v48  ;;  %v9295_v46 = vld [vmem:[#allocation10 + $0x3c] ss:$80 sps:$4 sm:$0xff]  }
0x1516   :  { %v3834_v59 = vmax.f32 %v10112_v57, 0.0 }
0x1530   :  { %v4076_v1 = vpop.f32.mrb[48].mxu0  ;;  %v4117_v2 = vpop.f32.mrb[80].mxu1 }
0x1531   :  { %v4078_v3 = vpop.f32.mrb[49].mxu0  ;;  %v8749_v58 = vpop.f32.mrb[81].mxu1  ;;  %v4077_v11 = vadd.f32 %v4076_v1, %v3902_v63  ;;  %v4118_v15 = vadd.f32 %v4117_v2, %v3910_v4 }
0x1532   :  { %v4079_v6 = vadd.f32 %v4078_v3, %v3906_v62  ;;  %v4080_v7 = vpop.f32.mrb[50].mxu0  ;;  %v4120_v8 = vpop.f32.mrb[82].mxu1 }
0x1533   :  { %v4081_v9 = vpop.f32.mrb[51].mxu0  ;;  %v8750_v10 = vpop.f32.mrb[83].mxu1  ;;  %v4124_v53 = vpack.c.bf16 %v4077_v11, %v4077_v11  ;;  %v10121_v54 = vpack.c.bf16 %v4118_v15, %v4118_v15  ;;  %v9298_v11 = vld [vmem:[#allocation10 + $0x21c] ss:$80 sps:$4 sm:$0xff]  }
0x1534   :  { %v4125_v12 = vpack.c.bf16 %v4079_v6, %v4079_v6  ;;  %v9297_v10 = vld [vmem:[#allocation10 + $0x17c] ss:$80 sps:$4 sm:$0xff]  }
0x1535   :  { %v4186_v38 = vsel %vm767_vm3, %v10121_v54, 0 }
0x1536   :  { %4299 = vrot.lane.b32.xlu1 %v4125_v12, %s9623_s0  ;;  %v4131_v31 = vsel %vm707_vm2, %v4125_v12, 0 }
0x1537   :  { %8752 = vmatpush3.bf16.xpose.msra.mxu0 %v4131_v31 }
0x1538   :  { %8757 = vmatprep.subr.bf16.mxu0 %v9621_v18 }
0x153a   :  { %4296 = vrot.lane.b32.xlu1 %v4124_v53, %s9623_s0 }
0x153e   :  { %8754 = vmatmul.mubr.msk.bf16.vlgmr.msra.gmra.mrb[52].mxu0 %vm707_vm2, %v4124_v53 }
0x153f   :  { %8758 = vmatpush3.bf16.msra.mxu0 %v4186_v38  ;;  %8759 = vmatprep.mubr.msk.bf16.mxu0 %vm9622_vm1, %v9621_v18 }
0x1540   :  { %8763 = vmatprep.subr.bf16.mxu0 %v9621_v18 }
0x15a8   :  { %v4300_v60 = vpop.permute.xlu1 %4299 }
0x15a9   :  { %v4305_v19 = vsel %vm707_vm2, %v4300_v60, 0 }
0x15aa   :  { %8772 = vmatpush3.bf16.xpose.msra.mxu1 %v4305_v19 }
0x15ab   :  { %8783 = vmatprep.subr.bf16.mxu1 %v9621_v18 }
0x15ac   :  { %v4297_v20 = vpop.permute.xlu1 %4296 }
0x15b1   :  { %8774 = vmatmul.mubr.msk.bf16.vlgmr.msra.gmra.mrb[84].mxu1 %vm707_vm2, %v4297_v20 }
0x15b2   :  { %8787 = vmatprep.mubr.msk.bf16.mxu1 %vm9622_vm1, %v9621_v18  ;;  %8784 = vmatpush3.bf16.msra.mxu1 %v9297_v10 }
0x15b3   :  { %8785 = vmatprep.subr.bf16.mxu1 %v9621_v18 }
0x15b6   :  { %8786 = vmatpush3.bf16.msra.mxu1 %v9298_v11 }
0x15b7   :  { %8797 = vmatprep.subr.bf16.mxu1 %v9621_v18 }
0x1611   :  { %v4167_v21 = vpop.f32.mrb[52].mxu0 }
0x1612   :  { %v4173_v23 = vmul.f32 0.17677669, %v4167_v21  ;;  %v8755_v24 = vpop.f32.mrb[53].mxu0 }
0x1613   :  { %v4170_v25 = vpop.f32.mrb[54].mxu0 }
0x1614   :  { %v4174_v26 = vmul.f32 1.442695, %v4173_v23  ;;  %v8756_v27 = vpop.f32.mrb[55].mxu0 }
0x1616   :  { %9427 = vpow2.f32 %v4174_v26 }
0x1620   :  { %v9428_v28 = vpop.eup %9427 }
0x1621   :  { %v4176_v29 = vsel %vm757_vm4, %v9428_v28, 0.0 }
0x1622   :  { %4177 = vadd.xlane.f32.xlu0 %v4176_v29 }
0x1638   :  { %4357 = vrot.lane.b32.xlu0 %v10121_v54, %s9623_s0 }
0x163c   :  { %4468 = vrot.lane.b32.xlu0 %v4125_v12, %s9609_s2 }
0x1640   :  { %4466 = vrot.lane.b32.xlu0 %v4124_v53, %s9609_s2 }
0x1684   :  { %v4341_v32 = vpop.f32.mrb[84].mxu1 }
0x1685   :  { %v4347_v34 = vmul.f32 0.17677669, %v4341_v32  ;;  %v8775_v36 = vpop.f32.mrb[85].mxu1 }
0x1686   :  { %v4344_v40 = vpop.f32.mrb[86].mxu1 }
0x1687   :  { %v4348_v41 = vmul.f32 1.442695, %v4347_v34  ;;  %v8776_v45 = vpop.f32.mrb[87].mxu1  ;;  %v9299_v40 = vld [vmem:[#allocation10 + $0x2bc] ss:$80 sps:$4 sm:$0xff]  }
0x1689   :  { %9429 = vpow2.f32 %v4348_v41  ;;  %v9300_v41 = vld [vmem:[#allocation10 + $0x35c] ss:$80 sps:$4 sm:$0xff]  }
0x1693   :  { %v9430_v42 = vpop.eup %9429 }
0x1694   :  { %v4350_v44 = vsel %vm757_vm4, %v9430_v42, 0.0 }
0x1695   :  { %4351 = vadd.xlane.f32.xlu1 %v4350_v44 }
0x16a6   :  { %4525 = vrot.lane.b32.xlu1 %v10121_v54, %s9609_s2 }
0x16aa   :  { %4636 = vrot.lane.b32.xlu1 %v4125_v12, %s9624_s3 }
0x16ae   :  { %4634 = vrot.lane.b32.xlu1 %v4124_v53, %s9624_s3 }
0x16af   :  { %v4178_v48 = vpop.xlane.xlu0 %4177 }
0x16b0   :  { %9431 = vrcp.f32 %v4178_v48 }
0x16b3   :  { %v4358_v47 = vpop.permute.xlu0 %4357 }
0x16b4   :  { %v4363_v3 = vsel %vm767_vm3, %v4358_v47, 0 }
0x16b7   :  { %v4469_v6 = vpop.permute.xlu0 %4468 }
0x16b8   :  { %v4474_v8 = vsel %vm707_vm2, %v4469_v6, 0 }
0x16ba   :  { %v9432_v49 = vpop.eup %9431 }
0x16bb   :  { %v4180_v50 = vmul.f32 %v9432_v49, %v9428_v28  ;;  %v4467_v9 = vpop.permute.xlu0 %4466 }
0x16bd   :  { %v4181_v51 = vpack.c.bf16 %v4180_v50, %v4180_v50 }
0x16bf   :  { %8760 = vmatmul.mubr.msk.bf16.vlgmr.msra.gmra.mrb[56].mxu0 %vm757_vm4, %v4181_v51 }
0x16c0   :  { %8764 = vmatpush3.bf16.msra.mxu0 %v9295_v46  ;;  %8767 = vmatprep.mubr.msk.bf16.mxu0 %vm9622_vm1, %v9621_v18  ;;  %v8004_v46 = vld [vmem:[#allocation5 + $0x18] ss:$0 sm:$0xff] }
0x16c1   :  { %8765 = vmatprep.subr.bf16.mxu0 %v9621_v18 }
0x16c4   :  { %8766 = vmatpush3.bf16.msra.mxu0 %v9296_v52 }
0x16c5   :  { %8777 = vmatprep.subr.bf16.mxu0 %v9621_v18 }
0x1722   :  { %v4352_v56 = vpop.xlane.xlu1 %4351 }
0x1723   :  { %9433 = vrcp.f32 %v4352_v56 }
0x1726   :  { %v4526_v38 = vpop.permute.xlu1 %4525 }
0x1727   :  { %v4531_v23 = vsel %vm767_vm3, %v4526_v38, 0 }
0x172a   :  { %v4637_v48 = vpop.permute.xlu1 %4636 }
0x172b   :  { %v4642_v50 = vsel %vm707_vm2, %v4637_v48, 0  ;;  %v9314_v48 = vld [vmem:[#allocation10 + $0xec] ss:$80 sps:$4 sm:$0xff]  }
0x172d   :  { %v9434_v1 = vpop.eup %9433 }
0x172e   :  { %v4354_v4 = vmul.f32 %v9434_v1, %v9430_v42 }
0x1730   :  { %v4355_v7 = vpack.c.bf16 %v4354_v4, %v4354_v4 }
0x1792   :  { %v4222_v61 = vpop.f32.mrb[56].mxu0 }
0x1793   :  { %v4232_v62 = vpack.c.bf16 %v4222_v61, %v4222_v61  ;;  %v8761_v63 = vpop.f32.mrb[57].mxu0 }
0x1794   :  { %v4225_v2 = vpop.f32.mrb[58].mxu0 }
0x1795   :  { %v8762_v58 = vpop.f32.mrb[59].mxu0  ;;  %8768 = vmatmul.mubr.msk.bf16.vlgmr.msra.gmra.mrb[60].mxu0 %vm707_vm2, %v4232_v62 }
0x1796   :  { %8778 = vmatpush3.bf16.msra.mxu0 %v4363_v3  ;;  %8779 = vmatprep.mubr.msk.bf16.mxu0 %vm9622_vm1, %v9621_v18 }
0x1797   :  { %8791 = vmatprep.subr.bf16.mxu0 %v9621_v18 }
0x179d   :  { %8780 = vmatmul.mubr.msk.bf16.vlgmr.msra.gmra.mrb[64].mxu0 %vm757_vm4, %v4355_v7 }
0x179e   :  { %8793 = vmatprep.mubr.msk.bf16.mxu0 %vm9622_vm1, %v9621_v18 }
0x179f   :  { %8792 = vmatpush3.bf16.xpose.msra.mxu0 %v4474_v8 }
0x17a0   :  { %8803 = vmatprep.subr.bf16.mxu0 %v9621_v18 }
0x17a6   :  { %8794 = vmatmul.mubr.msk.bf16.vlgmr.msra.gmra.mrb[68].mxu0 %vm707_vm2, %v4467_v9 }
0x17a7   :  { %8807 = vmatprep.mubr.msk.bf16.mxu0 %vm9622_vm1, %v9621_v18  ;;  %8804 = vmatpush3.bf16.msra.mxu0 %v9299_v40  ;;  %v9303_v40 = vld [vmem:[#allocation10 + $0x40] ss:$80 sps:$4 sm:$0xff]  }
0x17a8   :  { %8805 = vmatprep.subr.bf16.mxu0 %v9621_v18 }
0x17ab   :  { %8806 = vmatpush3.bf16.msra.mxu0 %v9300_v41  ;;  %v9305_v41 = vld [vmem:[#allocation10 + $0x44] ss:$80 sps:$4 sm:$0xff]  }
0x17ac   :  { %8817 = vmatprep.subr.bf16.mxu0 %v9621_v18 }
0x1868   :  { %v4282_v12 = vpop.f32.mrb[60].mxu0 }
0x1869   :  { %v8769_v15 = vpop.f32.mrb[61].mxu0  ;;  %v4294_v51 = vadd.f32 %v8004_v46, %v4282_v12 }
0x186a   :  { %v4285_v31 = vpop.f32.mrb[62].mxu0 }
0x186b   :  { %v8770_v53 = vpop.f32.mrb[63].mxu0 }
0x186c   :  { %v9301_v53 = vld [vmem:[#allocation10 + $0x3fc] ss:$80 sps:$4 sm:$0xff]  }
0x1870   :  { %v4399_v60 = vpop.f32.mrb[64].mxu0 }
0x1871   :  { %v4409_v19 = vpack.c.bf16 %v4399_v60, %v4399_v60  ;;  %v8781_v20 = vpop.f32.mrb[65].mxu0 }
0x1872   :  { %v4402_v21 = vpop.f32.mrb[66].mxu0 }
0x1873   :  { %v8782_v24 = vpop.f32.mrb[67].mxu0  ;;  %8788 = vmatmul.mubr.msk.bf16.vlgmr.msra.gmra.mrb[88].mxu1 %vm707_vm2, %v4409_v19 }
0x1874   :  { %8798 = vmatpush3.bf16.msra.mxu1 %v4531_v23  ;;  %8799 = vmatprep.mubr.msk.bf16.mxu1 %vm9622_vm1, %v9621_v18 }
0x1875   :  { %8811 = vmatprep.subr.bf16.mxu1 %v9621_v18 }
0x1879   :  { %v4510_v25 = vpop.f32.mrb[68].mxu0 }
0x187a   :  { %v4516_v26 = vmul.f32 0.17677669, %v4510_v25  ;;  %v8795_v27 = vpop.f32.mrb[69].mxu0 }
0x187b   :  { %v4513_v28 = vpop.f32.mrb[70].mxu0  ;;  %v9302_v27 = vld [vmem:[#allocation10 + $0x49c] ss:$80 sps:$4 sm:$0xff]  }
0x187c   :  { %v4517_v29 = vmul.f32 1.442695, %v4516_v26  ;;  %v8796_v32 = vpop.f32.mrb[71].mxu0 }
0x187e   :  { %9435 = vpow2.f32 %v4517_v29 }
0x1888   :  { %v9436_v34 = vpop.eup %9435 }
0x1889   :  { %v4519_v36 = vsel %vm757_vm4, %v9436_v34, 0.0 }
0x188a   :  { %4520 = vadd.xlane.f32.xlu0 %v4519_v36 }
0x18a0   :  { %4693 = vrot.lane.b32.xlu0 %v10121_v54, %s9624_s3  ;;  %v4635_v54 = vpop.permute.xlu1 %4634 }
0x1917   :  { %v4521_v45 = vpop.xlane.xlu0 %4520 }
0x1918   :  { %9437 = vrcp.f32 %v4521_v45  ;;  %v9306_v45 = vld [vmem:[#allocation10 + $0x48] ss:$80 sps:$4 sm:$0xff]  }
0x191b   :  { %v4694_v63 = vpop.permute.xlu0 %4693 }
0x191c   :  { %v4699_v4 = vsel %vm767_vm3, %v4694_v63, 0  ;;  %v9320_v63 = vld [vmem:[#allocation10 + $0x18c] ss:$80 sps:$4 sm:$0xff]  }
0x1922   :  { %v9438_v42 = vpop.eup %9437 }
0x1923   :  { %v4523_v44 = vmul.f32 %v9438_v42, %v9436_v34  ;;  %v9308_v42 = vld [vmem:[#allocation10 + $0x4c] ss:$80 sps:$4 sm:$0xff]  }
0x1925   :  { %v4524_v49 = vpack.c.bf16 %v4523_v44, %v4523_v44  ;;  %v9311_v44 = vld [vmem:[#allocation10 + $0xe4] ss:$80 sps:$4 sm:$0xff]  }
0x1927   :  { %8800 = vmatmul.mubr.msk.bf16.vlgmr.msra.gmra.mrb[92].mxu1 %vm757_vm4, %v4524_v49  ;;  %v9309_v49 = vld [vmem:[#allocation10 + $0xe0] ss:$80 sps:$4 sm:$0xff]  }
0x1928   :  { %8812 = vmatpush3.bf16.xpose.msra.mxu1 %v4642_v50  ;;  %8813 = vmatprep.mubr.msk.bf16.mxu1 %vm9622_vm1, %v9621_v18  ;;  %v9312_v50 = vld [vmem:[#allocation10 + $0xe8] ss:$80 sps:$4 sm:$0xff]  }
0x1929   :  { %8823 = vmatprep.subr.bf16.mxu1 %v9621_v18 }
0x192f   :  { %8814 = vmatmul.mubr.msk.bf16.vlgmr.msra.gmra.mrb[96].mxu1 %vm707_vm2, %v4635_v54 }
0x1930   :  { %8827 = vmatprep.mubr.msk.bf16.mxu1 %vm9622_vm1, %v9621_v18  ;;  %8824 = vmatpush3.bf16.msra.mxu1 %v9301_v53  ;;  %v9344_v53 = vld [vmem:[#allocation10 + $0x40c] ss:$80 sps:$4 sm:$0xff]  }
0x1931   :  { %8825 = vmatprep.subr.bf16.mxu1 %v9621_v18 }
0x1934   :  { %8826 = vmatpush3.bf16.msra.mxu1 %v9302_v27 }
0x1935   :  { %5088 = vmatprep.subr.bf16.mxu1 %v9308_v42 }
0x1946   :  { %v4459_v52 = vpop.f32.mrb[88].mxu1 }
0x1947   :  { %v4465_v56 = vadd.f32 %v4459_v52, %v4294_v51  ;;  %v8789_v47 = vpop.f32.mrb[89].mxu1 }
0x1948   :  { %v4462_v61 = vpop.f32.mrb[90].mxu1 }
0x1949   :  { %v8790_v62 = vpop.f32.mrb[91].mxu1 }
0x194a   :  { %v9317_v62 = vld [vmem:[#allocation10 + $0x184] ss:$80 sps:$4 sm:$0xff]  }
0x19fa   :  { %v4567_v1 = vpop.f32.mrb[92].mxu1 }
0x19fb   :  { %v4577_v2 = vpack.c.bf16 %v4567_v1, %v4567_v1  ;;  %v8801_v3 = vpop.f32.mrb[93].mxu1  ;;  %v9315_v1 = vld [vmem:[#allocation10 + $0x180] ss:$80 sps:$4 sm:$0xff]  }
0x19fc   :  { %v4570_v58 = vpop.f32.mrb[94].mxu1  ;;  %v9323_v3 = vld [vmem:[#allocation10 + $0x224] ss:$80 sps:$4 sm:$0xff]  }
0x19fd   :  { %v8802_v6 = vpop.f32.mrb[95].mxu1  ;;  %8808 = vmatmul.mubr.msk.bf16.vlgmr.msra.gmra.mrb[72].mxu0 %vm707_vm2, %v4577_v2  ;;  %v9318_v2 = vld [vmem:[#allocation10 + $0x188] ss:$80 sps:$4 sm:$0xff]   ;;  %v9326_v58 = vld [vmem:[#allocation10 + $0x22c] ss:$80 sps:$4 sm:$0xff]  }
0x19fe   :  { %8818 = vmatpush3.bf16.msra.mxu0 %v4699_v4  ;;  %8819 = vmatprep.mubr.msk.bf16.mxu0 %vm9622_vm1, %v9621_v18  ;;  %v9321_v4 = vld [vmem:[#allocation10 + $0x220] ss:$80 sps:$4 sm:$0xff]   ;;  %v9329_v6 = vld [vmem:[#allocation10 + $0x2c4] ss:$80 sps:$4 sm:$0xff]  }
0x19ff   :  { %5047 = vmatprep.subr.bf16.mxu0 %v9305_v41 }
0x1a02   :  { %v4678_v7 = vpop.f32.mrb[96].mxu1 }
0x1a03   :  { %v4684_v8 = vmul.f32 0.17677669, %v4678_v7  ;;  %v8815_v9 = vpop.f32.mrb[97].mxu1  ;;  %v9327_v7 = vld [vmem:[#allocation10 + $0x2c0] ss:$80 sps:$4 sm:$0xff]  }
0x1a04   :  { %v4681_v10 = vpop.f32.mrb[98].mxu1  ;;  %v9332_v9 = vld [vmem:[#allocation10 + $0x2cc] ss:$80 sps:$4 sm:$0xff]  }
0x1a05   :  { %v4685_v11 = vmul.f32 1.442695, %v4684_v8  ;;  %v8816_v12 = vpop.f32.mrb[99].mxu1  ;;  %v9330_v8 = vld [vmem:[#allocation10 + $0x2c8] ss:$80 sps:$4 sm:$0xff]  }
0x1a06   :  { %v9335_v10 = vld [vmem:[#allocation10 + $0x364] ss:$80 sps:$4 sm:$0xff]   ;;  %v9333_v12 = vld [vmem:[#allocation10 + $0x360] ss:$80 sps:$4 sm:$0xff]  }
0x1a07   :  { %9439 = vpow2.f32 %v4685_v11  ;;  %v9338_v11 = vld [vmem:[#allocation10 + $0x36c] ss:$80 sps:$4 sm:$0xff]  }
0x1a11   :  { %v9440_v15 = vpop.eup %9439 }
0x1a12   :  { %v4687_v31 = vsel %vm757_vm4, %v9440_v15, 0.0 }
0x1a13   :  { %4688 = vadd.xlane.f32.xlu1 %v4687_v31  ;;  %v9341_v31 = vld [vmem:[#allocation10 + $0x404] ss:$80 sps:$4 sm:$0xff]  }
0x1aa0   :  { %v4689_v38 = vpop.xlane.xlu1 %4688 }
0x1aa1   :  { %9441 = vrcp.f32 %v4689_v38  ;;  %v9339_v38 = vld [vmem:[#allocation10 + $0x400] ss:$80 sps:$4 sm:$0xff]  }
0x1aab   :  { %v9442_v60 = vpop.eup %9441 }
0x1aac   :  { %v4691_v19 = vmul.f32 %v9442_v60, %v9440_v15  ;;  %v9336_v15 = vld [vmem:[#allocation10 + $0x368] ss:$80 sps:$4 sm:$0xff]  }
0x1aad   :  { %v9342_v60 = vld [vmem:[#allocation10 + $0x408] ss:$80 sps:$4 sm:$0xff]  }
0x1aae   :  { %v4692_v20 = vpack.c.bf16 %v4691_v19, %v4691_v19  ;;  %v9347_v19 = vld [vmem:[#allocation10 + $0x4a4] ss:$80 sps:$4 sm:$0xff]  }
0x1ab0   :  { %8820 = vmatmul.mubr.msk.bf16.vlgmr.msra.gmra.mrb[76].mxu0 %vm757_vm4, %v4692_v20  ;;  %v9350_v20 = vld [vmem:[#allocation10 + $0x4ac] ss:$80 sps:$4 sm:$0xff]  }
0x1ab1   :  { %5079 = vmatprep.mubr.bf16.mxu0 %v9607_v0  ;;  %5048 = vmatpush1.bf16.msra.mxu0 %v9303_v40  ;;  %v8020_v40 = vld [vmem:[#allocation5 + $0x45] ss:$0 sm:$0xff] }
0x1ab2   :  { %5049 = vmatprep.subr.bf16.mxu0 %v9311_v44 }
0x1ab5   :  { %5050 = vmatpush1.bf16.msra.mxu0 %v9309_v49  ;;  %v9351_v49 = vld [vmem:[#allocation13 + $0x84] ss:$8 sps:$4 sm:$0xff]  }
0x1ab6   :  { %5051 = vmatprep.subr.bf16.mxu0 %v9317_v62 }
0x1ab9   :  { %5052 = vmatpush1.bf16.msra.mxu0 %v9315_v1 }
0x1aba   :  { %5053 = vmatprep.subr.bf16.mxu0 %v9323_v3 }
0x1abd   :  { %5054 = vmatpush1.bf16.msra.mxu0 %v9321_v4 }
0x1abe   :  { %5055 = vmatprep.subr.bf16.mxu0 %v9329_v6 }
0x1ac1   :  { %5056 = vmatpush1.bf16.msra.mxu0 %v9327_v7 }
0x1ac2   :  { %5057 = vmatprep.subr.bf16.mxu0 %v9335_v10 }
0x1ac5   :  { %5058 = vmatpush1.bf16.msra.mxu0 %v9333_v12 }
0x1ac6   :  { %5059 = vmatprep.subr.bf16.mxu0 %v9341_v31 }
0x1ac9   :  { %5060 = vmatpush1.bf16.msra.mxu0 %v9339_v38 }
0x1aca   :  { %5061 = vmatprep.subr.bf16.mxu0 %v9347_v19 }
0x1ad0   :  { %v4627_v21 = vpop.f32.mrb[72].mxu0 }
0x1ad1   :  { %v4633_v23 = vadd.f32 %v4627_v21, %v4465_v56  ;;  %v8809_v24 = vpop.f32.mrb[73].mxu0  ;;  %v9345_v21 = vld [vmem:[#allocation10 + $0x4a0] ss:$80 sps:$4 sm:$0xff]  }
0x1ad2   :  { %v4630_v25 = vpop.f32.mrb[74].mxu0  ;;  %5062 = vmatpush1.bf16.msra.mxu0 %v9345_v21 }
0x1ad3   :  { %v8810_v26 = vpop.f32.mrb[75].mxu0  ;;  %8275 = vmatprep.subr.bf16.mxu0 %v9351_v49  ;;  %v9367_v49 = vld [vmem:[#allocation13 + $0xc4] ss:$8 sps:$4 sm:$0xff]  }
0x1b83   :  { %v4735_v28 = vpop.f32.mrb[76].mxu0 }
0x1b84   :  { %v4745_v29 = vpack.c.bf16 %v4735_v28, %v4735_v28  ;;  %v8821_v32 = vpop.f32.mrb[77].mxu0 }
0x1b85   :  { %v4738_v34 = vpop.f32.mrb[78].mxu0 }
0x1b86   :  { %v8822_v36 = vpop.f32.mrb[79].mxu0  ;;  %8828 = vmatmul.mubr.msk.bf16.vlgmr.msra.gmra.mrb[100].mxu1 %vm707_vm2, %v4745_v29 }
0x1b87   :  { %5120 = vmatprep.mubr.bf16.mxu1 %v9607_v0  ;;  %5089 = vmatpush1.bf16.msra.mxu1 %v9306_v45  ;;  %v8021_v45 = vld [vmem:[#allocation5 + $0x46] ss:$0 sm:$0xff] }
0x1b88   :  { %5090 = vmatprep.subr.bf16.mxu1 %v9314_v48 }
0x1b8b   :  { %5091 = vmatpush1.bf16.msra.mxu1 %v9312_v50  ;;  %v9352_v50 = vld [vmem:[#allocation13 + $0x184] ss:$8 sps:$4 sm:$0xff]  }
0x1b8c   :  { %5092 = vmatprep.subr.bf16.mxu1 %v9320_v63 }
0x1b8f   :  { %5093 = vmatpush1.bf16.msra.mxu1 %v9318_v2 }
0x1b90   :  { %5094 = vmatprep.subr.bf16.mxu1 %v9326_v58 }
0x1c59   :  { %v4795_v54 = vpop.f32.mrb[100].mxu1 }
0x1c5a   :  { %v4801_v46 = vadd.f32 %v4795_v54, %v4633_v23  ;;  %v8829_v51 = vpop.f32.mrb[101].mxu1  ;;  %v9348_v23 = vld [vmem:[#allocation10 + $0x4a8] ss:$80 sps:$4 sm:$0xff]   ;;  %v9353_v54 = vld [vmem:[#allocation13 + $0x4] ss:$8 sps:$4 sm:$0xff]  }
0x1c5b   :  { %v4798_v52 = vpop.f32.mrb[102].mxu1  ;;  %v4865_v51 = vld [vmem:[#allocation5 + $0x19] sm:$0xf] }
0x1c5c   :  { %v10194_v56 = vadd.f32 %v4801_v46, %v10058_v5  ;;  %v8830_v47 = vpop.f32.mrb[103].mxu1  ;;  %v9324_v5 = vld [vmem:[#allocation10 + $0x228] ss:$80 sps:$4 sm:$0xff]   ;;  %v9354_v46 = vld [vmem:[#allocation13 + $0x104] ss:$8 sps:$4 sm:$0xff]   ;;  %v4870_v52 = vrot.slane %v4865_v51, %v9800_v14  ;;  %v4882_v63 = vrot.slane %v4865_v51, %v9905_v35 }
0x1c5d   :  { %5095 = vmatpush1.bf16.msra.mxu1 %v9324_v5  ;;  %v4874_v47 = vrot.slane %v4865_v51, %v9803_v16 }
0x1c5e   :  { %4803 = vadd.xlane.f32.xlu0 %v10194_v56  ;;  %v4806_v61 = vmul.f32 %v10194_v56, %v10194_v56  ;;  %5096 = vmatprep.subr.bf16.mxu1 %v9332_v9 }
0x1c60   :  { %4807 = vadd.xlane.f32.xlu1 %v4806_v61 }
0x1c61   :  { %5097 = vmatpush1.bf16.msra.mxu1 %v9330_v8 }
0x1c62   :  { %5098 = vmatprep.subr.bf16.mxu1 %v9338_v11 }
0x1c65   :  { %5099 = vmatpush1.bf16.msra.mxu1 %v9336_v15 }
0x1c66   :  { %5100 = vmatprep.subr.bf16.mxu1 %v9344_v53 }
0x1c69   :  { %5101 = vmatpush1.bf16.msra.mxu1 %v9342_v60 }
0x1c6a   :  { %5102 = vmatprep.subr.bf16.mxu1 %v9350_v20 }
0x1c6d   :  { %5103 = vmatpush1.bf16.msra.mxu1 %v9348_v23 }
0x1c6e   :  { %8297 = vmatprep.subr.bf16.mxu1 %v9352_v50  ;;  %v9368_v50 = vld [vmem:[#allocation13 + $0x1c4] ss:$8 sps:$4 sm:$0xff]  }
0x1ceb   :  { %v4804_v24 = vpop.xlane.xlu0 %4803 }
0x1cec   :  { %v4805_v25 = vmul.f32 0.0078125, %v4804_v24 }
0x1ced   :  { %v4808_v26 = vpop.xlane.xlu1 %4807 }
0x1cee   :  { %v4810_v27 = vmul.f32 %v4805_v25, %v4805_v25  ;;  %v4809_v28 = vmul.f32 0.0078125, %v4808_v26  ;;  %v4814_v34 = vsub.f32 %v10194_v56, %v4805_v25  ;;  %v4878_v56 = vrot.slane %v4865_v51, %v9806_v17  ;;  %v9355_v26 = vld [vmem:[#allocation13 + $0x94] ss:$8 sps:$4 sm:$0xff]  }
0x1cef   :  { %v9371_v51 = vld [vmem:[#allocation13 + $0xd4] ss:$8 sps:$4 sm:$0xff]  }
0x1cf0   :  { %v4811_v29 = vsub.f32 %v4809_v28, %v4810_v27  ;;  %v9356_v27 = vld [vmem:[#allocation13 + $0x194] ss:$8 sps:$4 sm:$0xff]  }
0x1cf1   :  { %v9357_v28 = vld [vmem:[#allocation13 + $0x14] ss:$8 sps:$4 sm:$0xff]  }
0x1cf2   :  { %v4812_v32 = vadd.f32 1e-05, %v4811_v29  ;;  %v9358_v29 = vld [vmem:[#allocation13 + $0x114] ss:$8 sps:$4 sm:$0xff]  }
0x1cf4   :  { %9443 = vrsqrt.f32 %v4812_v32  ;;  %v9359_v32 = vld [vmem:[#allocation13 + $0xa4] ss:$8 sps:$4 sm:$0xff]  }
0x1cfe   :  { %v9444_v36 = vpop.eup %9443 }
0x1cff   :  { %v4815_v41 = vmul.f32 %v9444_v36, %v4814_v34  ;;  %v9360_v34 = vld [vmem:[#allocation13 + $0x1a4] ss:$8 sps:$4 sm:$0xff]  }
0x1d00   :  { %v9361_v36 = vld [vmem:[#allocation13 + $0x24] ss:$8 sps:$4 sm:$0xff]  }
0x1d01   :  { %v4823_v42 = vmul.f32 %v8020_v40, %v4815_v41  ;;  %v9362_v40 = vld [vmem:[#allocation13 + $0x124] ss:$8 sps:$4 sm:$0xff]   ;;  %v9363_v41 = vld [vmem:[#allocation13 + $0xb4] ss:$8 sps:$4 sm:$0xff]  }
0x1d03   :  { %v10200_v44 = vadd.f32 %v8021_v45, %v4823_v42  ;;  %v9364_v45 = vld [vmem:[#allocation13 + $0x1b4] ss:$8 sps:$4 sm:$0xff]  }
0x1d04   :  { %v9365_v42 = vld [vmem:[#allocation13 + $0x34] ss:$8 sps:$4 sm:$0xff]  }
0x1d05   :  { %v4864_v48 = vpack.c.bf16 %v10200_v44, %v10200_v44 }
0x1d07   :  { %5080 = vmatmul.mubr.bf16.vlgmr.msra.gmra.mrb[80].mxu0 %v4864_v48  ;;  %5121 = vmatmul.mubr.bf16.vlgmr.msra.gmra.mrb[104].mxu1 %v4864_v48  ;;  %v9366_v48 = vld [vmem:[#allocation13 + $0x134] ss:$8 sps:$4 sm:$0xff]  }
0x1d08   :  { %8276 = vmatpush3.bf16.msra.mxu0 %v9353_v54  ;;  %8298 = vmatpush3.bf16.msra.mxu1 %v9354_v46  ;;  %v9369_v54 = vld [vmem:[#allocation13 + $0x44] ss:$8 sps:$4 sm:$0xff]  }
0x1d09   :  { %8277 = vmatprep.subr.bf16.mxu0 %v9355_v26  ;;  %8299 = vmatprep.subr.bf16.mxu1 %v9356_v27  ;;  %v9370_v46 = vld [vmem:[#allocation13 + $0x144] ss:$8 sps:$4 sm:$0xff]  }
0x1d0c   :  { %8278 = vmatpush3.bf16.msra.mxu0 %v9357_v28  ;;  %8300 = vmatpush3.bf16.msra.mxu1 %v9358_v29 }
0x1d0d   :  { %8279 = vmatprep.subr.bf16.mxu0 %v9359_v32  ;;  %8301 = vmatprep.subr.bf16.mxu1 %v9360_v34 }
0x1d10   :  { %8280 = vmatpush3.bf16.msra.mxu0 %v9361_v36  ;;  %8302 = vmatpush3.bf16.msra.mxu1 %v9362_v40 }
0x1d11   :  { %8281 = vmatprep.subr.bf16.mxu0 %v9363_v41  ;;  %8303 = vmatprep.subr.bf16.mxu1 %v9364_v45 }
0x1d14   :  { %8282 = vmatpush3.bf16.msra.mxu0 %v9365_v42  ;;  %8304 = vmatpush3.bf16.msra.mxu1 %v9366_v48 }
0x1d15   :  { %8283 = vmatprep.subr.bf16.mxu0 %v9367_v49  ;;  %8305 = vmatprep.subr.bf16.mxu1 %v9368_v50 }
0x1d18   :  { %8284 = vmatpush3.bf16.msra.mxu0 %v9369_v54  ;;  %8306 = vmatpush3.bf16.msra.mxu1 %v9370_v46 }
0x1d19   :  { %8285 = vmatprep.subr.bf16.mxu0 %v9371_v51 }
0x1dda   :  { %v5081_v61 = vpop.f32.mrb[80].mxu0  ;;  %v5122_v62 = vpop.f32.mrb[104].mxu1 }
0x1ddb   :  { %v5082_v1 = vadd.f32 %v5081_v61, %v4870_v52  ;;  %v5123_v2 = vadd.f32 %v5122_v62, %v4878_v56  ;;  %v5083_v3 = vpop.f32.mrb[81].mxu0  ;;  %v5124_v58 = vpop.f32.mrb[105].mxu1  ;;  %v9372_v52 = vld [vmem:[#allocation13 + $0x1d4] ss:$8 sps:$4 sm:$0xff]   ;;  %v9375_v61 = vld [vmem:[#allocation13 + $0xe4] ss:$8 sps:$4 sm:$0xff]  }
0x1ddc   :  { %v5084_v4 = vadd.f32 %v5083_v3, %v4874_v47  ;;  %v5085_v5 = vpop.f32.mrb[82].mxu0  ;;  %v5126_v6 = vpop.f32.mrb[106].mxu1  ;;  %v5125_v12 = vadd.f32 %v5124_v58, %v4882_v63  ;;  %v9373_v56 = vld [vmem:[#allocation13 + $0x54] ss:$8 sps:$4 sm:$0xff]   ;;  %8307 = vmatprep.subr.bf16.mxu1 %v9372_v52  ;;  %v9376_v62 = vld [vmem:[#allocation13 + $0x1e4] ss:$8 sps:$4 sm:$0xff]  }
0x1ddd   :  { %v10208_v7 = vmax.f32 %v5082_v1, 0.0  ;;  %v5086_v8 = vpop.f32.mrb[83].mxu0  ;;  %v5127_v9 = vpop.f32.mrb[107].mxu1  ;;  %v10210_v10 = vmax.f32 %v5123_v2, 0.0  ;;  %v9374_v47 = vld [vmem:[#allocation13 + $0x154] ss:$8 sps:$4 sm:$0xff]   ;;  %8286 = vmatpush3.bf16.msra.mxu0 %v9373_v56 }
0x1dde   :  { %v10212_v11 = vmax.f32 %v5084_v4, 0.0  ;;  %v10220_v38 = vmax.f32 %v5125_v12, 0.0  ;;  %8308 = vmatpush3.bf16.msra.mxu1 %v9374_v47  ;;  %v9377_v63 = vld [vmem:[#allocation13 + $0x64] ss:$8 sps:$4 sm:$0xff]   ;;  %8287 = vmatprep.subr.bf16.mxu0 %v9375_v61  ;;  %v9379_v2 = vld [vmem:[#allocation13 + $0xf4] ss:$8 sps:$4 sm:$0xff]  }
0x1ddf   :  { %v5139_v15 = vmul.f32 %v10208_v7, %v10208_v7  ;;  %v5141_v19 = vmul.f32 %v10210_v10, %v10210_v10  ;;  %v9378_v1 = vld [vmem:[#allocation13 + $0x164] ss:$8 sps:$4 sm:$0xff]   ;;  %8309 = vmatprep.subr.bf16.mxu1 %v9376_v62  ;;  %v9380_v3 = vld [vmem:[#allocation13 + $0x1f4] ss:$8 sps:$4 sm:$0xff]  }
0x1de0   :  { %v5140_v31 = vmul.f32 %v10212_v11, %v10212_v11  ;;  %v5133_v53 = vadd.f32 %v10212_v11, %v10208_v7  ;;  %v5142_v24 = vmul.f32 %v10220_v38, %v10220_v38  ;;  %v9381_v58 = vld [vmem:[#allocation13 + $0x74] ss:$8 sps:$4 sm:$0xff]  }
0x1de1   :  { %8288 = vmatpush3.bf16.msra.mxu0 %v9377_v63  ;;  %v9382_v4 = vld [vmem:[#allocation13 + $0x174] ss:$8 sps:$4 sm:$0xff]  }
0x1de2   :  { %v5134_v60 = vadd.f32 %v5133_v53, %v10210_v10  ;;  %v5143_v20 = vadd.f32 %v5140_v31, %v5139_v15  ;;  %8310 = vmatpush3.bf16.msra.mxu1 %v9378_v1  ;;  %8289 = vmatprep.subr.bf16.mxu0 %v9379_v2  ;;  %v5161_v53 = vld [vmem:[#allocation5 + $0x47] sm:$0xf]  ;;  %v8054_v62 = vld [vmem:[#allocation5 + $0x1d] ss:$0 sm:$0xff] }
0x1de3   :  { %8311 = vmatprep.subr.bf16.mxu1 %v9380_v3 }
0x1de4   :  { %v5135_v21 = vadd.f32 %v5134_v60, %v10220_v38  ;;  %v5144_v23 = vadd.f32 %v5143_v20, %v5141_v19  ;;  %v5187_v60 = vld [vmem:[#allocation5 + $0x4b] sm:$0xf]  ;;  %v5170_v19 = vrot.slane %v5161_v53, %v9803_v16  ;;  %v5178_v20 = vrot.slane %v5161_v53, %v9905_v35 }
0x1de5   :  { %8290 = vmatpush3.bf16.msra.mxu0 %v9381_v58  ;;  %v5196_v29 = vrot.slane %v5187_v60, %v9803_v16  ;;  %v5204_v32 = vrot.slane %v5187_v60, %v9905_v35  ;;  %v5192_v34 = vrot.slane %v5187_v60, %v9800_v14  ;;  %v5200_v36 = vrot.slane %v5187_v60, %v9806_v17 }
0x1de6   :  { %5136 = vadd.xlane.f32.xlu1 %v5135_v21  ;;  %v5145_v25 = vadd.f32 %v5144_v23, %v5142_v24  ;;  %8312 = vmatpush3.bf16.msra.mxu1 %v9382_v4  ;;  %v5166_v21 = vrot.slane %v5161_v53, %v9800_v14  ;;  %v5174_v23 = vrot.slane %v5161_v53, %v9806_v17 }
0x1de7   :  { %v5568_v53 = vmul.f32 %v10098_v37, %v10098_v37 }
0x1dea   :  { %5146 = vadd.xlane.f32.xlu1 %v5145_v25 }
0x1e73   :  { %v5137_v5 = vpop.xlane.xlu1 %5136 }
0x1e74   :  { %v5138_v6 = vmul.f32 0.001953125, %v5137_v5 }
0x1e76   :  { %v5149_v9 = vmul.f32 %v5138_v6, %v5138_v6  ;;  %v5153_v24 = vsub.f32 %v10208_v7, %v5138_v6  ;;  %v5155_v25 = vsub.f32 %v10210_v10, %v5138_v6  ;;  %v5154_v26 = vsub.f32 %v10212_v11, %v5138_v6 }
0x1e77   :  { %v5147_v8 = vpop.xlane.xlu1 %5146  ;;  %v5156_v27 = vsub.f32 %v10220_v38, %v5138_v6 }
0x1e78   :  { %v5148_v12 = vmul.f32 0.001953125, %v5147_v8 }
0x1e7a   :  { %v5150_v15 = vsub.f32 %v5148_v12, %v5149_v9 }
0x1e7c   :  { %v5151_v31 = vadd.f32 1e-05, %v5150_v15 }
0x1e7e   :  { %9445 = vrsqrt.f32 %v5151_v31 }
0x1e88   :  { %v9446_v28 = vpop.eup %9445 }
0x1e89   :  { %v5158_v40 = vmul.f32 %v9446_v28, %v5154_v26  ;;  %v5160_v41 = vmul.f32 %v9446_v28, %v5156_v27  ;;  %v5157_v45 = vmul.f32 %v9446_v28, %v5153_v24  ;;  %v5159_v42 = vmul.f32 %v9446_v28, %v5155_v25 }
0x1e8b   :  { %v5184_v7 = vmul.f32 %v5170_v19, %v5158_v40  ;;  %v5186_v48 = vmul.f32 %v5178_v20, %v5160_v41  ;;  %v5183_v10 = vmul.f32 %v5166_v21, %v5157_v45  ;;  %v5185_v49 = vmul.f32 %v5174_v23, %v5159_v42 }
0x1e8c   :  { %v5569_v20 = vmul.f32 %v10101_v39, %v10101_v39 }
0x1e8d   :  { %v5210_v11 = vadd.f32 %v5196_v29, %v5184_v7  ;;  %v5212_v50 = vadd.f32 %v5204_v32, %v5186_v48  ;;  %v5209_v38 = vadd.f32 %v5192_v34, %v5183_v10  ;;  %v5211_v54 = vadd.f32 %v5200_v36, %v5185_v49  ;;  %v5585_v29 = vld [vmem:[#allocation5 + $0x4f] sm:$0x7]  ;;  %v5605_v32 = vld [vmem:[#allocation5 + $0x52] sm:$0x7] }
0x1e8e   :  { %v5590_v34 = vrot.slane %v5585_v29, %v9800_v14  ;;  %v5594_v36 = vrot.slane %v5585_v29, %v9803_v16  ;;  %v5598_v42 = vrot.slane %v5585_v29, %v9806_v17  ;;  %v5610_v48 = vrot.slane %v5605_v32, %v9800_v14 }
0x1e8f   :  { %v5278_v46 = vpack.c.bf16 %v5210_v11, %v5210_v11  ;;  %v5280_v51 = vpack.c.bf16 %v5212_v50, %v5212_v50  ;;  %v5277_v52 = vpack.c.bf16 %v5209_v38, %v5209_v38  ;;  %v5279_v56 = vpack.c.bf16 %v5211_v54, %v5211_v54 }
0x1e90   :  { %v5614_v10 = vrot.slane %v5605_v32, %v9803_v16  ;;  %v5618_v49 = vrot.slane %v5605_v32, %v9806_v17 }
0x1e91   :  { %5512 = vmatprep.mubr.bf16.mxu0 %v5278_v46  ;;  %5552 = vmatprep.mubr.bf16.mxu1 %v5280_v51 }
0x1e92   :  { %5513 = vmatmul.mubr.bf16.vlgmr.msra.gmra.mrb[84].mxu0 %v5277_v52  ;;  %5553 = vmatmul.mubr.bf16.vlgmr.msra.gmra.mrb[108].mxu1 %v5279_v56 }
0x1f65   :  { %v8291_v47 = vpop.f32.mrb[84].mxu0  ;;  %v8313_v61 = vpop.f32.mrb[108].mxu1 }
0x1f66   :  { %v8292_v63 = vpop.f32.mrb[85].mxu0  ;;  %v8314_v1 = vpop.f32.mrb[109].mxu1 }
0x1f67   :  { %v8293_v2 = vadd.f32 %v8292_v63, %v8291_v47  ;;  %v8315_v3 = vadd.f32 %v8314_v1, %v8313_v61  ;;  %v8294_v58 = vpop.f32.mrb[86].mxu0  ;;  %v8316_v4 = vpop.f32.mrb[110].mxu1 }
0x1f68   :  { %v8295_v5 = vpop.f32.mrb[87].mxu0  ;;  %v8317_v6 = vpop.f32.mrb[111].mxu1 }
0x1f69   :  { %v5515_v8 = vadd.f32 %v8293_v2, %v8054_v62 }
0x1f6b   :  { %v5555_v9 = vadd.f32 %v8315_v3, %v5515_v8 }
0x1f6d   :  { %v10241_v12 = vadd.f32 %v5555_v9, %v10200_v44 }
0x1f6f   :  { %v5561_v15 = vadd.f32 %v10241_v12, %v10098_v37  ;;  %v5567_v31 = vmul.f32 %v10241_v12, %v10241_v12 }
0x1f71   :  { %v5562_v60 = vadd.f32 %v5561_v15, %v10101_v39  ;;  %v5570_v19 = vadd.f32 %v5568_v53, %v5567_v31 }
0x1f73   :  { %5563 = vadd.xlane.f32.xlu1 %v5562_v60  ;;  %v5571_v21 = vadd.f32 %v5570_v19, %v5569_v20 }
0x1f77   :  { %5572 = vadd.xlane.f32.xlu1 %v5571_v21 }
0x2000   :  { %v5564_v44 = vpop.xlane.xlu1 %5563 }
0x2001   :  { %v5566_v23 = vmul.f32 0.0026041667, %v5564_v44 }
0x2003   :  { %v5575_v25 = vmul.f32 %v5566_v23, %v5566_v23  ;;  %v5579_v40 = vsub.f32 %v10241_v12, %v5566_v23  ;;  %v5580_v41 = vsub.f32 %v10098_v37, %v5566_v23  ;;  %v5581_v45 = vsub.f32 %v10101_v39, %v5566_v23 }
0x2004   :  { %v5573_v24 = vpop.xlane.xlu1 %5572 }
0x2005   :  { %v5574_v26 = vmul.f32 0.0026041667, %v5573_v24 }
0x2007   :  { %v5576_v27 = vsub.f32 %v5574_v26, %v5575_v25 }
0x2009   :  { %v5577_v28 = vadd.f32 1e-05, %v5576_v27 }
0x200b   :  { %9447 = vrsqrt.f32 %v5577_v28 }
0x2015   :  { %v9448_v7 = vpop.eup %9447 }
0x2016   :  { %v5582_v11 = vmul.f32 %v9448_v7, %v5579_v40  ;;  %v5583_v50 = vmul.f32 %v9448_v7, %v5580_v41  ;;  %v5584_v38 = vmul.f32 %v9448_v7, %v5581_v45 }
0x2018   :  { %v5602_v54 = vmul.f32 %v5590_v34, %v5582_v11  ;;  %v5603_v46 = vmul.f32 %v5594_v36, %v5583_v50  ;;  %v5604_v51 = vmul.f32 %v5598_v42, %v5584_v38 }
0x201a   :  { %v10261_v52 = vadd.f32 %v5610_v48, %v5602_v54  ;;  %v5623_v56 = vadd.f32 %v5614_v10, %v5603_v46  ;;  %v10263_v47 = vadd.f32 %v5618_v49, %v5604_v51 }
0x201b   :  { %9587 = dma.done.wait [#allocation4], 49152 }
0x201c   :  { %9588 = vsyncadd [#allocation4], 4294918144 }
0x201d   :  { %9589 = dma.done.wait [#allocation4 + $0x1], 36864 }
0x201e   :  { %9590 = vsyncadd [#allocation4 + $0x1], 4294930432  ;;  %v10265_v61 = vpack.c.bf16 %v5623_v56, %v5623_v56  ;;  %v5634_v62 = vld [vmem:[#allocation2 + $0x8] sm:$0xff]  ;;  %v5636_v63 = vld [vmem:[#allocation2 + $0x18] sm:$0xff]  ;;  %s9625_s13 = smov [#allocation14]   ;;  %vm7670_vm6 = vcmask 130048  }
0x201f   :  { %v5633_v1 = vld [vmem:[#allocation2] sm:$0xff]  ;;  %5988 = vmatprep.subr.bf16.mxu0 %v5634_v62  ;;  %6070 = vmatprep.subr.bf16.mxu1 %v5636_v63  ;;  %v5635_v2 = vld [vmem:[#allocation2 + $0x10] sm:$0xff]  ;;  %v5646_v3 = vld [vmem:[#allocation2 + $0x88] sm:$0xff]  ;;  %s7678_s24 = sshll.u32 %s9625_s13, 4  ;;  %s7679_s24 = int_to_ptr.vmem [resolvable:$true] %s7678_s24 }
0x2020   :  { %6020 = vmatprep.mubr.bf16.mxu0 %v10265_v61  ;;  %6102 = vmatprep.mubr.bf16.mxu1 %v10265_v61  ;;  %v5648_v58 = vld [vmem:[#allocation2 + $0x98] sm:$0xff]  ;;  %v5645_v4 = vld [vmem:[#allocation2 + $0x80] sm:$0xff]  ;;  %v5647_v5 = vld [vmem:[#allocation2 + $0x90] sm:$0xff]  ;;  %s9559_s25 = scalar_lea.vmem %s7679_s24, 128  ;;  %p9564_p13 = scmp.lt.s32.totalorder %s7679_s24, %s7679_s24 }
0x2021   :  { %5989 = vmatpush1.bf16.msra.mxu0 %v5633_v1  ;;  %6071 = vmatpush1.bf16.msra.mxu1 %v5635_v2  ;;  %v5658_v6 = vld [vmem:[#allocation2 + $0x108] sm:$0xff]  ;;  %v5660_v8 = vld [vmem:[#allocation2 + $0x118] sm:$0xff]  ;;  %v5657_v9 = vld [vmem:[#allocation2 + $0x100] sm:$0xff]  ;;  %p9560_p12 = scmp.ne.s32.totalorder %s7679_s24, %s9559_s25  ;;  %p9565_p0 = scmp.lt.s32.totalorder %s9559_s25, %s9559_s25 }
0x2022   :  { %5990 = vmatprep.subr.bf16.mxu0 %v5646_v3  ;;  %6072 = vmatprep.subr.bf16.mxu1 %v5648_v58  ;;  %v5659_v15 = vld [vmem:[#allocation2 + $0x110] sm:$0xff]  ;;  %v5670_v31 = vld [vmem:[#allocation2 + $0x188] sm:$0xff]  ;;  %v5672_v53 = vld [vmem:[#allocation2 + $0x198] sm:$0xff] }
0x2023   :  { %v5669_v60 = vld [vmem:[#allocation2 + $0x180] sm:$0xff]  ;;  %v5671_v19 = vld [vmem:[#allocation2 + $0x190] sm:$0xff]  ;;  %v5682_v20 = vld [vmem:[#allocation2 + $0x208] sm:$0xff]  ;;  %p9566_p1 = por %p9565_p0, %p9564_p13 }
0x2024   :  { %v5684_v21 = vld [vmem:[#allocation2 + $0x218] sm:$0xff]  ;;  %v5681_v44 = vld [vmem:[#allocation2 + $0x200] sm:$0xff]  ;;  %v5683_v23 = vld [vmem:[#allocation2 + $0x210] sm:$0xff] }
0x2025   :  { %5991 = vmatpush1.bf16.msra.mxu0 %v5645_v4  ;;  %6073 = vmatpush1.bf16.msra.mxu1 %v5647_v5  ;;  %v5694_v24 = vld [vmem:[#allocation2 + $0x288] sm:$0xff]  ;;  %v5696_v25 = vld [vmem:[#allocation2 + $0x298] sm:$0xff]  ;;  %v5693_v26 = vld [vmem:[#allocation2 + $0x280] sm:$0xff]  ;;  %p9567_p2 = pnand %p9566_p1, %p9560_p12 }
0x2026   :  { %5992 = vmatprep.subr.bf16.mxu0 %v5658_v6  ;;  %6074 = vmatprep.subr.bf16.mxu1 %v5660_v8  ;;  %v5695_v27 = vld [vmem:[#allocation2 + $0x290] sm:$0xff]  ;;  %v5706_v28 = vld [vmem:[#allocation2 + $0x308] sm:$0xff]  ;;  %v5708_v29 = vld [vmem:[#allocation2 + $0x318] sm:$0xff] }
0x2027   :  { %v5705_v32 = vld [vmem:[#allocation2 + $0x300] sm:$0xff]  ;;  %v5707_v34 = vld [vmem:[#allocation2 + $0x310] sm:$0xff]  ;;  %v5718_v36 = vld [vmem:[#allocation2 + $0x388] sm:$0xff] }
0x2028   :  { %v5720_v40 = vld [vmem:[#allocation2 + $0x398] sm:$0xff]  ;;  %v5717_v41 = vld [vmem:[#allocation2 + $0x380] sm:$0xff]  ;;  %v5719_v45 = vld [vmem:[#allocation2 + $0x390] sm:$0xff] }
0x2029   :  { %5993 = vmatpush1.bf16.msra.mxu0 %v5657_v9  ;;  %6075 = vmatpush1.bf16.msra.mxu1 %v5659_v15  ;;  %v5730_v42 = vld [vmem:[#allocation2 + $0x408] sm:$0xff]  ;;  %v5732_v7 = vld [vmem:[#allocation2 + $0x418] sm:$0xff]  ;;  %v5729_v48 = vld [vmem:[#allocation2 + $0x400] sm:$0xff] }
0x202a   :  { %5994 = vmatprep.subr.bf16.mxu0 %v5670_v31  ;;  %6076 = vmatprep.subr.bf16.mxu1 %v5672_v53  ;;  %v5731_v10 = vld [vmem:[#allocation2 + $0x410] sm:$0xff]  ;;  %v5742_v49 = vld [vmem:[#allocation2 + $0x488] sm:$0xff]  ;;  %v5744_v11 = vld [vmem:[#allocation2 + $0x498] sm:$0xff] }
0x202b   :  { %v5741_v50 = vld [vmem:[#allocation2 + $0x480] sm:$0xff]  ;;  %v5743_v38 = vld [vmem:[#allocation2 + $0x490] sm:$0xff]  ;;  %v5754_v54 = vld [vmem:[#allocation2 + $0x508] sm:$0xff] }
0x202c   :  { %v5756_v46 = vld [vmem:[#allocation2 + $0x518] sm:$0xff]  ;;  %v5753_v51 = vld [vmem:[#allocation2 + $0x500] sm:$0xff]  ;;  %v5755_v56 = vld [vmem:[#allocation2 + $0x510] sm:$0xff] }
0x202d   :  { %5995 = vmatpush1.bf16.msra.mxu0 %v5669_v60  ;;  %6077 = vmatpush1.bf16.msra.mxu1 %v5671_v19  ;;  %v5766_v62 = vld [vmem:[#allocation2 + $0x588] sm:$0xff]  ;;  %v5768_v63 = vld [vmem:[#allocation2 + $0x598] sm:$0xff]  ;;  %v5765_v1 = vld [vmem:[#allocation2 + $0x580] sm:$0xff] }
0x202e   :  { %5996 = vmatprep.subr.bf16.mxu0 %v5682_v20  ;;  %6078 = vmatprep.subr.bf16.mxu1 %v5684_v21  ;;  %v5767_v2 = vld [vmem:[#allocation2 + $0x590] sm:$0xff]  ;;  %v5778_v3 = vld [vmem:[#allocation2 + $0x608] sm:$0xff]  ;;  %v5780_v58 = vld [vmem:[#allocation2 + $0x618] sm:$0xff] }
0x202f   :  { %v5777_v4 = vld [vmem:[#allocation2 + $0x600] sm:$0xff]  ;;  %v5779_v5 = vld [vmem:[#allocation2 + $0x610] sm:$0xff]  ;;  %v5790_v6 = vld [vmem:[#allocation2 + $0x688] sm:$0xff] }
0x2030   :  { %v5792_v8 = vld [vmem:[#allocation2 + $0x698] sm:$0xff]  ;;  %v5789_v9 = vld [vmem:[#allocation2 + $0x680] sm:$0xff]  ;;  %v5791_v15 = vld [vmem:[#allocation2 + $0x690] sm:$0xff] }
0x2031   :  { %5997 = vmatpush1.bf16.msra.mxu0 %v5681_v44  ;;  %6079 = vmatpush1.bf16.msra.mxu1 %v5683_v23  ;;  %v5802_v31 = vld [vmem:[#allocation2 + $0x708] sm:$0xff]  ;;  %v5804_v53 = vld [vmem:[#allocation2 + $0x718] sm:$0xff]  ;;  %v5801_v60 = vld [vmem:[#allocation2 + $0x700] sm:$0xff] }
0x2032   :  { %5998 = vmatprep.subr.bf16.mxu0 %v5694_v24  ;;  %6080 = vmatprep.subr.bf16.mxu1 %v5696_v25  ;;  %v5803_v19 = vld [vmem:[#allocation2 + $0x710] sm:$0xff]  ;;  %v5814_v20 = vld [vmem:[#allocation2 + $0x788] sm:$0xff]  ;;  %v5816_v21 = vld [vmem:[#allocation2 + $0x798] sm:$0xff] }
0x2033   :  { %v5813_v44 = vld [vmem:[#allocation2 + $0x780] sm:$0xff]  ;;  %v5815_v23 = vld [vmem:[#allocation2 + $0x790] sm:$0xff]  ;;  %v5826_v24 = vld [vmem:[#allocation2 + $0x808] sm:$0xff] }
0x2034   :  { %v5828_v25 = vld [vmem:[#allocation2 + $0x818] sm:$0xff] }
0x2035   :  { %5999 = vmatpush1.bf16.msra.mxu0 %v5693_v26  ;;  %6081 = vmatpush1.bf16.msra.mxu1 %v5695_v27  ;;  %v10271_v26 = vpack.c.bf16 %v10261_v52, %v10261_v52  ;;  %v5825_v27 = vld [vmem:[#allocation2 + $0x800] sm:$0xff]  ;;  %v5850_v52 = vld [vmem:[#allocation2 + $0x908] sm:$0xff] }
0x2036   :  { %6000 = vmatprep.subr.bf16.mxu0 %v5706_v28  ;;  %6082 = vmatprep.subr.bf16.mxu1 %v5708_v29  ;;  %v5827_v28 = vld [vmem:[#allocation2 + $0x810] sm:$0xff]  ;;  %v5838_v29 = vld [vmem:[#allocation2 + $0x888] sm:$0xff] }
0x2039   :  { %6001 = vmatpush1.bf16.msra.mxu0 %v5705_v32  ;;  %6083 = vmatpush1.bf16.msra.mxu1 %v5707_v34  ;;  %v5840_v32 = vld [vmem:[#allocation2 + $0x898] sm:$0xff]  ;;  %v5837_v34 = vld [vmem:[#allocation2 + $0x880] sm:$0xff] }
0x203a   :  { %6002 = vmatprep.subr.bf16.mxu0 %v5718_v36  ;;  %6084 = vmatprep.subr.bf16.mxu1 %v5720_v40  ;;  %v5839_v36 = vld [vmem:[#allocation2 + $0x890] sm:$0xff]  ;;  %v5852_v40 = vld [vmem:[#allocation2 + $0x918] sm:$0xff] }
0x203d   :  { %6003 = vmatpush1.bf16.msra.mxu0 %v5717_v41  ;;  %6085 = vmatpush1.bf16.msra.mxu1 %v5719_v45  ;;  %v5849_v41 = vld [vmem:[#allocation2 + $0x900] sm:$0xff]  ;;  %v5851_v45 = vld [vmem:[#allocation2 + $0x910] sm:$0xff] }
0x203e   :  { %6004 = vmatprep.subr.bf16.mxu0 %v5730_v42  ;;  %6086 = vmatprep.subr.bf16.mxu1 %v5732_v7  ;;  %v5862_v42 = vld [vmem:[#allocation2 + $0x988] sm:$0xff]  ;;  %v5864_v7 = vld [vmem:[#allocation2 + $0x998] sm:$0xff] }
0x2041   :  { %6005 = vmatpush1.bf16.msra.mxu0 %v5729_v48  ;;  %6087 = vmatpush1.bf16.msra.mxu1 %v5731_v10  ;;  %v5861_v48 = vld [vmem:[#allocation2 + $0x980] sm:$0xff]  ;;  %v5863_v10 = vld [vmem:[#allocation2 + $0x990] sm:$0xff] }
0x2042   :  { %6006 = vmatprep.subr.bf16.mxu0 %v5742_v49  ;;  %6088 = vmatprep.subr.bf16.mxu1 %v5744_v11  ;;  %v5874_v49 = vld [vmem:[#allocation2 + $0xa08] sm:$0xff]  ;;  %v5876_v11 = vld [vmem:[#allocation2 + $0xa18] sm:$0xff] }
0x2045   :  { %6007 = vmatpush1.bf16.msra.mxu0 %v5741_v50  ;;  %6089 = vmatpush1.bf16.msra.mxu1 %v5743_v38  ;;  %v5873_v50 = vld [vmem:[#allocation2 + $0xa00] sm:$0xff]  ;;  %v5875_v38 = vld [vmem:[#allocation2 + $0xa10] sm:$0xff] }
0x2046   :  { %6008 = vmatprep.subr.bf16.mxu0 %v5754_v54  ;;  %6090 = vmatprep.subr.bf16.mxu1 %v5756_v46  ;;  %v5886_v54 = vld [vmem:[#allocation2 + $0xa88] sm:$0xff]  ;;  %v5888_v46 = vld [vmem:[#allocation2 + $0xa98] sm:$0xff] }
0x2049   :  { %6009 = vmatpush1.bf16.msra.mxu0 %v5753_v51  ;;  %6091 = vmatpush1.bf16.msra.mxu1 %v5755_v56  ;;  %v5885_v51 = vld [vmem:[#allocation2 + $0xa80] sm:$0xff]  ;;  %v5887_v56 = vld [vmem:[#allocation2 + $0xa90] sm:$0xff] }
0x204a   :  { %6010 = vmatprep.subr.bf16.mxu0 %v5766_v62  ;;  %6092 = vmatprep.subr.bf16.mxu1 %v5768_v63  ;;  %v5898_v62 = vld [vmem:[#allocation2 + $0xb08] sm:$0xff]  ;;  %v5900_v63 = vld [vmem:[#allocation2 + $0xb18] sm:$0xff] }
0x204d   :  { %6011 = vmatpush1.bf16.msra.mxu0 %v5765_v1  ;;  %6093 = vmatpush1.bf16.msra.mxu1 %v5767_v2  ;;  %v5897_v1 = vld [vmem:[#allocation2 + $0xb00] sm:$0xff]  ;;  %v5899_v2 = vld [vmem:[#allocation2 + $0xb10] sm:$0xff] }
0x204e   :  { %6012 = vmatprep.subr.bf16.mxu0 %v5778_v3  ;;  %6094 = vmatprep.subr.bf16.mxu1 %v5780_v58  ;;  %v5910_v3 = vld [vmem:[#allocation2 + $0xb88] sm:$0xff]  ;;  %v5912_v58 = vld [vmem:[#allocation2 + $0xb98] sm:$0xff] }
0x2051   :  { %6013 = vmatpush1.bf16.msra.mxu0 %v5777_v4  ;;  %6095 = vmatpush1.bf16.msra.mxu1 %v5779_v5  ;;  %v5909_v4 = vld [vmem:[#allocation2 + $0xb80] sm:$0xff]  ;;  %v5911_v5 = vld [vmem:[#allocation2 + $0xb90] sm:$0xff] }
0x2052   :  { %6014 = vmatprep.subr.bf16.mxu0 %v5790_v6  ;;  %6096 = vmatprep.subr.bf16.mxu1 %v5792_v8  ;;  %v5638_v6 = vld [vmem:[#allocation2 + $0x28] sm:$0xff]  ;;  %v5640_v8 = vld [vmem:[#allocation2 + $0x38] sm:$0xff] }
0x2055   :  { %6015 = vmatpush1.bf16.msra.mxu0 %v5789_v9  ;;  %6097 = vmatpush1.bf16.msra.mxu1 %v5791_v15  ;;  %v10279_v9 = vpack.c.bf16 %v10263_v47, %v10263_v47  ;;  %v5637_v15 = vld [vmem:[#allocation2 + $0x20] sm:$0xff]  ;;  %v5662_v47 = vld [vmem:[#allocation2 + $0x128] sm:$0xff] }
0x2056   :  { %6016 = vmatprep.subr.bf16.mxu0 %v5802_v31  ;;  %6098 = vmatprep.subr.bf16.mxu1 %v5804_v53  ;;  %v5639_v31 = vld [vmem:[#allocation2 + $0x30] sm:$0xff]  ;;  %v5650_v53 = vld [vmem:[#allocation2 + $0xa8] sm:$0xff] }
0x2059   :  { %6017 = vmatpush1.bf16.msra.mxu0 %v5801_v60  ;;  %6099 = vmatpush1.bf16.msra.mxu1 %v5803_v19  ;;  %v5652_v60 = vld [vmem:[#allocation2 + $0xb8] sm:$0xff]  ;;  %v5649_v19 = vld [vmem:[#allocation2 + $0xa0] sm:$0xff] }
0x205a   :  { %6018 = vmatprep.subr.bf16.mxu0 %v5814_v20  ;;  %6100 = vmatprep.subr.bf16.mxu1 %v5816_v21  ;;  %v5651_v20 = vld [vmem:[#allocation2 + $0xb0] sm:$0xff]  ;;  %v5664_v21 = vld [vmem:[#allocation2 + $0x138] sm:$0xff] }
0x205d   :  { %6019 = vmatpush1.bf16.msra.mxu0 %v5813_v44  ;;  %6101 = vmatpush1.bf16.msra.mxu1 %v5815_v23  ;;  %v5661_v44 = vld [vmem:[#allocation2 + $0x120] sm:$0xff]  ;;  %v5663_v23 = vld [vmem:[#allocation2 + $0x130] sm:$0xff] }
0x205e   :  { %6029 = vmatprep.subr.bf16.mxu0 %v5826_v24  ;;  %6111 = vmatprep.subr.bf16.mxu1 %v5828_v25  ;;  %v5674_v24 = vld [vmem:[#allocation2 + $0x1a8] sm:$0xff]  ;;  %v5676_v25 = vld [vmem:[#allocation2 + $0x1b8] sm:$0xff] }
0x2060   :  { %6021 = vmatmul.mubr.bf16.vlgmr.msra.gmra.mrb[88].mxu0 %v10271_v26  ;;  %6103 = vmatmul.mubr.bf16.vlgmr.msra.gmra.mrb[112].mxu1 %v10271_v26 }
0x2061   :  { %6030 = vmatpush1.bf16.msra.mxu0 %v5825_v27  ;;  %6112 = vmatpush1.bf16.msra.mxu1 %v5827_v28  ;;  %v5673_v27 = vld [vmem:[#allocation2 + $0x1a0] sm:$0xff]  ;;  %v5675_v28 = vld [vmem:[#allocation2 + $0x1b0] sm:$0xff] }
0x2062   :  { %6031 = vmatprep.subr.bf16.mxu0 %v5838_v29  ;;  %6113 = vmatprep.subr.bf16.mxu1 %v5840_v32  ;;  %v5686_v29 = vld [vmem:[#allocation2 + $0x228] sm:$0xff]  ;;  %v5688_v32 = vld [vmem:[#allocation2 + $0x238] sm:$0xff] }
0x2063   :  { %6061 = vmatprep.mubr.bf16.mxu0 %v9607_v0  ;;  %6143 = vmatprep.mubr.bf16.mxu1 %v9607_v0 }
0x2065   :  { %6032 = vmatpush1.bf16.msra.mxu0 %v5837_v34  ;;  %6114 = vmatpush1.bf16.msra.mxu1 %v5839_v36  ;;  %v5685_v34 = vld [vmem:[#allocation2 + $0x220] sm:$0xff]  ;;  %v5687_v36 = vld [vmem:[#allocation2 + $0x230] sm:$0xff] }
0x2066   :  { %6033 = vmatprep.subr.bf16.mxu0 %v5850_v52  ;;  %6115 = vmatprep.subr.bf16.mxu1 %v5852_v40  ;;  %v5698_v52 = vld [vmem:[#allocation2 + $0x2a8] sm:$0xff]  ;;  %v5700_v40 = vld [vmem:[#allocation2 + $0x2b8] sm:$0xff] }
0x2069   :  { %6034 = vmatpush1.bf16.msra.mxu0 %v5849_v41  ;;  %6116 = vmatpush1.bf16.msra.mxu1 %v5851_v45  ;;  %v5697_v41 = vld [vmem:[#allocation2 + $0x2a0] sm:$0xff]  ;;  %v5699_v45 = vld [vmem:[#allocation2 + $0x2b0] sm:$0xff] }
0x206a   :  { %6035 = vmatprep.subr.bf16.mxu0 %v5862_v42  ;;  %6117 = vmatprep.subr.bf16.mxu1 %v5864_v7  ;;  %v5710_v42 = vld [vmem:[#allocation2 + $0x328] sm:$0xff]  ;;  %v5712_v7 = vld [vmem:[#allocation2 + $0x338] sm:$0xff] }
0x206d   :  { %6036 = vmatpush1.bf16.msra.mxu0 %v5861_v48  ;;  %6118 = vmatpush1.bf16.msra.mxu1 %v5863_v10  ;;  %v5709_v48 = vld [vmem:[#allocation2 + $0x320] sm:$0xff]  ;;  %v5711_v10 = vld [vmem:[#allocation2 + $0x330] sm:$0xff] }
0x206e   :  { %6037 = vmatprep.subr.bf16.mxu0 %v5874_v49  ;;  %6119 = vmatprep.subr.bf16.mxu1 %v5876_v11  ;;  %v5722_v49 = vld [vmem:[#allocation2 + $0x3a8] sm:$0xff]  ;;  %v5724_v11 = vld [vmem:[#allocation2 + $0x3b8] sm:$0xff] }
0x2071   :  { %6038 = vmatpush1.bf16.msra.mxu0 %v5873_v50  ;;  %6120 = vmatpush1.bf16.msra.mxu1 %v5875_v38  ;;  %v5721_v50 = vld [vmem:[#allocation2 + $0x3a0] sm:$0xff]  ;;  %v5723_v38 = vld [vmem:[#allocation2 + $0x3b0] sm:$0xff] }
0x2072   :  { %6039 = vmatprep.subr.bf16.mxu0 %v5886_v54  ;;  %6121 = vmatprep.subr.bf16.mxu1 %v5888_v46  ;;  %v5734_v54 = vld [vmem:[#allocation2 + $0x428] sm:$0xff]  ;;  %v5736_v46 = vld [vmem:[#allocation2 + $0x438] sm:$0xff] }
0x2075   :  { %6040 = vmatpush1.bf16.msra.mxu0 %v5885_v51  ;;  %6122 = vmatpush1.bf16.msra.mxu1 %v5887_v56  ;;  %v5733_v51 = vld [vmem:[#allocation2 + $0x420] sm:$0xff]  ;;  %v5735_v56 = vld [vmem:[#allocation2 + $0x430] sm:$0xff] }
0x2076   :  { %6041 = vmatprep.subr.bf16.mxu0 %v5898_v62  ;;  %6123 = vmatprep.subr.bf16.mxu1 %v5900_v63  ;;  %v5746_v62 = vld [vmem:[#allocation2 + $0x4a8] sm:$0xff]  ;;  %v5748_v63 = vld [vmem:[#allocation2 + $0x4b8] sm:$0xff] }
0x2079   :  { %6042 = vmatpush1.bf16.msra.mxu0 %v5897_v1  ;;  %6124 = vmatpush1.bf16.msra.mxu1 %v5899_v2  ;;  %v5745_v1 = vld [vmem:[#allocation2 + $0x4a0] sm:$0xff]  ;;  %v5747_v2 = vld [vmem:[#allocation2 + $0x4b0] sm:$0xff] }
0x207a   :  { %6043 = vmatprep.subr.bf16.mxu0 %v5910_v3  ;;  %6125 = vmatprep.subr.bf16.mxu1 %v5912_v58  ;;  %v5758_v3 = vld [vmem:[#allocation2 + $0x528] sm:$0xff]  ;;  %v5760_v58 = vld [vmem:[#allocation2 + $0x538] sm:$0xff] }
0x207d   :  { %6044 = vmatpush1.bf16.msra.mxu0 %v5909_v4  ;;  %6126 = vmatpush1.bf16.msra.mxu1 %v5911_v5  ;;  %v5757_v4 = vld [vmem:[#allocation2 + $0x520] sm:$0xff]  ;;  %v5759_v5 = vld [vmem:[#allocation2 + $0x530] sm:$0xff] }
0x207e   :  { %6152 = vmatprep.subr.bf16.mxu0 %v5638_v6  ;;  %6234 = vmatprep.subr.bf16.mxu1 %v5640_v8  ;;  %v5770_v6 = vld [vmem:[#allocation2 + $0x5a8] sm:$0xff]  ;;  %v5772_v8 = vld [vmem:[#allocation2 + $0x5b8] sm:$0xff] }
0x2080   :  { %6062 = vmatmul.mubr.bf16.vlgmr.msra.gmra.mrb[88].mxu0 %v10279_v9  ;;  %6144 = vmatmul.mubr.bf16.vlgmr.msra.gmra.mrb[112].mxu1 %v10279_v9 }
0x2081   :  { %6153 = vmatpush1.bf16.msra.mxu0 %v5637_v15  ;;  %6235 = vmatpush1.bf16.msra.mxu1 %v5639_v31  ;;  %v5769_v15 = vld [vmem:[#allocation2 + $0x5a0] sm:$0xff]  ;;  %v5771_v31 = vld [vmem:[#allocation2 + $0x5b0] sm:$0xff] }
0x2082   :  { %6154 = vmatprep.subr.bf16.mxu0 %v5650_v53  ;;  %6236 = vmatprep.subr.bf16.mxu1 %v5652_v60  ;;  %v5782_v53 = vld [vmem:[#allocation2 + $0x628] sm:$0xff]  ;;  %v5784_v60 = vld [vmem:[#allocation2 + $0x638] sm:$0xff] }
0x2083   :  { %6184 = vmatprep.mubr.bf16.mxu0 %v10265_v61  ;;  %6266 = vmatprep.mubr.bf16.mxu1 %v10265_v61 }
0x2085   :  { %6155 = vmatpush1.bf16.msra.mxu0 %v5649_v19  ;;  %6237 = vmatpush1.bf16.msra.mxu1 %v5651_v20  ;;  %v5781_v19 = vld [vmem:[#allocation2 + $0x620] sm:$0xff]  ;;  %v5783_v20 = vld [vmem:[#allocation2 + $0x630] sm:$0xff] }
0x2086   :  { %6156 = vmatprep.subr.bf16.mxu0 %v5662_v47  ;;  %6238 = vmatprep.subr.bf16.mxu1 %v5664_v21  ;;  %v5794_v47 = vld [vmem:[#allocation2 + $0x6a8] sm:$0xff]  ;;  %v5796_v21 = vld [vmem:[#allocation2 + $0x6b8] sm:$0xff] }
0x2089   :  { %6157 = vmatpush1.bf16.msra.mxu0 %v5661_v44  ;;  %6239 = vmatpush1.bf16.msra.mxu1 %v5663_v23  ;;  %v5793_v44 = vld [vmem:[#allocation2 + $0x6a0] sm:$0xff]  ;;  %v5795_v23 = vld [vmem:[#allocation2 + $0x6b0] sm:$0xff] }
0x208a   :  { %6158 = vmatprep.subr.bf16.mxu0 %v5674_v24  ;;  %6240 = vmatprep.subr.bf16.mxu1 %v5676_v25  ;;  %v5806_v24 = vld [vmem:[#allocation2 + $0x728] sm:$0xff]  ;;  %v5808_v25 = vld [vmem:[#allocation2 + $0x738] sm:$0xff] }
0x208d   :  { %6159 = vmatpush1.bf16.msra.mxu0 %v5673_v27  ;;  %6241 = vmatpush1.bf16.msra.mxu1 %v5675_v28  ;;  %v5805_v27 = vld [vmem:[#allocation2 + $0x720] sm:$0xff]  ;;  %v5807_v28 = vld [vmem:[#allocation2 + $0x730] sm:$0xff] }
0x208e   :  { %6160 = vmatprep.subr.bf16.mxu0 %v5686_v29  ;;  %6242 = vmatprep.subr.bf16.mxu1 %v5688_v32  ;;  %v5818_v29 = vld [vmem:[#allocation2 + $0x7a8] sm:$0xff]  ;;  %v5820_v32 = vld [vmem:[#allocation2 + $0x7b8] sm:$0xff] }
0x2091   :  { %6161 = vmatpush1.bf16.msra.mxu0 %v5685_v34  ;;  %6243 = vmatpush1.bf16.msra.mxu1 %v5687_v36  ;;  %v5817_v34 = vld [vmem:[#allocation2 + $0x7a0] sm:$0xff]  ;;  %v5819_v36 = vld [vmem:[#allocation2 + $0x7b0] sm:$0xff] }
0x2092   :  { %6162 = vmatprep.subr.bf16.mxu0 %v5698_v52  ;;  %6244 = vmatprep.subr.bf16.mxu1 %v5700_v40  ;;  %v5830_v52 = vld [vmem:[#allocation2 + $0x828] sm:$0xff]  ;;  %v5832_v40 = vld [vmem:[#allocation2 + $0x838] sm:$0xff] }
0x2095   :  { %6163 = vmatpush1.bf16.msra.mxu0 %v5697_v41  ;;  %6245 = vmatpush1.bf16.msra.mxu1 %v5699_v45  ;;  %v5829_v41 = vld [vmem:[#allocation2 + $0x820] sm:$0xff]  ;;  %v5831_v45 = vld [vmem:[#allocation2 + $0x830] sm:$0xff] }
0x2096   :  { %6164 = vmatprep.subr.bf16.mxu0 %v5710_v42  ;;  %6246 = vmatprep.subr.bf16.mxu1 %v5712_v7  ;;  %v5842_v42 = vld [vmem:[#allocation2 + $0x8a8] sm:$0xff]  ;;  %v5844_v7 = vld [vmem:[#allocation2 + $0x8b8] sm:$0xff] }
0x2099   :  { %6165 = vmatpush1.bf16.msra.mxu0 %v5709_v48  ;;  %6247 = vmatpush1.bf16.msra.mxu1 %v5711_v10  ;;  %v5841_v48 = vld [vmem:[#allocation2 + $0x8a0] sm:$0xff]  ;;  %v5843_v10 = vld [vmem:[#allocation2 + $0x8b0] sm:$0xff] }
0x209a   :  { %6166 = vmatprep.subr.bf16.mxu0 %v5722_v49  ;;  %6248 = vmatprep.subr.bf16.mxu1 %v5724_v11  ;;  %v5854_v49 = vld [vmem:[#allocation2 + $0x928] sm:$0xff]  ;;  %v5856_v11 = vld [vmem:[#allocation2 + $0x938] sm:$0xff] }
0x209d   :  { %6167 = vmatpush1.bf16.msra.mxu0 %v5721_v50  ;;  %6249 = vmatpush1.bf16.msra.mxu1 %v5723_v38  ;;  %v5853_v50 = vld [vmem:[#allocation2 + $0x920] sm:$0xff]  ;;  %v5855_v38 = vld [vmem:[#allocation2 + $0x930] sm:$0xff] }
0x209e   :  { %6168 = vmatprep.subr.bf16.mxu0 %v5734_v54  ;;  %6250 = vmatprep.subr.bf16.mxu1 %v5736_v46  ;;  %v5866_v54 = vld [vmem:[#allocation2 + $0x9a8] sm:$0xff]  ;;  %v5868_v46 = vld [vmem:[#allocation2 + $0x9b8] sm:$0xff] }
0x20a1   :  { %6169 = vmatpush1.bf16.msra.mxu0 %v5733_v51  ;;  %6251 = vmatpush1.bf16.msra.mxu1 %v5735_v56  ;;  %v5865_v51 = vld [vmem:[#allocation2 + $0x9a0] sm:$0xff]  ;;  %v5867_v56 = vld [vmem:[#allocation2 + $0x9b0] sm:$0xff] }
0x20a2   :  { %6170 = vmatprep.subr.bf16.mxu0 %v5746_v62  ;;  %6252 = vmatprep.subr.bf16.mxu1 %v5748_v63  ;;  %v5878_v62 = vld [vmem:[#allocation2 + $0xa28] sm:$0xff]  ;;  %v5880_v63 = vld [vmem:[#allocation2 + $0xa38] sm:$0xff] }
0x20a5   :  { %6171 = vmatpush1.bf16.msra.mxu0 %v5745_v1  ;;  %6253 = vmatpush1.bf16.msra.mxu1 %v5747_v2  ;;  %v5877_v1 = vld [vmem:[#allocation2 + $0xa20] sm:$0xff]  ;;  %v5879_v2 = vld [vmem:[#allocation2 + $0xa30] sm:$0xff] }
0x20a6   :  { %6172 = vmatprep.subr.bf16.mxu0 %v5758_v3  ;;  %6254 = vmatprep.subr.bf16.mxu1 %v5760_v58  ;;  %v5890_v3 = vld [vmem:[#allocation2 + $0xaa8] sm:$0xff]  ;;  %v5892_v58 = vld [vmem:[#allocation2 + $0xab8] sm:$0xff] }
0x20a9   :  { %6173 = vmatpush1.bf16.msra.mxu0 %v5757_v4  ;;  %6255 = vmatpush1.bf16.msra.mxu1 %v5759_v5  ;;  %v5889_v4 = vld [vmem:[#allocation2 + $0xaa0] sm:$0xff]  ;;  %v5891_v5 = vld [vmem:[#allocation2 + $0xab0] sm:$0xff] }
0x20aa   :  { %6174 = vmatprep.subr.bf16.mxu0 %v5770_v6  ;;  %6256 = vmatprep.subr.bf16.mxu1 %v5772_v8  ;;  %v5902_v6 = vld [vmem:[#allocation2 + $0xb28] sm:$0xff]  ;;  %v5904_v8 = vld [vmem:[#allocation2 + $0xb38] sm:$0xff] }
0x20ad   :  { %6175 = vmatpush1.bf16.msra.mxu0 %v5769_v15  ;;  %6257 = vmatpush1.bf16.msra.mxu1 %v5771_v31  ;;  %v5901_v15 = vld [vmem:[#allocation2 + $0xb20] sm:$0xff]  ;;  %v5903_v31 = vld [vmem:[#allocation2 + $0xb30] sm:$0xff] }
0x20ae   :  { %6176 = vmatprep.subr.bf16.mxu0 %v5782_v53  ;;  %6258 = vmatprep.subr.bf16.mxu1 %v5784_v60  ;;  %v5914_v53 = vld [vmem:[#allocation2 + $0xba8] sm:$0xff]  ;;  %v5916_v60 = vld [vmem:[#allocation2 + $0xbb8] sm:$0xff] }
0x20b1   :  { %6177 = vmatpush1.bf16.msra.mxu0 %v5781_v19  ;;  %6259 = vmatpush1.bf16.msra.mxu1 %v5783_v20  ;;  %v5913_v19 = vld [vmem:[#allocation2 + $0xba0] sm:$0xff]  ;;  %v5915_v20 = vld [vmem:[#allocation2 + $0xbb0] sm:$0xff] }
0x20b2   :  { %6178 = vmatprep.subr.bf16.mxu0 %v5794_v47  ;;  %6260 = vmatprep.subr.bf16.mxu1 %v5796_v21  ;;  %v5642_v47 = vld [vmem:[#allocation2 + $0x48] sm:$0xff]  ;;  %v5644_v21 = vld [vmem:[#allocation2 + $0x58] sm:$0xff] }
0x20b5   :  { %6179 = vmatpush1.bf16.msra.mxu0 %v5793_v44  ;;  %6261 = vmatpush1.bf16.msra.mxu1 %v5795_v23  ;;  %v5641_v44 = vld [vmem:[#allocation2 + $0x40] sm:$0xff]  ;;  %v5643_v23 = vld [vmem:[#allocation2 + $0x50] sm:$0xff] }
0x20b6   :  { %6180 = vmatprep.subr.bf16.mxu0 %v5806_v24  ;;  %6262 = vmatprep.subr.bf16.mxu1 %v5808_v25  ;;  %v5654_v24 = vld [vmem:[#allocation2 + $0xc8] sm:$0xff]  ;;  %v5656_v25 = vld [vmem:[#allocation2 + $0xd8] sm:$0xff] }
0x20b9   :  { %6181 = vmatpush1.bf16.msra.mxu0 %v5805_v27  ;;  %6263 = vmatpush1.bf16.msra.mxu1 %v5807_v28  ;;  %v5653_v27 = vld [vmem:[#allocation2 + $0xc0] sm:$0xff]  ;;  %v5655_v28 = vld [vmem:[#allocation2 + $0xd0] sm:$0xff] }
0x20ba   :  { %6182 = vmatprep.subr.bf16.mxu0 %v5818_v29  ;;  %6264 = vmatprep.subr.bf16.mxu1 %v5820_v32  ;;  %v5666_v29 = vld [vmem:[#allocation2 + $0x148] sm:$0xff]  ;;  %v5668_v32 = vld [vmem:[#allocation2 + $0x158] sm:$0xff] }
0x20bd   :  { %6183 = vmatpush1.bf16.msra.mxu0 %v5817_v34  ;;  %6265 = vmatpush1.bf16.msra.mxu1 %v5819_v36  ;;  %v5665_v34 = vld [vmem:[#allocation2 + $0x140] sm:$0xff]  ;;  %v5667_v36 = vld [vmem:[#allocation2 + $0x150] sm:$0xff] }
0x20be   :  { %6193 = vmatprep.subr.bf16.mxu0 %v5830_v52  ;;  %6275 = vmatprep.subr.bf16.mxu1 %v5832_v40  ;;  %v5678_v52 = vld [vmem:[#allocation2 + $0x1c8] sm:$0xff]  ;;  %v5680_v40 = vld [vmem:[#allocation2 + $0x1d8] sm:$0xff] }
0x20c0   :  { %6185 = vmatmul.mubr.bf16.vlgmr.msra.gmra.mrb[92].mxu0 %v10271_v26  ;;  %6267 = vmatmul.mubr.bf16.vlgmr.msra.gmra.mrb[116].mxu1 %v10271_v26 }
0x20c1   :  { %6194 = vmatpush1.bf16.msra.mxu0 %v5829_v41  ;;  %6276 = vmatpush1.bf16.msra.mxu1 %v5831_v45  ;;  %v5677_v41 = vld [vmem:[#allocation2 + $0x1c0] sm:$0xff]  ;;  %v5679_v45 = vld [vmem:[#allocation2 + $0x1d0] sm:$0xff] }
0x20c2   :  { %6195 = vmatprep.subr.bf16.mxu0 %v5842_v42  ;;  %6277 = vmatprep.subr.bf16.mxu1 %v5844_v7  ;;  %v5690_v42 = vld [vmem:[#allocation2 + $0x248] sm:$0xff]  ;;  %v5692_v7 = vld [vmem:[#allocation2 + $0x258] sm:$0xff] }
0x20c3   :  { %6225 = vmatprep.mubr.bf16.mxu0 %v9607_v0  ;;  %6307 = vmatprep.mubr.bf16.mxu1 %v9607_v0 }
0x20c5   :  { %6196 = vmatpush1.bf16.msra.mxu0 %v5841_v48  ;;  %6278 = vmatpush1.bf16.msra.mxu1 %v5843_v10  ;;  %v5689_v48 = vld [vmem:[#allocation2 + $0x240] sm:$0xff]  ;;  %v5691_v10 = vld [vmem:[#allocation2 + $0x250] sm:$0xff] }
0x20c6   :  { %6197 = vmatprep.subr.bf16.mxu0 %v5854_v49  ;;  %6279 = vmatprep.subr.bf16.mxu1 %v5856_v11  ;;  %v5702_v49 = vld [vmem:[#allocation2 + $0x2c8] sm:$0xff]  ;;  %v5704_v11 = vld [vmem:[#allocation2 + $0x2d8] sm:$0xff] }
0x20c9   :  { %6198 = vmatpush1.bf16.msra.mxu0 %v5853_v50  ;;  %6280 = vmatpush1.bf16.msra.mxu1 %v5855_v38  ;;  %v5701_v50 = vld [vmem:[#allocation2 + $0x2c0] sm:$0xff]  ;;  %v5703_v38 = vld [vmem:[#allocation2 + $0x2d0] sm:$0xff] }
0x20ca   :  { %6199 = vmatprep.subr.bf16.mxu0 %v5866_v54  ;;  %6281 = vmatprep.subr.bf16.mxu1 %v5868_v46  ;;  %v5714_v54 = vld [vmem:[#allocation2 + $0x348] sm:$0xff]  ;;  %v5716_v46 = vld [vmem:[#allocation2 + $0x358] sm:$0xff] }
0x20cd   :  { %6200 = vmatpush1.bf16.msra.mxu0 %v5865_v51  ;;  %6282 = vmatpush1.bf16.msra.mxu1 %v5867_v56  ;;  %v5713_v51 = vld [vmem:[#allocation2 + $0x340] sm:$0xff]  ;;  %v5715_v56 = vld [vmem:[#allocation2 + $0x350] sm:$0xff] }
0x20ce   :  { %6201 = vmatprep.subr.bf16.mxu0 %v5878_v62  ;;  %6283 = vmatprep.subr.bf16.mxu1 %v5880_v63  ;;  %v5726_v62 = vld [vmem:[#allocation2 + $0x3c8] sm:$0xff]  ;;  %v5728_v63 = vld [vmem:[#allocation2 + $0x3d8] sm:$0xff] }
0x20d1   :  { %6202 = vmatpush1.bf16.msra.mxu0 %v5877_v1  ;;  %6284 = vmatpush1.bf16.msra.mxu1 %v5879_v2  ;;  %v5725_v1 = vld [vmem:[#allocation2 + $0x3c0] sm:$0xff]  ;;  %v5727_v2 = vld [vmem:[#allocation2 + $0x3d0] sm:$0xff] }
0x20d2   :  { %6203 = vmatprep.subr.bf16.mxu0 %v5890_v3  ;;  %6285 = vmatprep.subr.bf16.mxu1 %v5892_v58  ;;  %v5738_v3 = vld [vmem:[#allocation2 + $0x448] sm:$0xff]  ;;  %v5740_v58 = vld [vmem:[#allocation2 + $0x458] sm:$0xff] }
0x20d5   :  { %6204 = vmatpush1.bf16.msra.mxu0 %v5889_v4  ;;  %6286 = vmatpush1.bf16.msra.mxu1 %v5891_v5  ;;  %v5737_v4 = vld [vmem:[#allocation2 + $0x440] sm:$0xff]  ;;  %v5739_v5 = vld [vmem:[#allocation2 + $0x450] sm:$0xff] }
0x20d6   :  { %6205 = vmatprep.subr.bf16.mxu0 %v5902_v6  ;;  %6287 = vmatprep.subr.bf16.mxu1 %v5904_v8  ;;  %v5750_v6 = vld [vmem:[#allocation2 + $0x4c8] sm:$0xff]  ;;  %v5752_v8 = vld [vmem:[#allocation2 + $0x4d8] sm:$0xff] }
0x20d9   :  { %6206 = vmatpush1.bf16.msra.mxu0 %v5901_v15  ;;  %6288 = vmatpush1.bf16.msra.mxu1 %v5903_v31  ;;  %v5749_v15 = vld [vmem:[#allocation2 + $0x4c0] sm:$0xff]  ;;  %v5751_v31 = vld [vmem:[#allocation2 + $0x4d0] sm:$0xff] }
0x20da   :  { %6207 = vmatprep.subr.bf16.mxu0 %v5914_v53  ;;  %6289 = vmatprep.subr.bf16.mxu1 %v5916_v60  ;;  %v5762_v53 = vld [vmem:[#allocation2 + $0x548] sm:$0xff]  ;;  %v5764_v60 = vld [vmem:[#allocation2 + $0x558] sm:$0xff] }
0x20dd   :  { %6208 = vmatpush1.bf16.msra.mxu0 %v5913_v19  ;;  %6290 = vmatpush1.bf16.msra.mxu1 %v5915_v20  ;;  %v5761_v19 = vld [vmem:[#allocation2 + $0x540] sm:$0xff]  ;;  %v5763_v20 = vld [vmem:[#allocation2 + $0x550] sm:$0xff] }
0x20de   :  { %6316 = vmatprep.subr.bf16.mxu0 %v5642_v47  ;;  %6398 = vmatprep.subr.bf16.mxu1 %v5644_v21  ;;  %v5774_v47 = vld [vmem:[#allocation2 + $0x5c8] sm:$0xff]  ;;  %v5776_v21 = vld [vmem:[#allocation2 + $0x5d8] sm:$0xff] }
0x20e0   :  { %6226 = vmatmul.mubr.bf16.vlgmr.msra.gmra.mrb[92].mxu0 %v10279_v9  ;;  %6308 = vmatmul.mubr.bf16.vlgmr.msra.gmra.mrb[116].mxu1 %v10279_v9 }
0x20e1   :  { %6317 = vmatpush1.bf16.msra.mxu0 %v5641_v44  ;;  %6399 = vmatpush1.bf16.msra.mxu1 %v5643_v23  ;;  %v5773_v44 = vld [vmem:[#allocation2 + $0x5c0] sm:$0xff]  ;;  %v5775_v23 = vld [vmem:[#allocation2 + $0x5d0] sm:$0xff] }
0x20e2   :  { %6318 = vmatprep.subr.bf16.mxu0 %v5654_v24  ;;  %6400 = vmatprep.subr.bf16.mxu1 %v5656_v25  ;;  %v5786_v24 = vld [vmem:[#allocation2 + $0x648] sm:$0xff]  ;;  %v5788_v25 = vld [vmem:[#allocation2 + $0x658] sm:$0xff] }
0x20e3   :  { %6348 = vmatprep.mubr.bf16.mxu0 %v10265_v61  ;;  %6430 = vmatprep.mubr.bf16.mxu1 %v10265_v61 }
0x20e5   :  { %6319 = vmatpush1.bf16.msra.mxu0 %v5653_v27  ;;  %6401 = vmatpush1.bf16.msra.mxu1 %v5655_v28  ;;  %v5785_v27 = vld [vmem:[#allocation2 + $0x640] sm:$0xff]  ;;  %v5787_v28 = vld [vmem:[#allocation2 + $0x650] sm:$0xff] }
0x20e6   :  { %6320 = vmatprep.subr.bf16.mxu0 %v5666_v29  ;;  %6402 = vmatprep.subr.bf16.mxu1 %v5668_v32  ;;  %v5798_v29 = vld [vmem:[#allocation2 + $0x6c8] sm:$0xff]  ;;  %v5800_v32 = vld [vmem:[#allocation2 + $0x6d8] sm:$0xff] }
0x20e9   :  { %6321 = vmatpush1.bf16.msra.mxu0 %v5665_v34  ;;  %6403 = vmatpush1.bf16.msra.mxu1 %v5667_v36  ;;  %v5797_v34 = vld [vmem:[#allocation2 + $0x6c0] sm:$0xff]  ;;  %v5799_v36 = vld [vmem:[#allocation2 + $0x6d0] sm:$0xff] }
0x20ea   :  { %6322 = vmatprep.subr.bf16.mxu0 %v5678_v52  ;;  %6404 = vmatprep.subr.bf16.mxu1 %v5680_v40  ;;  %v5810_v52 = vld [vmem:[#allocation2 + $0x748] sm:$0xff]  ;;  %v5812_v40 = vld [vmem:[#allocation2 + $0x758] sm:$0xff] }
0x20ed   :  { %6323 = vmatpush1.bf16.msra.mxu0 %v5677_v41  ;;  %6405 = vmatpush1.bf16.msra.mxu1 %v5679_v45  ;;  %v5809_v41 = vld [vmem:[#allocation2 + $0x740] sm:$0xff]  ;;  %v5811_v45 = vld [vmem:[#allocation2 + $0x750] sm:$0xff] }
0x20ee   :  { %6324 = vmatprep.subr.bf16.mxu0 %v5690_v42  ;;  %6406 = vmatprep.subr.bf16.mxu1 %v5692_v7  ;;  %v5822_v42 = vld [vmem:[#allocation2 + $0x7c8] sm:$0xff]  ;;  %v5824_v7 = vld [vmem:[#allocation2 + $0x7d8] sm:$0xff] }
0x20f1   :  { %6325 = vmatpush1.bf16.msra.mxu0 %v5689_v48  ;;  %6407 = vmatpush1.bf16.msra.mxu1 %v5691_v10  ;;  %v5821_v48 = vld [vmem:[#allocation2 + $0x7c0] sm:$0xff]  ;;  %v5823_v10 = vld [vmem:[#allocation2 + $0x7d0] sm:$0xff] }
0x20f2   :  { %6326 = vmatprep.subr.bf16.mxu0 %v5702_v49  ;;  %6408 = vmatprep.subr.bf16.mxu1 %v5704_v11  ;;  %v5834_v49 = vld [vmem:[#allocation2 + $0x848] sm:$0xff]  ;;  %v5836_v11 = vld [vmem:[#allocation2 + $0x858] sm:$0xff] }
0x20f5   :  { %6327 = vmatpush1.bf16.msra.mxu0 %v5701_v50  ;;  %6409 = vmatpush1.bf16.msra.mxu1 %v5703_v38  ;;  %v5833_v50 = vld [vmem:[#allocation2 + $0x840] sm:$0xff]  ;;  %v5835_v38 = vld [vmem:[#allocation2 + $0x850] sm:$0xff] }
0x20f6   :  { %6328 = vmatprep.subr.bf16.mxu0 %v5714_v54  ;;  %6410 = vmatprep.subr.bf16.mxu1 %v5716_v46  ;;  %v5846_v54 = vld [vmem:[#allocation2 + $0x8c8] sm:$0xff]  ;;  %v5848_v46 = vld [vmem:[#allocation2 + $0x8d8] sm:$0xff] }
0x20f9   :  { %6329 = vmatpush1.bf16.msra.mxu0 %v5713_v51  ;;  %6411 = vmatpush1.bf16.msra.mxu1 %v5715_v56  ;;  %v5845_v51 = vld [vmem:[#allocation2 + $0x8c0] sm:$0xff]  ;;  %v5847_v56 = vld [vmem:[#allocation2 + $0x8d0] sm:$0xff] }
0x20fa   :  { %6330 = vmatprep.subr.bf16.mxu0 %v5726_v62  ;;  %6412 = vmatprep.subr.bf16.mxu1 %v5728_v63  ;;  %v5858_v62 = vld [vmem:[#allocation2 + $0x948] sm:$0xff]  ;;  %v5860_v63 = vld [vmem:[#allocation2 + $0x958] sm:$0xff] }
0x20fd   :  { %6331 = vmatpush1.bf16.msra.mxu0 %v5725_v1  ;;  %6413 = vmatpush1.bf16.msra.mxu1 %v5727_v2  ;;  %v5857_v1 = vld [vmem:[#allocation2 + $0x940] sm:$0xff]  ;;  %v5859_v2 = vld [vmem:[#allocation2 + $0x950] sm:$0xff] }
0x20fe   :  { %6332 = vmatprep.subr.bf16.mxu0 %v5738_v3  ;;  %6414 = vmatprep.subr.bf16.mxu1 %v5740_v58  ;;  %v5870_v3 = vld [vmem:[#allocation2 + $0x9c8] sm:$0xff]  ;;  %v5872_v58 = vld [vmem:[#allocation2 + $0x9d8] sm:$0xff] }
0x2101   :  { %6333 = vmatpush1.bf16.msra.mxu0 %v5737_v4  ;;  %6415 = vmatpush1.bf16.msra.mxu1 %v5739_v5  ;;  %v5869_v4 = vld [vmem:[#allocation2 + $0x9c0] sm:$0xff]  ;;  %v5871_v5 = vld [vmem:[#allocation2 + $0x9d0] sm:$0xff] }
0x2102   :  { %6334 = vmatprep.subr.bf16.mxu0 %v5750_v6  ;;  %6416 = vmatprep.subr.bf16.mxu1 %v5752_v8  ;;  %v5882_v6 = vld [vmem:[#allocation2 + $0xa48] sm:$0xff]  ;;  %v5884_v8 = vld [vmem:[#allocation2 + $0xa58] sm:$0xff] }
0x2105   :  { %6335 = vmatpush1.bf16.msra.mxu0 %v5749_v15  ;;  %6417 = vmatpush1.bf16.msra.mxu1 %v5751_v31  ;;  %v5881_v15 = vld [vmem:[#allocation2 + $0xa40] sm:$0xff]  ;;  %v5883_v31 = vld [vmem:[#allocation2 + $0xa50] sm:$0xff] }
0x2106   :  { %6336 = vmatprep.subr.bf16.mxu0 %v5762_v53  ;;  %6418 = vmatprep.subr.bf16.mxu1 %v5764_v60  ;;  %v5894_v53 = vld [vmem:[#allocation2 + $0xac8] sm:$0xff]  ;;  %v5896_v60 = vld [vmem:[#allocation2 + $0xad8] sm:$0xff] }
0x2109   :  { %6337 = vmatpush1.bf16.msra.mxu0 %v5761_v19  ;;  %6419 = vmatpush1.bf16.msra.mxu1 %v5763_v20  ;;  %v5893_v19 = vld [vmem:[#allocation2 + $0xac0] sm:$0xff]  ;;  %v5895_v20 = vld [vmem:[#allocation2 + $0xad0] sm:$0xff] }
0x210a   :  { %6338 = vmatprep.subr.bf16.mxu0 %v5774_v47  ;;  %6420 = vmatprep.subr.bf16.mxu1 %v5776_v21  ;;  %v5906_v47 = vld [vmem:[#allocation2 + $0xb48] sm:$0xff]  ;;  %v5908_v21 = vld [vmem:[#allocation2 + $0xb58] sm:$0xff] }
0x210d   :  { %6339 = vmatpush1.bf16.msra.mxu0 %v5773_v44  ;;  %6421 = vmatpush1.bf16.msra.mxu1 %v5775_v23  ;;  %v5905_v44 = vld [vmem:[#allocation2 + $0xb40] sm:$0xff]  ;;  %v5907_v23 = vld [vmem:[#allocation2 + $0xb50] sm:$0xff] }
0x210e   :  { %6340 = vmatprep.subr.bf16.mxu0 %v5786_v24  ;;  %6422 = vmatprep.subr.bf16.mxu1 %v5788_v25  ;;  %v5918_v24 = vld [vmem:[#allocation2 + $0xbc8] sm:$0xff]  ;;  %v5920_v25 = vld [vmem:[#allocation2 + $0xbd8] sm:$0xff] }
0x2111   :  { %6341 = vmatpush1.bf16.msra.mxu0 %v5785_v27  ;;  %6423 = vmatpush1.bf16.msra.mxu1 %v5787_v28  ;;  %v5917_v27 = vld [vmem:[#allocation2 + $0xbc0] sm:$0xff]  ;;  %v5919_v28 = vld [vmem:[#allocation2 + $0xbd0] sm:$0xff] }
0x2112   :  { %6342 = vmatprep.subr.bf16.mxu0 %v5798_v29  ;;  %6424 = vmatprep.subr.bf16.mxu1 %v5800_v32  ;;  %v6493_v29 = vld [vmem:[#allocation2 + $0x68] sm:$0xff] }
0x2113   :  { %v6541_v32 = vld [vmem:[#allocation2 + $0x868] sm:$0xff] }
0x2115   :  { %6343 = vmatpush1.bf16.msra.mxu0 %v5797_v34  ;;  %6425 = vmatpush1.bf16.msra.mxu1 %v5799_v36  ;;  %v6492_v34 = vld [vmem:[#allocation2 + $0x60] sm:$0xff] }
0x2116   :  { %6344 = vmatprep.subr.bf16.mxu0 %v5810_v52  ;;  %6426 = vmatprep.subr.bf16.mxu1 %v5812_v40  ;;  %v6540_v36 = vld [vmem:[#allocation2 + $0x860] sm:$0xff]  ;;  %v6496_v52 = vld [vmem:[#allocation2 + $0xe8] sm:$0xff] }
0x2117   :  { %v6544_v40 = vld [vmem:[#allocation2 + $0x8e8] sm:$0xff] }
0x2119   :  { %6345 = vmatpush1.bf16.msra.mxu0 %v5809_v41  ;;  %6427 = vmatpush1.bf16.msra.mxu1 %v5811_v45  ;;  %v6495_v41 = vld [vmem:[#allocation2 + $0xe0] sm:$0xff] }
0x211a   :  { %6346 = vmatprep.subr.bf16.mxu0 %v5822_v42  ;;  %6428 = vmatprep.subr.bf16.mxu1 %v5824_v7  ;;  %v6543_v45 = vld [vmem:[#allocation2 + $0x8e0] sm:$0xff]  ;;  %v6499_v42 = vld [vmem:[#allocation2 + $0x168] sm:$0xff] }
0x211b   :  { %v6547_v7 = vld [vmem:[#allocation2 + $0x968] sm:$0xff] }
0x211d   :  { %6347 = vmatpush1.bf16.msra.mxu0 %v5821_v48  ;;  %6429 = vmatpush1.bf16.msra.mxu1 %v5823_v10  ;;  %v6498_v48 = vld [vmem:[#allocation2 + $0x160] sm:$0xff] }
0x211e   :  { %6357 = vmatprep.subr.bf16.mxu0 %v5834_v49  ;;  %6439 = vmatprep.subr.bf16.mxu1 %v5836_v11  ;;  %v6546_v10 = vld [vmem:[#allocation2 + $0x960] sm:$0xff]  ;;  %v6502_v49 = vld [vmem:[#allocation2 + $0x1e8] sm:$0xff] }
0x211f   :  { %v6550_v11 = vld [vmem:[#allocation2 + $0x9e8] sm:$0xff] }
0x2120   :  { %6349 = vmatmul.mubr.bf16.vlgmr.msra.gmra.mrb[96].mxu0 %v10271_v26  ;;  %6431 = vmatmul.mubr.bf16.vlgmr.msra.gmra.mrb[120].mxu1 %v10271_v26 }
0x2121   :  { %6358 = vmatpush1.bf16.msra.mxu0 %v5833_v50  ;;  %6440 = vmatpush1.bf16.msra.mxu1 %v5835_v38  ;;  %v6501_v50 = vld [vmem:[#allocation2 + $0x1e0] sm:$0xff] }
0x2122   :  { %6359 = vmatprep.subr.bf16.mxu0 %v5846_v54  ;;  %6441 = vmatprep.subr.bf16.mxu1 %v5848_v46  ;;  %v6549_v38 = vld [vmem:[#allocation2 + $0x9e0] sm:$0xff]  ;;  %v6505_v54 = vld [vmem:[#allocation2 + $0x268] sm:$0xff] }
0x2123   :  { %6389 = vmatprep.mubr.bf16.mxu0 %v9607_v0  ;;  %6471 = vmatprep.mubr.bf16.mxu1 %v9607_v0  ;;  %v6553_v46 = vld [vmem:[#allocation2 + $0xa68] sm:$0xff] }
0x2125   :  { %6360 = vmatpush1.bf16.msra.mxu0 %v5845_v51  ;;  %6442 = vmatpush1.bf16.msra.mxu1 %v5847_v56  ;;  %v6552_v51 = vld [vmem:[#allocation2 + $0xa60] sm:$0xff]  ;;  %v6508_v56 = vld [vmem:[#allocation2 + $0x2e8] sm:$0xff] }
0x2126   :  { %6361 = vmatprep.subr.bf16.mxu0 %v5858_v62  ;;  %6443 = vmatprep.subr.bf16.mxu1 %v5860_v63  ;;  %v6556_v62 = vld [vmem:[#allocation2 + $0xae8] sm:$0xff]  ;;  %v6507_v63 = vld [vmem:[#allocation2 + $0x2e0] sm:$0xff] }
0x2129   :  { %6362 = vmatpush1.bf16.msra.mxu0 %v5857_v1  ;;  %6444 = vmatpush1.bf16.msra.mxu1 %v5859_v2  ;;  %v6555_v1 = vld [vmem:[#allocation2 + $0xae0] sm:$0xff] }
0x212a   :  { %6363 = vmatprep.subr.bf16.mxu0 %v5870_v3  ;;  %6445 = vmatprep.subr.bf16.mxu1 %v5872_v58  ;;  %v6511_v58 = vld [vmem:[#allocation2 + $0x368] sm:$0xff] }
0x212d   :  { %6364 = vmatpush1.bf16.msra.mxu0 %v5869_v4  ;;  %6446 = vmatpush1.bf16.msra.mxu1 %v5871_v5  ;;  %v6559_v4 = vld [vmem:[#allocation2 + $0xb68] sm:$0xff] }
0x212e   :  { %6365 = vmatprep.subr.bf16.mxu0 %v5882_v6  ;;  %6447 = vmatprep.subr.bf16.mxu1 %v5884_v8 }
0x2131   :  { %6366 = vmatpush1.bf16.msra.mxu0 %v5881_v15  ;;  %6448 = vmatpush1.bf16.msra.mxu1 %v5883_v31 }
0x2132   :  { %6367 = vmatprep.subr.bf16.mxu0 %v5894_v53  ;;  %6449 = vmatprep.subr.bf16.mxu1 %v5896_v60  ;;  %v6510_v60 = vld [vmem:[#allocation2 + $0x360] sm:$0xff] }
0x2135   :  { %6368 = vmatpush1.bf16.msra.mxu0 %v5893_v19  ;;  %6450 = vmatpush1.bf16.msra.mxu1 %v5895_v20  ;;  %v6558_v19 = vld [vmem:[#allocation2 + $0xb60] sm:$0xff]  ;;  %v6514_v20 = vld [vmem:[#allocation2 + $0x3e8] sm:$0xff] }
0x2136   :  { %6369 = vmatprep.subr.bf16.mxu0 %v5906_v47  ;;  %6451 = vmatprep.subr.bf16.mxu1 %v5908_v21  ;;  %v6562_v47 = vld [vmem:[#allocation2 + $0xbe8] sm:$0xff]  ;;  %v6513_v21 = vld [vmem:[#allocation2 + $0x3e0] sm:$0xff] }
0x2139   :  { %6370 = vmatpush1.bf16.msra.mxu0 %v5905_v44  ;;  %6452 = vmatpush1.bf16.msra.mxu1 %v5907_v23  ;;  %v6561_v44 = vld [vmem:[#allocation2 + $0xbe0] sm:$0xff]  ;;  %v6517_v23 = vld [vmem:[#allocation2 + $0x468] sm:$0xff] }
0x213a   :  { %6371 = vmatprep.subr.bf16.mxu0 %v5918_v24  ;;  %6453 = vmatprep.subr.bf16.mxu1 %v5920_v25  ;;  %v6518_v24 = vld [vmem:[#allocation2 + $0x470] sm:$0xff]  ;;  %v6516_v25 = vld [vmem:[#allocation2 + $0x460] sm:$0xff] }
0x213d   :  { %6372 = vmatpush1.bf16.msra.mxu0 %v5917_v27  ;;  %6454 = vmatpush1.bf16.msra.mxu1 %v5919_v28  ;;  %v6494_v27 = vld [vmem:[#allocation2 + $0x70] sm:$0xff]  ;;  %v6520_v28 = vld [vmem:[#allocation2 + $0x4e8] sm:$0xff] }
0x213e   :  { %6581 = vmatprep.subr.bf16.mxu0 %v6493_v29  ;;  %6622 = vmatprep.subr.bf16.mxu1 %v6541_v32  ;;  %v6521_v29 = vld [vmem:[#allocation2 + $0x4f0] sm:$0xff]  ;;  %v6519_v32 = vld [vmem:[#allocation2 + $0x4e0] sm:$0xff] }
0x2140   :  { %6390 = vmatmul.mubr.bf16.vlgmr.msra.gmra.mrb[96].mxu0 %v10279_v9  ;;  %6472 = vmatmul.mubr.bf16.vlgmr.msra.gmra.mrb[120].mxu1 %v10279_v9 }
0x2141   :  { %6582 = vmatpush1.bf16.msra.mxu0 %v6492_v34  ;;  %6623 = vmatpush1.bf16.msra.mxu1 %v6540_v36  ;;  %v6497_v34 = vld [vmem:[#allocation2 + $0xf0] sm:$0xff]  ;;  %v6523_v36 = vld [vmem:[#allocation2 + $0x568] sm:$0xff] }
0x2142   :  { %6583 = vmatprep.subr.bf16.mxu0 %v6496_v52  ;;  %6624 = vmatprep.subr.bf16.mxu1 %v6544_v40  ;;  %v6524_v52 = vld [vmem:[#allocation2 + $0x570] sm:$0xff]  ;;  %v6522_v40 = vld [vmem:[#allocation2 + $0x560] sm:$0xff] }
0x2143   :  { %6654 = vmatprep.mubr.bf16.mxu1 %v9607_v0  ;;  %6613 = vmatprep.mubr.bf16.mxu0 %v10265_v61  ;;  %v6504_v0 = vld [vmem:[#allocation2 + $0x260] sm:$0xff] }
0x2145   :  { %6584 = vmatpush1.bf16.msra.mxu0 %v6495_v41  ;;  %6625 = vmatpush1.bf16.msra.mxu1 %v6543_v45  ;;  %v6500_v41 = vld [vmem:[#allocation2 + $0x170] sm:$0xff]  ;;  %v6526_v45 = vld [vmem:[#allocation2 + $0x5e8] sm:$0xff] }
0x2146   :  { %6585 = vmatprep.subr.bf16.mxu0 %v6499_v42  ;;  %6626 = vmatprep.subr.bf16.mxu1 %v6547_v7  ;;  %v6527_v42 = vld [vmem:[#allocation2 + $0x5f0] sm:$0xff]  ;;  %v6525_v7 = vld [vmem:[#allocation2 + $0x5e0] sm:$0xff] }
0x2149   :  { %6586 = vmatpush1.bf16.msra.mxu0 %v6498_v48  ;;  %6627 = vmatpush1.bf16.msra.mxu1 %v6546_v10  ;;  %v6503_v48 = vld [vmem:[#allocation2 + $0x1f0] sm:$0xff]  ;;  %v6529_v10 = vld [vmem:[#allocation2 + $0x668] sm:$0xff] }
0x214a   :  { %6587 = vmatprep.subr.bf16.mxu0 %v6502_v49  ;;  %6628 = vmatprep.subr.bf16.mxu1 %v6550_v11  ;;  %v6530_v49 = vld [vmem:[#allocation2 + $0x670] sm:$0xff] }
0x214b   :  { %v6506_v11 = vld [vmem:[#allocation2 + $0x270] sm:$0xff] }
0x214d   :  { %6588 = vmatpush1.bf16.msra.mxu0 %v6501_v50  ;;  %6629 = vmatpush1.bf16.msra.mxu1 %v6549_v38  ;;  %v6532_v50 = vld [vmem:[#allocation2 + $0x6e8] sm:$0xff]  ;;  %v6533_v38 = vld [vmem:[#allocation2 + $0x6f0] sm:$0xff] }
0x214e   :  { %6589 = vmatprep.subr.bf16.mxu0 %v6505_v54  ;;  %6630 = vmatprep.subr.bf16.mxu1 %v6553_v46  ;;  %v10311_v54 = vld [vmem:[#allocation5 + $0x1e] sm:$0xff] }
0x214f   :  { %v6531_v46 = vld [vmem:[#allocation2 + $0x6e0] sm:$0xff] }
0x2151   :  { %6590 = vmatpush1.bf16.msra.mxu0 %v6504_v0  ;;  %6631 = vmatpush1.bf16.msra.mxu1 %v6552_v51  ;;  %v6509_v0 = vld [vmem:[#allocation2 + $0x2f0] sm:$0xff]  ;;  %v6535_v51 = vld [vmem:[#allocation2 + $0x768] sm:$0xff] }
0x2152   :  { %6591 = vmatprep.subr.bf16.mxu0 %v6508_v56  ;;  %6632 = vmatprep.subr.bf16.mxu1 %v6556_v62  ;;  %v6536_v56 = vld [vmem:[#allocation2 + $0x770] sm:$0xff]  ;;  %v5935_v62 = vrot.slane %v10311_v54, %v9803_v16 }
0x2153   :  { %v10301_v2 = vpop.f32.mrb[88].mxu0  ;;  %v10303_v3 = vpop.f32.mrb[112].mxu1 }
0x2154   :  { %v10305_v5 = vpop.f32.mrb[89].mxu0  ;;  %v10307_v6 = vpop.f32.mrb[113].mxu1 }
0x2155   :  { %v6067_v8 = vpop.f32.mrb[90].mxu0  ;;  %v6149_v15 = vpop.f32.mrb[114].mxu1  ;;  %6592 = vmatpush1.bf16.msra.mxu0 %v6507_v63  ;;  %6633 = vmatpush1.bf16.msra.mxu1 %v6555_v1  ;;  %v6534_v63 = vld [vmem:[#allocation2 + $0x760] sm:$0xff]  ;;  %v6512_v1 = vld [vmem:[#allocation2 + $0x370] sm:$0xff] }
0x2156   :  { %v6068_v31 = vpop.f32.mrb[91].mxu0  ;;  %v6150_v53 = vpop.f32.mrb[115].mxu1  ;;  %6593 = vmatprep.subr.bf16.mxu0 %v6511_v58  ;;  %6634 = vmatprep.subr.bf16.mxu1 %v6559_v4  ;;  %v6538_v58 = vld [vmem:[#allocation2 + $0x7e8] sm:$0xff]  ;;  %v6539_v4 = vld [vmem:[#allocation2 + $0x7f0] sm:$0xff]  ;;  %v8875_v8 = vadd.f32 %v10305_v5, %v5935_v62  ;;  %v6537_v15 = vld [vmem:[#allocation2 + $0x7e0] sm:$0xff] }
0x2157   :  { %v6515_v31 = vld [vmem:[#allocation2 + $0x3f0] sm:$0xff]  ;;  %v6744_v53 = vld [vmem:[#allocation3 + $0x8] sm:$0xff]  ;;  %v6747_v5 = vld [vmem:[#allocation3 + $0x20] sm:$0xff] }
0x2158   :  { %v6770_v62 = vld [vmem:[#allocation3 + $0xd8] sm:$0xff] }
0x2159   :  { %6594 = vmatpush1.bf16.msra.mxu0 %v6510_v60  ;;  %6635 = vmatpush1.bf16.msra.mxu1 %v6558_v19  ;;  %v6481_v60 = vmax.f32 %v8875_v8, 0.0  ;;  %v6542_v19 = vld [vmem:[#allocation2 + $0x870] sm:$0xff] }
0x215a   :  { %6595 = vmatprep.subr.bf16.mxu0 %v6514_v20  ;;  %6636 = vmatprep.subr.bf16.mxu1 %v6562_v47  ;;  %v6743_v20 = vld [vmem:[#allocation3] sm:$0xff]  ;;  %v6797_v8 = vld [vmem:[#allocation3 + $0x1b0] sm:$0xff] }
0x215b   :  { %v10317_v47 = vpack.c.bf16 %v6481_v60, %v6481_v60  ;;  %v6780_v60 = vld [vmem:[#allocation3 + $0x128] sm:$0xff] }
0x215d   :  { %6596 = vmatpush1.bf16.msra.mxu0 %v6513_v21  ;;  %6637 = vmatpush1.bf16.msra.mxu1 %v6561_v44  ;;  %v6545_v21 = vld [vmem:[#allocation2 + $0x8f0] sm:$0xff]  ;;  %v6746_v44 = vld [vmem:[#allocation3 + $0x18] sm:$0xff] }
0x215e   :  { %6597 = vmatprep.subr.bf16.mxu0 %v6517_v23  ;;  %8319 = vmatprep.subr.bf16.mxu1 %v6518_v24  ;;  %v6750_v23 = vld [vmem:[#allocation3 + $0x38] sm:$0xff]  ;;  %v6749_v24 = vld [vmem:[#allocation3 + $0x30] sm:$0xff] }
0x2160   :  { %6655 = vmatmul.mubr.bf16.vlgmr.msra.gmra.mrb[124].mxu1 %v10279_v9 }
0x2161   :  { %6598 = vmatpush1.bf16.msra.mxu0 %v6516_v25  ;;  %8320 = vmatpush3.bf16.msra.mxu1 %v6494_v27  ;;  %v6753_v25 = vld [vmem:[#allocation3 + $0x50] sm:$0xff] }
0x2162   :  { %6599 = vmatprep.subr.bf16.mxu0 %v6520_v28  ;;  %8321 = vmatprep.subr.bf16.mxu1 %v6521_v29  ;;  %v6551_v27 = vld [vmem:[#allocation2 + $0x9f0] sm:$0xff]  ;;  %v6752_v28 = vld [vmem:[#allocation3 + $0x48] sm:$0xff] }
0x2163   :  { %6695 = vmatprep.mubr.bf16.mxu1 %v10265_v61  ;;  %v6528_v61 = vld [vmem:[#allocation2 + $0x660] sm:$0xff]  ;;  %v6756_v29 = vld [vmem:[#allocation3 + $0x68] sm:$0xff] }
0x2165   :  { %6600 = vmatpush1.bf16.msra.mxu0 %v6519_v32  ;;  %8322 = vmatpush3.bf16.msra.mxu1 %v6497_v34  ;;  %v6554_v32 = vld [vmem:[#allocation2 + $0xa70] sm:$0xff]  ;;  %v6755_v34 = vld [vmem:[#allocation3 + $0x60] sm:$0xff] }
0x2166   :  { %6601 = vmatprep.subr.bf16.mxu0 %v6523_v36  ;;  %8323 = vmatprep.subr.bf16.mxu1 %v6524_v52  ;;  %v6759_v36 = vld [vmem:[#allocation3 + $0x80] sm:$0xff]  ;;  %v6557_v52 = vld [vmem:[#allocation2 + $0xaf0] sm:$0xff] }
0x2169   :  { %6602 = vmatpush1.bf16.msra.mxu0 %v6522_v40  ;;  %8324 = vmatpush3.bf16.msra.mxu1 %v6500_v41  ;;  %v6758_v40 = vld [vmem:[#allocation3 + $0x78] sm:$0xff] }
0x216a   :  { %6603 = vmatprep.subr.bf16.mxu0 %v6526_v45  ;;  %8325 = vmatprep.subr.bf16.mxu1 %v6527_v42  ;;  %v6762_v41 = vld [vmem:[#allocation3 + $0x98] sm:$0xff]  ;;  %v5943_v45 = vrot.slane %v10311_v54, %v9905_v35  ;;  %v6560_v42 = vld [vmem:[#allocation2 + $0xb70] sm:$0xff] }
0x216d   :  { %6604 = vmatpush1.bf16.msra.mxu0 %v6525_v7  ;;  %8326 = vmatpush3.bf16.msra.mxu1 %v6503_v48  ;;  %v6761_v7 = vld [vmem:[#allocation3 + $0x90] sm:$0xff] }
0x216e   :  { %6605 = vmatprep.subr.bf16.mxu0 %v6529_v10  ;;  %8327 = vmatprep.subr.bf16.mxu1 %v6530_v49  ;;  %v6765_v48 = vld [vmem:[#allocation3 + $0xb0] sm:$0xff]  ;;  %v8877_v10 = vadd.f32 %v10307_v6, %v5943_v45  ;;  %v6795_v6 = vld [vmem:[#allocation3 + $0x1a0] sm:$0xff] }
0x216f   :  { %v6563_v49 = vld [vmem:[#allocation2 + $0xbf0] sm:$0xff] }
0x2171   :  { %6606 = vmatpush1.bf16.msra.mxu0 %v6528_v61  ;;  %8328 = vmatpush3.bf16.msra.mxu1 %v6506_v11  ;;  %v6764_v61 = vld [vmem:[#allocation3 + $0xa8] sm:$0xff] }
0x2172   :  { %6607 = vmatprep.subr.bf16.mxu0 %v6532_v50  ;;  %8329 = vmatprep.subr.bf16.mxu1 %v6533_v38  ;;  %v6768_v11 = vld [vmem:[#allocation3 + $0xc8] sm:$0xff]  ;;  %v6483_v38 = vmax.f32 %v8877_v10, 0.0  ;;  %v6809_v10 = vld [vmem:[#allocation3 + $0x210] sm:$0xff] }
0x2173   :  { %v6792_v50 = vld [vmem:[#allocation3 + $0x188] sm:$0xff] }
0x2175   :  { %6608 = vmatpush1.bf16.msra.mxu0 %v6531_v46  ;;  %8330 = vmatpush3.bf16.msra.mxu1 %v6509_v0  ;;  %v6767_v46 = vld [vmem:[#allocation3 + $0xc0] sm:$0xff] }
0x2176   :  { %6609 = vmatprep.subr.bf16.mxu0 %v6535_v51  ;;  %8331 = vmatprep.subr.bf16.mxu1 %v6536_v56  ;;  %v6791_v0 = vld [vmem:[#allocation3 + $0x180] sm:$0xff]  ;;  %v10334_v56 = vpack.c.bf16 %v6483_v38, %v6483_v38  ;;  %v6788_v38 = vld [vmem:[#allocation3 + $0x168] sm:$0xff] }
0x2177   :  { %v6771_v51 = vld [vmem:[#allocation3 + $0xe0] sm:$0xff] }
0x2179   :  { %6610 = vmatpush1.bf16.msra.mxu0 %v6534_v63  ;;  %8332 = vmatpush3.bf16.msra.mxu1 %v6512_v1  ;;  %v6794_v63 = vld [vmem:[#allocation3 + $0x198] sm:$0xff] }
0x217a   :  { %6611 = vmatprep.subr.bf16.mxu0 %v6538_v58  ;;  %8333 = vmatprep.subr.bf16.mxu1 %v6539_v4  ;;  %v6774_v1 = vld [vmem:[#allocation3 + $0xf8] sm:$0xff]  ;;  %v6773_v4 = vld [vmem:[#allocation3 + $0xf0] sm:$0xff] }
0x217b   :  { %v6798_v58 = vld [vmem:[#allocation3 + $0x1b8] sm:$0xff] }
0x217d   :  { %6612 = vmatpush1.bf16.msra.mxu0 %v6537_v15  ;;  %8334 = vmatpush3.bf16.msra.mxu1 %v6515_v31  ;;  %v6777_v15 = vld [vmem:[#allocation3 + $0x110] sm:$0xff] }
0x217e   :  { %8831 = vmatprep.subr.bf16.mxu0 %v9621_v18  ;;  %7060 = vmatprep.subr.bf16.mxu1 %v6744_v53  ;;  %v6801_v31 = vld [vmem:[#allocation3 + $0x1d0] sm:$0xff]  ;;  %v6800_v53 = vld [vmem:[#allocation3 + $0x1c8] sm:$0xff] }
0x2180   :  { %6614 = vmatmul.mubr.bf16.vlgmr.msra.gmra.mrb[100].mxu0 %v10271_v26  ;;  %6696 = vmatmul.mubr.bf16.vlgmr.msra.gmra.mrb[128].mxu1 %v10271_v26  ;;  %v6548_v26 = vld [vmem:[#allocation2 + $0x970] sm:$0xff] }
0x2181   :  { %8832 = vmatpush3.bf16.msra.mxu0 %v6542_v19  ;;  %7061 = vmatpush1.bf16.msra.mxu1 %v6743_v20  ;;  %v6804_v19 = vld [vmem:[#allocation3 + $0x1e8] sm:$0xff]  ;;  %v6779_v20 = vld [vmem:[#allocation3 + $0x120] sm:$0xff] }
0x2182   :  { %7092 = vmatprep.mubr.bf16.mxu1 %v10317_v47  ;;  %8833 = vmatprep.subr.bf16.mxu0 %v9621_v18 }
0x2183   :  { %7062 = vmatprep.subr.bf16.mxu1 %v6747_v5  ;;  %8847 = vmatprep.mubr.msk.bf16.mxu0 %vm9622_vm1, %v9621_v18  ;;  %v6803_v5 = vld [vmem:[#allocation3 + $0x1e0] sm:$0xff] }
0x2185   :  { %8834 = vmatpush3.bf16.msra.mxu0 %v6545_v21  ;;  %7063 = vmatpush1.bf16.msra.mxu1 %v6746_v44  ;;  %v6783_v21 = vld [vmem:[#allocation3 + $0x140] sm:$0xff] }
0x2186   :  { %8835 = vmatprep.subr.bf16.mxu0 %v9621_v18  ;;  %7064 = vmatprep.subr.bf16.mxu1 %v6750_v23  ;;  %v6807_v44 = vld [vmem:[#allocation3 + $0x200] sm:$0xff]  ;;  %v5950_v23 = vsub.s32 5, %v9797_v13 }
0x2189   :  { %8836 = vmatpush3.bf16.msra.mxu0 %v6548_v26  ;;  %7065 = vmatpush1.bf16.msra.mxu1 %v6749_v24  ;;  %v5931_v26 = vrot.slane %v10311_v54, %v9800_v14  ;;  %v6782_v24 = vld [vmem:[#allocation3 + $0x138] sm:$0xff] }
0x218a   :  { %8837 = vmatprep.subr.bf16.mxu0 %v9621_v18  ;;  %7066 = vmatprep.subr.bf16.mxu1 %v6753_v25  ;;  %v6806_v25 = vld [vmem:[#allocation3 + $0x1f8] sm:$0xff] }
0x218b   :  { %v8874_v45 = vadd.f32 %v10301_v2, %v5931_v26  ;;  %v6827_v26 = vld [vmem:[#allocation3 + $0x2a0] sm:$0xff] }
0x218d   :  { %8838 = vmatpush3.bf16.msra.mxu0 %v6551_v27  ;;  %7067 = vmatpush1.bf16.msra.mxu1 %v6752_v28 }
0x218e   :  { %8839 = vmatprep.subr.bf16.mxu0 %v9621_v18  ;;  %7068 = vmatprep.subr.bf16.mxu1 %v6756_v29  ;;  %v6786_v29 = vld [vmem:[#allocation3 + $0x158] sm:$0xff] }
0x2191   :  { %8840 = vmatpush3.bf16.msra.mxu0 %v6554_v32  ;;  %7069 = vmatpush1.bf16.msra.mxu1 %v6755_v34  ;;  %v6810_v32 = vld [vmem:[#allocation3 + $0x218] sm:$0xff]  ;;  %v5951_v34 = vrot.slane %v10311_v54, %v5950_v23  ;;  %v6852_v23 = vld [vmem:[#allocation3 + $0x368] sm:$0xff] }
0x2192   :  { %8841 = vmatprep.subr.bf16.mxu0 %v9621_v18  ;;  %7070 = vmatprep.subr.bf16.mxu1 %v6759_v36 }
0x2195   :  { %8842 = vmatpush3.bf16.msra.mxu0 %v6557_v52  ;;  %7071 = vmatpush1.bf16.msra.mxu1 %v6758_v40 }
0x2196   :  { %8843 = vmatprep.subr.bf16.mxu0 %v9621_v18  ;;  %7072 = vmatprep.subr.bf16.mxu1 %v6762_v41 }
0x2199   :  { %8844 = vmatpush3.bf16.msra.mxu0 %v6560_v42  ;;  %7073 = vmatpush1.bf16.msra.mxu1 %v6761_v7 }
0x219a   :  { %8845 = vmatprep.subr.bf16.mxu0 %v9621_v18  ;;  %7074 = vmatprep.subr.bf16.mxu1 %v6765_v48  ;;  %v6785_v48 = vld [vmem:[#allocation3 + $0x150] sm:$0xff] }
0x219d   :  { %8846 = vmatpush3.bf16.msra.mxu0 %v6563_v49  ;;  %7075 = vmatpush1.bf16.msra.mxu1 %v6764_v61  ;;  %v6789_v49 = vld [vmem:[#allocation3 + $0x170] sm:$0xff] }
0x219e   :  { %7076 = vmatprep.subr.bf16.mxu1 %v6768_v11  ;;  %7101 = vmatprep.subr.bf16.mxu0 %v6792_v50  ;;  %v6813_v61 = vld [vmem:[#allocation3 + $0x230] sm:$0xff]  ;;  %v6480_v50 = vmax.f32 %v8874_v45, 0.0  ;;  %v6858_v45 = vld [vmem:[#allocation3 + $0x398] sm:$0xff] }
0x21a0   :  { %8848 = vmatmul.mubr.bf16.vlgmr.msra.gmra.mrb[104].mxu0 %v10279_v9  ;;  %v6776_v9 = vld [vmem:[#allocation3 + $0x108] sm:$0xff]  ;;  %v10349_v2 = vpack.c.bf16 %v6480_v50, %v6480_v50 }
0x21a1   :  { %7077 = vmatpush1.bf16.msra.mxu1 %v6767_v46  ;;  %7102 = vmatpush1.bf16.msra.mxu0 %v6791_v0  ;;  %v6812_v46 = vld [vmem:[#allocation3 + $0x228] sm:$0xff] }
0x21a2   :  { %7133 = vmatprep.mubr.bf16.mxu0 %v10334_v56  ;;  %7078 = vmatprep.subr.bf16.mxu1 %v6771_v51  ;;  %v6816_v0 = vld [vmem:[#allocation3 + $0x248] sm:$0xff] }
0x21a3   :  { %7103 = vmatprep.subr.bf16.mxu0 %v6795_v6  ;;  %v6840_v51 = vld [vmem:[#allocation3 + $0x308] sm:$0xff] }
0x21a5   :  { %7079 = vmatpush1.bf16.msra.mxu1 %v6770_v62  ;;  %7104 = vmatpush1.bf16.msra.mxu0 %v6794_v63  ;;  %v6815_v62 = vld [vmem:[#allocation3 + $0x240] sm:$0xff] }
0x21a6   :  { %7080 = vmatprep.subr.bf16.mxu1 %v6774_v1  ;;  %7105 = vmatprep.subr.bf16.mxu0 %v6798_v58  ;;  %v6839_v63 = vld [vmem:[#allocation3 + $0x300] sm:$0xff] }
0x21a7   :  { %v6819_v1 = vld [vmem:[#allocation3 + $0x260] sm:$0xff] }
0x21a9   :  { %7081 = vmatpush1.bf16.msra.mxu1 %v6773_v4  ;;  %7106 = vmatpush1.bf16.msra.mxu0 %v6797_v8  ;;  %v6843_v4 = vld [vmem:[#allocation3 + $0x320] sm:$0xff]  ;;  %v6818_v8 = vld [vmem:[#allocation3 + $0x258] sm:$0xff] }
0x21aa   :  { %7082 = vmatprep.subr.bf16.mxu1 %v6777_v15  ;;  %7107 = vmatprep.subr.bf16.mxu0 %v6801_v31  ;;  %v6842_v15 = vld [vmem:[#allocation3 + $0x318] sm:$0xff] }
0x21ab   :  { %v6822_v31 = vld [vmem:[#allocation3 + $0x278] sm:$0xff] }
0x21ad   :  { %7083 = vmatpush1.bf16.msra.mxu1 %v6776_v9  ;;  %7108 = vmatpush1.bf16.msra.mxu0 %v6800_v53  ;;  %v6846_v9 = vld [vmem:[#allocation3 + $0x338] sm:$0xff]  ;;  %v6821_v53 = vld [vmem:[#allocation3 + $0x270] sm:$0xff] }
0x21ae   :  { %7084 = vmatprep.subr.bf16.mxu1 %v6780_v60  ;;  %7109 = vmatprep.subr.bf16.mxu0 %v6804_v19  ;;  %v6845_v60 = vld [vmem:[#allocation3 + $0x330] sm:$0xff] }
0x21af   :  { %v6825_v19 = vld [vmem:[#allocation3 + $0x290] sm:$0xff] }
0x21b1   :  { %7085 = vmatpush1.bf16.msra.mxu1 %v6779_v20  ;;  %7110 = vmatpush1.bf16.msra.mxu0 %v6803_v5  ;;  %v6849_v20 = vld [vmem:[#allocation3 + $0x350] sm:$0xff]  ;;  %v6824_v5 = vld [vmem:[#allocation3 + $0x288] sm:$0xff] }
0x21b2   :  { %7086 = vmatprep.subr.bf16.mxu1 %v6783_v21  ;;  %7111 = vmatprep.subr.bf16.mxu0 %v6807_v44  ;;  %v6848_v21 = vld [vmem:[#allocation3 + $0x348] sm:$0xff] }
0x21b3   :  { %v10341_v27 = vpop.f32.mrb[92].mxu0  ;;  %v10343_v28 = vpop.f32.mrb[116].mxu1  ;;  %v6828_v44 = vld [vmem:[#allocation3 + $0x2a8] sm:$0xff] }
0x21b4   :  { %v6229_v36 = vpop.f32.mrb[93].mxu0  ;;  %v10346_v52 = vpop.f32.mrb[117].mxu1 }
0x21b5   :  { %v6231_v40 = vpop.f32.mrb[94].mxu0  ;;  %v6313_v41 = vpop.f32.mrb[118].mxu1  ;;  %7087 = vmatpush1.bf16.msra.mxu1 %v6782_v24  ;;  %7112 = vmatpush1.bf16.msra.mxu0 %v6806_v25  ;;  %v8879_v11 = vadd.f32 %v6229_v36, %v5951_v34  ;;  %v6851_v24 = vld [vmem:[#allocation3 + $0x360] sm:$0xff]  ;;  %v5939_v34 = vrot.slane %v10311_v54, %v9806_v17  ;;  %v6830_v36 = vld [vmem:[#allocation3 + $0x2b8] sm:$0xff] }
0x21b6   :  { %v6232_v42 = vpop.f32.mrb[95].mxu0  ;;  %v6314_v7 = vpop.f32.mrb[119].mxu1  ;;  %7088 = vmatprep.subr.bf16.mxu1 %v6786_v29  ;;  %7113 = vmatprep.subr.bf16.mxu0 %v6810_v32  ;;  %v6831_v25 = vld [vmem:[#allocation3 + $0x2c0] sm:$0xff]  ;;  %v5958_v32 = vsub.s32 7, %v9797_v13  ;;  %v6854_v40 = vld [vmem:[#allocation3 + $0x378] sm:$0xff] }
0x21b7   :  { %v6485_v6 = vmax.f32 %v8879_v11, 0.0  ;;  %v6855_v29 = vld [vmem:[#allocation3 + $0x380] sm:$0xff]  ;;  %v6834_v41 = vld [vmem:[#allocation3 + $0x2d8] sm:$0xff]  ;;  %v8876_v7 = vadd.f32 %v10303_v3, %v5939_v34 }
0x21b8   :  { %v5959_v42 = vrot.slane %v10311_v54, %v5958_v32  ;;  %v6903_v32 = vld [vmem:[#allocation3 + $0x500] sm:$0xff] }
0x21b9   :  { %7089 = vmatpush1.bf16.msra.mxu1 %v6785_v48  ;;  %7114 = vmatpush1.bf16.msra.mxu0 %v6809_v10  ;;  %v10351_v58 = vpack.c.bf16 %v6485_v6, %v6485_v6  ;;  %v6833_v48 = vld [vmem:[#allocation3 + $0x2d0] sm:$0xff]  ;;  %v6482_v50 = vmax.f32 %v8876_v7, 0.0 }
0x21ba   :  { %7090 = vmatprep.subr.bf16.mxu1 %v6789_v49  ;;  %7115 = vmatprep.subr.bf16.mxu0 %v6813_v61  ;;  %v6857_v10 = vld [vmem:[#allocation3 + $0x390] sm:$0xff]  ;;  %v8881_v11 = vadd.f32 %v10346_v52, %v5959_v42 }
0x21bb   :  { %v6837_v49 = vld [vmem:[#allocation3 + $0x2f0] sm:$0xff]  ;;  %v10361_v3 = vpack.c.bf16 %v6482_v50, %v6482_v50  ;;  %v6908_v50 = vld [vmem:[#allocation3 + $0x528] sm:$0xff] }
0x21bc   :  { %v6861_v61 = vld [vmem:[#allocation3 + $0x3b0] sm:$0xff]  ;;  %v6487_v6 = vmax.f32 %v8881_v11, 0.0  ;;  %v6884_v11 = vld [vmem:[#allocation3 + $0x468] sm:$0xff] }
0x21bd   :  { %7091 = vmatpush1.bf16.msra.mxu1 %v6788_v38  ;;  %7116 = vmatpush1.bf16.msra.mxu0 %v6812_v46  ;;  %v6836_v38 = vld [vmem:[#allocation3 + $0x2e8] sm:$0xff]  ;;  %v6881_v7 = vld [vmem:[#allocation3 + $0x450] sm:$0xff] }
0x21be   :  { %7117 = vmatprep.subr.bf16.mxu0 %v6816_v0  ;;  %7142 = vmatprep.subr.bf16.mxu1 %v6840_v51  ;;  %v6860_v46 = vld [vmem:[#allocation3 + $0x3a8] sm:$0xff]  ;;  %v10363_v52 = vpack.c.bf16 %v6487_v6, %v6487_v6  ;;  %v6915_v6 = vld [vmem:[#allocation3 + $0x560] sm:$0xff] }
0x21bf   :  { %v6864_v0 = vld [vmem:[#allocation3 + $0x3c8] sm:$0xff] }
0x21c0   :  { %7093 = vmatmul.mubr.bf16.vlgmr.msra.gmra.mrb[132].mxu1 %v10349_v2  ;;  %v6888_v51 = vld [vmem:[#allocation3 + $0x488] sm:$0xff] }
0x21c1   :  { %7118 = vmatpush1.bf16.msra.mxu0 %v6815_v62  ;;  %7143 = vmatpush1.bf16.msra.mxu1 %v6839_v63  ;;  %v6863_v62 = vld [vmem:[#allocation3 + $0x3c0] sm:$0xff] }
0x21c2   :  { %7174 = vmatprep.mubr.bf16.mxu1 %v10351_v58  ;;  %7119 = vmatprep.subr.bf16.mxu0 %v6819_v1  ;;  %v6887_v63 = vld [vmem:[#allocation3 + $0x480] sm:$0xff] }
0x21c3   :  { %7144 = vmatprep.subr.bf16.mxu1 %v6843_v4  ;;  %v6867_v1 = vld [vmem:[#allocation3 + $0x3e0] sm:$0xff] }
0x21c4   :  { %v6891_v4 = vld [vmem:[#allocation3 + $0x4a0] sm:$0xff] }
0x21c5   :  { %7120 = vmatpush1.bf16.msra.mxu0 %v6818_v8  ;;  %7145 = vmatpush1.bf16.msra.mxu1 %v6842_v15  ;;  %v6866_v8 = vld [vmem:[#allocation3 + $0x3d8] sm:$0xff] }
0x21c6   :  { %7121 = vmatprep.subr.bf16.mxu0 %v6822_v31  ;;  %7146 = vmatprep.subr.bf16.mxu1 %v6846_v9  ;;  %v6890_v15 = vld [vmem:[#allocation3 + $0x498] sm:$0xff] }
0x21c7   :  { %v6870_v31 = vld [vmem:[#allocation3 + $0x3f8] sm:$0xff] }
0x21c8   :  { %v6894_v9 = vld [vmem:[#allocation3 + $0x4b8] sm:$0xff] }
0x21c9   :  { %7122 = vmatpush1.bf16.msra.mxu0 %v6821_v53  ;;  %7147 = vmatpush1.bf16.msra.mxu1 %v6845_v60  ;;  %v6869_v53 = vld [vmem:[#allocation3 + $0x3f0] sm:$0xff] }
0x21ca   :  { %7123 = vmatprep.subr.bf16.mxu0 %v6825_v19  ;;  %7148 = vmatprep.subr.bf16.mxu1 %v6849_v20  ;;  %v6893_v60 = vld [vmem:[#allocation3 + $0x4b0] sm:$0xff] }
0x21cb   :  { %v6873_v19 = vld [vmem:[#allocation3 + $0x410] sm:$0xff] }
0x21cc   :  { %v6897_v20 = vld [vmem:[#allocation3 + $0x4d0] sm:$0xff] }
0x21cd   :  { %7124 = vmatpush1.bf16.msra.mxu0 %v6824_v5  ;;  %7149 = vmatpush1.bf16.msra.mxu1 %v6848_v21  ;;  %v6872_v5 = vld [vmem:[#allocation3 + $0x408] sm:$0xff] }
0x21ce   :  { %7125 = vmatprep.subr.bf16.mxu0 %v6828_v44  ;;  %7150 = vmatprep.subr.bf16.mxu1 %v6852_v23  ;;  %v6896_v21 = vld [vmem:[#allocation3 + $0x4c8] sm:$0xff] }
0x21cf   :  { %v6876_v44 = vld [vmem:[#allocation3 + $0x428] sm:$0xff] }
0x21d0   :  { %v6900_v23 = vld [vmem:[#allocation3 + $0x4e8] sm:$0xff] }
0x21d1   :  { %7126 = vmatpush1.bf16.msra.mxu0 %v6827_v26  ;;  %7151 = vmatpush1.bf16.msra.mxu1 %v6851_v24  ;;  %v5946_v26 = vsub.s32 4, %v9797_v13  ;;  %v6875_v24 = vld [vmem:[#allocation3 + $0x420] sm:$0xff] }
0x21d2   :  { %7127 = vmatprep.subr.bf16.mxu0 %v6831_v25  ;;  %7152 = vmatprep.subr.bf16.mxu1 %v6855_v29  ;;  %v6899_v25 = vld [vmem:[#allocation3 + $0x4e0] sm:$0xff] }
0x21d3   :  { %v6879_v29 = vld [vmem:[#allocation3 + $0x440] sm:$0xff]  ;;  %v5947_v34 = vrot.slane %v10311_v54, %v5946_v26 }
0x21d4   :  { %v6947_v26 = vld [vmem:[#allocation3 + $0x660] sm:$0xff] }
0x21d5   :  { %7128 = vmatpush1.bf16.msra.mxu0 %v6830_v36  ;;  %7153 = vmatpush1.bf16.msra.mxu1 %v6854_v40  ;;  %v6878_v36 = vld [vmem:[#allocation3 + $0x438] sm:$0xff]  ;;  %v8878_v42 = vadd.f32 %v10341_v27, %v5947_v34  ;;  %v6911_v27 = vld [vmem:[#allocation3 + $0x540] sm:$0xff] }
0x21d6   :  { %7129 = vmatprep.subr.bf16.mxu0 %v6834_v41  ;;  %7154 = vmatprep.subr.bf16.mxu1 %v6858_v45  ;;  %v6902_v40 = vld [vmem:[#allocation3 + $0x4f8] sm:$0xff] }
0x21d7   :  { %v6882_v41 = vld [vmem:[#allocation3 + $0x458] sm:$0xff] }
0x21d8   :  { %v6906_v45 = vld [vmem:[#allocation3 + $0x518] sm:$0xff] }
0x21d9   :  { %7130 = vmatpush1.bf16.msra.mxu0 %v6833_v48  ;;  %7155 = vmatpush1.bf16.msra.mxu1 %v6857_v10  ;;  %v6905_v48 = vld [vmem:[#allocation3 + $0x510] sm:$0xff] }
0x21da   :  { %7131 = vmatprep.subr.bf16.mxu0 %v6837_v49  ;;  %7156 = vmatprep.subr.bf16.mxu1 %v6861_v61  ;;  %v6885_v10 = vld [vmem:[#allocation3 + $0x470] sm:$0xff]  ;;  %v6484_v61 = vmax.f32 %v8878_v42, 0.0  ;;  %v6954_v42 = vld [vmem:[#allocation3 + $0x698] sm:$0xff] }
0x21db   :  { %v6909_v49 = vld [vmem:[#allocation3 + $0x530] sm:$0xff] }
0x21dd   :  { %7132 = vmatpush1.bf16.msra.mxu0 %v6836_v38  ;;  %7157 = vmatpush1.bf16.msra.mxu1 %v6860_v46  ;;  %v6912_v38 = vld [vmem:[#allocation3 + $0x548] sm:$0xff] }
0x21de   :  { %7158 = vmatprep.subr.bf16.mxu1 %v6864_v0  ;;  %7183 = vmatprep.subr.bf16.mxu0 %v6888_v51  ;;  %v6936_v46 = vld [vmem:[#allocation3 + $0x608] sm:$0xff]  ;;  %v10370_v0 = vpack.c.bf16 %v6484_v61, %v6484_v61  ;;  %v6935_v51 = vld [vmem:[#allocation3 + $0x600] sm:$0xff] }
0x21e0   :  { %7134 = vmatmul.mubr.bf16.vlgmr.msra.gmra.mrb[108].mxu0 %v10361_v3 }
0x21e1   :  { %7159 = vmatpush1.bf16.msra.mxu1 %v6863_v62  ;;  %7184 = vmatpush1.bf16.msra.mxu0 %v6887_v63  ;;  %v6939_v62 = vld [vmem:[#allocation3 + $0x620] sm:$0xff]  ;;  %v6914_v63 = vld [vmem:[#allocation3 + $0x558] sm:$0xff] }
0x21e2   :  { %7215 = vmatprep.mubr.bf16.mxu0 %v10363_v52  ;;  %7160 = vmatprep.subr.bf16.mxu1 %v6867_v1  ;;  %v6938_v1 = vld [vmem:[#allocation3 + $0x618] sm:$0xff] }
0x21e3   :  { %7185 = vmatprep.subr.bf16.mxu0 %v6891_v4  ;;  %v6918_v4 = vld [vmem:[#allocation3 + $0x578] sm:$0xff] }
0x21e5   :  { %7161 = vmatpush1.bf16.msra.mxu1 %v6866_v8  ;;  %7186 = vmatpush1.bf16.msra.mxu0 %v6890_v15  ;;  %v6942_v8 = vld [vmem:[#allocation3 + $0x638] sm:$0xff]  ;;  %v6917_v15 = vld [vmem:[#allocation3 + $0x570] sm:$0xff] }
0x21e6   :  { %7162 = vmatprep.subr.bf16.mxu1 %v6870_v31  ;;  %7187 = vmatprep.subr.bf16.mxu0 %v6894_v9  ;;  %v6941_v31 = vld [vmem:[#allocation3 + $0x630] sm:$0xff] }
0x21e7   :  { %v6921_v9 = vld [vmem:[#allocation3 + $0x590] sm:$0xff] }
0x21e9   :  { %7163 = vmatpush1.bf16.msra.mxu1 %v6869_v53  ;;  %7188 = vmatpush1.bf16.msra.mxu0 %v6893_v60  ;;  %v6945_v53 = vld [vmem:[#allocation3 + $0x650] sm:$0xff]  ;;  %v6920_v60 = vld [vmem:[#allocation3 + $0x588] sm:$0xff] }
0x21ea   :  { %7164 = vmatprep.subr.bf16.mxu1 %v6873_v19  ;;  %7189 = vmatprep.subr.bf16.mxu0 %v6897_v20  ;;  %v6944_v19 = vld [vmem:[#allocation3 + $0x648] sm:$0xff] }
0x21eb   :  { %v6924_v20 = vld [vmem:[#allocation3 + $0x5a8] sm:$0xff] }
0x21ed   :  { %7165 = vmatpush1.bf16.msra.mxu1 %v6872_v5  ;;  %7190 = vmatpush1.bf16.msra.mxu0 %v6896_v21  ;;  %v6948_v5 = vld [vmem:[#allocation3 + $0x668] sm:$0xff] }
0x21ee   :  { %7166 = vmatprep.subr.bf16.mxu1 %v6876_v44  ;;  %7191 = vmatprep.subr.bf16.mxu0 %v6900_v23  ;;  %v10373_v21 = vld [vmem:[#allocation5 + $0x26] sm:$0xf]  ;;  %v5954_v44 = vsub.s32 6, %v9797_v13  ;;  %v6950_v13 = vld [vmem:[#allocation3 + $0x678] sm:$0xff] }
0x21ef   :  { %v6923_v23 = vld [vmem:[#allocation3 + $0x5a0] sm:$0xff] }
0x21f0   :  { %v5955_v34 = vrot.slane %v10311_v54, %v5954_v44  ;;  %v6987_v44 = vld [vmem:[#allocation3 + $0x7a0] sm:$0xff] }
0x21f1   :  { %7167 = vmatpush1.bf16.msra.mxu1 %v6875_v24  ;;  %7192 = vmatpush1.bf16.msra.mxu0 %v6899_v25  ;;  %v6927_v24 = vld [vmem:[#allocation3 + $0x5c0] sm:$0xff] }
0x21f2   :  { %7168 = vmatprep.subr.bf16.mxu1 %v6879_v29  ;;  %7193 = vmatprep.subr.bf16.mxu0 %v6903_v32  ;;  %v6951_v25 = vld [vmem:[#allocation3 + $0x680] sm:$0xff]  ;;  %v5971_v29 = vrot.slane %v10373_v21, %v9806_v17  ;;  %v5967_v32 = vrot.slane %v10373_v21, %v9803_v16  ;;  %v8880_v54 = vadd.f32 %v10343_v28, %v5955_v34  ;;  %v6960_v28 = vld [vmem:[#allocation3 + $0x6c8] sm:$0xff]  ;;  %v6969_v34 = vld [vmem:[#allocation3 + $0x710] sm:$0xff] }
0x21f5   :  { %7169 = vmatpush1.bf16.msra.mxu1 %v6878_v36  ;;  %7194 = vmatpush1.bf16.msra.mxu0 %v6902_v40  ;;  %v6926_v36 = vld [vmem:[#allocation3 + $0x5b8] sm:$0xff] }
0x21f6   :  { %7170 = vmatprep.subr.bf16.mxu1 %v6882_v41  ;;  %7195 = vmatprep.subr.bf16.mxu0 %v6906_v45  ;;  %v6930_v45 = vld [vmem:[#allocation3 + $0x5d8] sm:$0xff] }
0x21f9   :  { %7171 = vmatpush1.bf16.msra.mxu1 %v6881_v7  ;;  %7196 = vmatpush1.bf16.msra.mxu0 %v6905_v48 }
0x21fa   :  { %7172 = vmatprep.subr.bf16.mxu1 %v6885_v10  ;;  %7197 = vmatprep.subr.bf16.mxu0 %v6909_v49  ;;  %v5975_v10 = vrot.slane %v10373_v21, %v9905_v35  ;;  %v6486_v35 = vmax.f32 %v8880_v54, 0.0  ;;  %v6998_v54 = vld [vmem:[#allocation3 + $0x7f8] sm:$0xff] }
0x21fd   :  { %7173 = vmatpush1.bf16.msra.mxu1 %v6884_v11  ;;  %7198 = vmatpush1.bf16.msra.mxu0 %v6908_v50 }
0x21fe   :  { %7199 = vmatprep.subr.bf16.mxu0 %v6912_v38  ;;  %7224 = vmatprep.subr.bf16.mxu1 %v6936_v46 }
0x2200   :  { %7175 = vmatmul.mubr.bf16.vlgmr.msra.gmra.mrb[136].mxu1 %v10370_v0 }
0x2201   :  { %7200 = vmatpush1.bf16.msra.mxu0 %v6911_v27  ;;  %7225 = vmatpush1.bf16.msra.mxu1 %v6935_v51  ;;  %v6929_v27 = vld [vmem:[#allocation3 + $0x5d0] sm:$0xff] }
0x2202   :  { %7201 = vmatprep.subr.bf16.mxu0 %v6915_v6  ;;  %7226 = vmatprep.subr.bf16.mxu1 %v6939_v62  ;;  %v6953_v51 = vld [vmem:[#allocation3 + $0x690] sm:$0xff] }
0x2203   :  { %v6933_v62 = vld [vmem:[#allocation3 + $0x5f0] sm:$0xff] }
0x2205   :  { %7202 = vmatpush1.bf16.msra.mxu0 %v6914_v63  ;;  %7227 = vmatpush1.bf16.msra.mxu1 %v6938_v1  ;;  %v6957_v63 = vld [vmem:[#allocation3 + $0x6b0] sm:$0xff] }
0x2206   :  { %7203 = vmatprep.subr.bf16.mxu0 %v6918_v4  ;;  %7228 = vmatprep.subr.bf16.mxu1 %v6942_v8  ;;  %v6932_v8 = vld [vmem:[#allocation3 + $0x5e8] sm:$0xff] }
0x2209   :  { %7204 = vmatpush1.bf16.msra.mxu0 %v6917_v15  ;;  %7229 = vmatpush1.bf16.msra.mxu1 %v6941_v31  ;;  %v6956_v15 = vld [vmem:[#allocation3 + $0x6a8] sm:$0xff] }
0x220a   :  { %7205 = vmatprep.subr.bf16.mxu0 %v6921_v9  ;;  %7230 = vmatprep.subr.bf16.mxu1 %v6945_v53  ;;  %v6984_v31 = vld [vmem:[#allocation3 + $0x788] sm:$0xff]  ;;  %v10391_v53 = vpack.c.bf16 %v6486_v35, %v6486_v35  ;;  %v6981_v35 = vld [vmem:[#allocation3 + $0x770] sm:$0xff] }
0x220d   :  { %7206 = vmatpush1.bf16.msra.mxu0 %v6920_v60  ;;  %7231 = vmatpush1.bf16.msra.mxu1 %v6944_v19  ;;  %v6959_v60 = vld [vmem:[#allocation3 + $0x6c0] sm:$0xff] }
0x220e   :  { %7207 = vmatprep.subr.bf16.mxu0 %v6924_v20  ;;  %7232 = vmatprep.subr.bf16.mxu1 %v6948_v5  ;;  %v6983_v19 = vld [vmem:[#allocation3 + $0x780] sm:$0xff] }
0x220f   :  { %v6963_v20 = vld [vmem:[#allocation3 + $0x6e0] sm:$0xff] }
0x2211   :  { %7208 = vmatpush1.bf16.msra.mxu0 %v6923_v23  ;;  %7233 = vmatpush1.bf16.msra.mxu1 %v6947_v26  ;;  %v6962_v23 = vld [vmem:[#allocation3 + $0x6d8] sm:$0xff] }
0x2212   :  { %7209 = vmatprep.subr.bf16.mxu0 %v6927_v24  ;;  %7234 = vmatprep.subr.bf16.mxu1 %v6951_v25  ;;  %v6986_v26 = vld [vmem:[#allocation3 + $0x798] sm:$0xff] }
0x2213   :  { %v10381_v40 = vpop.f32.mrb[96].mxu0  ;;  %v6473_v41 = vpop.f32.mrb[120].mxu1  ;;  %v6966_v24 = vld [vmem:[#allocation3 + $0x6f8] sm:$0xff] }
0x2214   :  { %v10383_v7 = vadd.f32 %v6473_v41, %v5971_v29  ;;  %v6393_v48 = vpop.f32.mrb[97].mxu0  ;;  %v6475_v49 = vpop.f32.mrb[121].mxu1  ;;  %v6990_v25 = vld [vmem:[#allocation3 + $0x7b8] sm:$0xff]  ;;  %v6965_v29 = vld [vmem:[#allocation3 + $0x6f0] sm:$0xff]  ;;  %v6992_v41 = vld [vmem:[#allocation3 + $0x7c8] sm:$0xff] }
0x2215   :  { %v8883_v61 = vadd.f32 %v6393_v48, %v5967_v32  ;;  %v6395_v11 = vpop.f32.mrb[98].mxu0  ;;  %v6477_v50 = vpop.f32.mrb[122].mxu1  ;;  %7210 = vmatpush1.bf16.msra.mxu0 %v6926_v36  ;;  %7235 = vmatpush1.bf16.msra.mxu1 %v6950_v13  ;;  %v8885_v1 = vadd.f32 %v6475_v49, %v5975_v10  ;;  %v6989_v32 = vld [vmem:[#allocation3 + $0x7b0] sm:$0xff]  ;;  %v6968_v13 = vld [vmem:[#allocation3 + $0x708] sm:$0xff]  ;;  %v6971_v48 = vld [vmem:[#allocation3 + $0x720] sm:$0xff] }
0x2216   :  { %v6396_v38 = vpop.f32.mrb[99].mxu0  ;;  %v6478_v46 = vpop.f32.mrb[123].mxu1  ;;  %7211 = vmatprep.subr.bf16.mxu0 %v6930_v45  ;;  %7236 = vmatprep.subr.bf16.mxu1 %v6954_v42  ;;  %v6993_v36 = vld [vmem:[#allocation3 + $0x7d0] sm:$0xff]  ;;  %v6972_v45 = vld [vmem:[#allocation3 + $0x728] sm:$0xff]  ;;  %v6995_v10 = vld [vmem:[#allocation3 + $0x7e0] sm:$0xff]  ;;  %v5963_v11 = vrot.slane %v10373_v21, %v9800_v14 }
0x2217   :  { %v6489_v6 = vmax.f32 %v8883_v61, 0.0  ;;  %v6491_v9 = vmax.f32 %v8885_v1, 0.0  ;;  %v6996_v42 = vld [vmem:[#allocation3 + $0x7e8] sm:$0xff]  ;;  %v6975_v49 = vld [vmem:[#allocation3 + $0x740] sm:$0xff]  ;;  %v6974_v50 = vld [vmem:[#allocation3 + $0x738] sm:$0xff] }
0x2218   :  { %v6999_v61 = vld [vmem:[#allocation3 + $0x800] sm:$0xff]  ;;  %v6978_v38 = vld [vmem:[#allocation3 + $0x758] sm:$0xff]  ;;  %v7001_v1 = vld [vmem:[#allocation3 + $0x810] sm:$0xff] }
0x2219   :  { %v10388_v4 = vpack.c.bf16 %v6489_v6, %v6489_v6  ;;  %7212 = vmatpush1.bf16.msra.mxu0 %v6929_v27  ;;  %7237 = vmatpush1.bf16.msra.mxu1 %v6953_v51  ;;  %v10393_v5 = vpack.c.bf16 %v6491_v9, %v6491_v9  ;;  %v7002_v46 = vld [vmem:[#allocation3 + $0x818] sm:$0xff]  ;;  %v7008_v9 = vld [vmem:[#allocation3 + $0x848] sm:$0xff] }
0x221a   :  { %7213 = vmatprep.subr.bf16.mxu0 %v6933_v62  ;;  %7238 = vmatprep.subr.bf16.mxu1 %v6957_v63  ;;  %v8882_v62 = vadd.f32 %v10381_v40, %v5963_v11  ;;  %v6977_v63 = vld [vmem:[#allocation3 + $0x750] sm:$0xff]  ;;  %v7007_v40 = vld [vmem:[#allocation3 + $0x840] sm:$0xff]  ;;  %v6784_v11 = vld [vmem:[#allocation3 + $0x148] sm:$0xff] }
0x221b   :  { %7256 = vmatprep.mubr.bf16.mxu1 %v10388_v4 }
0x221d   :  { %7214 = vmatpush1.bf16.msra.mxu0 %v6932_v8  ;;  %7239 = vmatpush1.bf16.msra.mxu1 %v6956_v15  ;;  %v7005_v8 = vld [vmem:[#allocation3 + $0x830] sm:$0xff]  ;;  %v6488_v15 = vmax.f32 %v8882_v62, 0.0  ;;  %v7026_v62 = vld [vmem:[#allocation3 + $0x8d8] sm:$0xff] }
0x221e   :  { %7240 = vmatprep.subr.bf16.mxu1 %v6960_v28  ;;  %7265 = vmatprep.subr.bf16.mxu0 %v6984_v31  ;;  %v6980_v28 = vld [vmem:[#allocation3 + $0x768] sm:$0xff] }
0x221f   :  { %v7004_v31 = vld [vmem:[#allocation3 + $0x828] sm:$0xff] }
0x2220   :  { %7216 = vmatmul.mubr.bf16.vlgmr.msra.gmra.mrb[112].mxu0 %v10391_v53 }
0x2221   :  { %7241 = vmatpush1.bf16.msra.mxu1 %v6959_v60  ;;  %7266 = vmatpush1.bf16.msra.mxu0 %v6983_v19  ;;  %v6769_v60 = vld [vmem:[#allocation3 + $0xd0] sm:$0xff]  ;;  %v10404_v19 = vpack.c.bf16 %v6488_v15, %v6488_v15 }
0x2222   :  { %7297 = vmatprep.mubr.bf16.mxu0 %v10393_v5  ;;  %7242 = vmatprep.subr.bf16.mxu1 %v6963_v20  ;;  %v6745_v20 = vld [vmem:[#allocation3 + $0x10] sm:$0xff] }
0x2223   :  { %7267 = vmatprep.subr.bf16.mxu0 %v6987_v44  ;;  %v7011_v44 = vld [vmem:[#allocation3 + $0x860] sm:$0xff] }
0x2225   :  { %7243 = vmatpush1.bf16.msra.mxu1 %v6962_v23  ;;  %7268 = vmatpush1.bf16.msra.mxu0 %v6986_v26  ;;  %v6772_v23 = vld [vmem:[#allocation3 + $0xe8] sm:$0xff]  ;;  %v7010_v26 = vld [vmem:[#allocation3 + $0x858] sm:$0xff] }
0x2226   :  { %7244 = vmatprep.subr.bf16.mxu1 %v6966_v24  ;;  %7269 = vmatprep.subr.bf16.mxu0 %v6990_v25  ;;  %v6748_v24 = vld [vmem:[#allocation3 + $0x28] sm:$0xff]  ;;  %v7014_v25 = vld [vmem:[#allocation3 + $0x878] sm:$0xff] }
0x2229   :  { %7245 = vmatpush1.bf16.msra.mxu1 %v6965_v29  ;;  %7270 = vmatpush1.bf16.msra.mxu0 %v6989_v32  ;;  %v6775_v29 = vld [vmem:[#allocation3 + $0x100] sm:$0xff]  ;;  %v7013_v32 = vld [vmem:[#allocation3 + $0x870] sm:$0xff] }
0x222a   :  { %7246 = vmatprep.subr.bf16.mxu1 %v6969_v34  ;;  %7271 = vmatprep.subr.bf16.mxu0 %v6993_v36  ;;  %v6751_v34 = vld [vmem:[#allocation3 + $0x40] sm:$0xff]  ;;  %v7017_v36 = vld [vmem:[#allocation3 + $0x890] sm:$0xff] }
0x222d   :  { %7247 = vmatpush1.bf16.msra.mxu1 %v6968_v13  ;;  %7272 = vmatpush1.bf16.msra.mxu0 %v6992_v41  ;;  %v6778_v13 = vld [vmem:[#allocation3 + $0x118] sm:$0xff]  ;;  %v7016_v41 = vld [vmem:[#allocation3 + $0x888] sm:$0xff] }
0x222e   :  { %7248 = vmatprep.subr.bf16.mxu1 %v6972_v45  ;;  %7273 = vmatprep.subr.bf16.mxu0 %v6996_v42  ;;  %v7020_v45 = vld [vmem:[#allocation3 + $0x8a8] sm:$0xff]  ;;  %v6781_v42 = vld [vmem:[#allocation3 + $0x130] sm:$0xff] }
0x2231   :  { %7249 = vmatpush1.bf16.msra.mxu1 %v6971_v48  ;;  %7274 = vmatpush1.bf16.msra.mxu0 %v6995_v10  ;;  %v6564_v48 = vld [vmem:[#allocation5 + $0x2a] sm:$0x7]  ;;  %v7019_v10 = vld [vmem:[#allocation3 + $0x8a0] sm:$0xff] }
0x2232   :  { %7250 = vmatprep.subr.bf16.mxu1 %v6975_v49  ;;  %7275 = vmatprep.subr.bf16.mxu0 %v6999_v61  ;;  %v6757_v49 = vld [vmem:[#allocation3 + $0x70] sm:$0xff]  ;;  %v7023_v61 = vld [vmem:[#allocation3 + $0x8c0] sm:$0xff] }
0x2233   :  { %v10399_v27 = vpop.f32.mrb[124].mxu1 }
0x2234   :  { %v10401_v51 = vpop.f32.mrb[125].mxu1 }
0x2235   :  { %7251 = vmatpush1.bf16.msra.mxu1 %v6974_v50  ;;  %7276 = vmatpush1.bf16.msra.mxu0 %v6998_v54  ;;  %v6660_v6 = vpop.f32.mrb[126].mxu1  ;;  %v6569_v50 = vrot.slane %v6564_v48, %v9800_v14  ;;  %v6573_v54 = vrot.slane %v6564_v48, %v9803_v16 }
0x2236   :  { %7252 = vmatprep.subr.bf16.mxu1 %v6978_v38  ;;  %7277 = vmatprep.subr.bf16.mxu0 %v7002_v46  ;;  %v6661_v21 = vpop.f32.mrb[127].mxu1  ;;  %v7022_v38 = vld [vmem:[#allocation3 + $0x8b8] sm:$0xff]  ;;  %v6760_v46 = vld [vmem:[#allocation3 + $0x88] sm:$0xff] }
0x2237   :  { %v6577_v21 = vrot.slane %v6564_v48, %v9806_v17  ;;  %v6796_v48 = vld [vmem:[#allocation3 + $0x1a8] sm:$0xff] }
0x2239   :  { %7253 = vmatpush1.bf16.msra.mxu1 %v6977_v63  ;;  %7278 = vmatpush1.bf16.msra.mxu0 %v7001_v1  ;;  %v6787_v63 = vld [vmem:[#allocation3 + $0x160] sm:$0xff] }
0x223a   :  { %7254 = vmatprep.subr.bf16.mxu1 %v6981_v35  ;;  %7279 = vmatprep.subr.bf16.mxu0 %v7005_v8 }
0x223d   :  { %7255 = vmatpush1.bf16.msra.mxu1 %v6980_v28  ;;  %7280 = vmatpush1.bf16.msra.mxu0 %v7004_v31 }
0x223e   :  { %7281 = vmatprep.subr.bf16.mxu0 %v7008_v9  ;;  %8350 = vmatprep.subr.bf16.mxu1 %v6769_v60 }
0x2240   :  { %7257 = vmatmul.mubr.bf16.vlgmr.msra.gmra.mrb[140].mxu1 %v10404_v19 }
0x2241   :  { %7282 = vmatpush1.bf16.msra.mxu0 %v7007_v40  ;;  %8351 = vmatpush3.bf16.msra.mxu1 %v6745_v20 }
0x2242   :  { %7338 = vmatprep.mubr.bf16.mxu1 %v10317_v47  ;;  %7283 = vmatprep.subr.bf16.mxu0 %v7011_v44  ;;  %v6754_v47 = vld [vmem:[#allocation3 + $0x58] sm:$0xff]  ;;  %v7025_v44 = vld [vmem:[#allocation3 + $0x8d0] sm:$0xff] }
0x2243   :  { %8352 = vmatprep.subr.bf16.mxu1 %v6772_v23  ;;  %v6763_v23 = vld [vmem:[#allocation3 + $0xa0] sm:$0xff] }
0x2245   :  { %7284 = vmatpush1.bf16.msra.mxu0 %v7010_v26  ;;  %8353 = vmatpush3.bf16.msra.mxu1 %v6748_v24 }
0x2246   :  { %7285 = vmatprep.subr.bf16.mxu0 %v7014_v25  ;;  %8354 = vmatprep.subr.bf16.mxu1 %v6775_v29  ;;  %v7029_v25 = vld [vmem:[#allocation3 + $0x8f0] sm:$0xff]  ;;  %v6790_v29 = vld [vmem:[#allocation3 + $0x178] sm:$0xff] }
0x2249   :  { %7286 = vmatpush1.bf16.msra.mxu0 %v7013_v32  ;;  %8355 = vmatpush3.bf16.msra.mxu1 %v6751_v34  ;;  %v6490_v34 = vmax.f32 %v10383_v7, 0.0  ;;  %v6868_v7 = vld [vmem:[#allocation3 + $0x3e8] sm:$0xff] }
0x224a   :  { %7287 = vmatprep.subr.bf16.mxu0 %v7017_v36  ;;  %8356 = vmatprep.subr.bf16.mxu1 %v6778_v13  ;;  %v6766_v36 = vld [vmem:[#allocation3 + $0xb8] sm:$0xff]  ;;  %v6817_v13 = vld [vmem:[#allocation3 + $0x250] sm:$0xff] }
0x224d   :  { %7288 = vmatpush1.bf16.msra.mxu0 %v7016_v41  ;;  %8357 = vmatpush3.bf16.msra.mxu1 %v6754_v47  ;;  %v6865_v41 = vld [vmem:[#allocation3 + $0x3d0] sm:$0xff]  ;;  %v10420_v47 = vpack.c.bf16 %v6490_v34, %v6490_v34  ;;  %v6862_v34 = vld [vmem:[#allocation3 + $0x3b8] sm:$0xff] }
0x224e   :  { %7289 = vmatprep.subr.bf16.mxu0 %v7020_v45  ;;  %8358 = vmatprep.subr.bf16.mxu1 %v6781_v42  ;;  %v6841_v45 = vld [vmem:[#allocation3 + $0x310] sm:$0xff]  ;;  %v6820_v42 = vld [vmem:[#allocation3 + $0x268] sm:$0xff] }
0x2251   :  { %7290 = vmatpush1.bf16.msra.mxu0 %v7019_v10  ;;  %8359 = vmatpush3.bf16.msra.mxu1 %v6757_v49  ;;  %v6844_v10 = vld [vmem:[#allocation3 + $0x328] sm:$0xff]  ;;  %v6823_v49 = vld [vmem:[#allocation3 + $0x280] sm:$0xff] }
0x2252   :  { %7291 = vmatprep.subr.bf16.mxu0 %v7023_v61  ;;  %8360 = vmatprep.subr.bf16.mxu1 %v6784_v11  ;;  %v6871_v61 = vld [vmem:[#allocation3 + $0x400] sm:$0xff] }
0x2253   :  { %v6615_v6 = vpop.f32.mrb[100].mxu0  ;;  %v8335_v1 = vpop.f32.mrb[128].mxu1  ;;  %v6799_v11 = vld [vmem:[#allocation3 + $0x1c0] sm:$0xff] }
0x2254   :  { %v6616_v35 = vadd.f32 %v6615_v6, %v6569_v50  ;;  %v6617_v8 = vpop.f32.mrb[101].mxu0  ;;  %v8336_v15 = vpop.f32.mrb[129].mxu1  ;;  %v6826_v50 = vld [vmem:[#allocation3 + $0x298] sm:$0xff]  ;;  %v6805_v6 = vld [vmem:[#allocation3 + $0x1f0] sm:$0xff] }
0x2255   :  { %v6618_v28 = vadd.f32 %v6617_v8, %v6573_v54  ;;  %v6619_v31 = vpop.f32.mrb[102].mxu0  ;;  %7292 = vmatpush1.bf16.msra.mxu0 %v7022_v38  ;;  %8361 = vmatpush3.bf16.msra.mxu1 %v6760_v46  ;;  %v8337_v9 = vadd.f32 %v8336_v15, %v8335_v1  ;;  %v8338_v60 = vpop.f32.mrb[130].mxu1  ;;  %v6874_v54 = vld [vmem:[#allocation3 + $0x418] sm:$0xff]  ;;  %v6829_v38 = vld [vmem:[#allocation3 + $0x2b0] sm:$0xff]  ;;  %v6880_v1 = vld [vmem:[#allocation3 + $0x448] sm:$0xff] }
0x2256   :  { %v10412_v40 = vadd.f32 %v10399_v27, %v6616_v35  ;;  %v6620_v20 = vpop.f32.mrb[103].mxu0  ;;  %7293 = vmatprep.subr.bf16.mxu0 %v7026_v62  ;;  %8362 = vmatprep.subr.bf16.mxu1 %v6787_v63  ;;  %v8339_v26 = vpop.f32.mrb[131].mxu1  ;;  %v7028_v27 = vld [vmem:[#allocation3 + $0x8e8] sm:$0xff]  ;;  %v6877_v46 = vld [vmem:[#allocation3 + $0x430] sm:$0xff]  ;;  %v6835_v15 = vld [vmem:[#allocation3 + $0x2e0] sm:$0xff] }
0x2257   :  { %v10415_v24 = vadd.f32 %v10401_v51, %v6618_v28  ;;  %v10417_v32 = vadd.f32 %v8337_v9, %v6577_v21  ;;  %v6793_v51 = vld [vmem:[#allocation3 + $0x190] sm:$0xff]  ;;  %v6832_v63 = vld [vmem:[#allocation3 + $0x2c8] sm:$0xff]  ;;  %v6883_v9 = vld [vmem:[#allocation3 + $0x460] sm:$0xff] }
0x2258   :  { %v6853_v62 = vld [vmem:[#allocation3 + $0x370] sm:$0xff]  ;;  %v6808_v21 = vld [vmem:[#allocation3 + $0x208] sm:$0xff]  ;;  %v6838_v26 = vld [vmem:[#allocation3 + $0x2f8] sm:$0xff] }
0x2259   :  { %7294 = vmatpush1.bf16.msra.mxu0 %v7025_v44  ;;  %8363 = vmatpush3.bf16.msra.mxu1 %v6763_v23  ;;  %v6856_v8 = vld [vmem:[#allocation3 + $0x388] sm:$0xff]  ;;  %v6811_v44 = vld [vmem:[#allocation3 + $0x220] sm:$0xff] }
0x225a   :  { %7295 = vmatprep.subr.bf16.mxu0 %v7029_v25  ;;  %8364 = vmatprep.subr.bf16.mxu1 %v6790_v29  ;;  %v6859_v23 = vld [vmem:[#allocation3 + $0x3a0] sm:$0xff]  ;;  %v6886_v25 = vld [vmem:[#allocation3 + $0x478] sm:$0xff] }
0x225b   :  { %v6814_v29 = vld [vmem:[#allocation3 + $0x238] sm:$0xff] }
0x225d   :  { %7296 = vmatpush1.bf16.msra.mxu0 %v7028_v27  ;;  %8365 = vmatpush3.bf16.msra.mxu1 %v6766_v36  ;;  %v6961_v27 = vld [vmem:[#allocation3 + $0x6d0] sm:$0xff] }
0x225e   :  { %8372 = vmatprep.subr.bf16.mxu0 %v6817_v13  ;;  %8394 = vmatprep.subr.bf16.mxu1 %v6865_v41  ;;  %v6889_v36 = vld [vmem:[#allocation3 + $0x490] sm:$0xff]  ;;  %v6916_v41 = vld [vmem:[#allocation3 + $0x568] sm:$0xff] }
0x225f   :  { %v6937_v13 = vld [vmem:[#allocation3 + $0x610] sm:$0xff] }
0x2260   :  { %7298 = vmatmul.mubr.bf16.vlgmr.msra.gmra.mrb[116].mxu0 %v10420_v47  ;;  %7339 = vmatmul.mubr.bf16.vlgmr.msra.gmra.mrb[144].mxu1 %v10349_v2  ;;  %v6847_v2 = vld [vmem:[#allocation3 + $0x340] sm:$0xff] }
0x2261   :  { %8373 = vmatpush3.bf16.msra.mxu0 %v6793_v51  ;;  %7378 = vmatprep.mubr.bf16.mxu0 %v10334_v56  ;;  %v6802_v56 = vld [vmem:[#allocation3 + $0x1d8] sm:$0xff]  ;;  %v6964_v51 = vld [vmem:[#allocation3 + $0x6e8] sm:$0xff] }
0x2262   :  { %8395 = vmatpush3.bf16.msra.mxu1 %v6841_v45  ;;  %7418 = vmatprep.mubr.bf16.mxu1 %v10351_v58  ;;  %v6850_v58 = vld [vmem:[#allocation3 + $0x358] sm:$0xff]  ;;  %v6892_v45 = vld [vmem:[#allocation3 + $0x4a8] sm:$0xff] }
0x2263   :  { %8374 = vmatprep.subr.bf16.mxu0 %v6820_v42  ;;  %8396 = vmatprep.subr.bf16.mxu1 %v6868_v7  ;;  %v6940_v42 = vld [vmem:[#allocation3 + $0x628] sm:$0xff]  ;;  %v6919_v7 = vld [vmem:[#allocation3 + $0x580] sm:$0xff] }
0x2265   :  { %8375 = vmatpush3.bf16.msra.mxu0 %v6796_v48  ;;  %v6967_v48 = vld [vmem:[#allocation3 + $0x700] sm:$0xff] }
0x2266   :  { %8397 = vmatpush3.bf16.msra.mxu1 %v6844_v10  ;;  %8376 = vmatprep.subr.bf16.mxu0 %v6823_v49  ;;  %v6943_v10 = vld [vmem:[#allocation3 + $0x640] sm:$0xff]  ;;  %v6970_v49 = vld [vmem:[#allocation3 + $0x718] sm:$0xff] }
0x2267   :  { %8398 = vmatprep.subr.bf16.mxu1 %v6871_v61  ;;  %v6946_v61 = vld [vmem:[#allocation3 + $0x658] sm:$0xff] }
0x2269   :  { %8377 = vmatpush3.bf16.msra.mxu0 %v6799_v11  ;;  %v6973_v11 = vld [vmem:[#allocation3 + $0x730] sm:$0xff] }
0x226a   :  { %8399 = vmatpush3.bf16.msra.mxu1 %v6847_v2  ;;  %8378 = vmatprep.subr.bf16.mxu0 %v6826_v50  ;;  %v6901_v2 = vld [vmem:[#allocation3 + $0x4f0] sm:$0xff] }
0x226b   :  { %8400 = vmatprep.subr.bf16.mxu1 %v6874_v54  ;;  %v6949_v50 = vld [vmem:[#allocation3 + $0x670] sm:$0xff]  ;;  %v6928_v54 = vld [vmem:[#allocation3 + $0x5c8] sm:$0xff] }
0x226d   :  { %8379 = vmatpush3.bf16.msra.mxu0 %v6802_v56  ;;  %v6976_v56 = vld [vmem:[#allocation3 + $0x748] sm:$0xff] }
0x226e   :  { %8401 = vmatpush3.bf16.msra.mxu1 %v6850_v58  ;;  %8380 = vmatprep.subr.bf16.mxu0 %v6829_v38  ;;  %v6904_v58 = vld [vmem:[#allocation3 + $0x508] sm:$0xff] }
0x226f   :  { %8402 = vmatprep.subr.bf16.mxu1 %v6877_v46  ;;  %v6952_v46 = vld [vmem:[#allocation3 + $0x688] sm:$0xff] }
0x2271   :  { %8381 = vmatpush3.bf16.msra.mxu0 %v6805_v6  ;;  %v6931_v6 = vld [vmem:[#allocation3 + $0x5e0] sm:$0xff] }
0x2272   :  { %8403 = vmatpush3.bf16.msra.mxu1 %v6853_v62  ;;  %8382 = vmatprep.subr.bf16.mxu0 %v6832_v63  ;;  %v6979_v63 = vld [vmem:[#allocation3 + $0x760] sm:$0xff] }
0x2273   :  { %v6737_v35 = vpop.f32.mrb[104].mxu0  ;;  %8404 = vmatprep.subr.bf16.mxu1 %v6880_v1 }
0x2274   :  { %v10427_v28 = vadd.f32 %v6737_v35, %v10417_v32  ;;  %v8849_v31 = vpop.f32.mrb[105].mxu0  ;;  %v6913_v32 = vld [vmem:[#allocation3 + $0x550] sm:$0xff]  ;;  %v6907_v35 = vld [vmem:[#allocation3 + $0x520] sm:$0xff] }
0x2275   :  { %v6740_v60 = vpop.f32.mrb[106].mxu0  ;;  %8383 = vmatpush3.bf16.msra.mxu0 %v6808_v21  ;;  %v6982_v31 = vld [vmem:[#allocation3 + $0x778] sm:$0xff] }
0x2276   :  { %8405 = vmatpush3.bf16.msra.mxu1 %v6856_v8  ;;  %v8850_v20 = vpop.f32.mrb[107].mxu0  ;;  %8384 = vmatprep.subr.bf16.mxu0 %v6835_v15  ;;  %v6955_v8 = vld [vmem:[#allocation3 + $0x6a0] sm:$0xff]  ;;  %v6934_v15 = vld [vmem:[#allocation3 + $0x5f8] sm:$0xff] }
0x2277   :  { %8406 = vmatprep.subr.bf16.mxu1 %v6883_v9  ;;  %v6910_v9 = vld [vmem:[#allocation3 + $0x538] sm:$0xff]  ;;  %v7009_v20 = vld [vmem:[#allocation3 + $0x850] sm:$0xff] }
0x2278   :  { %v6958_v60 = vld [vmem:[#allocation3 + $0x6b8] sm:$0xff] }
0x2279   :  { %8385 = vmatpush3.bf16.msra.mxu0 %v6811_v44  ;;  %v7564_v44 = vld [vmem:[#allocation2 + $0x478] sm:$0xff] }
0x227a   :  { %8407 = vmatpush3.bf16.msra.mxu1 %v6859_v23  ;;  %8386 = vmatprep.subr.bf16.mxu0 %v6838_v26  ;;  %v6985_v23 = vld [vmem:[#allocation3 + $0x790] sm:$0xff]  ;;  %v7012_v26 = vld [vmem:[#allocation3 + $0x868] sm:$0xff] }
0x227b   :  { %8408 = vmatprep.subr.bf16.mxu1 %v6886_v25  ;;  %v7556_v25 = vld [vmem:[#allocation2 + $0x78] sm:$0xff] }
0x227d   :  { %8387 = vmatpush3.bf16.msra.mxu0 %v6814_v29  ;;  %v7565_v29 = vld [vmem:[#allocation2 + $0x4f8] sm:$0xff] }
0x227e   :  { %8409 = vmatpush3.bf16.msra.mxu1 %v6862_v34  ;;  %8416 = vmatprep.subr.bf16.mxu0 %v6913_v32  ;;  %v6988_v34 = vld [vmem:[#allocation3 + $0x7a8] sm:$0xff]  ;;  %v7015_v32 = vld [vmem:[#allocation3 + $0x880] sm:$0xff] }
0x227f   :  { %8438 = vmatprep.subr.bf16.mxu1 %v6961_v27  ;;  %v7557_v27 = vld [vmem:[#allocation2 + $0xf8] sm:$0xff] }
0x2280   :  { %7379 = vmatmul.mubr.bf16.vlgmr.msra.gmra.mrb[120].mxu0 %v10361_v3  ;;  %v6895_v3 = vld [vmem:[#allocation3 + $0x4c0] sm:$0xff] }
0x2281   :  { %7419 = vmatmul.mubr.bf16.vlgmr.msra.gmra.mrb[148].mxu1 %v10370_v0  ;;  %8417 = vmatpush3.bf16.msra.mxu0 %v6889_v36  ;;  %v6922_v0 = vld [vmem:[#allocation3 + $0x598] sm:$0xff] }
0x2282   :  { %7458 = vmatprep.mubr.bf16.mxu0 %v10363_v52  ;;  %8439 = vmatpush3.bf16.msra.mxu1 %v6937_v13  ;;  %v6898_v52 = vld [vmem:[#allocation3 + $0x4d8] sm:$0xff]  ;;  %v6991_v13 = vld [vmem:[#allocation3 + $0x7c0] sm:$0xff] }
0x2283   :  { %7498 = vmatprep.mubr.bf16.mxu1 %v10388_v4  ;;  %8418 = vmatprep.subr.bf16.mxu0 %v6916_v41  ;;  %v6925_v4 = vld [vmem:[#allocation3 + $0x5b0] sm:$0xff]  ;;  %v7566_v36 = vld [vmem:[#allocation2 + $0x578] sm:$0xff] }
0x2284   :  { %8440 = vmatprep.subr.bf16.mxu1 %v6964_v51  ;;  %v7018_v41 = vld [vmem:[#allocation3 + $0x898] sm:$0xff] }
0x2285   :  { %8419 = vmatpush3.bf16.msra.mxu0 %v6892_v45  ;;  %v6994_v51 = vld [vmem:[#allocation3 + $0x7d8] sm:$0xff]  ;;  %v10440_v45 = vld [vmem:[#allocation5 + $0x2d] sm:$0x7] }
0x2286   :  { %8441 = vmatpush3.bf16.msra.mxu1 %v6940_v42  ;;  %8420 = vmatprep.subr.bf16.mxu0 %v6919_v7  ;;  %v7559_v42 = vld [vmem:[#allocation2 + $0x1f8] sm:$0xff] }
0x2287   :  { %8442 = vmatprep.subr.bf16.mxu1 %v6967_v48  ;;  %v7568_v7 = vld [vmem:[#allocation2 + $0x678] sm:$0xff]  ;;  %v7048_v48 = vrot.slane %v10440_v45, %v9800_v14 }
0x2289   :  { %8421 = vmatpush3.bf16.msra.mxu0 %v6895_v3  ;;  %v6997_v3 = vld [vmem:[#allocation3 + $0x7f0] sm:$0xff] }
0x228a   :  { %8443 = vmatpush3.bf16.msra.mxu1 %v6943_v10  ;;  %8422 = vmatprep.subr.bf16.mxu0 %v6922_v0  ;;  %v7052_v10 = vrot.slane %v10440_v45, %v9803_v16  ;;  %v7024_v0 = vld [vmem:[#allocation3 + $0x8c8] sm:$0xff]  ;;  %v7569_v16 = vld [vmem:[#allocation2 + $0x6f8] sm:$0xff] }
0x228b   :  { %8444 = vmatprep.subr.bf16.mxu1 %v6970_v49  ;;  %v7560_v49 = vld [vmem:[#allocation2 + $0x278] sm:$0xff] }
0x228d   :  { %8423 = vmatpush3.bf16.msra.mxu0 %v6898_v52 }
0x228e   :  { %8445 = vmatpush3.bf16.msra.mxu1 %v6946_v61  ;;  %8424 = vmatprep.subr.bf16.mxu0 %v6925_v4  ;;  %v7000_v61 = vld [vmem:[#allocation3 + $0x808] sm:$0xff] }
0x228f   :  { %8446 = vmatprep.subr.bf16.mxu1 %v6973_v11 }
0x2291   :  { %8425 = vmatpush3.bf16.msra.mxu0 %v6901_v2  ;;  %v7027_v2 = vld [vmem:[#allocation3 + $0x8e0] sm:$0xff] }
0x2292   :  { %8447 = vmatpush3.bf16.msra.mxu1 %v6949_v50  ;;  %8426 = vmatprep.subr.bf16.mxu0 %v6928_v54 }
0x2293   :  { %v10433_v38 = vpop.f32.mrb[132].mxu1  ;;  %8448 = vmatprep.subr.bf16.mxu1 %v6976_v56 }
0x2294   :  { %v10435_v62 = vpop.f32.mrb[133].mxu1  ;;  %v7095_v52 = vadd.f32 %v10433_v38, %v7048_v48  ;;  %v7570_v38 = vld [vmem:[#allocation2 + $0x778] sm:$0xff] }
0x2295   :  { %v7098_v1 = vpop.f32.mrb[134].mxu1  ;;  %8427 = vmatpush3.bf16.msra.mxu0 %v6904_v58  ;;  %v7097_v4 = vadd.f32 %v10435_v62, %v7052_v10  ;;  %v7006_v62 = vld [vmem:[#allocation3 + $0x838] sm:$0xff] }
0x2296   :  { %8449 = vmatpush3.bf16.msra.mxu1 %v6952_v46  ;;  %v7099_v21 = vpop.f32.mrb[135].mxu1  ;;  %8428 = vmatprep.subr.bf16.mxu0 %v6931_v6  ;;  %v7003_v46 = vld [vmem:[#allocation3 + $0x820] sm:$0xff]  ;;  %v7561_v6 = vld [vmem:[#allocation2 + $0x2f8] sm:$0xff] }
0x2297   :  { %8450 = vmatprep.subr.bf16.mxu1 %v6979_v63  ;;  %v7030_v63 = vld [vmem:[#allocation3 + $0x8f8] sm:$0xff] }
0x2298   :  { %v7562_v1 = vld [vmem:[#allocation2 + $0x378] sm:$0xff] }
0x2299   :  { %8429 = vmatpush3.bf16.msra.mxu0 %v6907_v35  ;;  %v7571_v21 = vld [vmem:[#allocation2 + $0x7f8] sm:$0xff] }
0x229a   :  { %8451 = vmatpush3.bf16.msra.mxu1 %v6955_v8  ;;  %8430 = vmatprep.subr.bf16.mxu0 %v6934_v15  ;;  %v7563_v35 = vld [vmem:[#allocation2 + $0x3f8] sm:$0xff] }
0x229b   :  { %8452 = vmatprep.subr.bf16.mxu1 %v6982_v31  ;;  %v7578_v48 = vld [vmem:[#allocation2 + $0xb78] sm:$0xff] }
0x229d   :  { %8431 = vmatpush3.bf16.msra.mxu0 %v6910_v9 }
0x229e   :  { %8453 = vmatpush3.bf16.msra.mxu1 %v6958_v60  ;;  %8460 = vmatprep.subr.bf16.mxu0 %v7009_v20 }
0x229f   :  { %8482 = vmatprep.subr.bf16.mxu1 %v7564_v44 }
0x22a0   :  { %7459 = vmatmul.mubr.bf16.vlgmr.msra.gmra.mrb[124].mxu0 %v10391_v53  ;;  %v7558_v53 = vld [vmem:[#allocation2 + $0x178] sm:$0xff] }
0x22a1   :  { %7499 = vmatmul.mubr.bf16.vlgmr.msra.gmra.mrb[152].mxu1 %v10404_v19  ;;  %8461 = vmatpush3.bf16.msra.mxu0 %v6985_v23  ;;  %v7567_v19 = vld [vmem:[#allocation2 + $0x5f8] sm:$0xff] }
0x22a2   :  { %7538 = vmatprep.mubr.bf16.mxu0 %v10393_v5  ;;  %8462 = vmatprep.subr.bf16.mxu0 %v7012_v26  ;;  %v7021_v5 = vld [vmem:[#allocation3 + $0x8b0] sm:$0xff] }
0x22a3   :  { %8483 = vmatpush3.bf16.msra.mxu1 %v7556_v25 }
0x22a4   :  { %8484 = vmatprep.subr.bf16.mxu1 %v7565_v29 }
0x22a5   :  { %8463 = vmatpush3.bf16.msra.mxu0 %v6988_v34 }
0x22a6   :  { %8464 = vmatprep.subr.bf16.mxu0 %v7015_v32  ;;  %v7572_v32 = vld [vmem:[#allocation2 + $0x878] sm:$0xff] }
0x22a7   :  { %8485 = vmatpush3.bf16.msra.mxu1 %v7557_v27  ;;  %v7574_v27 = vld [vmem:[#allocation2 + $0x978] sm:$0xff] }
0x22a8   :  { %8486 = vmatprep.subr.bf16.mxu1 %v7566_v36  ;;  %v7575_v36 = vld [vmem:[#allocation2 + $0x9f8] sm:$0xff] }
0x22a9   :  { %8465 = vmatpush3.bf16.msra.mxu0 %v6991_v13  ;;  %v7576_v13 = vld [vmem:[#allocation2 + $0xa78] sm:$0xff] }
0x22aa   :  { %8466 = vmatprep.subr.bf16.mxu0 %v7018_v41 }
0x22ab   :  { %8487 = vmatpush3.bf16.msra.mxu1 %v7558_v53 }
0x22ac   :  { %8488 = vmatprep.subr.bf16.mxu1 %v7567_v19 }
0x22ad   :  { %8467 = vmatpush3.bf16.msra.mxu0 %v6994_v51 }
0x22ae   :  { %8468 = vmatprep.subr.bf16.mxu0 %v7021_v5 }
0x22af   :  { %8489 = vmatpush3.bf16.msra.mxu1 %v7559_v42 }
0x22b0   :  { %8490 = vmatprep.subr.bf16.mxu1 %v7568_v7  ;;  %v7577_v7 = vld [vmem:[#allocation2 + $0xaf8] sm:$0xff] }
0x22b1   :  { %8469 = vmatpush3.bf16.msra.mxu0 %v6997_v3  ;;  %v7579_v3 = vld [vmem:[#allocation2 + $0xbf8] sm:$0xff] }
0x22b2   :  { %8470 = vmatprep.subr.bf16.mxu0 %v7024_v0 }
0x22b3   :  { %v7135_v11 = vpop.f32.mrb[108].mxu0  ;;  %8491 = vmatpush3.bf16.msra.mxu1 %v7560_v49 }
0x22b4   :  { %v7136_v14 = vadd.f32 %v7135_v11, %v7095_v52  ;;  %v7137_v50 = vpop.f32.mrb[109].mxu0  ;;  %8492 = vmatprep.subr.bf16.mxu1 %v7569_v16 }
0x22b5   :  { %v7138_v54 = vadd.f32 %v7137_v50, %v7097_v4  ;;  %v7139_v56 = vpop.f32.mrb[110].mxu0  ;;  %8471 = vmatpush3.bf16.msra.mxu0 %v7000_v61  ;;  %v7546_v50 = vadd.f32 %v10241_v12, %v9968_v22  ;;  %v7056_v22 = vrot.slane %v10440_v45, %v9806_v17 }
0x22b6   :  { %v7140_v58 = vpop.f32.mrb[111].mxu0  ;;  %8472 = vmatprep.subr.bf16.mxu0 %v7027_v2 }
0x22b7   :  { %8493 = vmatpush3.bf16.msra.mxu1 %v7561_v6 }
0x22b8   :  { %8494 = vmatprep.subr.bf16.mxu1 %v7570_v38 }
0x22b9   :  { %8473 = vmatpush3.bf16.msra.mxu0 %v7003_v46 }
0x22ba   :  { %8474 = vmatprep.subr.bf16.mxu0 %v7030_v63 }
0x22bb   :  { %8495 = vmatpush3.bf16.msra.mxu1 %v7562_v1 }
0x22bc   :  { %8496 = vmatprep.subr.bf16.mxu1 %v7571_v21 }
0x22bd   :  { %8475 = vmatpush3.bf16.msra.mxu0 %v7006_v62 }
0x22be   :  { %8851 = vmatprep.subr.bf16.mxu0 %v9621_v18 }
0x22bf   :  { %8497 = vmatpush3.bf16.msra.mxu1 %v7563_v35 }
0x22c0   :  { %7539 = vmatmul.mubr.bf16.vlgmr.msra.gmra.mrb[128].mxu0 %v10420_v47  ;;  %v7573_v47 = vld [vmem:[#allocation2 + $0x8f8] sm:$0xff] }
0x22c1   :  { %8867 = vmatprep.mubr.msk.bf16.mxu0 %vm9622_vm1, %v9621_v18  ;;  %8852 = vmatpush3.bf16.msra.mxu0 %v7572_v32 }
0x22c2   :  { %8853 = vmatprep.subr.bf16.mxu0 %v9621_v18 }
0x22c5   :  { %8854 = vmatpush3.bf16.msra.mxu0 %v7573_v47 }
0x22c6   :  { %8855 = vmatprep.subr.bf16.mxu0 %v9621_v18 }
0x22c9   :  { %8856 = vmatpush3.bf16.msra.mxu0 %v7574_v27 }
0x22ca   :  { %8857 = vmatprep.subr.bf16.mxu0 %v9621_v18 }
0x22cd   :  { %8858 = vmatpush3.bf16.msra.mxu0 %v7575_v36 }
0x22ce   :  { %8859 = vmatprep.subr.bf16.mxu0 %v9621_v18 }
0x22d1   :  { %8860 = vmatpush3.bf16.msra.mxu0 %v7576_v13 }
0x22d2   :  { %8861 = vmatprep.subr.bf16.mxu0 %v9621_v18 }
0x22d3   :  { %v7176_v8 = vpop.f32.mrb[136].mxu1 }
0x22d4   :  { %v7177_v15 = vadd.f32 %v7176_v8, %v7136_v14  ;;  %v7178_v31 = vpop.f32.mrb[137].mxu1 }
0x22d5   :  { %v7179_v9 = vadd.f32 %v7178_v31, %v7138_v54  ;;  %v7180_v60 = vpop.f32.mrb[138].mxu1  ;;  %8862 = vmatpush3.bf16.msra.mxu0 %v7577_v7 }
0x22d6   :  { %v7181_v20 = vpop.f32.mrb[139].mxu1  ;;  %8863 = vmatprep.subr.bf16.mxu0 %v9621_v18 }
0x22d9   :  { %8864 = vmatpush3.bf16.msra.mxu0 %v7578_v48 }
0x22da   :  { %8865 = vmatprep.subr.bf16.mxu0 %v9621_v18 }
0x22dd   :  { %8866 = vmatpush3.bf16.msra.mxu0 %v7579_v3 }
0x22f3   :  { %v7217_v44 = vpop.f32.mrb[112].mxu0 }
0x22f4   :  { %v7218_v23 = vadd.f32 %v7217_v44, %v7177_v15  ;;  %v7219_v26 = vpop.f32.mrb[113].mxu0 }
0x22f5   :  { %v7220_v25 = vadd.f32 %v7219_v26, %v7179_v9  ;;  %v7221_v29 = vpop.f32.mrb[114].mxu0 }
0x22f6   :  { %v7222_v34 = vpop.f32.mrb[115].mxu0 }
0x2313   :  { %v7258_v41 = vpop.f32.mrb[140].mxu1 }
0x2314   :  { %v7259_v53 = vadd.f32 %v7258_v41, %v7218_v23  ;;  %v7260_v19 = vpop.f32.mrb[141].mxu1 }
0x2315   :  { %v7261_v51 = vadd.f32 %v7260_v19, %v7220_v25  ;;  %v7262_v5 = vpop.f32.mrb[142].mxu1 }
0x2316   :  { %v7263_v42 = vpop.f32.mrb[143].mxu1 }
0x2333   :  { %v7299_v10 = vpop.f32.mrb[116].mxu0  ;;  %v8366_v0 = vpop.f32.mrb[144].mxu1 }
0x2334   :  { %v7300_v49 = vadd.f32 %v7299_v10, %v7259_v53  ;;  %v7301_v52 = vpop.f32.mrb[117].mxu0  ;;  %v8367_v61 = vpop.f32.mrb[145].mxu1 }
0x2335   :  { %v7302_v4 = vadd.f32 %v7301_v52, %v7261_v51  ;;  %v8368_v11 = vadd.f32 %v8367_v61, %v8366_v0  ;;  %v7303_v2 = vpop.f32.mrb[118].mxu0  ;;  %v8369_v14 = vpop.f32.mrb[146].mxu1  ;;  %v8087_v0 = vld [vmem:[#allocation5 + $0x30] ss:$0 sm:$0xff] }
0x2336   :  { %v7547_v54 = vadd.f32 %v7300_v49, %v10412_v40  ;;  %v7304_v56 = vpop.f32.mrb[119].mxu0  ;;  %v8370_v16 = vpop.f32.mrb[147].mxu1 }
0x2337   :  { %v7548_v18 = vadd.f32 %v7302_v4, %v10415_v24  ;;  %v7341_v24 = vadd.f32 %v8368_v11, %v7056_v22 }
0x2338   :  { %v7550_v58 = vadd.f32 %v7547_v54, %v3832_v33 }
0x2339   :  { %v7551_v46 = vadd.f32 %v7548_v18, %v3833_v55 }
0x233a   :  { %v7553_v6 = vadd.f32 %v7550_v58, %v7546_v50 }
0x233b   :  { %v7554_v63 = vadd.f32 %v7551_v46, %v10098_v37 }
0x233c   :  { %v7580_v62 = vpack.c.bf16 %v7553_v6, %v7553_v6 }
0x233d   :  { %v7581_v38 = vpack.c.bf16 %v7554_v63, %v7554_v63 }
0x233f   :  { %7622 = vmatprep.mubr.bf16.mxu1 %v7581_v38 }
0x2340   :  { %7623 = vmatmul.mubr.bf16.vlgmr.msra.gmra.mrb[156].mxu1 %v7580_v62 }
0x2353   :  { %v8388_v12 = vpop.f32.mrb[120].mxu0 }
0x2354   :  { %v8410_v40 = vpop.f32.mrb[148].mxu1  ;;  %v8389_v1 = vpop.f32.mrb[121].mxu0 }
0x2355   :  { %v8390_v21 = vadd.f32 %v8389_v1, %v8388_v12  ;;  %v8411_v43 = vpop.f32.mrb[149].mxu1  ;;  %v8391_v33 = vpop.f32.mrb[122].mxu0 }
0x2356   :  { %v8412_v35 = vadd.f32 %v8411_v43, %v8410_v40  ;;  %v8413_v30 = vpop.f32.mrb[150].mxu1  ;;  %v8392_v55 = vpop.f32.mrb[123].mxu0 }
0x2357   :  { %v7381_v8 = vadd.f32 %v8390_v21, %v7341_v24  ;;  %v8414_v15 = vpop.f32.mrb[151].mxu1 }
0x2359   :  { %v7421_v37 = vadd.f32 %v8412_v35, %v7381_v8 }
0x2373   :  { %v8432_v31 = vpop.f32.mrb[124].mxu0 }
0x2374   :  { %v8454_v9 = vpop.f32.mrb[152].mxu1  ;;  %v8433_v60 = vpop.f32.mrb[125].mxu0 }
0x2375   :  { %v8434_v20 = vadd.f32 %v8433_v60, %v8432_v31  ;;  %v8455_v44 = vpop.f32.mrb[153].mxu1  ;;  %v8435_v23 = vpop.f32.mrb[126].mxu0 }
0x2376   :  { %v8456_v17 = vadd.f32 %v8455_v44, %v8454_v9  ;;  %v8457_v45 = vpop.f32.mrb[154].mxu1  ;;  %v8436_v26 = vpop.f32.mrb[127].mxu0 }
0x2377   :  { %v7461_v25 = vadd.f32 %v8434_v20, %v7421_v37  ;;  %v8458_v29 = vpop.f32.mrb[155].mxu1 }
0x2379   :  { %v7501_v34 = vadd.f32 %v8456_v17, %v7461_v25 }
0x2393   :  { %v8476_v32 = vpop.f32.mrb[128].mxu0 }
0x2394   :  { %v8477_v47 = vpop.f32.mrb[129].mxu0 }
0x2395   :  { %v8478_v27 = vadd.f32 %v8477_v47, %v8476_v32  ;;  %v8479_v36 = vpop.f32.mrb[130].mxu0 }
0x2396   :  { %v8480_v13 = vpop.f32.mrb[131].mxu0 }
0x2397   :  { %v7541_v41 = vadd.f32 %v8478_v27, %v7501_v34 }
0x2399   :  { %v7549_v53 = vadd.f32 %v7541_v41, %v10427_v28 }
0x239b   :  { %v7552_v19 = vadd.f32 %v7549_v53, %v3834_v59 }
0x239d   :  { %v7555_v51 = vadd.f32 %v7552_v19, %v10101_v39 }
0x239f   :  { %v7582_v5 = vpack.c.bf16 %v7555_v51, %v7555_v51 }
0x23a1   :  { %8868 = vmatmul.mubr.bf16.vlgmr.msra.gmra.mrb[132].mxu0 %v7582_v5 }
0x2413   :  { %v8498_v42 = vpop.f32.mrb[156].mxu1 }
0x2414   :  { %v8499_v7 = vpop.f32.mrb[157].mxu1 }
0x2415   :  { %v8500_v48 = vadd.f32 %v8499_v7, %v8498_v42  ;;  %v8501_v3 = vpop.f32.mrb[158].mxu1 }
0x2416   :  { %v8502_v10 = vpop.f32.mrb[159].mxu1 }
0x2417   :  { %v7625_v49 = vadd.f32 %v8500_v48, %v8087_v0 }
0x2474   :  { %v7664_v52 = vpop.f32.mrb[132].mxu0 }
0x2475   :  { %v7665_v61 = vadd.f32 %v7664_v52, %v7625_v49  ;;  %v8869_v28 = vpop.f32.mrb[133].mxu0 }
0x2476   :  { %v7667_v57 = vpop.f32.mrb[134].mxu0 }
0x2477   :  { %v8870_v59 = vpop.f32.mrb[135].mxu0  ;;  %7671 = vst.msk [vmem:[#allocation14] sm:$0xff] %vm7670_vm6, %v7665_v61 }
0x2478   :  { %9570 = shalt.err (!%p9567_p2)
}
0x2479   :  { %s9571_s29 = scalar_lea.hbm %s10494_s8, 128 }
0x247a   :  { %p9572_p3 = scmp.ne.s32.totalorder %s10494_s8, %s9571_s29  ;;  %p9575_p4 = scmp.lt.u32.totalorder %s9571_s29, %s10494_s8 }
0x247c   :  { %p9577_p5 = pnand %p9575_p4, %p9572_p3 }
0x247e   :  { %9580 = shalt.err (!%p9577_p5)
}
0x247f   :  { %7681 = dma.vmem_to_hbm [thread:$0]  %s7679_s24, 128, %s10494_s8, [#allocation7]  }
0x2480   :  { %9591 = dma.done.wait [#allocation7], 128  }
0x2481   :  { %9592 = vsyncadd [#allocation7], 4294967168 }
0x2482   :  { %7685 = vsyncpa [#allocation6], 1 }
0x2483   :  { %7686 = vsyncpa [#allocation9], 1 }
0x2484   :  { %7687 = vsyncpa [#allocation12], 1 }
0x2485   :  { %7688 = vsyncpa [#allocation7], 1 }
0x2486   :  { %7689 = vsyncmov [#allocation4] }
0x2489   :  { %s7690_s10 = vpop.sfrf %7689 }
0x248a   :  { %p8088_p6 = scmp.ne.s32.totalorder %s7690_s10, 0 }
0x248c   :  { %7694 = shalt.err (%p8088_p6)  }
0x248d   :  { %7696 = vsyncmov [#allocation4 + $0x1] }
0x2490   :  { %s7697_s11 = vpop.sfrf %7696 }
0x2491   :  { %p8089_p7 = scmp.ne.s32.totalorder %s7697_s11, 0 }
0x2493   :  { %7701 = shalt.err (%p8089_p7)  }

</bundles_post_ra>
